<compile_context>
chip_gen: v7x
topology: tpu7x:2x2x1
jax: 0.10.0
libtpu: 0.0.40
codegen_flags: <defaults>
</compile_context>

<pallas_src>
import jax
import jax.numpy as jnp
import numpy as np
from jax import lax
from jax.experimental import pallas as pl
from jax.experimental.pallas import tpu as pltpu


# ---------------------------------------------------------------------------
# Fused kernel: one grid step == one image.
# Activation layout inside the kernel: (spatial_rows, channel_lanes).
# ---------------------------------------------------------------------------
def _nature_cnn_kernel(xps_ref, w1_ref, b1_ref, w2_ref, b2_ref,
                       w3_ref, b3_ref, wl_ref, bl_ref, out_ref):
    f32 = jnp.float32
    cdt = w1_ref.dtype                     # MXU operand dtype (f32 or bf16)

    x = xps_ref[0]                         # (15, 15, 64) phase-split input

    # ---- conv1: 8x8 stride 4 -> (14*14, 32).  Phase decomposition: kernel
    # tap (i, j) = (4*ax + rx, 4*ay + ry); the 16 (rx, ry) phases x 4 channels
    # are pre-packed on the lane axis, so only the 2x2 (ax, ay) taps remain.
    acc1 = jnp.zeros((196, 32), f32)
    for ax in range(2):
        for ay in range(2):
            sl = x[ax:ax + 14, ay:ay + 14, :]            # (14, 14, 64)
            sl2 = sl.reshape(196, 64).astype(cdt)
            acc1 = acc1 + jnp.dot(sl2, w1_ref[ax * 2 + ay],
                                  preferred_element_type=f32)
    a1 = jnp.maximum(acc1 + b1_ref[...], 0.0)            # (196, 32)

    # ---- conv2: 4x4 stride 2 -> (6*6, 64).  View rows (u*14+v) as the phase
    # split (pu, ru, pv, rv); each of the 16 taps is a unit-stride slice.
    a1v = a1.reshape(7, 2, 7, 2, 32)                     # (pu, ru, pv, rv, c)
    acc2 = jnp.zeros((36, 64), f32)
    for ax in range(2):
        for rx in range(2):
            for ay in range(2):
                for ry in range(2):
                    t = ((ax * 2 + rx) * 2 + ay) * 2 + ry
                    sl = a1v[ax:ax + 6, rx, ay:ay + 6, ry, :]   # (6, 6, 32)
                    sl2 = sl.reshape(36, 32).astype(cdt)
                    acc2 = acc2 + jnp.dot(sl2, w2_ref[t],
                                          preferred_element_type=f32)
    a2 = jnp.maximum(acc2 + b2_ref[...], 0.0)            # (36, 64)

    # ---- conv3: 3x3 stride 1 -> (4*4, 64).  9 unit-stride taps.
    a2v = a2.reshape(6, 6, 64)
    acc3 = jnp.zeros((16, 64), f32)
    for i in range(3):
        for j in range(3):
            sl = a2v[i:i + 4, j:j + 4, :]                # (4, 4, 64)
            sl2 = sl.reshape(16, 64).astype(cdt)
            acc3 = acc3 + jnp.dot(sl2, w3_ref[i * 3 + j],
                                  preferred_element_type=f32)
    a3 = jnp.maximum(acc3 + b3_ref[...], 0.0)            # (16, 64)

    # ---- Flatten (torch (c, h, w) order handled by weight prep) + Linear.
    # K = 1024 contracted as 16 spatial positions x 64 channels.
    accl = jnp.zeros((1, 32), f32)
    for m in range(16):
        accl = accl + jnp.dot(a3[m:m + 1, :].astype(cdt), wl_ref[m],
                              preferred_element_type=f32)
    out_ref[0] = jnp.maximum(accl + bl_ref[...], 0.0)    # (1, 32)


# ---------------------------------------------------------------------------
# Wrapper-side layout prep (pure relabeling of the input / weights, no
# duplicated patch materialization).
# ---------------------------------------------------------------------------
def _prep_input(x):
    """(N, 4, 60, 60) -> (N, 15, 15, 64) with lane = rx*16 + ry*4 + c."""
    n = x.shape[0]
    return (x.reshape(n, 4, 15, 4, 15, 4)          # [n, c, px, rx, py, ry]
             .transpose(0, 2, 4, 3, 5, 1)          # [n, px, py, rx, ry, c]
             .reshape(n, 15, 15, 64)
             .astype(jnp.float32))


def _prep_params(params, compute_dtype):
    w1, b1 = params["w1"], params["b1"]            # (32,4,8,8), (32,)
    w2, b2 = params["w2"], params["b2"]            # (64,32,4,4), (64,)
    w3, b3 = params["w3"], params["b3"]            # (64,64,3,3), (64,)
    wl, bl = params["wl"], params["bl"]            # (32,1024), (32,)

    # conv1 tap blocks: [ax*2+ay, rx*16+ry*4+c, o]
    w1p = (w1.reshape(32, 4, 2, 4, 2, 4)           # [o, c, ax, rx, ay, ry]
             .transpose(2, 4, 3, 5, 1, 0)          # [ax, ay, rx, ry, c, o]
             .reshape(4, 64, 32).astype(compute_dtype))
    # conv2 taps: [ax*8+rx*4+ay*2+ry, c, o]
    w2p = (w2.reshape(64, 32, 2, 2, 2, 2)          # [o, c, ax, rx, ay, ry]
             .transpose(2, 3, 4, 5, 1, 0)          # [ax, rx, ay, ry, c, o]
             .reshape(16, 32, 64).astype(compute_dtype))
    # conv3 taps: [i*3+j, c, o]
    w3p = w3.transpose(2, 3, 1, 0).reshape(9, 64, 64).astype(compute_dtype)
    # linear: [m = oh*4+ow, c, r]  (torch flat index = c*16 + m)
    wlp = (wl.reshape(32, 64, 16)                  # [r, c, m]
             .transpose(2, 1, 0)                   # [m, c, r]
             .reshape(16, 64, 32).astype(compute_dtype))

    return (w1p, b1.reshape(1, 32).astype(jnp.float32),
            w2p, b2.reshape(1, 64).astype(jnp.float32),
            w3p, b3.reshape(1, 64).astype(jnp.float32),
            wlp, bl.reshape(1, 32).astype(jnp.float32))


def nature_cnn_forward(x, params, compute_dtype=jnp.float32):
    """Fused NatureCNN forward.  x: (N, 4, 60, 60) float32 -> (N, 32)."""
    n = x.shape[0]
    assert x.shape[1:] == (4, 60, 60), x.shape
    xps = _prep_input(x)
    (w1p, b1p, w2p, b2p, w3p, b3p, wlp, blp) = _prep_params(params,
                                                            compute_dtype)

    out = pl.pallas_call(
        _nature_cnn_kernel,
        out_shape=jax.ShapeDtypeStruct((n, 1, 32), jnp.float32),
        grid=(n,),
        in_specs=[
            pl.BlockSpec((1, 15, 15, 64), lambda i: (i, 0, 0, 0)),
            pl.BlockSpec((4, 64, 32), lambda i: (0, 0, 0)),
            pl.BlockSpec((1, 32), lambda i: (0, 0)),
            pl.BlockSpec((16, 32, 64), lambda i: (0, 0, 0)),
            pl.BlockSpec((1, 64), lambda i: (0, 0)),
            pl.BlockSpec((9, 64, 64), lambda i: (0, 0, 0)),
            pl.BlockSpec((1, 64), lambda i: (0, 0)),
            pl.BlockSpec((16, 64, 32), lambda i: (0, 0, 0)),
            pl.BlockSpec((1, 32), lambda i: (0, 0)),
        ],
        out_specs=pl.BlockSpec((1, 1, 32), lambda i: (i, 0, 0)),
        compiler_params=pltpu.CompilerParams(
            dimension_semantics=("parallel",)),
    )(xps, w1p, b1p, w2p, b2p, w3p, b3p, wlp, blp)
    return out.reshape(n, 32)


# ---------------------------------------------------------------------------
# Pure-JAX reference (lax convs) for the correctness check.
# ---------------------------------------------------------------------------
def nature_cnn_reference(x, params):
    def conv(x, w, b, s):
        y = lax.conv_general_dilated(
            x, w, window_strides=(s, s), padding="VALID",
            dimension_numbers=("NCHW", "OIHW", "NCHW"))
        return jnp.maximum(y + b.reshape(1, -1, 1, 1), 0.0)
    x = conv(x, params["w1"], params["b1"], 4)
    x = conv(x, params["w2"], params["b2"], 2)
    x = conv(x, params["w3"], params["b3"], 1)
    x = x.reshape(x.shape[0], -1)
    return jnp.maximum(x @ params["wl"].T + params["bl"], 0.0)


def init_params(key, in_dim, rep_dim):
    ks = jax.random.split(key, 8)
    def w(k, shape, fan_in):
        return jax.random.normal(k, shape, jnp.float32) / np.sqrt(fan_in)
    return {
        "w1": w(ks[0], (32, in_dim, 8, 8), in_dim * 64),
        "b1": 0.01 * jax.random.normal(ks[1], (32,), jnp.float32),
        "w2": w(ks[2], (64, 32, 4, 4), 32 * 16),
        "b2": 0.01 * jax.random.normal(ks[3], (64,), jnp.float32),
        "w3": w(ks[4], (64, 64, 3, 3), 64 * 9),
        "b3": 0.01 * jax.random.normal(ks[5], (64,), jnp.float32),
        "wl": w(ks[6], (rep_dim, 1024), 1024),
        "bl": 0.01 * jax.random.normal(ks[7], (rep_dim,), jnp.float32),
    }


if __name__ == "__main__":
    key = jax.random.PRNGKey(0)
    k_x, k_p = jax.random.split(key)

    in_dim, rep_dim = 4, 32
    batch, spatial = 2, 60   # 60 -> 14 -> 6 -> 4 ; 64*4*4 = 1024 (Linear in)

    x = jax.random.normal(k_x, (batch, in_dim, spatial, spatial), jnp.float32)
    params = init_params(k_p, in_dim, rep_dim)

    ref = jax.block_until_ready(nature_cnn_reference(x, params))

    # f32 MXU operands: bit-for-bit-ish vs. the lax reference (fp assoc only).
    fwd_f32 = jax.jit(lambda xx, pp: nature_cnn_forward(xx, pp, jnp.float32))
    out = jax.block_until_ready(fwd_f32(x, params))
    assert out.shape == (batch, rep_dim), out.shape
    np.testing.assert_allclose(np.asarray(out), np.asarray(ref),
                               rtol=1e-4, atol=1e-4)

    # bf16 MXU operands (f32 accumulation + f32 epilogue) for v6e/v7x.
    fwd_bf16 = jax.jit(lambda xx, pp: nature_cnn_forward(xx, pp, jnp.bfloat16))
    out_bf16 = jax.block_until_ready(fwd_bf16(x, params))
    np.testing.assert_allclose(np.asarray(out_bf16), np.asarray(ref),
                               rtol=1e-1, atol=1e-1)

    print("KERNEL_OK")
</pallas_src>

<mosaic_0001>
module attributes {stable_mosaic.version = 11 : i64} {
  func.func @_nature_cnn_kernel(%arg0: i32, %arg1: memref<1x15x15x64xf32, #tpu.memory_space<vmem>>, %arg2: memref<4x64x32xf32, #tpu.memory_space<vmem>>, %arg3: memref<1x32xf32, #tpu.memory_space<vmem>>, %arg4: memref<16x32x64xf32, #tpu.memory_space<vmem>>, %arg5: memref<1x64xf32, #tpu.memory_space<vmem>>, %arg6: memref<9x64x64xf32, #tpu.memory_space<vmem>>, %arg7: memref<1x64xf32, #tpu.memory_space<vmem>>, %arg8: memref<16x64x32xf32, #tpu.memory_space<vmem>>, %arg9: memref<1x32xf32, #tpu.memory_space<vmem>>, %arg10: memref<1x1x32xf32, #tpu.memory_space<vmem>>) attributes {dimension_semantics = [#tpu.dimension_semantics<parallel>], iteration_bounds = array<i64: 2>, scalar_prefetch = 0 : i64, scratch_operands = 0 : i64, tpu.core_type = #tpu.core_type<tc>, window_params = [{transform_indices = @transform_0, window_bounds = array<i64: 1, 15, 15, 64>}, {pipeline_mode = #tpu.pipeline_mode<synchronous>, transform_indices = @transform_1, window_bounds = array<i64: 4, 64, 32>}, {pipeline_mode = #tpu.pipeline_mode<synchronous>, transform_indices = @transform_2, window_bounds = array<i64: 1, 32>}, {pipeline_mode = #tpu.pipeline_mode<synchronous>, transform_indices = @transform_3, window_bounds = array<i64: 16, 32, 64>}, {pipeline_mode = #tpu.pipeline_mode<synchronous>, transform_indices = @transform_4, window_bounds = array<i64: 1, 64>}, {pipeline_mode = #tpu.pipeline_mode<synchronous>, transform_indices = @transform_5, window_bounds = array<i64: 9, 64, 64>}, {pipeline_mode = #tpu.pipeline_mode<synchronous>, transform_indices = @transform_6, window_bounds = array<i64: 1, 64>}, {pipeline_mode = #tpu.pipeline_mode<synchronous>, transform_indices = @transform_7, window_bounds = array<i64: 16, 64, 32>}, {pipeline_mode = #tpu.pipeline_mode<synchronous>, transform_indices = @transform_8, window_bounds = array<i64: 1, 32>}, {transform_indices = @transform_9, window_bounds = array<i64: 1, 1, 32>}]} {
    %c0 = arith.constant 0 : index
    %c0_0 = arith.constant 0 : index
    %c0_1 = arith.constant 0 : index
    %c0_2 = arith.constant 0 : index
    %0 = vector.load %arg1[%c0, %c0_0, %c0_1, %c0_2] : memref<1x15x15x64xf32, #tpu.memory_space<vmem>>, vector<1x15x15x64xf32>
    %1 = vector.shape_cast %0 : vector<1x15x15x64xf32> to vector<15x15x64xf32>
    %cst = arith.constant 0.000000e+00 : f32
    %2 = vector.broadcast %cst : f32 to vector<196x32xf32>
    %3 = vector.extract_strided_slice %1 {offsets = [0, 0, 0], sizes = [14, 14, 64], strides = [1, 1, 1]} : vector<15x15x64xf32> to vector<14x14x64xf32>
    %4 = vector.shape_cast %3 : vector<14x14x64xf32> to vector<196x64xf32>
    %c0_3 = arith.constant 0 : index
    %c0_4 = arith.constant 0 : index
    %c0_5 = arith.constant 0 : index
    %5 = vector.load %arg2[%c0_3, %c0_4, %c0_5] : memref<4x64x32xf32, #tpu.memory_space<vmem>>, vector<1x64x32xf32>
    %6 = vector.shape_cast %5 : vector<1x64x32xf32> to vector<64x32xf32>
    %cst_6 = arith.constant dense<0.000000e+00> : vector<196x32xf32>
    %7 = tpu.matmul %4, %6, %cst_6 {dimension_numbers = #tpu.dot_dimension_numbers<[1], [0], [0], [1], [0, 0, 1, 1], [], []>} : vector<196x64xf32>, vector<64x32xf32>, vector<196x32xf32> -> vector<196x32xf32>
    %8 = arith.addf %2, %7 : vector<196x32xf32>
    %9 = vector.extract_strided_slice %1 {offsets = [0, 1, 0], sizes = [14, 14, 64], strides = [1, 1, 1]} : vector<15x15x64xf32> to vector<14x14x64xf32>
    %10 = vector.shape_cast %9 : vector<14x14x64xf32> to vector<196x64xf32>
    %c1 = arith.constant 1 : index
    %c0_7 = arith.constant 0 : index
    %c0_8 = arith.constant 0 : index
    %11 = vector.load %arg2[%c1, %c0_7, %c0_8] : memref<4x64x32xf32, #tpu.memory_space<vmem>>, vector<1x64x32xf32>
    %12 = vector.shape_cast %11 : vector<1x64x32xf32> to vector<64x32xf32>
    %cst_9 = arith.constant dense<0.000000e+00> : vector<196x32xf32>
    %13 = tpu.matmul %10, %12, %cst_9 {dimension_numbers = #tpu.dot_dimension_numbers<[1], [0], [0], [1], [0, 0, 1, 1], [], []>} : vector<196x64xf32>, vector<64x32xf32>, vector<196x32xf32> -> vector<196x32xf32>
    %14 = arith.addf %8, %13 : vector<196x32xf32>
    %15 = vector.extract_strided_slice %1 {offsets = [1, 0, 0], sizes = [14, 14, 64], strides = [1, 1, 1]} : vector<15x15x64xf32> to vector<14x14x64xf32>
    %16 = vector.shape_cast %15 : vector<14x14x64xf32> to vector<196x64xf32>
    %c2 = arith.constant 2 : index
    %c0_10 = arith.constant 0 : index
    %c0_11 = arith.constant 0 : index
    %17 = vector.load %arg2[%c2, %c0_10, %c0_11] : memref<4x64x32xf32, #tpu.memory_space<vmem>>, vector<1x64x32xf32>
    %18 = vector.shape_cast %17 : vector<1x64x32xf32> to vector<64x32xf32>
    %cst_12 = arith.constant dense<0.000000e+00> : vector<196x32xf32>
    %19 = tpu.matmul %16, %18, %cst_12 {dimension_numbers = #tpu.dot_dimension_numbers<[1], [0], [0], [1], [0, 0, 1, 1], [], []>} : vector<196x64xf32>, vector<64x32xf32>, vector<196x32xf32> -> vector<196x32xf32>
    %20 = arith.addf %14, %19 : vector<196x32xf32>
    %21 = vector.extract_strided_slice %1 {offsets = [1, 1, 0], sizes = [14, 14, 64], strides = [1, 1, 1]} : vector<15x15x64xf32> to vector<14x14x64xf32>
    %22 = vector.shape_cast %21 : vector<14x14x64xf32> to vector<196x64xf32>
    %c3 = arith.constant 3 : index
    %c0_13 = arith.constant 0 : index
    %c0_14 = arith.constant 0 : index
    %23 = vector.load %arg2[%c3, %c0_13, %c0_14] : memref<4x64x32xf32, #tpu.memory_space<vmem>>, vector<1x64x32xf32>
    %24 = vector.shape_cast %23 : vector<1x64x32xf32> to vector<64x32xf32>
    %cst_15 = arith.constant dense<0.000000e+00> : vector<196x32xf32>
    %25 = tpu.matmul %22, %24, %cst_15 {dimension_numbers = #tpu.dot_dimension_numbers<[1], [0], [0], [1], [0, 0, 1, 1], [], []>} : vector<196x64xf32>, vector<64x32xf32>, vector<196x32xf32> -> vector<196x32xf32>
    %26 = arith.addf %20, %25 : vector<196x32xf32>
    %c0_16 = arith.constant 0 : index
    %c0_17 = arith.constant 0 : index
    %27 = vector.load %arg3[%c0_16, %c0_17] : memref<1x32xf32, #tpu.memory_space<vmem>>, vector<1x32xf32>
    %28 = vector.broadcast %27 : vector<1x32xf32> to vector<196x32xf32>
    %29 = arith.addf %26, %28 : vector<196x32xf32>
    %cst_18 = arith.constant 0.000000e+00 : f32
    %30 = vector.broadcast %cst_18 : f32 to vector<196x32xf32>
    %31 = arith.maximumf %29, %30 : vector<196x32xf32>
    %32 = vector.shape_cast %31 : vector<196x32xf32> to vector<7x2x7x2x32xf32>
    %cst_19 = arith.constant 0.000000e+00 : f32
    %33 = vector.broadcast %cst_19 : f32 to vector<36x64xf32>
    %34 = vector.extract_strided_slice %32 {offsets = [0, 0, 0, 0, 0], sizes = [6, 1, 6, 1, 32], strides = [1, 1, 1, 1, 1]} : vector<7x2x7x2x32xf32> to vector<6x1x6x1x32xf32>
    %35 = vector.shape_cast %34 : vector<6x1x6x1x32xf32> to vector<6x6x32xf32>
    %36 = vector.shape_cast %35 : vector<6x6x32xf32> to vector<36x32xf32>
    %c0_20 = arith.constant 0 : index
    %c0_21 = arith.constant 0 : index
    %c0_22 = arith.constant 0 : index
    %37 = vector.load %arg4[%c0_20, %c0_21, %c0_22] : memref<16x32x64xf32, #tpu.memory_space<vmem>>, vector<1x32x64xf32>
    %38 = vector.shape_cast %37 : vector<1x32x64xf32> to vector<32x64xf32>
    %cst_23 = arith.constant dense<0.000000e+00> : vector<36x64xf32>
    %39 = tpu.matmul %36, %38, %cst_23 {dimension_numbers = #tpu.dot_dimension_numbers<[1], [0], [0], [1], [0, 0, 1, 1], [], []>} : vector<36x32xf32>, vector<32x64xf32>, vector<36x64xf32> -> vector<36x64xf32>
    %40 = arith.addf %33, %39 : vector<36x64xf32>
    %41 = vector.extract_strided_slice %32 {offsets = [0, 0, 0, 1, 0], sizes = [6, 1, 6, 1, 32], strides = [1, 1, 1, 1, 1]} : vector<7x2x7x2x32xf32> to vector<6x1x6x1x32xf32>
    %42 = vector.shape_cast %41 : vector<6x1x6x1x32xf32> to vector<6x6x32xf32>
    %43 = vector.shape_cast %42 : vector<6x6x32xf32> to vector<36x32xf32>
    %c1_24 = arith.constant 1 : index
    %c0_25 = arith.constant 0 : index
    %c0_26 = arith.constant 0 : index
    %44 = vector.load %arg4[%c1_24, %c0_25, %c0_26] : memref<16x32x64xf32, #tpu.memory_space<vmem>>, vector<1x32x64xf32>
    %45 = vector.shape_cast %44 : vector<1x32x64xf32> to vector<32x64xf32>
    %cst_27 = arith.constant dense<0.000000e+00> : vector<36x64xf32>
    %46 = tpu.matmul %43, %45, %cst_27 {dimension_numbers = #tpu.dot_dimension_numbers<[1], [0], [0], [1], [0, 0, 1, 1], [], []>} : vector<36x32xf32>, vector<32x64xf32>, vector<36x64xf32> -> vector<36x64xf32>
    %47 = arith.addf %40, %46 : vector<36x64xf32>
    %48 = vector.extract_strided_slice %32 {offsets = [0, 0, 1, 0, 0], sizes = [6, 1, 6, 1, 32], strides = [1, 1, 1, 1, 1]} : vector<7x2x7x2x32xf32> to vector<6x1x6x1x32xf32>
    %49 = vector.shape_cast %48 : vector<6x1x6x1x32xf32> to vector<6x6x32xf32>
    %50 = vector.shape_cast %49 : vector<6x6x32xf32> to vector<36x32xf32>
    %c2_28 = arith.constant 2 : index
    %c0_29 = arith.constant 0 : index
    %c0_30 = arith.constant 0 : index
    %51 = vector.load %arg4[%c2_28, %c0_29, %c0_30] : memref<16x32x64xf32, #tpu.memory_space<vmem>>, vector<1x32x64xf32>
    %52 = vector.shape_cast %51 : vector<1x32x64xf32> to vector<32x64xf32>
    %cst_31 = arith.constant dense<0.000000e+00> : vector<36x64xf32>
    %53 = tpu.matmul %50, %52, %cst_31 {dimension_numbers = #tpu.dot_dimension_numbers<[1], [0], [0], [1], [0, 0, 1, 1], [], []>} : vector<36x32xf32>, vector<32x64xf32>, vector<36x64xf32> -> vector<36x64xf32>
    %54 = arith.addf %47, %53 : vector<36x64xf32>
    %55 = vector.extract_strided_slice %32 {offsets = [0, 0, 1, 1, 0], sizes = [6, 1, 6, 1, 32], strides = [1, 1, 1, 1, 1]} : vector<7x2x7x2x32xf32> to vector<6x1x6x1x32xf32>
    %56 = vector.shape_cast %55 : vector<6x1x6x1x32xf32> to vector<6x6x32xf32>
    %57 = vector.shape_cast %56 : vector<6x6x32xf32> to vector<36x32xf32>
    %c3_32 = arith.constant 3 : index
    %c0_33 = arith.constant 0 : index
    %c0_34 = arith.constant 0 : index
    %58 = vector.load %arg4[%c3_32, %c0_33, %c0_34] : memref<16x32x64xf32, #tpu.memory_space<vmem>>, vector<1x32x64xf32>
    %59 = vector.shape_cast %58 : vector<1x32x64xf32> to vector<32x64xf32>
    %cst_35 = arith.constant dense<0.000000e+00> : vector<36x64xf32>
    %60 = tpu.matmul %57, %59, %cst_35 {dimension_numbers = #tpu.dot_dimension_numbers<[1], [0], [0], [1], [0, 0, 1, 1], [], []>} : vector<36x32xf32>, vector<32x64xf32>, vector<36x64xf32> -> vector<36x64xf32>
    %61 = arith.addf %54, %60 : vector<36x64xf32>
    %62 = vector.extract_strided_slice %32 {offsets = [0, 1, 0, 0, 0], sizes = [6, 1, 6, 1, 32], strides = [1, 1, 1, 1, 1]} : vector<7x2x7x2x32xf32> to vector<6x1x6x1x32xf32>
    %63 = vector.shape_cast %62 : vector<6x1x6x1x32xf32> to vector<6x6x32xf32>
    %64 = vector.shape_cast %63 : vector<6x6x32xf32> to vector<36x32xf32>
    %c4 = arith.constant 4 : index
    %c0_36 = arith.constant 0 : index
    %c0_37 = arith.constant 0 : index
    %65 = vector.load %arg4[%c4, %c0_36, %c0_37] : memref<16x32x64xf32, #tpu.memory_space<vmem>>, vector<1x32x64xf32>
    %66 = vector.shape_cast %65 : vector<1x32x64xf32> to vector<32x64xf32>
    %cst_38 = arith.constant dense<0.000000e+00> : vector<36x64xf32>
    %67 = tpu.matmul %64, %66, %cst_38 {dimension_numbers = #tpu.dot_dimension_numbers<[1], [0], [0], [1], [0, 0, 1, 1], [], []>} : vector<36x32xf32>, vector<32x64xf32>, vector<36x64xf32> -> vector<36x64xf32>
    %68 = arith.addf %61, %67 : vector<36x64xf32>
    %69 = vector.extract_strided_slice %32 {offsets = [0, 1, 0, 1, 0], sizes = [6, 1, 6, 1, 32], strides = [1, 1, 1, 1, 1]} : vector<7x2x7x2x32xf32> to vector<6x1x6x1x32xf32>
    %70 = vector.shape_cast %69 : vector<6x1x6x1x32xf32> to vector<6x6x32xf32>
    %71 = vector.shape_cast %70 : vector<6x6x32xf32> to vector<36x32xf32>
    %c5 = arith.constant 5 : index
    %c0_39 = arith.constant 0 : index
    %c0_40 = arith.constant 0 : index
    %72 = vector.load %arg4[%c5, %c0_39, %c0_40] : memref<16x32x64xf32, #tpu.memory_space<vmem>>, vector<1x32x64xf32>
    %73 = vector.shape_cast %72 : vector<1x32x64xf32> to vector<32x64xf32>
    %cst_41 = arith.constant dense<0.000000e+00> : vector<36x64xf32>
    %74 = tpu.matmul %71, %73, %cst_41 {dimension_numbers = #tpu.dot_dimension_numbers<[1], [0], [0], [1], [0, 0, 1, 1], [], []>} : vector<36x32xf32>, vector<32x64xf32>, vector<36x64xf32> -> vector<36x64xf32>
    %75 = arith.addf %68, %74 : vector<36x64xf32>
    %76 = vector.extract_strided_slice %32 {offsets = [0, 1, 1, 0, 0], sizes = [6, 1, 6, 1, 32], strides = [1, 1, 1, 1, 1]} : vector<7x2x7x2x32xf32> to vector<6x1x6x1x32xf32>
    %77 = vector.shape_cast %76 : vector<6x1x6x1x32xf32> to vector<6x6x32xf32>
    %78 = vector.shape_cast %77 : vector<6x6x32xf32> to vector<36x32xf32>
    %c6 = arith.constant 6 : index
    %c0_42 = arith.constant 0 : index
    %c0_43 = arith.constant 0 : index
    %79 = vector.load %arg4[%c6, %c0_42, %c0_43] : memref<16x32x64xf32, #tpu.memory_space<vmem>>, vector<1x32x64xf32>
    %80 = vector.shape_cast %79 : vector<1x32x64xf32> to vector<32x64xf32>
    %cst_44 = arith.constant dense<0.000000e+00> : vector<36x64xf32>
    %81 = tpu.matmul %78, %80, %cst_44 {dimension_numbers = #tpu.dot_dimension_numbers<[1], [0], [0], [1], [0, 0, 1, 1], [], []>} : vector<36x32xf32>, vector<32x64xf32>, vector<36x64xf32> -> vector<36x64xf32>
    %82 = arith.addf %75, %81 : vector<36x64xf32>
    %83 = vector.extract_strided_slice %32 {offsets = [0, 1, 1, 1, 0], sizes = [6, 1, 6, 1, 32], strides = [1, 1, 1, 1, 1]} : vector<7x2x7x2x32xf32> to vector<6x1x6x1x32xf32>
    %84 = vector.shape_cast %83 : vector<6x1x6x1x32xf32> to vector<6x6x32xf32>
    %85 = vector.shape_cast %84 : vector<6x6x32xf32> to vector<36x32xf32>
    %c7 = arith.constant 7 : index
    %c0_45 = arith.constant 0 : index
    %c0_46 = arith.constant 0 : index
    %86 = vector.load %arg4[%c7, %c0_45, %c0_46] : memref<16x32x64xf32, #tpu.memory_space<vmem>>, vector<1x32x64xf32>
    %87 = vector.shape_cast %86 : vector<1x32x64xf32> to vector<32x64xf32>
    %cst_47 = arith.constant dense<0.000000e+00> : vector<36x64xf32>
    %88 = tpu.matmul %85, %87, %cst_47 {dimension_numbers = #tpu.dot_dimension_numbers<[1], [0], [0], [1], [0, 0, 1, 1], [], []>} : vector<36x32xf32>, vector<32x64xf32>, vector<36x64xf32> -> vector<36x64xf32>
    %89 = arith.addf %82, %88 : vector<36x64xf32>
    %90 = vector.extract_strided_slice %32 {offsets = [1, 0, 0, 0, 0], sizes = [6, 1, 6, 1, 32], strides = [1, 1, 1, 1, 1]} : vector<7x2x7x2x32xf32> to vector<6x1x6x1x32xf32>
    %91 = vector.shape_cast %90 : vector<6x1x6x1x32xf32> to vector<6x6x32xf32>
    %92 = vector.shape_cast %91 : vector<6x6x32xf32> to vector<36x32xf32>
    %c8 = arith.constant 8 : index
    %c0_48 = arith.constant 0 : index
    %c0_49 = arith.constant 0 : index
    %93 = vector.load %arg4[%c8, %c0_48, %c0_49] : memref<16x32x64xf32, #tpu.memory_space<vmem>>, vector<1x32x64xf32>
    %94 = vector.shape_cast %93 : vector<1x32x64xf32> to vector<32x64xf32>
    %cst_50 = arith.constant dense<0.000000e+00> : vector<36x64xf32>
    %95 = tpu.matmul %92, %94, %cst_50 {dimension_numbers = #tpu.dot_dimension_numbers<[1], [0], [0], [1], [0, 0, 1, 1], [], []>} : vector<36x32xf32>, vector<32x64xf32>, vector<36x64xf32> -> vector<36x64xf32>
    %96 = arith.addf %89, %95 : vector<36x64xf32>
    %97 = vector.extract_strided_slice %32 {offsets = [1, 0, 0, 1, 0], sizes = [6, 1, 6, 1, 32], strides = [1, 1, 1, 1, 1]} : vector<7x2x7x2x32xf32> to vector<6x1x6x1x32xf32>
    %98 = vector.shape_cast %97 : vector<6x1x6x1x32xf32> to vector<6x6x32xf32>
    %99 = vector.shape_cast %98 : vector<6x6x32xf32> to vector<36x32xf32>
    %c9 = arith.constant 9 : index
    %c0_51 = arith.constant 0 : index
    %c0_52 = arith.constant 0 : index
    %100 = vector.load %arg4[%c9, %c0_51, %c0_52] : memref<16x32x64xf32, #tpu.memory_space<vmem>>, vector<1x32x64xf32>
    %101 = vector.shape_cast %100 : vector<1x32x64xf32> to vector<32x64xf32>
    %cst_53 = arith.constant dense<0.000000e+00> : vector<36x64xf32>
    %102 = tpu.matmul %99, %101, %cst_53 {dimension_numbers = #tpu.dot_dimension_numbers<[1], [0], [0], [1], [0, 0, 1, 1], [], []>} : vector<36x32xf32>, vector<32x64xf32>, vector<36x64xf32> -> vector<36x64xf32>
    %103 = arith.addf %96, %102 : vector<36x64xf32>
    %104 = vector.extract_strided_slice %32 {offsets = [1, 0, 1, 0, 0], sizes = [6, 1, 6, 1, 32], strides = [1, 1, 1, 1, 1]} : vector<7x2x7x2x32xf32> to vector<6x1x6x1x32xf32>
    %105 = vector.shape_cast %104 : vector<6x1x6x1x32xf32> to vector<6x6x32xf32>
    %106 = vector.shape_cast %105 : vector<6x6x32xf32> to vector<36x32xf32>
    %c10 = arith.constant 10 : index
    %c0_54 = arith.constant 0 : index
    %c0_55 = arith.constant 0 : index
    %107 = vector.load %arg4[%c10, %c0_54, %c0_55] : memref<16x32x64xf32, #tpu.memory_space<vmem>>, vector<1x32x64xf32>
    %108 = vector.shape_cast %107 : vector<1x32x64xf32> to vector<32x64xf32>
    %cst_56 = arith.constant dense<0.000000e+00> : vector<36x64xf32>
    %109 = tpu.matmul %106, %108, %cst_56 {dimension_numbers = #tpu.dot_dimension_numbers<[1], [0], [0], [1], [0, 0, 1, 1], [], []>} : vector<36x32xf32>, vector<32x64xf32>, vector<36x64xf32> -> vector<36x64xf32>
    %110 = arith.addf %103, %109 : vector<36x64xf32>
    %111 = vector.extract_strided_slice %32 {offsets = [1, 0, 1, 1, 0], sizes = [6, 1, 6, 1, 32], strides = [1, 1, 1, 1, 1]} : vector<7x2x7x2x32xf32> to vector<6x1x6x1x32xf32>
    %112 = vector.shape_cast %111 : vector<6x1x6x1x32xf32> to vector<6x6x32xf32>
    %113 = vector.shape_cast %112 : vector<6x6x32xf32> to vector<36x32xf32>
    %c11 = arith.constant 11 : index
    %c0_57 = arith.constant 0 : index
    %c0_58 = arith.constant 0 : index
    %114 = vector.load %arg4[%c11, %c0_57, %c0_58] : memref<16x32x64xf32, #tpu.memory_space<vmem>>, vector<1x32x64xf32>
    %115 = vector.shape_cast %114 : vector<1x32x64xf32> to vector<32x64xf32>
    %cst_59 = arith.constant dense<0.000000e+00> : vector<36x64xf32>
    %116 = tpu.matmul %113, %115, %cst_59 {dimension_numbers = #tpu.dot_dimension_numbers<[1], [0], [0], [1], [0, 0, 1, 1], [], []>} : vector<36x32xf32>, vector<32x64xf32>, vector<36x64xf32> -> vector<36x64xf32>
    %117 = arith.addf %110, %116 : vector<36x64xf32>
    %118 = vector.extract_strided_slice %32 {offsets = [1, 1, 0, 0, 0], sizes = [6, 1, 6, 1, 32], strides = [1, 1, 1, 1, 1]} : vector<7x2x7x2x32xf32> to vector<6x1x6x1x32xf32>
    %119 = vector.shape_cast %118 : vector<6x1x6x1x32xf32> to vector<6x6x32xf32>
    %120 = vector.shape_cast %119 : vector<6x6x32xf32> to vector<36x32xf32>
    %c12 = arith.constant 12 : index
    %c0_60 = arith.constant 0 : index
    %c0_61 = arith.constant 0 : index
    %121 = vector.load %arg4[%c12, %c0_60, %c0_61] : memref<16x32x64xf32, #tpu.memory_space<vmem>>, vector<1x32x64xf32>
    %122 = vector.shape_cast %121 : vector<1x32x64xf32> to vector<32x64xf32>
    %cst_62 = arith.constant dense<0.000000e+00> : vector<36x64xf32>
    %123 = tpu.matmul %120, %122, %cst_62 {dimension_numbers = #tpu.dot_dimension_numbers<[1], [0], [0], [1], [0, 0, 1, 1], [], []>} : vector<36x32xf32>, vector<32x64xf32>, vector<36x64xf32> -> vector<36x64xf32>
    %124 = arith.addf %117, %123 : vector<36x64xf32>
    %125 = vector.extract_strided_slice %32 {offsets = [1, 1, 0, 1, 0], sizes = [6, 1, 6, 1, 32], strides = [1, 1, 1, 1, 1]} : vector<7x2x7x2x32xf32> to vector<6x1x6x1x32xf32>
    %126 = vector.shape_cast %125 : vector<6x1x6x1x32xf32> to vector<6x6x32xf32>
    %127 = vector.shape_cast %126 : vector<6x6x32xf32> to vector<36x32xf32>
    %c13 = arith.constant 13 : index
    %c0_63 = arith.constant 0 : index
    %c0_64 = arith.constant 0 : index
    %128 = vector.load %arg4[%c13, %c0_63, %c0_64] : memref<16x32x64xf32, #tpu.memory_space<vmem>>, vector<1x32x64xf32>
    %129 = vector.shape_cast %128 : vector<1x32x64xf32> to vector<32x64xf32>
    %cst_65 = arith.constant dense<0.000000e+00> : vector<36x64xf32>
    %130 = tpu.matmul %127, %129, %cst_65 {dimension_numbers = #tpu.dot_dimension_numbers<[1], [0], [0], [1], [0, 0, 1, 1], [], []>} : vector<36x32xf32>, vector<32x64xf32>, vector<36x64xf32> -> vector<36x64xf32>
    %131 = arith.addf %124, %130 : vector<36x64xf32>
    %132 = vector.extract_strided_slice %32 {offsets = [1, 1, 1, 0, 0], sizes = [6, 1, 6, 1, 32], strides = [1, 1, 1, 1, 1]} : vector<7x2x7x2x32xf32> to vector<6x1x6x1x32xf32>
    %133 = vector.shape_cast %132 : vector<6x1x6x1x32xf32> to vector<6x6x32xf32>
    %134 = vector.shape_cast %133 : vector<6x6x32xf32> to vector<36x32xf32>
    %c14 = arith.constant 14 : index
    %c0_66 = arith.constant 0 : index
    %c0_67 = arith.constant 0 : index
    %135 = vector.load %arg4[%c14, %c0_66, %c0_67] : memref<16x32x64xf32, #tpu.memory_space<vmem>>, vector<1x32x64xf32>
    %136 = vector.shape_cast %135 : vector<1x32x64xf32> to vector<32x64xf32>
    %cst_68 = arith.constant dense<0.000000e+00> : vector<36x64xf32>
    %137 = tpu.matmul %134, %136, %cst_68 {dimension_numbers = #tpu.dot_dimension_numbers<[1], [0], [0], [1], [0, 0, 1, 1], [], []>} : vector<36x32xf32>, vector<32x64xf32>, vector<36x64xf32> -> vector<36x64xf32>
    %138 = arith.addf %131, %137 : vector<36x64xf32>
    %139 = vector.extract_strided_slice %32 {offsets = [1, 1, 1, 1, 0], sizes = [6, 1, 6, 1, 32], strides = [1, 1, 1, 1, 1]} : vector<7x2x7x2x32xf32> to vector<6x1x6x1x32xf32>
    %140 = vector.shape_cast %139 : vector<6x1x6x1x32xf32> to vector<6x6x32xf32>
    %141 = vector.shape_cast %140 : vector<6x6x32xf32> to vector<36x32xf32>
    %c15 = arith.constant 15 : index
    %c0_69 = arith.constant 0 : index
    %c0_70 = arith.constant 0 : index
    %142 = vector.load %arg4[%c15, %c0_69, %c0_70] : memref<16x32x64xf32, #tpu.memory_space<vmem>>, vector<1x32x64xf32>
    %143 = vector.shape_cast %142 : vector<1x32x64xf32> to vector<32x64xf32>
    %cst_71 = arith.constant dense<0.000000e+00> : vector<36x64xf32>
    %144 = tpu.matmul %141, %143, %cst_71 {dimension_numbers = #tpu.dot_dimension_numbers<[1], [0], [0], [1], [0, 0, 1, 1], [], []>} : vector<36x32xf32>, vector<32x64xf32>, vector<36x64xf32> -> vector<36x64xf32>
    %145 = arith.addf %138, %144 : vector<36x64xf32>
    %c0_72 = arith.constant 0 : index
    %c0_73 = arith.constant 0 : index
    %146 = vector.load %arg5[%c0_72, %c0_73] : memref<1x64xf32, #tpu.memory_space<vmem>>, vector<1x64xf32>
    %147 = vector.broadcast %146 : vector<1x64xf32> to vector<36x64xf32>
    %148 = arith.addf %145, %147 : vector<36x64xf32>
    %cst_74 = arith.constant 0.000000e+00 : f32
    %149 = vector.broadcast %cst_74 : f32 to vector<36x64xf32>
    %150 = arith.maximumf %148, %149 : vector<36x64xf32>
    %151 = vector.shape_cast %150 : vector<36x64xf32> to vector<6x6x64xf32>
    %cst_75 = arith.constant 0.000000e+00 : f32
    %152 = vector.broadcast %cst_75 : f32 to vector<16x64xf32>
    %153 = vector.extract_strided_slice %151 {offsets = [0, 0, 0], sizes = [4, 4, 64], strides = [1, 1, 1]} : vector<6x6x64xf32> to vector<4x4x64xf32>
    %154 = vector.shape_cast %153 : vector<4x4x64xf32> to vector<16x64xf32>
    %c0_76 = arith.constant 0 : index
    %c0_77 = arith.constant 0 : index
    %c0_78 = arith.constant 0 : index
    %155 = vector.load %arg6[%c0_76, %c0_77, %c0_78] : memref<9x64x64xf32, #tpu.memory_space<vmem>>, vector<1x64x64xf32>
    %156 = vector.shape_cast %155 : vector<1x64x64xf32> to vector<64x64xf32>
    %cst_79 = arith.constant dense<0.000000e+00> : vector<16x64xf32>
    %157 = tpu.matmul %154, %156, %cst_79 {dimension_numbers = #tpu.dot_dimension_numbers<[1], [0], [0], [1], [0, 0, 1, 1], [], []>} : vector<16x64xf32>, vector<64x64xf32>, vector<16x64xf32> -> vector<16x64xf32>
    %158 = arith.addf %152, %157 : vector<16x64xf32>
    %159 = vector.extract_strided_slice %151 {offsets = [0, 1, 0], sizes = [4, 4, 64], strides = [1, 1, 1]} : vector<6x6x64xf32> to vector<4x4x64xf32>
    %160 = vector.shape_cast %159 : vector<4x4x64xf32> to vector<16x64xf32>
    %c1_80 = arith.constant 1 : index
    %c0_81 = arith.constant 0 : index
    %c0_82 = arith.constant 0 : index
    %161 = vector.load %arg6[%c1_80, %c0_81, %c0_82] : memref<9x64x64xf32, #tpu.memory_space<vmem>>, vector<1x64x64xf32>
    %162 = vector.shape_cast %161 : vector<1x64x64xf32> to vector<64x64xf32>
    %cst_83 = arith.constant dense<0.000000e+00> : vector<16x64xf32>
    %163 = tpu.matmul %160, %162, %cst_83 {dimension_numbers = #tpu.dot_dimension_numbers<[1], [0], [0], [1], [0, 0, 1, 1], [], []>} : vector<16x64xf32>, vector<64x64xf32>, vector<16x64xf32> -> vector<16x64xf32>
    %164 = arith.addf %158, %163 : vector<16x64xf32>
    %165 = vector.extract_strided_slice %151 {offsets = [0, 2, 0], sizes = [4, 4, 64], strides = [1, 1, 1]} : vector<6x6x64xf32> to vector<4x4x64xf32>
    %166 = vector.shape_cast %165 : vector<4x4x64xf32> to vector<16x64xf32>
    %c2_84 = arith.constant 2 : index
    %c0_85 = arith.constant 0 : index
    %c0_86 = arith.constant 0 : index
    %167 = vector.load %arg6[%c2_84, %c0_85, %c0_86] : memref<9x64x64xf32, #tpu.memory_space<vmem>>, vector<1x64x64xf32>
    %168 = vector.shape_cast %167 : vector<1x64x64xf32> to vector<64x64xf32>
    %cst_87 = arith.constant dense<0.000000e+00> : vector<16x64xf32>
    %169 = tpu.matmul %166, %168, %cst_87 {dimension_numbers = #tpu.dot_dimension_numbers<[1], [0], [0], [1], [0, 0, 1, 1], [], []>} : vector<16x64xf32>, vector<64x64xf32>, vector<16x64xf32> -> vector<16x64xf32>
    %170 = arith.addf %164, %169 : vector<16x64xf32>
    %171 = vector.extract_strided_slice %151 {offsets = [1, 0, 0], sizes = [4, 4, 64], strides = [1, 1, 1]} : vector<6x6x64xf32> to vector<4x4x64xf32>
    %172 = vector.shape_cast %171 : vector<4x4x64xf32> to vector<16x64xf32>
    %c3_88 = arith.constant 3 : index
    %c0_89 = arith.constant 0 : index
    %c0_90 = arith.constant 0 : index
    %173 = vector.load %arg6[%c3_88, %c0_89, %c0_90] : memref<9x64x64xf32, #tpu.memory_space<vmem>>, vector<1x64x64xf32>
    %174 = vector.shape_cast %173 : vector<1x64x64xf32> to vector<64x64xf32>
    %cst_91 = arith.constant dense<0.000000e+00> : vector<16x64xf32>
    %175 = tpu.matmul %172, %174, %cst_91 {dimension_numbers = #tpu.dot_dimension_numbers<[1], [0], [0], [1], [0, 0, 1, 1], [], []>} : vector<16x64xf32>, vector<64x64xf32>, vector<16x64xf32> -> vector<16x64xf32>
    %176 = arith.addf %170, %175 : vector<16x64xf32>
    %177 = vector.extract_strided_slice %151 {offsets = [1, 1, 0], sizes = [4, 4, 64], strides = [1, 1, 1]} : vector<6x6x64xf32> to vector<4x4x64xf32>
    %178 = vector.shape_cast %177 : vector<4x4x64xf32> to vector<16x64xf32>
    %c4_92 = arith.constant 4 : index
    %c0_93 = arith.constant 0 : index
    %c0_94 = arith.constant 0 : index
    %179 = vector.load %arg6[%c4_92, %c0_93, %c0_94] : memref<9x64x64xf32, #tpu.memory_space<vmem>>, vector<1x64x64xf32>
    %180 = vector.shape_cast %179 : vector<1x64x64xf32> to vector<64x64xf32>
    %cst_95 = arith.constant dense<0.000000e+00> : vector<16x64xf32>
    %181 = tpu.matmul %178, %180, %cst_95 {dimension_numbers = #tpu.dot_dimension_numbers<[1], [0], [0], [1], [0, 0, 1, 1], [], []>} : vector<16x64xf32>, vector<64x64xf32>, vector<16x64xf32> -> vector<16x64xf32>
    %182 = arith.addf %176, %181 : vector<16x64xf32>
    %183 = vector.extract_strided_slice %151 {offsets = [1, 2, 0], sizes = [4, 4, 64], strides = [1, 1, 1]} : vector<6x6x64xf32> to vector<4x4x64xf32>
    %184 = vector.shape_cast %183 : vector<4x4x64xf32> to vector<16x64xf32>
    %c5_96 = arith.constant 5 : index
    %c0_97 = arith.constant 0 : index
    %c0_98 = arith.constant 0 : index
    %185 = vector.load %arg6[%c5_96, %c0_97, %c0_98] : memref<9x64x64xf32, #tpu.memory_space<vmem>>, vector<1x64x64xf32>
    %186 = vector.shape_cast %185 : vector<1x64x64xf32> to vector<64x64xf32>
    %cst_99 = arith.constant dense<0.000000e+00> : vector<16x64xf32>
    %187 = tpu.matmul %184, %186, %cst_99 {dimension_numbers = #tpu.dot_dimension_numbers<[1], [0], [0], [1], [0, 0, 1, 1], [], []>} : vector<16x64xf32>, vector<64x64xf32>, vector<16x64xf32> -> vector<16x64xf32>
    %188 = arith.addf %182, %187 : vector<16x64xf32>
    %189 = vector.extract_strided_slice %151 {offsets = [2, 0, 0], sizes = [4, 4, 64], strides = [1, 1, 1]} : vector<6x6x64xf32> to vector<4x4x64xf32>
    %190 = vector.shape_cast %189 : vector<4x4x64xf32> to vector<16x64xf32>
    %c6_100 = arith.constant 6 : index
    %c0_101 = arith.constant 0 : index
    %c0_102 = arith.constant 0 : index
    %191 = vector.load %arg6[%c6_100, %c0_101, %c0_102] : memref<9x64x64xf32, #tpu.memory_space<vmem>>, vector<1x64x64xf32>
    %192 = vector.shape_cast %191 : vector<1x64x64xf32> to vector<64x64xf32>
    %cst_103 = arith.constant dense<0.000000e+00> : vector<16x64xf32>
    %193 = tpu.matmul %190, %192, %cst_103 {dimension_numbers = #tpu.dot_dimension_numbers<[1], [0], [0], [1], [0, 0, 1, 1], [], []>} : vector<16x64xf32>, vector<64x64xf32>, vector<16x64xf32> -> vector<16x64xf32>
    %194 = arith.addf %188, %193 : vector<16x64xf32>
    %195 = vector.extract_strided_slice %151 {offsets = [2, 1, 0], sizes = [4, 4, 64], strides = [1, 1, 1]} : vector<6x6x64xf32> to vector<4x4x64xf32>
    %196 = vector.shape_cast %195 : vector<4x4x64xf32> to vector<16x64xf32>
    %c7_104 = arith.constant 7 : index
    %c0_105 = arith.constant 0 : index
    %c0_106 = arith.constant 0 : index
    %197 = vector.load %arg6[%c7_104, %c0_105, %c0_106] : memref<9x64x64xf32, #tpu.memory_space<vmem>>, vector<1x64x64xf32>
    %198 = vector.shape_cast %197 : vector<1x64x64xf32> to vector<64x64xf32>
    %cst_107 = arith.constant dense<0.000000e+00> : vector<16x64xf32>
    %199 = tpu.matmul %196, %198, %cst_107 {dimension_numbers = #tpu.dot_dimension_numbers<[1], [0], [0], [1], [0, 0, 1, 1], [], []>} : vector<16x64xf32>, vector<64x64xf32>, vector<16x64xf32> -> vector<16x64xf32>
    %200 = arith.addf %194, %199 : vector<16x64xf32>
    %201 = vector.extract_strided_slice %151 {offsets = [2, 2, 0], sizes = [4, 4, 64], strides = [1, 1, 1]} : vector<6x6x64xf32> to vector<4x4x64xf32>
    %202 = vector.shape_cast %201 : vector<4x4x64xf32> to vector<16x64xf32>
    %c8_108 = arith.constant 8 : index
    %c0_109 = arith.constant 0 : index
    %c0_110 = arith.constant 0 : index
    %203 = vector.load %arg6[%c8_108, %c0_109, %c0_110] : memref<9x64x64xf32, #tpu.memory_space<vmem>>, vector<1x64x64xf32>
    %204 = vector.shape_cast %203 : vector<1x64x64xf32> to vector<64x64xf32>
    %cst_111 = arith.constant dense<0.000000e+00> : vector<16x64xf32>
    %205 = tpu.matmul %202, %204, %cst_111 {dimension_numbers = #tpu.dot_dimension_numbers<[1], [0], [0], [1], [0, 0, 1, 1], [], []>} : vector<16x64xf32>, vector<64x64xf32>, vector<16x64xf32> -> vector<16x64xf32>
    %206 = arith.addf %200, %205 : vector<16x64xf32>
    %c0_112 = arith.constant 0 : index
    %c0_113 = arith.constant 0 : index
    %207 = vector.load %arg7[%c0_112, %c0_113] : memref<1x64xf32, #tpu.memory_space<vmem>>, vector<1x64xf32>
    %208 = vector.broadcast %207 : vector<1x64xf32> to vector<16x64xf32>
    %209 = arith.addf %206, %208 : vector<16x64xf32>
    %cst_114 = arith.constant 0.000000e+00 : f32
    %210 = vector.broadcast %cst_114 : f32 to vector<16x64xf32>
    %211 = arith.maximumf %209, %210 : vector<16x64xf32>
    %cst_115 = arith.constant 0.000000e+00 : f32
    %212 = vector.broadcast %cst_115 : f32 to vector<1x32xf32>
    %213 = vector.extract_strided_slice %211 {offsets = [0, 0], sizes = [1, 64], strides = [1, 1]} : vector<16x64xf32> to vector<1x64xf32>
    %c0_116 = arith.constant 0 : index
    %c0_117 = arith.constant 0 : index
    %c0_118 = arith.constant 0 : index
    %214 = vector.load %arg8[%c0_116, %c0_117, %c0_118] : memref<16x64x32xf32, #tpu.memory_space<vmem>>, vector<1x64x32xf32>
    %215 = vector.shape_cast %214 : vector<1x64x32xf32> to vector<64x32xf32>
    %cst_119 = arith.constant dense<0.000000e+00> : vector<1x32xf32>
    %216 = tpu.matmul %213, %215, %cst_119 {dimension_numbers = #tpu.dot_dimension_numbers<[1], [0], [0], [1], [0, 0, 1, 1], [], []>} : vector<1x64xf32>, vector<64x32xf32>, vector<1x32xf32> -> vector<1x32xf32>
    %217 = arith.addf %212, %216 : vector<1x32xf32>
    %218 = vector.extract_strided_slice %211 {offsets = [1, 0], sizes = [1, 64], strides = [1, 1]} : vector<16x64xf32> to vector<1x64xf32>
    %c1_120 = arith.constant 1 : index
    %c0_121 = arith.constant 0 : index
    %c0_122 = arith.constant 0 : index
    %219 = vector.load %arg8[%c1_120, %c0_121, %c0_122] : memref<16x64x32xf32, #tpu.memory_space<vmem>>, vector<1x64x32xf32>
    %220 = vector.shape_cast %219 : vector<1x64x32xf32> to vector<64x32xf32>
    %cst_123 = arith.constant dense<0.000000e+00> : vector<1x32xf32>
    %221 = tpu.matmul %218, %220, %cst_123 {dimension_numbers = #tpu.dot_dimension_numbers<[1], [0], [0], [1], [0, 0, 1, 1], [], []>} : vector<1x64xf32>, vector<64x32xf32>, vector<1x32xf32> -> vector<1x32xf32>
    %222 = arith.addf %217, %221 : vector<1x32xf32>
    %223 = vector.extract_strided_slice %211 {offsets = [2, 0], sizes = [1, 64], strides = [1, 1]} : vector<16x64xf32> to vector<1x64xf32>
    %c2_124 = arith.constant 2 : index
    %c0_125 = arith.constant 0 : index
    %c0_126 = arith.constant 0 : index
    %224 = vector.load %arg8[%c2_124, %c0_125, %c0_126] : memref<16x64x32xf32, #tpu.memory_space<vmem>>, vector<1x64x32xf32>
    %225 = vector.shape_cast %224 : vector<1x64x32xf32> to vector<64x32xf32>
    %cst_127 = arith.constant dense<0.000000e+00> : vector<1x32xf32>
    %226 = tpu.matmul %223, %225, %cst_127 {dimension_numbers = #tpu.dot_dimension_numbers<[1], [0], [0], [1], [0, 0, 1, 1], [], []>} : vector<1x64xf32>, vector<64x32xf32>, vector<1x32xf32> -> vector<1x32xf32>
    %227 = arith.addf %222, %226 : vector<1x32xf32>
    %228 = vector.extract_strided_slice %211 {offsets = [3, 0], sizes = [1, 64], strides = [1, 1]} : vector<16x64xf32> to vector<1x64xf32>
    %c3_128 = arith.constant 3 : index
    %c0_129 = arith.constant 0 : index
    %c0_130 = arith.constant 0 : index
    %229 = vector.load %arg8[%c3_128, %c0_129, %c0_130] : memref<16x64x32xf32, #tpu.memory_space<vmem>>, vector<1x64x32xf32>
    %230 = vector.shape_cast %229 : vector<1x64x32xf32> to vector<64x32xf32>
    %cst_131 = arith.constant dense<0.000000e+00> : vector<1x32xf32>
    %231 = tpu.matmul %228, %230, %cst_131 {dimension_numbers = #tpu.dot_dimension_numbers<[1], [0], [0], [1], [0, 0, 1, 1], [], []>} : vector<1x64xf32>, vector<64x32xf32>, vector<1x32xf32> -> vector<1x32xf32>
    %232 = arith.addf %227, %231 : vector<1x32xf32>
    %233 = vector.extract_strided_slice %211 {offsets = [4, 0], sizes = [1, 64], strides = [1, 1]} : vector<16x64xf32> to vector<1x64xf32>
    %c4_132 = arith.constant 4 : index
    %c0_133 = arith.constant 0 : index
    %c0_134 = arith.constant 0 : index
    %234 = vector.load %arg8[%c4_132, %c0_133, %c0_134] : memref<16x64x32xf32, #tpu.memory_space<vmem>>, vector<1x64x32xf32>
    %235 = vector.shape_cast %234 : vector<1x64x32xf32> to vector<64x32xf32>
    %cst_135 = arith.constant dense<0.000000e+00> : vector<1x32xf32>
    %236 = tpu.matmul %233, %235, %cst_135 {dimension_numbers = #tpu.dot_dimension_numbers<[1], [0], [0], [1], [0, 0, 1, 1], [], []>} : vector<1x64xf32>, vector<64x32xf32>, vector<1x32xf32> -> vector<1x32xf32>
    %237 = arith.addf %232, %236 : vector<1x32xf32>
    %238 = vector.extract_strided_slice %211 {offsets = [5, 0], sizes = [1, 64], strides = [1, 1]} : vector<16x64xf32> to vector<1x64xf32>
    %c5_136 = arith.constant 5 : index
    %c0_137 = arith.constant 0 : index
    %c0_138 = arith.constant 0 : index
    %239 = vector.load %arg8[%c5_136, %c0_137, %c0_138] : memref<16x64x32xf32, #tpu.memory_space<vmem>>, vector<1x64x32xf32>
    %240 = vector.shape_cast %239 : vector<1x64x32xf32> to vector<64x32xf32>
    %cst_139 = arith.constant dense<0.000000e+00> : vector<1x32xf32>
    %241 = tpu.matmul %238, %240, %cst_139 {dimension_numbers = #tpu.dot_dimension_numbers<[1], [0], [0], [1], [0, 0, 1, 1], [], []>} : vector<1x64xf32>, vector<64x32xf32>, vector<1x32xf32> -> vector<1x32xf32>
    %242 = arith.addf %237, %241 : vector<1x32xf32>
    %243 = vector.extract_strided_slice %211 {offsets = [6, 0], sizes = [1, 64], strides = [1, 1]} : vector<16x64xf32> to vector<1x64xf32>
    %c6_140 = arith.constant 6 : index
    %c0_141 = arith.constant 0 : index
    %c0_142 = arith.constant 0 : index
    %244 = vector.load %arg8[%c6_140, %c0_141, %c0_142] : memref<16x64x32xf32, #tpu.memory_space<vmem>>, vector<1x64x32xf32>
    %245 = vector.shape_cast %244 : vector<1x64x32xf32> to vector<64x32xf32>
    %cst_143 = arith.constant dense<0.000000e+00> : vector<1x32xf32>
    %246 = tpu.matmul %243, %245, %cst_143 {dimension_numbers = #tpu.dot_dimension_numbers<[1], [0], [0], [1], [0, 0, 1, 1], [], []>} : vector<1x64xf32>, vector<64x32xf32>, vector<1x32xf32> -> vector<1x32xf32>
    %247 = arith.addf %242, %246 : vector<1x32xf32>
    %248 = vector.extract_strided_slice %211 {offsets = [7, 0], sizes = [1, 64], strides = [1, 1]} : vector<16x64xf32> to vector<1x64xf32>
    %c7_144 = arith.constant 7 : index
    %c0_145 = arith.constant 0 : index
    %c0_146 = arith.constant 0 : index
    %249 = vector.load %arg8[%c7_144, %c0_145, %c0_146] : memref<16x64x32xf32, #tpu.memory_space<vmem>>, vector<1x64x32xf32>
    %250 = vector.shape_cast %249 : vector<1x64x32xf32> to vector<64x32xf32>
    %cst_147 = arith.constant dense<0.000000e+00> : vector<1x32xf32>
    %251 = tpu.matmul %248, %250, %cst_147 {dimension_numbers = #tpu.dot_dimension_numbers<[1], [0], [0], [1], [0, 0, 1, 1], [], []>} : vector<1x64xf32>, vector<64x32xf32>, vector<1x32xf32> -> vector<1x32xf32>
    %252 = arith.addf %247, %251 : vector<1x32xf32>
    %253 = vector.extract_strided_slice %211 {offsets = [8, 0], sizes = [1, 64], strides = [1, 1]} : vector<16x64xf32> to vector<1x64xf32>
    %c8_148 = arith.constant 8 : index
    %c0_149 = arith.constant 0 : index
    %c0_150 = arith.constant 0 : index
    %254 = vector.load %arg8[%c8_148, %c0_149, %c0_150] : memref<16x64x32xf32, #tpu.memory_space<vmem>>, vector<1x64x32xf32>
    %255 = vector.shape_cast %254 : vector<1x64x32xf32> to vector<64x32xf32>
    %cst_151 = arith.constant dense<0.000000e+00> : vector<1x32xf32>
    %256 = tpu.matmul %253, %255, %cst_151 {dimension_numbers = #tpu.dot_dimension_numbers<[1], [0], [0], [1], [0, 0, 1, 1], [], []>} : vector<1x64xf32>, vector<64x32xf32>, vector<1x32xf32> -> vector<1x32xf32>
    %257 = arith.addf %252, %256 : vector<1x32xf32>
    %258 = vector.extract_strided_slice %211 {offsets = [9, 0], sizes = [1, 64], strides = [1, 1]} : vector<16x64xf32> to vector<1x64xf32>
    %c9_152 = arith.constant 9 : index
    %c0_153 = arith.constant 0 : index
    %c0_154 = arith.constant 0 : index
    %259 = vector.load %arg8[%c9_152, %c0_153, %c0_154] : memref<16x64x32xf32, #tpu.memory_space<vmem>>, vector<1x64x32xf32>
    %260 = vector.shape_cast %259 : vector<1x64x32xf32> to vector<64x32xf32>
    %cst_155 = arith.constant dense<0.000000e+00> : vector<1x32xf32>
    %261 = tpu.matmul %258, %260, %cst_155 {dimension_numbers = #tpu.dot_dimension_numbers<[1], [0], [0], [1], [0, 0, 1, 1], [], []>} : vector<1x64xf32>, vector<64x32xf32>, vector<1x32xf32> -> vector<1x32xf32>
    %262 = arith.addf %257, %261 : vector<1x32xf32>
    %263 = vector.extract_strided_slice %211 {offsets = [10, 0], sizes = [1, 64], strides = [1, 1]} : vector<16x64xf32> to vector<1x64xf32>
    %c10_156 = arith.constant 10 : index
    %c0_157 = arith.constant 0 : index
    %c0_158 = arith.constant 0 : index
    %264 = vector.load %arg8[%c10_156, %c0_157, %c0_158] : memref<16x64x32xf32, #tpu.memory_space<vmem>>, vector<1x64x32xf32>
    %265 = vector.shape_cast %264 : vector<1x64x32xf32> to vector<64x32xf32>
    %cst_159 = arith.constant dense<0.000000e+00> : vector<1x32xf32>
    %266 = tpu.matmul %263, %265, %cst_159 {dimension_numbers = #tpu.dot_dimension_numbers<[1], [0], [0], [1], [0, 0, 1, 1], [], []>} : vector<1x64xf32>, vector<64x32xf32>, vector<1x32xf32> -> vector<1x32xf32>
    %267 = arith.addf %262, %266 : vector<1x32xf32>
    %268 = vector.extract_strided_slice %211 {offsets = [11, 0], sizes = [1, 64], strides = [1, 1]} : vector<16x64xf32> to vector<1x64xf32>
    %c11_160 = arith.constant 11 : index
    %c0_161 = arith.constant 0 : index
    %c0_162 = arith.constant 0 : index
    %269 = vector.load %arg8[%c11_160, %c0_161, %c0_162] : memref<16x64x32xf32, #tpu.memory_space<vmem>>, vector<1x64x32xf32>
    %270 = vector.shape_cast %269 : vector<1x64x32xf32> to vector<64x32xf32>
    %cst_163 = arith.constant dense<0.000000e+00> : vector<1x32xf32>
    %271 = tpu.matmul %268, %270, %cst_163 {dimension_numbers = #tpu.dot_dimension_numbers<[1], [0], [0], [1], [0, 0, 1, 1], [], []>} : vector<1x64xf32>, vector<64x32xf32>, vector<1x32xf32> -> vector<1x32xf32>
    %272 = arith.addf %267, %271 : vector<1x32xf32>
    %273 = vector.extract_strided_slice %211 {offsets = [12, 0], sizes = [1, 64], strides = [1, 1]} : vector<16x64xf32> to vector<1x64xf32>
    %c12_164 = arith.constant 12 : index
    %c0_165 = arith.constant 0 : index
    %c0_166 = arith.constant 0 : index
    %274 = vector.load %arg8[%c12_164, %c0_165, %c0_166] : memref<16x64x32xf32, #tpu.memory_space<vmem>>, vector<1x64x32xf32>
    %275 = vector.shape_cast %274 : vector<1x64x32xf32> to vector<64x32xf32>
    %cst_167 = arith.constant dense<0.000000e+00> : vector<1x32xf32>
    %276 = tpu.matmul %273, %275, %cst_167 {dimension_numbers = #tpu.dot_dimension_numbers<[1], [0], [0], [1], [0, 0, 1, 1], [], []>} : vector<1x64xf32>, vector<64x32xf32>, vector<1x32xf32> -> vector<1x32xf32>
    %277 = arith.addf %272, %276 : vector<1x32xf32>
    %278 = vector.extract_strided_slice %211 {offsets = [13, 0], sizes = [1, 64], strides = [1, 1]} : vector<16x64xf32> to vector<1x64xf32>
    %c13_168 = arith.constant 13 : index
    %c0_169 = arith.constant 0 : index
    %c0_170 = arith.constant 0 : index
    %279 = vector.load %arg8[%c13_168, %c0_169, %c0_170] : memref<16x64x32xf32, #tpu.memory_space<vmem>>, vector<1x64x32xf32>
    %280 = vector.shape_cast %279 : vector<1x64x32xf32> to vector<64x32xf32>
    %cst_171 = arith.constant dense<0.000000e+00> : vector<1x32xf32>
    %281 = tpu.matmul %278, %280, %cst_171 {dimension_numbers = #tpu.dot_dimension_numbers<[1], [0], [0], [1], [0, 0, 1, 1], [], []>} : vector<1x64xf32>, vector<64x32xf32>, vector<1x32xf32> -> vector<1x32xf32>
    %282 = arith.addf %277, %281 : vector<1x32xf32>
    %283 = vector.extract_strided_slice %211 {offsets = [14, 0], sizes = [1, 64], strides = [1, 1]} : vector<16x64xf32> to vector<1x64xf32>
    %c14_172 = arith.constant 14 : index
    %c0_173 = arith.constant 0 : index
    %c0_174 = arith.constant 0 : index
    %284 = vector.load %arg8[%c14_172, %c0_173, %c0_174] : memref<16x64x32xf32, #tpu.memory_space<vmem>>, vector<1x64x32xf32>
    %285 = vector.shape_cast %284 : vector<1x64x32xf32> to vector<64x32xf32>
    %cst_175 = arith.constant dense<0.000000e+00> : vector<1x32xf32>
    %286 = tpu.matmul %283, %285, %cst_175 {dimension_numbers = #tpu.dot_dimension_numbers<[1], [0], [0], [1], [0, 0, 1, 1], [], []>} : vector<1x64xf32>, vector<64x32xf32>, vector<1x32xf32> -> vector<1x32xf32>
    %287 = arith.addf %282, %286 : vector<1x32xf32>
    %288 = vector.extract_strided_slice %211 {offsets = [15, 0], sizes = [1, 64], strides = [1, 1]} : vector<16x64xf32> to vector<1x64xf32>
    %c15_176 = arith.constant 15 : index
    %c0_177 = arith.constant 0 : index
    %c0_178 = arith.constant 0 : index
    %289 = vector.load %arg8[%c15_176, %c0_177, %c0_178] : memref<16x64x32xf32, #tpu.memory_space<vmem>>, vector<1x64x32xf32>
    %290 = vector.shape_cast %289 : vector<1x64x32xf32> to vector<64x32xf32>
    %cst_179 = arith.constant dense<0.000000e+00> : vector<1x32xf32>
    %291 = tpu.matmul %288, %290, %cst_179 {dimension_numbers = #tpu.dot_dimension_numbers<[1], [0], [0], [1], [0, 0, 1, 1], [], []>} : vector<1x64xf32>, vector<64x32xf32>, vector<1x32xf32> -> vector<1x32xf32>
    %292 = arith.addf %287, %291 : vector<1x32xf32>
    %c0_180 = arith.constant 0 : index
    %c0_181 = arith.constant 0 : index
    %293 = vector.load %arg9[%c0_180, %c0_181] : memref<1x32xf32, #tpu.memory_space<vmem>>, vector<1x32xf32>
    %294 = arith.addf %292, %293 : vector<1x32xf32>
    %cst_182 = arith.constant 0.000000e+00 : f32
    %295 = vector.broadcast %cst_182 : f32 to vector<1x32xf32>
    %296 = arith.maximumf %294, %295 : vector<1x32xf32>
    %c0_183 = arith.constant 0 : index
    %c0_184 = arith.constant 0 : index
    %c0_185 = arith.constant 0 : index
    %297 = vector.load %arg10[%c0_183, %c0_184, %c0_185] : memref<1x1x32xf32, #tpu.memory_space<vmem>>, vector<1x1x32xf32>
    %298 = vector.shape_cast %297 : vector<1x1x32xf32> to vector<1x32xf32>
    %299 = vector.shape_cast %296 : vector<1x32xf32> to vector<1x1x32xf32>
    tpu.vector_store %arg10[%c0_183, %c0_184, %c0_185], %299 {strides = array<i32>} : memref<1x1x32xf32, #tpu.memory_space<vmem>>, vector<1x1x32xf32>,
    return
  }
  func.func @transform_0(%arg0: i32) -> (i32, i32, i32, i32) {
    %c0_i32 = arith.constant 0 : i32
    %c0_i32_0 = arith.constant 0 : i32
    %c0_i32_1 = arith.constant 0 : i32
    %c0_i32_2 = arith.constant 0 : i32
    return %arg0, %c0_i32, %c0_i32_0, %c0_i32_1 : i32, i32, i32, i32
  }
  func.func @transform_1(%arg0: i32) -> (i32, i32, i32) {
    %c0_i32 = arith.constant 0 : i32
    %c0_i32_0 = arith.constant 0 : i32
    %c0_i32_1 = arith.constant 0 : i32
    %c0_i32_2 = arith.constant 0 : i32
    return %c0_i32, %c0_i32_0, %c0_i32_1 : i32, i32, i32
  }
  func.func @transform_2(%arg0: i32) -> (i32, i32) {
    %c0_i32 = arith.constant 0 : i32
    %c0_i32_0 = arith.constant 0 : i32
    %c0_i32_1 = arith.constant 0 : i32
    return %c0_i32, %c0_i32_0 : i32, i32
  }
  func.func @transform_3(%arg0: i32) -> (i32, i32, i32) {
    %c0_i32 = arith.constant 0 : i32
    %c0_i32_0 = arith.constant 0 : i32
    %c0_i32_1 = arith.constant 0 : i32
    %c0_i32_2 = arith.constant 0 : i32
    return %c0_i32, %c0_i32_0, %c0_i32_1 : i32, i32, i32
  }
  func.func @transform_4(%arg0: i32) -> (i32, i32) {
    %c0_i32 = arith.constant 0 : i32
    %c0_i32_0 = arith.constant 0 : i32
    %c0_i32_1 = arith.constant 0 : i32
    return %c0_i32, %c0_i32_0 : i32, i32
  }
  func.func @transform_5(%arg0: i32) -> (i32, i32, i32) {
    %c0_i32 = arith.constant 0 : i32
    %c0_i32_0 = arith.constant 0 : i32
    %c0_i32_1 = arith.constant 0 : i32
    %c0_i32_2 = arith.constant 0 : i32
    return %c0_i32, %c0_i32_0, %c0_i32_1 : i32, i32, i32
  }
  func.func @transform_6(%arg0: i32) -> (i32, i32) {
    %c0_i32 = arith.constant 0 : i32
    %c0_i32_0 = arith.constant 0 : i32
    %c0_i32_1 = arith.constant 0 : i32
    return %c0_i32, %c0_i32_0 : i32, i32
  }
  func.func @transform_7(%arg0: i32) -> (i32, i32, i32) {
    %c0_i32 = arith.constant 0 : i32
    %c0_i32_0 = arith.constant 0 : i32
    %c0_i32_1 = arith.constant 0 : i32
    %c0_i32_2 = arith.constant 0 : i32
    return %c0_i32, %c0_i32_0, %c0_i32_1 : i32, i32, i32
  }
  func.func @transform_8(%arg0: i32) -> (i32, i32) {
    %c0_i32 = arith.constant 0 : i32
    %c0_i32_0 = arith.constant 0 : i32
    %c0_i32_1 = arith.constant 0 : i32
    return %c0_i32, %c0_i32_0 : i32, i32
  }
  func.func @transform_9(%arg0: i32) -> (i32, i32, i32) {
    %c0_i32 = arith.constant 0 : i32
    %c0_i32_0 = arith.constant 0 : i32
    %c0_i32_1 = arith.constant 0 : i32
    return %arg0, %c0_i32, %c0_i32_0 : i32, i32, i32
  }
}

</mosaic_0001>

<bundles_post_ra>
// kernel: _lambda_.1
= control target key start
LH: loop header
LB: loop body
LE: loop exit
PB: predicated region body
PF: predicated region fallthrough
CT: control target
= control target key end

     0   :  { %14 = vsyncpa [#allocation3], 0  ;;  %s18543_s0 = inlined_call_operand.vmem [shape: f32[2,15,15,64], index: 0, kind: input, shape index: {}]   ;;  %s18544_s1 = inlined_call_operand.vmem [shape: f32[4,64,32], index: 1, kind: input, shape index: {}]   ;;  %s18545_s2 = inlined_call_operand.vmem [shape: f32[1,32], index: 2, kind: input, shape index: {}]   ;;  %s18546_s3 = inlined_call_operand.vmem [shape: f32[16,32,64], index: 3, kind: input, shape index: {}]   ;;  %s18547_s4 = inlined_call_operand.vmem [shape: f32[1,64], index: 4, kind: input, shape index: {}]   ;;  %s18548_s5 = inlined_call_operand.vmem [shape: f32[9,64,64], index: 5, kind: input, shape index: {}]   ;;  %s18549_s6 = inlined_call_operand.vmem [shape: f32[1,64], index: 6, kind: input, shape index: {}]   ;;  %s18550_s7 = inlined_call_operand.vmem [shape: f32[16,64,32], index: 7, kind: input, shape index: {}]   ;;  %s18551_s8 = inlined_call_operand.vmem [shape: f32[1,32], index: 8, kind: input, shape index: {}]   ;;  %s18552_s9 = inlined_call_operand.hbm [shape: f32[2,1,32], index: 9, kind: output, shape index: {}]  }
   0x1   :  { %16 = vsyncpa [#allocation3 + $0x1], 0  ;;  %s12911_s30 = smov 0   ;;  %s12913_s10 = smov 0  }
   0x2   :  { %s12915_s11 = smov 0   ;;  %s12917_s12 = smov 0  }
   0x3 LB: > { %s12932_s13 = sadd.s32 4294967295, %s12854_s12   ;;  %s9986_s14 = sadd.s32 4294967294, %s12854_s12   ;;  %s12854_s12 = sphi %s12917_s12, %s19716_s12   ;;  %s12850_s11 = sphi %s12915_s11, %s19715_s11   ;;  %s12846_s10 = sphi %s12913_s10, %s19714_s10   ;;  %s12842_s30 = sphi %s12911_s30, %s19713_s30  }
   0x4   : > { %s12936_s15 = sadd.s32 1, %s12854_s12   ;;  %s223_s16 = sadd.s32 1, %s12850_s11 }
   0x5   : > { %s220_s17 = ssub.s32 %s12854_s12, %s12936_s15  ;;  %p233_p0 = scmp.ne.s32.totalorder %s12850_s11, %s12846_s10 }
   0x6   : > { %p221_p1 = scmp.eq.s32.totalorder %s220_s17, 0  ;;  %p234_p2 = scmp.eq.s32.totalorder %s12932_s13, 1 }
   0x7   : > { %p239_p3 = scmp.ne.s32.totalorder %s12846_s10, %s12842_s30  ;;  %p240_p4 = scmp.eq.s32.totalorder %s9986_s14, 1 }
   0x8   : > { %s12947_s18 = scalar_select %p221_p1, %s12850_s11, %s223_s16  }
   0x9   : > { %p12949_p5 = por %p234_p2, %p233_p0  ;;  %p12953_p6 = por %p240_p4, %p239_p3 }
   0xa   : > { %p9989_p7 = scmp.ge.s32.totalorder %s12854_s12, 1  ;;  %p290_p8 = scmp.lt.s32.totalorder %s12854_s12, 3 }
   0xc   : > { %p291_p9 = pnand %p9989_p7, %p290_p8 }
   0xe   : > { %294 = sbr.rel (%p291_p9) target bundleno = 1727 (0x6bf), region = 56 }
  0x15   : > { %v10005_v0 = vld [vmem:[%s18544_s1 + $0x40] sm:$0xff]  ;;  %v10006_v1 = vld [vmem:[%s18544_s1 + $0x48] sm:$0xff]  ;;  %v392_v3 = vlaneseq  ;;  %v18553_v4 = vmov 0.0|0.0   ;;  %v10007_v7 = vld [vmem:[%s18544_s1 + $0x50] sm:$0xff]  ;;  %p325_p10 = scmp.lt.s32.totalorder %s12932_s13, 1  ;;  %vm12857_vm0 = vmmov 0  }
  0x16   : > { %v850_v2 = vld [vmem:[%s18544_s1] sm:$0xff]  ;;  %12217 = vmatprep.subr.bf16.mxu0 %v18553_v4  ;;  %v12218_v5 = vpack.c.bf16 %v10006_v1, %v10005_v0  ;;  %12229 = vmatprep.subr.bf16.mxu1 %v18553_v4  ;;  %v851_v6 = vld [vmem:[%s18544_s1 + $0x8] sm:$0xff]  ;;  %v10008_v8 = vld [vmem:[%s18544_s1 + $0x58] sm:$0xff]  ;;  %v18555_v12 = vmov 0.0   ;;  %v12859_v13 = vmov 1983009808  }
  0x17   : > { %v12230_v9 = vpack.c.bf16 %v851_v6, %v850_v2  ;;  %v852_v10 = vld [vmem:[%s18544_s1 + $0x10] sm:$0xff]  ;;  %v853_v11 = vld [vmem:[%s18544_s1 + $0x18] sm:$0xff]  ;;  %11026 = vmatprep.mubr.msk.f32.mxu0 %vm12857_vm0, %v18555_v12  ;;  %11117 = vmatprep.mubr.msk.f32.mxu1 %vm12857_vm0, %v18555_v12  ;;  %v390_v14 = vunpack.c.l.s4 %v12859_v13  ;;  %v12990_v15 = vshrl.u32 %v392_v3, 7  ;;  %v12221_v16 = vpack.c.bf16 %v10008_v8, %v10007_v7  ;;  %v10009_v17 = vld [vmem:[%s18544_s1 + $0x60] sm:$0xff]  ;;  %s326_s16 = scalar_select %p325_p10, %s12932_s13, 1 }
  0x18   : > { %12219 = vmatpush3.bf16.msra.mxu0 %v12218_v5  ;;  %v10010_v18 = vld [vmem:[%s18544_s1 + $0x68] sm:$0xff]  ;;  %v854_v19 = vld [vmem:[%s18544_s1 + $0x20] sm:$0xff]  ;;  %vm872_vm1 = vcmask 1040384   ;;  %vm873_vm2 = vcmask 1042434   ;;  %v12233_v20 = vpack.c.bf16 %v853_v11, %v852_v10  ;;  %v10011_v22 = vld [vmem:[%s18544_s1 + $0x70] sm:$0xff]  ;;  %vm875_vm4 = vcmask 1044484  }
  0x19   : > { %18945 = vst [vmem:[#allocation5_spill] sm:$0xff] %v12990_v15  ;;  %12231 = vmatpush3.bf16.msra.mxu1 %v12230_v9  ;;  %12220 = vmatprep.subr.bf16.mxu0 %v18553_v4  ;;  %v855_v21 = vld [vmem:[%s18544_s1 + $0x28] sm:$0xff]  ;;  %v10012_v23 = vld [vmem:[%s18544_s1 + $0x78] sm:$0xff]  ;;  %v391_v24 = vunpack.c.0.s8 %v390_v14  ;;  %v856_v25 = vld [vmem:[%s18544_s1 + $0x30] sm:$0xff]  ;;  %s12717_s14 = smul.u32 240, %s326_s16  ;;  %v12224_v32 = vpack.c.bf16 %v10010_v18, %v10009_v17  ;;  %vm877_vm5 = vcmask 1046534  }
  0x1a   : > { %12232 = vmatprep.subr.bf16.mxu1 %v18553_v4  ;;  %v857_v26 = vld [vmem:[%s18544_s1 + $0x38] sm:$0xff]  ;;  %v13024_v27 = vld [vmem:[%s18544_s1 + $0x80] sm:$0xff]  ;;  %vm13031_vm3 = vmor %vm872_vm1, %vm873_vm2  ;;  %v12236_v33 = vpack.c.bf16 %v855_v21, %v854_v19  ;;  %v12227_v34 = vpack.c.bf16 %v10012_v23, %v10011_v22  ;;  %vm1612_vm7 = vcmask 523264   ;;  %v18951_v56 = vmov 0  ;;  %s323_s28 = sand.u32 1, %s12846_s10   ;;  %s10497_s17 = sshll.u32 %s12932_s13, 4 }
  0x1b   : > { %v13027_v28 = vsub.s32 %v391_v24, %v12990_v15  ;;  %v13038_v30 = vld [vmem:[%s18544_s1 + $0x88] sm:$0xff]  ;;  %v13043_v31 = vld [vmem:[%s18544_s1 + $0xc0] sm:$0xff]  ;;  %s13048_s27 = scalar_lea.vmem %s18543_s0, %s12717_s14  ;;  %v12239_v36 = vpack.c.bf16 %v857_v26, %v856_v25  ;;  %vm13071_vm6 = vmor %vm13031_vm3, %vm875_vm4  ;;  %vm4598_vm9 = vcmask 1041409   ;;  %vm4601_vm10 = vcmask 1043459   ;;  %s18501_s16 = scalar_lea.hbm %s18552_s9, %s10497_s17 }
  0x1c   : > { %12222 = vmatpush3.bf16.msra.mxu0 %v12221_v16  ;;  %v13053_v35 = vld [vmem:[%s18544_s1 + $0xc8] sm:$0xff]  ;;  %v330_v37 = vld [vmem:[%s13048_s27] sm:$0xff]  ;;  %v12242_v39 = vpack.c.bf16 %v13038_v30, %v13024_v27  ;;  %v13063_v41 = vld [vmem:[%s13048_s27 + $0x10] sm:$0xff]  ;;  %vm4604_vm11 = vcmask 1045509   ;;  %vm4607_vm12 = vcmask 1047559   ;;  %vm4633_vm13 = vcmask 261120  }
  0x1d   : > { %18946 = vst [vmem:[#allocation6_spill] sm:$0xff] %v13027_v28  ;;  %12234 = vmatpush3.bf16.msra.mxu1 %v12233_v20  ;;  %12223 = vmatprep.subr.bf16.mxu0 %v18553_v4  ;;  %v331_v38 = vld [vmem:[%s13048_s27 + $0x8] sm:$0x7f]  ;;  %v12254_v40 = vpack.c.bf16 %v13053_v35, %v13043_v31  ;;  %v388_v42 = vcombine.high %v330_v37, %v330_v37  ;;  %v13076_v47 = vld [vmem:[%s13048_s27 + $0x18] sm:$0x7f]  ;;  %vm13095_vm8 = vmor %vm13071_vm6, %vm877_vm5  ;;  %vm9916_vm14 = vcmask 253952  }
  0x1e   : > { %12235 = vmatprep.subr.bf16.mxu1 %v18553_v4  ;;  %v395_v43 = vrot.slane %v330_v37, %v13027_v28  ;;  %v412_v44 = vrot.slane %v331_v38, %v13027_v28  ;;  %v405_v46 = vcombine.high %v331_v38, %v331_v38  ;;  %v13080_v48 = vrot.slane %v13063_v41, %v13027_v28  ;;  %s9919_s24 = scalar_lea.sflag [#allocation3], %s323_s28  ;;  %s12860_s13 = smov [#allocation2]  }
  0x1f   : > { %v421_v49 = vcombine.high %v13063_v41, %v13063_v41  ;;  %v13086_v50 = vrot.slane %v13076_v47, %v13027_v28  ;;  %v438_v51 = vcombine.high %v13076_v47, %v13076_v47  ;;  %v402_v52 = vrot.slane %v388_v42, %v13027_v28  ;;  %s12796_s26 = sshll.u32 %s12860_s13, 4  ;;  %s12797_s26 = int_to_ptr.vmem [resolvable:$false] %s12796_s26 }
  0x20   : > { %12225 = vmatpush3.bf16.msra.mxu0 %v12224_v32  ;;  %v403_v53 = vcombine.high %v395_v43, %v395_v43  ;;  %v9991_v54 = vrot.slane %v395_v43, 9  ;;  %v890_v55 = vrot.slane %v412_v44, 7  ;;  %v18952_v56 = vsel %vm13095_vm8, 4294967295, %v18951_v56  ;;  %s12798_s29 = scalar_lea.vmem %s12797_s26, 32 }
  0x21   : > { %12237 = vmatpush3.bf16.msra.mxu1 %v12236_v33  ;;  %12226 = vmatprep.subr.bf16.mxu0 %v18553_v4  ;;  %18953 = vst [vmem:[#allocation7_spill] sm:$0xff] %v18952_v56  ;;  %v419_v57 = vrot.slane %v405_v46, %v13027_v28  ;;  %v420_v58 = vcombine.high %v412_v44, %v412_v44  ;;  %v9992_v60 = vrot.slane %v13080_v48, 9  ;;  %v884_v63 = vrot.slane %v402_v52, 7 }
  0x22   : > { %v13102_v59 = vcombine.high %v13080_v48, %v13080_v48  ;;  %12238 = vmatprep.subr.bf16.mxu1 %v18553_v4  ;;  %v404_v61 = vcombine.high %v402_v52, %v402_v52  ;;  %v881_v62 = vrot.slane %v403_v53, 7  ;;  %v1853_v0 = vcombine.low %v395_v43, %v403_v53 }
  0x23   : > { %v858_v1 = vcombine.high %v419_v57, %v419_v57  ;;  %v892_v2 = vrot.slane %v890_v55, 2  ;;  %v893_v3 = vrot.slane %v420_v58, 7  ;;  %v896_v5 = vrot.slane %v419_v57, 7 }
  0x24   : > { %12228 = vmatpush3.bf16.msra.mxu0 %v12227_v34  ;;  %v882_v6 = vsel %vm13095_vm8, %v9991_v54, %v881_v62  ;;  %v883_v7 = vrot.slane %v881_v62, 2  ;;  %v886_v8 = vrot.slane %v884_v63, 2  ;;  %v887_v9 = vrot.slane %v404_v61, 7 }
  0x25   : > { %12240 = vmatpush3.bf16.msra.mxu1 %v12239_v36  ;;  %12241 = vmatprep.subr.bf16.mxu0 %v18553_v4  ;;  %v1854_v10 = vcombine.low %v402_v52, %v404_v61  ;;  %v1861_v11 = vrot.slane %v1853_v0, %v13027_v28  ;;  %v894_v13 = vsel %vm13095_vm8, %v892_v2, %v893_v3  ;;  %v895_v14 = vrot.slane %v893_v3, 2  ;;  %v334_v0 = vld [vmem:[%s13048_s27 + $0x20] sm:$0xff] }
  0x26   : > { %v885_v16 = vsel %vm13095_vm8, %v883_v7, %v884_v63  ;;  %v888_v17 = vsel %vm13095_vm8, %v886_v8, %v887_v9  ;;  %v889_v18 = vrot.slane %v887_v9, 2  ;;  %12253 = vmatprep.subr.bf16.mxu1 %v18553_v4  ;;  %v898_v19 = vrot.slane %v896_v5, 2 }
  0x27   : > { %v1196_v20 = vcombine.low %v882_v6, %v885_v16  ;;  %v1868_v21 = vrot.slane %v1854_v10, %v13027_v28  ;;  %v897_v22 = vsel %vm13095_vm8, %v895_v14, %v896_v5  ;;  %v899_v23 = vrot.slane %v858_v1, 7 }
  0x28   : > { %v891_v24 = vsel %vm13095_vm8, %v889_v18, %v890_v55  ;;  %v903_v25 = vrot.slane %v13102_v59, 7  ;;  %v1213_v26 = vcombine.low %v894_v13, %v897_v22  ;;  %v1870_v29 = vcombine.low %v412_v44, %v420_v58 }
  0x29   : > { %v1197_v32 = vcombine.low %v888_v17, %v891_v24  ;;  %v1204_v33 = vrot.slane %v1196_v20, %v13027_v28  ;;  %v1869_v34 = vcombine.low %v1861_v11, %v1868_v21  ;;  %v900_v36 = vsel %vm13095_vm8, %v898_v19, %v899_v23 }
  0x2a   : > { %v904_v37 = vsel %vm13095_vm8, %v9992_v60, %v903_v25  ;;  %v1221_v38 = vrot.slane %v1213_v26, %v13027_v28  ;;  %v1871_v41 = vcombine.low %v419_v57, %v13080_v48  ;;  %v1878_v42 = vrot.slane %v1870_v29, %v13027_v28 }
  0x2b   : > { %v1211_v43 = vrot.slane %v1197_v32, %v13027_v28  ;;  %11118 = vmatmul.mubr.msk.f32.vlgmr.msra.gmra.mrb[0].mxu1 %vm1612_vm7, %v1869_v34  ;;  %v1214_v44 = vcombine.low %v900_v36, %v904_v37  ;;  %v13134_v45 = vrot.slane %v421_v49, %v13027_v28  ;;  %v13138_v46 = vcombine.high %v13086_v50, %v13086_v50 }
  0x2c   : > { %12255 = vmatpush3.bf16.msra.mxu1 %v12254_v40  ;;  %11120 = vmatprep.mubr.msk.f32.mxu1 %vm12857_vm0, %v18555_v12  ;;  %v1885_v52 = vrot.slane %v1871_v41, %v13027_v28  ;;  %v905_v53 = vrot.slane %v903_v25, 2  ;;  %v912_v54 = vrot.slane %v13086_v50, 7  ;;  %v13151_v49 = vrot.slane %v438_v51, %v13027_v28 }
  0x2d   : > { %v1212_v55 = vcombine.low %v1204_v33, %v1211_v43  ;;  %v1228_v57 = vrot.slane %v1214_v44, %v13027_v28  ;;  %v13156_v31 = vcombine.high %v13134_v45, %v13134_v45  ;;  %v906_v35 = vrot.slane %v13134_v45, 7  ;;  %12256 = vmatprep.subr.bf16.mxu1 %v18553_v4 }
  0x2e   : > { %v1886_v40 = vcombine.low %v1878_v42, %v1885_v52  ;;  %v914_v58 = vrot.slane %v912_v54, 2  ;;  %v915_v60 = vrot.slane %v13138_v46, 7  ;;  %v1887_v47 = vcombine.low %v13102_v59, %v13134_v45 }
  0x2f   : > { %11027 = vmatmul.mubr.msk.f32.vlgmr.msra.gmra.mrb[0].mxu0 %vm1612_vm7, %v1212_v55  ;;  %v1229_v51 = vcombine.low %v1221_v38, %v1228_v57  ;;  %v907_v61 = vsel %vm13095_vm8, %v905_v53, %v906_v35  ;;  %v908_v62 = vrot.slane %v906_v35, 2  ;;  %v909_v63 = vrot.slane %v13156_v31, 7 }
  0x30   : > { %12243 = vmatpush3.bf16.msra.mxu0 %v12242_v39  ;;  %11029 = vmatprep.mubr.msk.f32.mxu0 %vm12857_vm0, %v18555_v12  ;;  %v13175_v1 = vsel %vm13095_vm8, %v914_v58, %v915_v60  ;;  %v3266_v2 = vcombine.low %v904_v37, %v907_v61  ;;  %v1888_v3 = vcombine.low %v13156_v31, %v13086_v50  ;;  %v917_v5 = vrot.slane %v915_v60, 2  ;;  %v335_v37 = vld [vmem:[%s13048_s27 + $0x28] sm:$0x7f]  ;;  %v336_v58 = vld [vmem:[%s13048_s27 + $0x30] sm:$0xff] }
  0x31   : > { %11121 = vmatmul.mubr.msk.f32.gmra.mrb[2].mxu1 %vm1612_vm7, %v1886_v40  ;;  %v13182_v6 = vsel %vm13095_vm8, %v908_v62, %v909_v63  ;;  %v911_v27 = vrot.slane %v909_v63, 2  ;;  %v1895_v30 = vrot.slane %v1887_v47, %v13027_v28  ;;  %v454_v39 = vcombine.high %v334_v0, %v334_v0  ;;  %12244 = vmatprep.subr.bf16.mxu0 %v18553_v4 }
  0x32   : > { %11123 = vmatprep.mubr.msk.f32.mxu1 %vm12857_vm0, %v18555_v12  ;;  %v1230_v7 = vcombine.low %v907_v61, %v13182_v6  ;;  %v1902_v8 = vrot.slane %v1888_v3, %v13027_v28  ;;  %v13191_v9 = vrot.slane %v334_v0, %v13027_v28  ;;  %v859_v13 = vcombine.high %v13151_v49, %v13151_v49 }
  0x33   : > { %11030 = vmatmul.mubr.msk.f32.gmra.mrb[2].mxu0 %vm1612_vm7, %v1229_v51  ;;  %v13196_v10 = vsel %vm13095_vm8, %v911_v27, %v912_v54  ;;  %v13199_v11 = vrot.slane %v454_v39, %v13027_v28  ;;  %v918_v14 = vrot.slane %v13151_v49, 7  ;;  %v13221_v25 = vrot.slane %v3266_v2, %v13027_v28 }
  0x34   : > { %11032 = vmatprep.mubr.msk.f32.mxu0 %vm12857_vm0, %v18555_v12  ;;  %v1231_v16 = vcombine.low %v13196_v10, %v13175_v1  ;;  %v1238_v17 = vrot.slane %v1230_v7, %v13027_v28  ;;  %v1903_v19 = vcombine.low %v1895_v30, %v1902_v8  ;;  %v13213_v20 = vcombine.high %v13191_v9, %v13191_v9 }
  0x35   : > { %v13217_v21 = vsel %vm13095_vm8, %v917_v5, %v918_v14  ;;  %v920_v22 = vrot.slane %v918_v14, 2  ;;  %v921_v23 = vrot.slane %v859_v13, 7  ;;  %v9993_v26 = vrot.slane %v13191_v9, 9 }
  0x36   : > { %v1245_v24 = vrot.slane %v1231_v16, %v13027_v28  ;;  %11124 = vmatmul.mubr.msk.f32.gmra.mrb[4].mxu1 %vm1612_vm7, %v1903_v19  ;;  %v928_v29 = vrot.slane %v13199_v11, 7  ;;  %v925_v33 = vrot.slane %v13213_v20, 7  ;;  %v1904_v34 = vcombine.low %v13138_v46, %v13151_v49 }
  0x37   : > { %11126 = vmatprep.mubr.msk.f32.mxu1 %vm12857_vm0, %v18555_v12  ;;  %v13230_v32 = vsel %vm13095_vm8, %v920_v22, %v921_v23  ;;  %v1905_v36 = vcombine.low %v13191_v9, %v13213_v20  ;;  %v13242_v42 = vcombine.high %v13199_v11, %v13199_v11  ;;  %v471_v43 = vcombine.high %v335_v37, %v335_v37 }
  0x38   : > { %v1246_v38 = vcombine.low %v1238_v17, %v1245_v24  ;;  %v1247_v41 = vcombine.low %v13217_v21, %v13230_v32  ;;  %v13246_v44 = vsel %vm13095_vm8, %v9993_v26, %v925_v33  ;;  %v927_v52 = vrot.slane %v925_v33, 2 }
  0x39   : > { %v1912_v53 = vrot.slane %v1904_v34, %v13027_v28  ;;  %v1919_v54 = vrot.slane %v1905_v36, %v13027_v28  ;;  %v13253_v57 = vrot.slane %v335_v37, %v13027_v28  ;;  %v13256_v35 = vrot.slane %v471_v43, %v13027_v28 }
  0x3a   : > { %11033 = vmatmul.mubr.msk.f32.gmra.mrb[4].mxu0 %vm1612_vm7, %v1246_v38  ;;  %v1255_v55 = vrot.slane %v1247_v41, %v13027_v28  ;;  %v930_v40 = vrot.slane %v928_v29, 2  ;;  %v13263_v60 = vsel %vm13095_vm8, %v927_v52, %v928_v29  ;;  %v931_v51 = vrot.slane %v13242_v42, 7 }
  0x3b   : > { %11035 = vmatprep.mubr.msk.f32.mxu0 %vm12857_vm0, %v18555_v12  ;;  %v1920_v47 = vcombine.low %v1912_v53, %v1919_v54  ;;  %v1921_v61 = vcombine.low %v13199_v11, %v13242_v42  ;;  %v1248_v62 = vcombine.low %v13246_v44, %v13263_v60  ;;  %v13272_v63 = vcombine.high %v13253_v57, %v13253_v57 }
  0x3c   : > { %v934_v0 = vrot.slane %v13253_v57, 7  ;;  %v940_v2 = vrot.slane %v13256_v35, 7  ;;  %v13279_v3 = vsel %vm13095_vm8, %v930_v40, %v931_v51  ;;  %v933_v5 = vrot.slane %v931_v51, 2  ;;  %v337_v40 = vld [vmem:[%s13048_s27 + $0x38] sm:$0x7f] }
  0x3d   : > { %11127 = vmatmul.mubr.msk.f32.gmra.mrb[6].mxu1 %vm1612_vm7, %v1920_v47  ;;  %v1929_v27 = vrot.slane %v1921_v61, %v13027_v28  ;;  %v487_v30 = vcombine.high %v336_v58, %v336_v58  ;;  %v1262_v39 = vrot.slane %v1248_v62, %v13027_v28  ;;  %v937_v8 = vrot.slane %v13272_v63, 7 }
  0x3e   : > { %11129 = vmatprep.mubr.msk.f32.mxu1 %vm12857_vm0, %v18555_v12  ;;  %v936_v7 = vrot.slane %v934_v0, 2  ;;  %v1922_v13 = vcombine.low %v13253_v57, %v13272_v63  ;;  %v13290_v14 = vsel %vm13095_vm8, %v933_v5, %v934_v0  ;;  %v13293_v16 = vrot.slane %v336_v58, %v13027_v28 }
  0x3f   : > { %v13296_v17 = vrot.slane %v487_v30, %v13027_v28  ;;  %v860_v19 = vcombine.high %v13256_v35, %v13256_v35  ;;  %v1263_v22 = vcombine.low %v1255_v55, %v1262_v39  ;;  %v939_v24 = vrot.slane %v937_v8, 2 }
  0x40   : > { %v13302_v23 = vsel %vm13095_vm8, %v936_v7, %v937_v8  ;;  %v1264_v26 = vcombine.low %v13279_v3, %v13290_v14  ;;  %v1936_v29 = vrot.slane %v1922_v13, %v13027_v28  ;;  %v13309_v33 = vcombine.high %v13293_v16, %v13293_v16 }
  0x41   : > { %18954 = vst [vmem:[#allocation8_spill] sm:$0xff] %v13296_v17  ;;  %v13313_v34 = vcombine.high %v13296_v17, %v13296_v17  ;;  %v942_v36 = vrot.slane %v940_v2, 2  ;;  %11036 = vmatmul.mubr.msk.f32.gmra.mrb[6].mxu0 %vm1612_vm7, %v1263_v22  ;;  %v13318_v37 = vsel %vm13095_vm8, %v939_v24, %v940_v2  ;;  %v943_v41 = vrot.slane %v860_v19, 7  ;;  %v10065_v24 = vld [vmem:[%s18544_s1 + $0x90] sm:$0xff] }
  0x42   : > { %v1272_v38 = vrot.slane %v1264_v26, %v13027_v28  ;;  %v9994_v43 = vrot.slane %v13293_v16, 9  ;;  %11038 = vmatprep.mubr.msk.f32.mxu0 %vm12857_vm0, %v18555_v12  ;;  %v1265_v52 = vcombine.low %v13302_v23, %v13318_v37  ;;  %v1937_v53 = vcombine.low %v1929_v27, %v1936_v29  ;;  %v10066_v26 = vld [vmem:[%s18544_s1 + $0x98] sm:$0xff] }
  0x43   : > { %18955 = vst [vmem:[#allocation9_spill] sm:$0xff] %v13313_v34  ;;  %v947_v54 = vrot.slane %v13309_v33, 7  ;;  %v950_v55 = vrot.slane %v13296_v17, 7  ;;  %v13331_v58 = vsel %vm13095_vm8, %v942_v36, %v943_v41  ;;  %v953_v47 = vrot.slane %v13313_v34, 7 }
  0x44   : > { %v1938_v51 = vcombine.low %v13256_v35, %v13293_v16  ;;  %v1939_v61 = vcombine.low %v13309_v33, %v13296_v17  ;;  %v1279_v62 = vrot.slane %v1265_v52, %v13027_v28  ;;  %11130 = vmatmul.mubr.msk.f32.gmra.mrb[8].mxu1 %vm1612_vm7, %v1937_v53  ;;  %v504_v7 = vcombine.high %v337_v40, %v337_v40 }
  0x45   : > { %v13342_v0 = vsel %vm13095_vm8, %v9994_v43, %v947_v54  ;;  %v949_v2 = vrot.slane %v947_v54, 2  ;;  %v952_v5 = vrot.slane %v950_v55, 2  ;;  %11132 = vmatprep.mubr.msk.f32.mxu1 %vm12857_vm0, %v18555_v12  ;;  %v13359_v22 = vrot.slane %v337_v40, %v13027_v28 }
  0x46   : > { %v1281_v27 = vcombine.low %v13331_v58, %v13342_v0  ;;  %v1946_v30 = vrot.slane %v1938_v51, %v13027_v28  ;;  %v1953_v39 = vrot.slane %v1939_v61, %v13027_v28  ;;  %v1280_v8 = vcombine.low %v1272_v38, %v1279_v62  ;;  %v10099_v61 = vld [vmem:[%s18544_s1 + $0xd0] sm:$0xff]  ;;  %v10100_v62 = vld [vmem:[%s18544_s1 + $0xd8] sm:$0xff] }
  0x47   : > { %v13352_v13 = vsel %vm13095_vm8, %v949_v2, %v950_v55  ;;  %v13356_v19 = vsel %vm13095_vm8, %v952_v5, %v953_v47  ;;  %18956 = vst [vmem:[#allocation10_spill] sm:$0xff] %v13359_v22  ;;  %v13371_v41 = vrot.slane %v504_v7, %v13027_v28  ;;  %v13376_v43 = vcombine.high %v13359_v22, %v13359_v22 }
  0x48   : > { %v1282_v29 = vcombine.low %v13352_v13, %v13356_v19  ;;  %v1289_v36 = vrot.slane %v1281_v27, %v13027_v28  ;;  %v1954_v38 = vcombine.low %v1946_v30, %v1953_v39  ;;  %11039 = vmatmul.mubr.msk.f32.gmra.mrb[8].mxu0 %vm1612_vm7, %v1280_v8  ;;  %v955_v52 = vrot.slane %v953_v47, 2  ;;  %v338_v39 = vld [vmem:[%s13048_s27 + $0x40] sm:$0xff] }
  0x49   : > { %18957 = vst [vmem:[#allocation11_spill] sm:$0xff] %v13371_v41  ;;  %18958 = vst [vmem:[#allocation12_spill] sm:$0xff] %v13376_v43  ;;  %v956_v53 = vrot.slane %v13359_v22, 7  ;;  %v1955_v54 = vcombine.low %v13313_v34, %v13359_v22  ;;  %11041 = vmatprep.mubr.msk.f32.mxu0 %vm12857_vm0, %v18555_v12  ;;  %v861_v40 = vcombine.high %v13371_v41, %v13371_v41  ;;  %v962_v51 = vrot.slane %v13371_v41, 7 }
  0x4a   : > { %v1296_v55 = vrot.slane %v1282_v29, %v13027_v28  ;;  %11133 = vmatmul.mubr.msk.f32.gmra.mrb[10].mxu1 %vm1612_vm7, %v1954_v38  ;;  %v12245_v47 = vpack.c.bf16 %v10066_v26, %v10065_v24  ;;  %v959_v27 = vrot.slane %v13376_v43, 7  ;;  %v1956_v30 = vcombine.low %v13376_v43, %v13371_v41  ;;  %v339_v29 = vld [vmem:[%s13048_s27 + $0x48] sm:$0x7f] }
  0x4b   : > { %11135 = vmatprep.mubr.msk.f32.mxu1 %vm12857_vm0, %v18555_v12  ;;  %v13398_v2 = vsel %vm13095_vm8, %v955_v52, %v956_v53  ;;  %v958_v5 = vrot.slane %v956_v53, 2  ;;  %v964_v8 = vrot.slane %v962_v51, 2  ;;  %v965_v24 = vrot.slane %v861_v40, 7 }
  0x4c   : > { %v1297_v7 = vcombine.low %v1289_v36, %v1296_v55  ;;  %v1963_v26 = vrot.slane %v1955_v54, %v13027_v28  ;;  %12246 = vmatpush3.bf16.msra.mxu0 %v12245_v47  ;;  %v961_v52 = vrot.slane %v959_v27, 2  ;;  %v1970_v53 = vrot.slane %v1956_v30, %v13027_v28 }
  0x4d   : > { %v13408_v38 = vsel %vm13095_vm8, %v958_v5, %v959_v27  ;;  %v12257_v18 = vpack.c.bf16 %v10100_v62, %v10099_v61  ;;  %12247 = vmatprep.subr.bf16.mxu0 %v18553_v4  ;;  %v13415_v36 = vsel %vm13095_vm8, %v964_v8, %v965_v24  ;;  %v520_v55 = vcombine.high %v338_v39, %v338_v39 }
  0x4e   : > { %18959 = vst [vmem:[#allocation13_spill] sm:$0xff] %v13408_v38  ;;  %11042 = vmatmul.mubr.msk.f32.gmra.mrb[10].mxu0 %vm1612_vm7, %v1297_v7  ;;  %18960 = vst [vmem:[#allocation14_spill] sm:$0xff] %v13415_v36  ;;  %v1298_v54 = vcombine.low %v13398_v2, %v13408_v38  ;;  %v13420_v40 = vrot.slane %v338_v39, %v13027_v28  ;;  %v13426_v47 = vsel %vm13095_vm8, %v961_v52, %v962_v51  ;;  %v13442_v7 = vld [vmem:[%s13048_s27 + $0x50] sm:$0xff] }
  0x4f   : > { %11044 = vmatprep.mubr.msk.f32.mxu0 %vm12857_vm0, %v18555_v12  ;;  %18962 = vst [vmem:[#allocation16_spill] sm:$0xff] %v13426_v47  ;;  %v1971_v61 = vcombine.low %v1963_v26, %v1970_v53  ;;  %12258 = vmatpush3.bf16.msra.mxu1 %v12257_v18  ;;  %v13429_v62 = vrot.slane %v339_v29, %v13027_v28 }
  0x50   : > { %18961 = vst [vmem:[#allocation15_spill] sm:$0xff] %v13420_v40  ;;  %v1299_v5 = vcombine.low %v13426_v47, %v13415_v36  ;;  %v1306_v27 = vrot.slane %v1298_v54, %v13027_v28  ;;  %v13435_v30 = vrot.slane %v520_v55, %v13027_v28  ;;  %v13439_v39 = vcombine.high %v13420_v40, %v13420_v40  ;;  %v341_v47 = vld [vmem:[%s13048_s27 + $0x58] sm:$0x7f] }
  0x51   : > { %18963 = vst [vmem:[#allocation17_spill] sm:$0xff] %v13429_v62  ;;  %12259 = vmatprep.subr.bf16.mxu1 %v18553_v4  ;;  %11136 = vmatmul.mubr.msk.f32.gmra.mrb[12].mxu1 %vm1612_vm7, %v1971_v61  ;;  %v9995_v18 = vrot.slane %v13420_v40, 9  ;;  %v978_v51 = vrot.slane %v13429_v62, 7  ;;  %v537_v8 = vcombine.high %v339_v29, %v339_v29  ;;  %v13450_v24 = vcombine.high %v13429_v62, %v13429_v62 }
  0x52   : > { %18964 = vst [vmem:[#allocation18_spill] sm:$0xff] %v13435_v30  ;;  %18965 = vst [vmem:[#allocation19_spill] sm:$0xff] %v13439_v39  ;;  %v1313_v26 = vrot.slane %v1299_v5, %v13027_v28  ;;  %11138 = vmatprep.mubr.msk.f32.mxu1 %vm12857_vm0, %v18555_v12  ;;  %v13457_v52 = vcombine.high %v13435_v30, %v13435_v30  ;;  %v969_v53 = vrot.slane %v13439_v39, 7  ;;  %v972_v54 = vrot.slane %v13435_v30, 7 }
  0x53   : > { %18966 = vst [vmem:[#allocation20_spill] sm:$0xff] %v13450_v24  ;;  %v1972_v29 = vcombine.low %v13420_v40, %v13439_v39  ;;  %v13464_v55 = vrot.slane %v537_v8, %v13027_v28  ;;  %v13468_v61 = vrot.slane %v13442_v7, %v13027_v28  ;;  %v980_v5 = vrot.slane %v978_v51, 2 }
  0x54   : > { %18967 = vst [vmem:[#allocation21_spill] sm:$0xff] %v13457_v52  ;;  %v1314_v4 = vcombine.low %v1306_v27, %v1313_v26  ;;  %v13472_v12 = vsel %vm13095_vm8, %v9995_v18, %v969_v53  ;;  %v971_v15 = vrot.slane %v969_v53, 2  ;;  %v974_v41 = vrot.slane %v972_v54, 2 }
  0x55   : > { %18968 = vst [vmem:[#allocation22_spill] sm:$0xff] %v13464_v55  ;;  %18969 = vst [vmem:[#allocation23_spill] sm:$0xff] %v13468_v61  ;;  %v975_v36 = vrot.slane %v13457_v52, 7  ;;  %v1973_v39 = vcombine.low %v13435_v30, %v13457_v52  ;;  %v1980_v8 = vrot.slane %v1972_v29, %v13027_v28  ;;  %v13480_v40 = vcombine.high %v13468_v61, %v13468_v61 }
  0x56   : > { %11045 = vmatmul.mubr.msk.f32.gmra.mrb[12].mxu0 %vm1612_vm7, %v1314_v4  ;;  %v13485_v27 = vsel %vm13095_vm8, %v971_v15, %v972_v54  ;;  %v862_v18 = vcombine.high %v13464_v55, %v13464_v55  ;;  %v981_v26 = vrot.slane %v13450_v24, 7  ;;  %v984_v53 = vrot.slane %v13464_v55, 7 }
  0x57   : > { %18970 = vst [vmem:[#allocation24_spill] sm:$0xff] %v13480_v40  ;;  %v18971_v52 = vmov 0.0   ;;  %v13495_v29 = vsel %vm13095_vm8, %v974_v41, %v975_v36  ;;  %v977_v4 = vrot.slane %v975_v36, 2  ;;  %v1315_v15 = vcombine.low %v13472_v12, %v13485_v27 }
  0x58   : > { %11047 = vmatprep.mubr.msk.f32.mxu0 %vm12857_vm0, %v18971_v52  ;;  %v1987_v54 = vrot.slane %v1973_v39, %v13027_v28  ;;  %v13502_v30 = vsel %vm13095_vm8, %v980_v5, %v981_v26  ;;  %v983_v22 = vrot.slane %v981_v26, 2  ;;  %v986_v43 = vrot.slane %v984_v53, 2 }
  0x59   : > { %18972 = vst [vmem:[#allocation25_spill] sm:$0xff] %v13502_v30  ;;  %v987_v17 = vrot.slane %v862_v18, 7  ;;  %v13506_v34 = vsel %vm13095_vm8, %v977_v4, %v978_v51  ;;  %v1323_v41 = vrot.slane %v1315_v15, %v13027_v28  ;;  %v9996_v36 = vrot.slane %v13468_v61, 9 }
  0x5a   : > { %18973 = vst [vmem:[#allocation26_spill] sm:$0xff] %v13506_v34  ;;  %v1988_v38 = vcombine.low %v1980_v8, %v1987_v54  ;;  %v1316_v39 = vcombine.low %v13495_v29, %v13506_v34  ;;  %v13515_v5 = vsel %vm13095_vm8, %v983_v22, %v984_v53  ;;  %v991_v51 = vrot.slane %v13480_v40, 7 }
  0x5b   : > { %18974 = vst [vmem:[#allocation27_spill] sm:$0xff] %v13515_v5  ;;  %v13519_v18 = vsel %vm13095_vm8, %v986_v43, %v987_v17  ;;  %v1332_v8 = vcombine.low %v13502_v30, %v13515_v5  ;;  %v1989_v26 = vcombine.low %v13429_v62, %v13450_v24  ;;  %v1990_v4 = vcombine.low %v13464_v55, %v13468_v61 }
  0x5c   : > { %18975 = vst [vmem:[#allocation28_spill] sm:$0xff] %v13519_v18  ;;  %11139 = vmatmul.mubr.msk.f32.gmra.mrb[14].mxu1 %vm1612_vm7, %v1988_v38  ;;  %v553_v22 = vcombine.high %v13442_v7, %v13442_v7  ;;  %v1330_v17 = vrot.slane %v1316_v39, %v13027_v28  ;;  %v13536_v43 = vsel %vm13095_vm8, %v9996_v36, %v991_v51  ;;  %v993_v53 = vrot.slane %v991_v51, 2  ;;  %v342_v51 = vld [vmem:[%s13048_s27 + $0x60] sm:$0xff] }
  0x5d   : > { %11141 = vmatprep.mubr.msk.f32.mxu1 %vm12857_vm0, %v18971_v52  ;;  %18976 = vst [vmem:[#allocation29_spill] sm:$0xff] %v13536_v43  ;;  %v13539_v38 = vrot.slane %v341_v47, %v13027_v28  ;;  %v1333_v15 = vcombine.low %v13519_v18, %v13536_v43  ;;  %v1340_v54 = vrot.slane %v1332_v8, %v13027_v28 }
  0x5e   : > { %v1997_v7 = vrot.slane %v1989_v26, %v13027_v28  ;;  %v2004_v39 = vrot.slane %v1990_v4, %v13027_v28  ;;  %v1331_v61 = vcombine.low %v1323_v41, %v1330_v17  ;;  %v13547_v24 = vrot.slane %v553_v22, %v13027_v28 }
  0x5f   : > { %18977 = vst [vmem:[#allocation30_spill] sm:$0xff] %v13539_v38  ;;  %v13551_v36 = vcombine.high %v13539_v38, %v13539_v38  ;;  %v1000_v55 = vrot.slane %v13539_v38, 7  ;;  %v1347_v62 = vrot.slane %v1333_v15, %v13027_v28  ;;  %v570_v5 = vcombine.high %v341_v47, %v341_v47 }
  0x60   : > { %18978 = vst [vmem:[#allocation31_spill] sm:$0xff] %v13547_v24  ;;  %v2005_v43 = vcombine.low %v1997_v7, %v2004_v39  ;;  %v586_v8 = vcombine.high %v342_v51, %v342_v51  ;;  %11048 = vmatmul.mubr.msk.f32.gmra.mrb[14].mxu0 %vm1612_vm7, %v1331_v61  ;;  %v13559_v41 = vcombine.high %v13547_v24, %v13547_v24  ;;  %v994_v26 = vrot.slane %v13547_v24, 7 }
  0x61   : > { %18979 = vst [vmem:[#allocation32_spill] sm:$0xff] %v13551_v36  ;;  %v1002_v4 = vrot.slane %v1000_v55, 2  ;;  %v1003_v22 = vrot.slane %v13551_v36, 7  ;;  %11050 = vmatprep.mubr.msk.f32.mxu0 %vm12857_vm0, %v18971_v52  ;;  %v1348_v17 = vcombine.low %v1340_v54, %v1347_v62  ;;  %v2006_v47 = vcombine.low %v13480_v40, %v13547_v24  ;;  %v343_v40 = vld [vmem:[%s13048_s27 + $0x68] sm:$0x7f] }
  0x62   : > { %18980 = vst [vmem:[#allocation33_spill] sm:$0xff] %v13559_v41  ;;  %11142 = vmatmul.mubr.msk.f32.gmra.mrb[16].mxu1 %vm1612_vm7, %v2005_v43  ;;  %v13569_v61 = vrot.slane %v570_v5, %v13027_v28  ;;  %v13575_v15 = vsel %vm13095_vm8, %v993_v53, %v994_v26  ;;  %v996_v7 = vrot.slane %v994_v26, 2  ;;  %v997_v39 = vrot.slane %v13559_v41, 7 }
  0x63   : > { %11144 = vmatprep.mubr.msk.f32.mxu1 %vm12857_vm0, %v18971_v52  ;;  %18982 = vst [vmem:[#allocation35_spill] sm:$0xff] %v13575_v15  ;;  %v13580_v62 = vsel %vm13095_vm8, %v1002_v4, %v1003_v22  ;;  %v2007_v43 = vcombine.low %v13559_v41, %v13539_v38  ;;  %v2014_v5 = vrot.slane %v2006_v47, %v13027_v28  ;;  %v1005_v38 = vrot.slane %v1003_v22, 2 }
  0x64   : > { %18981 = vst [vmem:[#allocation34_spill] sm:$0xff] %v13569_v61  ;;  %18983 = vst [vmem:[#allocation36_spill] sm:$0xff] %v13580_v62  ;;  %v13586_v54 = vrot.slane %v342_v51, %v13027_v28  ;;  %v13589_v24 = vrot.slane %v586_v8, %v13027_v28  ;;  %11051 = vmatmul.mubr.msk.f32.gmra.mrb[16].mxu0 %vm1612_vm7, %v1348_v17  ;;  %v13594_v53 = vsel %vm13095_vm8, %v996_v7, %v997_v39 }
  0x65   : > { %18986 = vst [vmem:[#allocation39_spill] sm:$0xff] %v13594_v53  ;;  %v999_v26 = vrot.slane %v997_v39, 2  ;;  %v863_v4 = vcombine.high %v13569_v61, %v13569_v61  ;;  %11053 = vmatprep.mubr.msk.f32.mxu0 %vm12857_vm0, %v18971_v52  ;;  %v1349_v51 = vcombine.low %v13575_v15, %v13594_v53  ;;  %v2021_v8 = vrot.slane %v2007_v43, %v13027_v28 }
  0x66   : > { %18984 = vst [vmem:[#allocation37_spill] sm:$0xff] %v13586_v54  ;;  %18985 = vst [vmem:[#allocation38_spill] sm:$0xff] %v13589_v24  ;;  %v13605_v17 = vcombine.high %v13586_v54, %v13586_v54  ;;  %v1006_v47 = vrot.slane %v13569_v61, 7  ;;  %v9997_v22 = vrot.slane %v13586_v54, 9  ;;  %v1016_v41 = vrot.slane %v13589_v24, 7 }
  0x67   : > { %v13610_v7 = vsel %vm13095_vm8, %v999_v26, %v1000_v55  ;;  %v1009_v39 = vrot.slane %v863_v4, 7  ;;  %v1357_v43 = vrot.slane %v1349_v51, %v13027_v28  ;;  %v2022_v15 = vcombine.low %v2014_v5, %v2021_v8 }
  0x68   : > { %18987 = vst [vmem:[#allocation40_spill] sm:$0xff] %v13605_v17  ;;  %v1350_v53 = vcombine.low %v13610_v7, %v13580_v62  ;;  %v13620_v18 = vsel %vm13095_vm8, %v1005_v38, %v1006_v47  ;;  %v1008_v34 = vrot.slane %v1006_v47, 2  ;;  %v1013_v55 = vrot.slane %v13605_v17, 7  ;;  %v348_v62 = vld [vmem:[%s13048_s27 + $0x90] sm:$0xff] }
  0x69   : > { %18988 = vst [vmem:[#allocation41_spill] sm:$0xff] %v13620_v18  ;;  %v2023_v26 = vcombine.low %v13551_v36, %v13569_v61  ;;  %v2024_v4 = vcombine.low %v13586_v54, %v13605_v17  ;;  %11145 = vmatmul.mubr.msk.f32.gmra.mrb[18].mxu1 %vm1612_vm7, %v2022_v15  ;;  %v13631_v5 = vcombine.high %v13589_v24, %v13589_v24 }
  0x6a   : > { %v1364_v30 = vrot.slane %v1350_v53, %v13027_v28  ;;  %v603_v51 = vcombine.high %v343_v40, %v343_v40  ;;  %v13634_v38 = vrot.slane %v343_v40, %v13027_v28  ;;  %11147 = vmatprep.mubr.msk.f32.mxu1 %vm12857_vm0, %v18971_v52  ;;  %v13640_v8 = vsel %vm13095_vm8, %v1008_v34, %v1009_v39 }
  0x6b   : > { %18989 = vst [vmem:[#allocation42_spill] sm:$0xff] %v13631_v5  ;;  %18991 = vst [vmem:[#allocation44_spill] sm:$0xff] %v13640_v8  ;;  %v13644_v53 = vsel %vm13095_vm8, %v9997_v22, %v1013_v55  ;;  %v1015_v15 = vrot.slane %v1013_v55, 2  ;;  %v2031_v47 = vrot.slane %v2023_v26, %v13027_v28  ;;  %v1366_v40 = vcombine.low %v13620_v18, %v13640_v8 }
  0x6c   : > { %18990 = vst [vmem:[#allocation43_spill] sm:$0xff] %v13634_v38  ;;  %18992 = vst [vmem:[#allocation45_spill] sm:$0xff] %v13644_v53  ;;  %v1365_v17 = vcombine.low %v1357_v43, %v1364_v30  ;;  %v2038_v61 = vrot.slane %v2024_v4, %v13027_v28  ;;  %v13651_v54 = vrot.slane %v603_v51, %v13027_v28  ;;  %v1018_v22 = vrot.slane %v1016_v41, 2  ;;  %v344_v51 = vld [vmem:[%s13048_s27 + $0x70] sm:$0xff] }
  0x6d   : > { %v13655_v34 = vsel %vm13095_vm8, %v1015_v15, %v1016_v41  ;;  %v13659_v39 = vcombine.high %v13634_v38, %v13634_v38  ;;  %v1019_v55 = vrot.slane %v13631_v5, 7  ;;  %v1374_v43 = vrot.slane %v1366_v40, %v13027_v28 }
  0x6e   : > { %18993 = vst [vmem:[#allocation46_spill] sm:$0xff] %v13651_v54  ;;  %18994 = vst [vmem:[#allocation47_spill] sm:$0xff] %v13655_v34  ;;  %11054 = vmatmul.mubr.msk.f32.gmra.mrb[18].mxu0 %vm1612_vm7, %v1365_v17  ;;  %v1367_v30 = vcombine.low %v13644_v53, %v13655_v34  ;;  %v2039_v26 = vcombine.low %v2031_v47, %v2038_v61  ;;  %v1022_v4 = vrot.slane %v13634_v38, 7  ;;  %v1028_v17 = vrot.slane %v13651_v54, 7 }
  0x6f   : > { %18995 = vst [vmem:[#allocation48_spill] sm:$0xff] %v13659_v39  ;;  %11056 = vmatprep.mubr.msk.f32.mxu0 %vm12857_vm0, %v18971_v52  ;;  %v13672_v15 = vsel %vm13095_vm8, %v1018_v22, %v1019_v55  ;;  %v1021_v41 = vrot.slane %v1019_v55, 2  ;;  %v1025_v36 = vrot.slane %v13659_v39, 7  ;;  %v2040_v47 = vcombine.low %v13589_v24, %v13631_v5 }
  0x70   : > { %18996 = vst [vmem:[#allocation49_spill] sm:$0xff] %v13672_v15  ;;  %v1381_v34 = vrot.slane %v1367_v30, %v13027_v28  ;;  %11148 = vmatmul.mubr.msk.f32.gmra.mrb[20].mxu1 %vm1612_vm7, %v2039_v26  ;;  %v1024_v61 = vrot.slane %v1022_v4, 2  ;;  %v2041_v40 = vcombine.low %v13634_v38, %v13659_v39  ;;  %v619_v8 = vcombine.high %v344_v51, %v344_v51 }
  0x71   : > { %11150 = vmatprep.mubr.msk.f32.mxu1 %vm12857_vm0, %v18971_v52  ;;  %v13686_v22 = vsel %vm13095_vm8, %v1021_v41, %v1022_v4  ;;  %v1027_v55 = vrot.slane %v1025_v36, 2  ;;  %v13689_v30 = vrot.slane %v344_v51, %v13027_v28  ;;  %v2048_v5 = vrot.slane %v2040_v47, %v13027_v28 }
  0x72   : > { %18997 = vst [vmem:[#allocation50_spill] sm:$0xff] %v13686_v22  ;;  %v1382_v26 = vcombine.low %v1374_v43, %v1381_v34  ;;  %v13693_v53 = vsel %vm13095_vm8, %v1024_v61, %v1025_v36  ;;  %v1383_v39 = vcombine.low %v13672_v15, %v13686_v22  ;;  %v2055_v4 = vrot.slane %v2041_v40, %v13027_v28 }
  0x73   : > { %18998 = vst [vmem:[#allocation51_spill] sm:$0xff] %v13689_v30  ;;  %18999 = vst [vmem:[#allocation52_spill] sm:$0xff] %v13693_v53  ;;  %v13700_v38 = vsel %vm13095_vm8, %v1027_v55, %v1028_v17  ;;  %v13704_v41 = vrot.slane %v619_v8, %v13027_v28  ;;  %v13708_v34 = vcombine.high %v13689_v30, %v13689_v30  ;;  %v1030_v61 = vrot.slane %v1028_v17, 2 }
  0x74   : > { %19000 = vst [vmem:[#allocation53_spill] sm:$0xff] %v13700_v38  ;;  %11057 = vmatmul.mubr.msk.f32.gmra.mrb[20].mxu0 %vm1612_vm7, %v1382_v26  ;;  %v1384_v36 = vcombine.low %v13693_v53, %v13700_v38  ;;  %v1391_v43 = vrot.slane %v1383_v39, %v13027_v28  ;;  %v864_v51 = vcombine.high %v13651_v54, %v13651_v54  ;;  %v9998_v40 = vrot.slane %v13689_v30, 9 }
  0x75   : > { %19001 = vst [vmem:[#allocation54_spill] sm:$0xff] %v13704_v41  ;;  %19002 = vst [vmem:[#allocation55_spill] sm:$0xff] %v13708_v34  ;;  %11059 = vmatprep.mubr.msk.f32.mxu0 %vm12857_vm0, %v18971_v52  ;;  %v2056_v8 = vcombine.low %v2048_v5, %v2055_v4  ;;  %v13720_v47 = vcombine.high %v13704_v41, %v13704_v41  ;;  %v1035_v55 = vrot.slane %v13708_v34, 7  ;;  %v1038_v38 = vrot.slane %v13704_v41, 7  ;;  %v10067_v5 = vld [vmem:[%s18544_s1 + $0xa0] sm:$0xff]  ;;  %v10068_v4 = vld [vmem:[%s18544_s1 + $0xa8] sm:$0xff] }
  0x76   : > { %v1398_v26 = vrot.slane %v1384_v36, %v13027_v28  ;;  %v1031_v39 = vrot.slane %v864_v51, 7  ;;  %v2057_v17 = vcombine.low %v13651_v54, %v13689_v30  ;;  %v2058_v30 = vcombine.low %v13708_v34, %v13704_v41  ;;  %v345_v54 = vld [vmem:[%s13048_s27 + $0x78] sm:$0x7f] }
  0x77   : > { %19003 = vst [vmem:[#allocation56_spill] sm:$0xff] %v13720_v47  ;;  %11151 = vmatmul.mubr.msk.f32.gmra.mrb[22].mxu1 %vm1612_vm7, %v2056_v8  ;;  %v13737_v24 = vsel %vm13095_vm8, %v9998_v40, %v1035_v55  ;;  %v1037_v36 = vrot.slane %v1035_v55, 2  ;;  %v1041_v51 = vrot.slane %v13720_v47, 7  ;;  %v1040_v8 = vrot.slane %v1038_v38, 2 }
  0x78   : > { %19004 = vst [vmem:[#allocation57_spill] sm:$0xff] %v13737_v24  ;;  %v1399_v22 = vcombine.low %v1391_v43, %v1398_v26  ;;  %11153 = vmatprep.mubr.msk.f32.mxu1 %vm12857_vm0, %v18971_v52  ;;  %v13747_v53 = vsel %vm13095_vm8, %v1030_v61, %v1031_v39  ;;  %v2065_v40 = vrot.slane %v2057_v17, %v13027_v28 }
  0x79   : > { %19005 = vst [vmem:[#allocation58_spill] sm:$0xff] %v13747_v53  ;;  %v13752_v55 = vsel %vm13095_vm8, %v1037_v36, %v1038_v38  ;;  %v1400_v41 = vcombine.low %v13747_v53, %v13737_v24  ;;  %v2072_v43 = vrot.slane %v2058_v30, %v13027_v28  ;;  %v12248_v26 = vpack.c.bf16 %v10068_v4, %v10067_v5  ;;  %v10101_v38 = vld [vmem:[%s18544_s1 + $0xe0] sm:$0xff]  ;;  %v10102_v30 = vld [vmem:[%s18544_s1 + $0xe8] sm:$0xff] }
  0x7a   : > { %19006 = vst [vmem:[#allocation59_spill] sm:$0xff] %v13752_v55  ;;  %11060 = vmatmul.mubr.msk.f32.gmra.mrb[22].mxu0 %vm1612_vm7, %v1399_v22  ;;  %v13760_v34 = vsel %vm13095_vm8, %v1040_v8, %v1041_v51  ;;  %v636_v61 = vcombine.high %v345_v54, %v345_v54  ;;  %v13763_v39 = vrot.slane %v345_v54, %v13027_v28  ;;  %v1043_v17 = vrot.slane %v1041_v51, 2  ;;  %v346_v5 = vld [vmem:[%s13048_s27 + $0x80] sm:$0xff] }
  0x7b   : > { %19007 = vst [vmem:[#allocation60_spill] sm:$0xff] %v13760_v34  ;;  %11062 = vmatprep.mubr.msk.f32.mxu0 %vm12857_vm0, %v18971_v52  ;;  %v1401_v22 = vcombine.low %v13752_v55, %v13760_v34  ;;  %v1408_v4 = vrot.slane %v1400_v41, %v13027_v28  ;;  %v2073_v54 = vcombine.low %v2065_v40, %v2072_v43  ;;  %v19011_v53 = vmov 0.0|0.0  }
  0x7c   : > { %19008 = vst [vmem:[#allocation61_spill] sm:$0xff] %v13763_v39  ;;  %12249 = vmatpush3.bf16.msra.mxu0 %v12248_v26  ;;  %v13778_v36 = vrot.slane %v636_v61, %v13027_v28  ;;  %v13782_v51 = vcombine.high %v13763_v39, %v13763_v39  ;;  %v1044_v8 = vrot.slane %v13763_v39, 7  ;;  %v2074_v24 = vcombine.low %v13720_v47, %v13763_v39 }
  0x7d   : > { %12250 = vmatprep.subr.bf16.mxu0 %v19011_v53  ;;  %v1415_v34 = vrot.slane %v1401_v22, %v13027_v28  ;;  %11154 = vmatmul.mubr.msk.f32.gmra.mrb[24].mxu1 %vm1612_vm7, %v2073_v54  ;;  %v12260_v41 = vpack.c.bf16 %v10102_v30, %v10101_v38  ;;  %v652_v40 = vcombine.high %v346_v5, %v346_v5  ;;  %v347_v54 = vld [vmem:[%s13048_s27 + $0x88] sm:$0x7f] }
  0x7e   : > { %19009 = vst [vmem:[#allocation62_spill] sm:$0xff] %v13778_v36  ;;  %19010 = vst [vmem:[#allocation63_spill] sm:$0xff] %v13782_v51  ;;  %v13791_v43 = vrot.slane %v346_v5, %v13027_v28  ;;  %11156 = vmatprep.mubr.msk.f32.mxu1 %vm12857_vm0, %v18971_v52  ;;  %v865_v26 = vcombine.high %v13778_v36, %v13778_v36  ;;  %v13799_v61 = vsel %vm13095_vm8, %v1043_v17, %v1044_v8 }
  0x7f   : > { %19013 = vst [vmem:[#allocation65_spill] sm:$0xff] %v13799_v61  ;;  %v1046_v39 = vrot.slane %v1044_v8, 2  ;;  %v1047_v22 = vrot.slane %v13782_v51, 7  ;;  %v1416_v47 = vcombine.low %v1408_v4, %v1415_v34  ;;  %v1050_v38 = vrot.slane %v13778_v36, 7  ;;  %12261 = vmatpush3.bf16.msra.mxu1 %v12260_v41 }
  0x80   : > { %19012 = vst [vmem:[#allocation64_spill] sm:$0xff] %v13791_v43  ;;  %v2075_v30 = vcombine.low %v13782_v51, %v13778_v36  ;;  %v2082_v5 = vrot.slane %v2074_v24, %v13027_v28  ;;  %v1053_v17 = vrot.slane %v865_v26, 7  ;;  %v13812_v8 = vrot.slane %v652_v40, %v13027_v28  ;;  %12262 = vmatprep.subr.bf16.mxu1 %v19011_v53 }
  0x81   : > { %v13809_v55 = vsel %vm13095_vm8, %v1046_v39, %v1047_v22  ;;  %v1049_v15 = vrot.slane %v1047_v22, 2  ;;  %11063 = vmatmul.mubr.msk.f32.gmra.mrb[24].mxu0 %vm1612_vm7, %v1416_v47  ;;  %v1052_v34 = vrot.slane %v1050_v38, 2  ;;  %v13821_v41 = vcombine.high %v13791_v43, %v13791_v43 }
  0x82   : > { %19014 = vst [vmem:[#allocation66_spill] sm:$0xff] %v13809_v55  ;;  %19015 = vst [vmem:[#allocation67_spill] sm:$0xff] %v13812_v8  ;;  %v1417_v4 = vcombine.low %v13799_v61, %v13809_v55  ;;  %v2089_v24 = vrot.slane %v2075_v30, %v13027_v28  ;;  %11065 = vmatprep.mubr.msk.f32.mxu0 %vm12857_vm0, %v18971_v52  ;;  %v13831_v47 = vcombine.high %v13812_v8, %v13812_v8 }
  0x83   : > { %19016 = vst [vmem:[#allocation68_spill] sm:$0xff] %v13821_v41  ;;  %v13827_v39 = vsel %vm13095_vm8, %v1049_v15, %v1050_v38  ;;  %v13834_v40 = vrot.slane %v347_v54, %v13027_v28  ;;  %v9999_v26 = vrot.slane %v13791_v43, 9  ;;  %v13839_v22 = vsel %vm13095_vm8, %v1052_v34, %v1053_v17 }
  0x84   : > { %19017 = vst [vmem:[#allocation69_spill] sm:$0xff] %v13827_v39  ;;  %19018 = vst [vmem:[#allocation70_spill] sm:$0xff] %v13831_v47  ;;  %v1425_v30 = vrot.slane %v1417_v4, %v13027_v28  ;;  %v2090_v36 = vcombine.low %v2082_v5, %v2089_v24  ;;  %v1057_v15 = vrot.slane %v13821_v41, 7  ;;  %v1418_v38 = vcombine.low %v13827_v39, %v13839_v22 }
  0x85   : > { %19019 = vst [vmem:[#allocation71_spill] sm:$0xff] %v13834_v40  ;;  %19020 = vst [vmem:[#allocation72_spill] sm:$0xff] %v13839_v22  ;;  %v1060_v51 = vrot.slane %v13812_v8, 7  ;;  %v1063_v55 = vrot.slane %v13831_v47, 7  ;;  %v1066_v61 = vrot.slane %v13834_v40, 7  ;;  %v2091_v5 = vcombine.low %v13791_v43, %v13821_v41 }
  0x86   : > { %11157 = vmatmul.mubr.msk.f32.gmra.mrb[26].mxu1 %vm1612_vm7, %v2090_v36  ;;  %v13851_v17 = vsel %vm13095_vm8, %v9999_v26, %v1057_v15  ;;  %v1059_v34 = vrot.slane %v1057_v15, 2  ;;  %v2092_v4 = vcombine.low %v13812_v8, %v13831_v47  ;;  %v1432_v24 = vrot.slane %v1418_v38, %v13027_v28 }
  0x87   : > { %19021 = vst [vmem:[#allocation73_spill] sm:$0xff] %v13851_v17  ;;  %11159 = vmatprep.mubr.msk.f32.mxu1 %vm12857_vm0, %v18971_v52  ;;  %v1062_v22 = vrot.slane %v1060_v51, 2  ;;  %v1065_v39 = vrot.slane %v1063_v55, 2  ;;  %v669_v36 = vcombine.high %v347_v54, %v347_v54  ;;  %v2099_v15 = vrot.slane %v2091_v5, %v13027_v28 }
  0x88   : > { %v13863_v26 = vsel %vm13095_vm8, %v1059_v34, %v1060_v51  ;;  %v2106_v41 = vrot.slane %v2092_v4, %v13027_v28  ;;  %v13869_v47 = vcombine.high %v13834_v40, %v13834_v40  ;;  %v1433_v38 = vcombine.low %v1425_v30, %v1432_v24 }
  0x89   : > { %19022 = vst [vmem:[#allocation74_spill] sm:$0xff] %v13863_v26  ;;  %v13873_v8 = vsel %vm13095_vm8, %v1062_v22, %v1063_v55  ;;  %v13877_v54 = vsel %vm13095_vm8, %v1065_v39, %v1066_v61  ;;  %v1434_v51 = vcombine.low %v13851_v17, %v13863_v26  ;;  %v13884_v4 = vrot.slane %v669_v36, %v13027_v28 }
  0x8a   : > { %19023 = vst [vmem:[#allocation75_spill] sm:$0xff] %v13869_v47  ;;  %19024 = vst [vmem:[#allocation76_spill] sm:$0xff] %v13873_v8  ;;  %v1435_v34 = vcombine.low %v13873_v8, %v13877_v54  ;;  %v2107_v5 = vcombine.low %v2099_v15, %v2106_v41  ;;  %v13887_v30 = vrot.slane %v348_v62, %v13027_v28  ;;  %11066 = vmatmul.mubr.msk.f32.gmra.mrb[26].mxu0 %vm1612_vm7, %v1433_v38 }
  0x8b   : > { %19025 = vst [vmem:[#allocation77_spill] sm:$0xff] %v13877_v54  ;;  %19026 = vst [vmem:[#allocation78_spill] sm:$0xff] %v13884_v4  ;;  %v1442_v55 = vrot.slane %v1434_v51, %v13027_v28  ;;  %v1068_v39 = vrot.slane %v1066_v61, 2  ;;  %v1069_v22 = vrot.slane %v13869_v47, 7  ;;  %v2108_v24 = vcombine.low %v13834_v40, %v13869_v47  ;;  %11068 = vmatprep.mubr.msk.f32.mxu0 %vm12857_vm0, %v18971_v52  ;;  %v349_v47 = vld [vmem:[%s13048_s27 + $0x98] sm:$0x7f] }
  0x8c   : > { %19027 = vst [vmem:[#allocation79_spill] sm:$0xff] %v13887_v30  ;;  %v1449_v41 = vrot.slane %v1435_v34, %v13027_v28  ;;  %11160 = vmatmul.mubr.msk.f32.gmra.mrb[28].mxu1 %vm1612_vm7, %v2107_v5  ;;  %v13900_v36 = vcombine.high %v13887_v30, %v13887_v30  ;;  %v866_v15 = vcombine.high %v13884_v4, %v13884_v4  ;;  %v1072_v61 = vrot.slane %v13884_v4, 7 }
  0x8d   : > { %11162 = vmatprep.mubr.msk.f32.mxu1 %vm12857_vm0, %v18971_v52  ;;  %v13909_v38 = vsel %vm13095_vm8, %v1068_v39, %v1069_v22  ;;  %v1071_v51 = vrot.slane %v1069_v22, 2  ;;  %v10000_v34 = vrot.slane %v13887_v30, 9  ;;  %v2109_v5 = vcombine.low %v13884_v4, %v13887_v30 }
  0x8e   : > { %19028 = vst [vmem:[#allocation80_spill] sm:$0xff] %v13900_v36  ;;  %19029 = vst [vmem:[#allocation81_spill] sm:$0xff] %v13909_v38  ;;  %v1450_v54 = vcombine.low %v1442_v55, %v1449_v41  ;;  %v1074_v40 = vrot.slane %v1072_v61, 2  ;;  %v1075_v43 = vrot.slane %v866_v15, 7  ;;  %v1079_v26 = vrot.slane %v13900_v36, 7 }
  0x8f   : > { %v13918_v8 = vsel %vm13095_vm8, %v1071_v51, %v1072_v61  ;;  %v2116_v17 = vrot.slane %v2108_v24, %v13027_v28  ;;  %v2123_v39 = vrot.slane %v2109_v5, %v13027_v28  ;;  %v685_v22 = vcombine.high %v348_v62, %v348_v62 }
  0x90   : > { %19030 = vst [vmem:[#allocation82_spill] sm:$0xff] %v13918_v8  ;;  %11069 = vmatmul.mubr.msk.f32.gmra.mrb[28].mxu0 %vm1612_vm7, %v1450_v54  ;;  %v13925_v30 = vsel %vm13095_vm8, %v1074_v40, %v1075_v43  ;;  %v13929_v55 = vsel %vm13095_vm8, %v10000_v34, %v1079_v26  ;;  %v1451_v41 = vcombine.low %v13909_v38, %v13918_v8  ;;  %v1081_v40 = vrot.slane %v1079_v26, 2 }
  0x91   : > { %19031 = vst [vmem:[#allocation83_spill] sm:$0xff] %v13925_v30  ;;  %19032 = vst [vmem:[#allocation84_spill] sm:$0xff] %v13929_v55  ;;  %v13934_v15 = vrot.slane %v349_v47, %v13027_v28  ;;  %11071 = vmatprep.mubr.msk.f32.mxu0 %vm12857_vm0, %v18971_v52  ;;  %v1452_v62 = vcombine.low %v13925_v30, %v13929_v55  ;;  %v2124_v54 = vcombine.low %v2116_v17, %v2123_v39 }
  0x92   : > { %v13941_v43 = vrot.slane %v685_v22, %v13027_v28  ;;  %v1459_v24 = vrot.slane %v1451_v41, %v13027_v28  ;;  %v702_v34 = vcombine.high %v349_v47, %v349_v47  ;;  %v350_v22 = vld [vmem:[%s13048_s27 + $0xa0] sm:$0xff] }
  0x93   : > { %19033 = vst [vmem:[#allocation85_spill] sm:$0xff] %v13934_v15  ;;  %v13946_v61 = vcombine.high %v13934_v15, %v13934_v15  ;;  %v1088_v51 = vrot.slane %v13934_v15, 7  ;;  %v1466_v5 = vrot.slane %v1452_v62, %v13027_v28  ;;  %11163 = vmatmul.mubr.msk.f32.gmra.mrb[30].mxu1 %vm1612_vm7, %v2124_v54  ;;  %v718_v54 = vcombine.high %v350_v22, %v350_v22 }
  0x94   : > { %19034 = vst [vmem:[#allocation86_spill] sm:$0xff] %v13941_v43  ;;  %v13953_v17 = vcombine.high %v13941_v43, %v13941_v43  ;;  %v1082_v39 = vrot.slane %v13941_v43, 7  ;;  %v2125_v26 = vcombine.low %v13900_v36, %v13941_v43  ;;  %11165 = vmatprep.mubr.msk.f32.mxu1 %vm12857_vm0, %v18971_v52  ;;  %v13963_v62 = vrot.slane %v702_v34, %v13027_v28 }
  0x95   : > { %19035 = vst [vmem:[#allocation87_spill] sm:$0xff] %v13946_v61  ;;  %v1090_v41 = vrot.slane %v1088_v51, 2  ;;  %v1091_v47 = vrot.slane %v13946_v61, 7  ;;  %v1467_v55 = vcombine.low %v1459_v24, %v1466_v5  ;;  %v13978_v34 = vrot.slane %v350_v22, %v13027_v28 }
  0x96   : > { %19036 = vst [vmem:[#allocation88_spill] sm:$0xff] %v13953_v17  ;;  %19037 = vst [vmem:[#allocation89_spill] sm:$0xff] %v13963_v62  ;;  %v13967_v4 = vsel %vm13095_vm8, %v1081_v40, %v1082_v39  ;;  %v1084_v8 = vrot.slane %v1082_v39, 2  ;;  %v1085_v30 = vrot.slane %v13953_v17, 7  ;;  %v2126_v36 = vcombine.low %v13953_v17, %v13934_v15 }
  0x97   : > { %19038 = vst [vmem:[#allocation90_spill] sm:$0xff] %v13967_v4  ;;  %v13972_v43 = vsel %vm13095_vm8, %v1090_v41, %v1091_v47  ;;  %v2133_v38 = vrot.slane %v2125_v26, %v13027_v28  ;;  %19040 = vst [vmem:[#allocation92_spill] sm:$0xff] %v13978_v34  ;;  %11072 = vmatmul.mubr.msk.f32.gmra.mrb[30].mxu0 %vm1612_vm7, %v1467_v55  ;;  %v13986_v5 = vrot.slane %v718_v54, %v13027_v28 }
  0x98   : > { %19039 = vst [vmem:[#allocation91_spill] sm:$0xff] %v13972_v43  ;;  %v13983_v40 = vsel %vm13095_vm8, %v1084_v8, %v1085_v30  ;;  %v1087_v24 = vrot.slane %v1085_v30, 2  ;;  %v867_v39 = vcombine.high %v13963_v62, %v13963_v62  ;;  %11074 = vmatprep.mubr.msk.f32.mxu0 %vm12857_vm0, %v18971_v52  ;;  %v2140_v22 = vrot.slane %v2126_v36, %v13027_v28 }
  0x99   : > { %19041 = vst [vmem:[#allocation93_spill] sm:$0xff] %v13983_v40  ;;  %19042 = vst [vmem:[#allocation94_spill] sm:$0xff] %v13986_v5  ;;  %v1468_v26 = vcombine.low %v13967_v4, %v13983_v40  ;;  %v13997_v55 = vcombine.high %v13978_v34, %v13978_v34  ;;  %v1093_v8 = vrot.slane %v1091_v47, 2  ;;  %v1094_v41 = vrot.slane %v13963_v62, 7 }
  0x9a   : > { %v14001_v30 = vsel %vm13095_vm8, %v1087_v24, %v1088_v51  ;;  %v1097_v54 = vrot.slane %v867_v39, 7  ;;  %v10001_v15 = vrot.slane %v13978_v34, 9  ;;  %v2141_v4 = vcombine.low %v2133_v38, %v2140_v22 }
  0x9b   : > { %19043 = vst [vmem:[#allocation95_spill] sm:$0xff] %v13997_v55  ;;  %v1469_v40 = vcombine.low %v14001_v30, %v13972_v43  ;;  %v1476_v36 = vrot.slane %v1468_v26, %v13027_v28  ;;  %v1101_v17 = vrot.slane %v13997_v55, 7  ;;  %v14011_v47 = vsel %vm13095_vm8, %v1093_v8, %v1094_v41  ;;  %v351_v8 = vld [vmem:[%s13048_s27 + $0xa8] sm:$0x7f] }
  0x9c   : > { %19044 = vst [vmem:[#allocation96_spill] sm:$0xff] %v14011_v47  ;;  %v1096_v51 = vrot.slane %v1094_v41, 2  ;;  %v1104_v24 = vrot.slane %v13986_v5, 7  ;;  %v2142_v39 = vcombine.low %v13946_v61, %v13963_v62  ;;  %11166 = vmatmul.mubr.msk.f32.gmra.mrb[32].mxu1 %vm1612_vm7, %v2141_v4  ;;  %v2143_v22 = vcombine.low %v13978_v34, %v13997_v55 }
  0x9d   : > { %v1483_v18 = vrot.slane %v1469_v40, %v13027_v28  ;;  %v14020_v26 = vsel %vm13095_vm8, %v10001_v15, %v1101_v17  ;;  %v1103_v38 = vrot.slane %v1101_v17, 2  ;;  %11168 = vmatprep.mubr.msk.f32.mxu1 %vm12857_vm0, %v18971_v52  ;;  %v14034_v4 = vcombine.high %v13986_v5, %v13986_v5 }
  0x9e   : > { %19045 = vst [vmem:[#allocation97_spill] sm:$0xff] %v14020_v26  ;;  %v14029_v41 = vsel %vm13095_vm8, %v1096_v51, %v1097_v54  ;;  %v2150_v40 = vrot.slane %v2142_v39, %v13027_v28  ;;  %v735_v15 = vcombine.high %v351_v8, %v351_v8  ;;  %v2157_v62 = vrot.slane %v2143_v22, %v13027_v28 }
  0x9f   : > { %19046 = vst [vmem:[#allocation98_spill] sm:$0xff] %v14029_v41  ;;  %19047 = vst [vmem:[#allocation99_spill] sm:$0xff] %v14034_v4  ;;  %v1484_v43 = vcombine.low %v1476_v36, %v1483_v18  ;;  %v14038_v17 = vsel %vm13095_vm8, %v1103_v38, %v1104_v24  ;;  %v1485_v55 = vcombine.low %v14011_v47, %v14029_v41  ;;  %v1106_v18 = vrot.slane %v1104_v24, 2  ;;  %v10069_v36 = vld [vmem:[%s18544_s1 + $0xb0] sm:$0xff]  ;;  %v10070_v38 = vld [vmem:[%s18544_s1 + $0xb8] sm:$0xff] }
  0xa0   : > { %19048 = vst [vmem:[#allocation100_spill] sm:$0xff] %v14038_v17  ;;  %v1486_v54 = vcombine.low %v14020_v26, %v14038_v17  ;;  %v14046_v51 = vrot.slane %v351_v8, %v13027_v28  ;;  %v14049_v39 = vrot.slane %v735_v15, %v13027_v28  ;;  %v2158_v17 = vcombine.low %v2150_v40, %v2157_v62 }
  0xa1   : > { %11075 = vmatmul.mubr.msk.f32.gmra.mrb[32].mxu0 %vm1612_vm7, %v1484_v43  ;;  %v1493_v22 = vrot.slane %v1485_v55, %v13027_v28  ;;  %v1107_v8 = vrot.slane %v14034_v4, 7  ;;  %v2159_v15 = vcombine.low %v13986_v5, %v14034_v4  ;;  %v352_v55 = vld [vmem:[%s13048_s27 + $0xb0] sm:$0xff]  ;;  %v12251_v5 = vpack.c.bf16 %v10070_v38, %v10069_v36 }
  0xa2   : > { %19049 = vst [vmem:[#allocation101_spill] sm:$0xff] %v14046_v51  ;;  %11077 = vmatprep.mubr.msk.f32.mxu0 %vm12857_vm0, %v18971_v52  ;;  %v1500_v24 = vrot.slane %v1486_v54, %v13027_v28  ;;  %v14067_v41 = vcombine.high %v14046_v51, %v14046_v51  ;;  %v1110_v26 = vrot.slane %v14046_v51, 7  ;;  %v1116_v43 = vrot.slane %v14049_v39, 7  ;;  %11169 = vmatmul.mubr.msk.f32.gmra.mrb[34].mxu1 %vm1612_vm7, %v2158_v17 }
  0xa3   : > { %v14075_v62 = vsel %vm13095_vm8, %v1106_v18, %v1107_v8  ;;  %v1109_v40 = vrot.slane %v1107_v8, 2  ;;  %v2167_v4 = vrot.slane %v2159_v15, %v13027_v28  ;;  %11171 = vmatprep.mubr.msk.f32.mxu1 %vm12857_vm0, %v18971_v52  ;;  %12252 = vmatpush3.bf16.msra.mxu0 %v12251_v5  ;;  %v751_v18 = vcombine.high %v352_v55, %v352_v55 }
  0xa4   : > { %19050 = vst [vmem:[#allocation102_spill] sm:$0xff] %v14067_v41  ;;  %19051 = vst [vmem:[#allocation103_spill] sm:$0xff] %v14075_v62  ;;  %v1501_v54 = vcombine.low %v1493_v22, %v1500_v24  ;;  %v1112_v47 = vrot.slane %v1110_v26, 2  ;;  %v1113_v34 = vrot.slane %v14067_v41, 7  ;;  %v2160_v61 = vcombine.low %v14046_v51, %v14067_v41  ;;  %12265 = vmatprep.subr.bf16.mxu0 %v19011_v53 }
  0xa5   : > { %v14085_v17 = vsel %vm13095_vm8, %v1109_v40, %v1110_v26  ;;  %v14088_v8 = vrot.slane %v352_v55, %v13027_v28  ;;  %v868_v36 = vcombine.high %v14049_v39, %v14049_v39  ;;  %v14104_v5 = vrot.slane %v751_v18, %v13027_v28 }
  0xa6   : > { %19052 = vst [vmem:[#allocation104_spill] sm:$0xff] %v14085_v17  ;;  %11078 = vmatmul.mubr.msk.f32.gmra.mrb[34].mxu0 %vm1612_vm7, %v1501_v54  ;;  %v14095_v38 = vsel %vm13095_vm8, %v1112_v47, %v1113_v34  ;;  %v1115_v22 = vrot.slane %v1113_v34, 2  ;;  %v1502_v15 = vcombine.low %v14075_v62, %v14085_v17  ;;  %v2174_v26 = vrot.slane %v2160_v61, %v13027_v28  ;;  %v10103_v34 = vld [vmem:[%s18544_s1 + $0xf0] sm:$0xff]  ;;  %v10104_v61 = vld [vmem:[%s18544_s1 + $0xf8] sm:$0xff] }
  0xa7   : > { %19053 = vst [vmem:[#allocation105_spill] sm:$0xff] %v14088_v8  ;;  %19054 = vst [vmem:[#allocation106_spill] sm:$0xff] %v14095_v38  ;;  %11080 = vmatprep.mubr.msk.f32.mxu0 %vm12857_vm0, %v18971_v52  ;;  %v14108_v24 = vcombine.high %v14088_v8, %v14088_v8  ;;  %v1118_v47 = vrot.slane %v1116_v43, 2  ;;  %v1119_v55 = vrot.slane %v868_v36, 7  ;;  %v10002_v41 = vrot.slane %v14088_v8, 9 }
  0xa8   : > { %19055 = vst [vmem:[#allocation107_spill] sm:$0xff] %v14104_v5  ;;  %v14118_v40 = vsel %vm13095_vm8, %v1115_v22, %v1116_v43  ;;  %v1510_v54 = vrot.slane %v1502_v15, %v13027_v28  ;;  %v2175_v18 = vcombine.low %v2167_v4, %v2174_v26  ;;  %v14126_v17 = vcombine.high %v14104_v5, %v14104_v5  ;;  %v353_v26 = vld [vmem:[%s13048_s27 + $0xb8] sm:$0x7f] }
  0xa9   : > { %19056 = vst [vmem:[#allocation108_spill] sm:$0xff] %v14108_v24  ;;  %19057 = vst [vmem:[#allocation109_spill] sm:$0xff] %v14118_v40  ;;  %v1503_v36 = vcombine.low %v14095_v38, %v14118_v40  ;;  %v14130_v62 = vsel %vm13095_vm8, %v1118_v47, %v1119_v55  ;;  %v1123_v51 = vrot.slane %v14108_v24, 7  ;;  %v1126_v43 = vrot.slane %v14104_v5, 7 }
  0xaa   : > { %19058 = vst [vmem:[#allocation110_spill] sm:$0xff] %v14126_v17  ;;  %19059 = vst [vmem:[#allocation111_spill] sm:$0xff] %v14130_v62  ;;  %11172 = vmatmul.mubr.msk.f32.gmra.mrb[36].mxu1 %vm1612_vm7, %v2175_v18  ;;  %v2176_v4 = vcombine.low %v14049_v39, %v14088_v8  ;;  %v2177_v22 = vcombine.low %v14108_v24, %v14104_v5  ;;  %v12263_v15 = vpack.c.bf16 %v10104_v61, %v10103_v34 }
  0xab   : > { %v1517_v40 = vrot.slane %v1503_v36, %v13027_v28  ;;  %11174 = vmatprep.mubr.msk.f32.mxu1 %vm12857_vm0, %v18971_v52  ;;  %v14145_v47 = vsel %vm13095_vm8, %v10002_v41, %v1123_v51  ;;  %v1125_v55 = vrot.slane %v1123_v51, 2  ;;  %v1129_v18 = vrot.slane %v14126_v17, 7  ;;  %v354_v51 = vld [vmem:[%s13048_s27 + $0xc0] sm:$0xff] }
  0xac   : > { %19060 = vst [vmem:[#allocation112_spill] sm:$0xff] %v14145_v47  ;;  %v1128_v38 = vrot.slane %v1126_v43, 2  ;;  %v1519_v8 = vcombine.low %v14130_v62, %v14145_v47  ;;  %v2184_v34 = vrot.slane %v2176_v4, %v13027_v28  ;;  %v2191_v61 = vrot.slane %v2177_v22, %v13027_v28  ;;  %12264 = vmatpush3.bf16.msra.mxu1 %v12263_v15 }
  0xad   : > { %v1518_v36 = vcombine.low %v1510_v54, %v1517_v40  ;;  %v14154_v5 = vsel %vm13095_vm8, %v1125_v55, %v1126_v43  ;;  %v768_v24 = vcombine.high %v353_v26, %v353_v26  ;;  %v14157_v41 = vrot.slane %v353_v26, %v13027_v28  ;;  %12697 = vmatprep.subr.bf16.mxu1 %v19011_v53  ;;  %v355_v53 = vld [vmem:[%s13048_s27 + $0xc8] sm:$0x7f] }
  0xae   : > { %19061 = vst [vmem:[#allocation113_spill] sm:$0xff] %v14154_v5  ;;  %v14163_v47 = vsel %vm13095_vm8, %v1128_v38, %v1129_v18  ;;  %v1527_v4 = vrot.slane %v1519_v8, %v13027_v28  ;;  %v2192_v22 = vcombine.low %v2184_v34, %v2191_v61  ;;  %v1131_v15 = vrot.slane %v1129_v18, 2 }
  0xaf   : > { %19062 = vst [vmem:[#allocation114_spill] sm:$0xff] %v14157_v41  ;;  %19063 = vst [vmem:[#allocation115_spill] sm:$0xff] %v14163_v47  ;;  %11081 = vmatmul.mubr.msk.f32.gmra.mrb[36].mxu0 %vm1612_vm7, %v1518_v36  ;;  %v1520_v40 = vcombine.low %v14154_v5, %v14163_v47  ;;  %v14170_v54 = vrot.slane %v768_v24, %v13027_v28  ;;  %v14174_v43 = vcombine.high %v14157_v41, %v14157_v41 }
  0xb0   : > { %v1132_v38 = vrot.slane %v14157_v41, 7  ;;  %11083 = vmatprep.mubr.msk.f32.mxu0 %vm12857_vm0, %v18971_v52  ;;  %11175 = vmatmul.mubr.msk.f32.gmra.mrb[38].mxu1 %vm1612_vm7, %v2192_v22  ;;  %v2193_v8 = vcombine.low %v14126_v17, %v14157_v41  ;;  %v784_v26 = vcombine.high %v354_v51, %v354_v51  ;;  %v14183_v55 = vrot.slane %v354_v51, %v13027_v28 }
  0xb1   : > { %19064 = vst [vmem:[#allocation116_spill] sm:$0xff] %v14170_v54  ;;  %19065 = vst [vmem:[#allocation117_spill] sm:$0xff] %v14174_v43  ;;  %v1534_v24 = vrot.slane %v1520_v40, %v13027_v28  ;;  %11177 = vmatprep.mubr.msk.f32.mxu1 %vm12857_vm0, %v18971_v52  ;;  %v869_v18 = vcombine.high %v14170_v54, %v14170_v54  ;;  %v1135_v36 = vrot.slane %v14174_v43, 7  ;;  %v1138_v22 = vrot.slane %v14170_v54, 7 }
  0xb2   : > { %19066 = vst [vmem:[#allocation118_spill] sm:$0xff] %v14183_v55  ;;  %v14192_v34 = vsel %vm13095_vm8, %v1131_v15, %v1132_v38  ;;  %v1134_v61 = vrot.slane %v1132_v38, 2  ;;  %v2194_v51 = vcombine.low %v14174_v43, %v14170_v54  ;;  %v2201_v40 = vrot.slane %v2193_v8, %v13027_v28 }
  0xb3   : > { %19067 = vst [vmem:[#allocation119_spill] sm:$0xff] %v14192_v34  ;;  %v1535_v41 = vcombine.low %v1527_v4, %v1534_v24  ;;  %v1141_v47 = vrot.slane %v869_v18, 7  ;;  %v14201_v17 = vrot.slane %v784_v26, %v13027_v28  ;;  %v14205_v15 = vcombine.high %v14183_v55, %v14183_v55 }
  0xb4   : > { %v14209_v38 = vsel %vm13095_vm8, %v1134_v61, %v1135_v36  ;;  %v1137_v5 = vrot.slane %v1135_v36, 2  ;;  %v1140_v62 = vrot.slane %v1138_v22, 2  ;;  %v2208_v54 = vrot.slane %v2194_v51, %v13027_v28 }
  0xb5   : > { %19068 = vst [vmem:[#allocation120_spill] sm:$0xff] %v14201_v17  ;;  %19069 = vst [vmem:[#allocation121_spill] sm:$0xff] %v14205_v15  ;;  %11084 = vmatmul.mubr.msk.f32.gmra.mrb[38].mxu0 %vm1612_vm7, %v1535_v41  ;;  %v1536_v4 = vcombine.low %v14192_v34, %v14209_v38  ;;  %v14217_v8 = vcombine.high %v14201_v17, %v14201_v17  ;;  %v14220_v26 = vrot.slane %v355_v53, %v13027_v28 }
  0xb6   : > { %19070 = vst [vmem:[#allocation122_spill] sm:$0xff] %v14209_v38  ;;  %v10003_v24 = vrot.slane %v14183_v55, 9  ;;  %11086 = vmatprep.mubr.msk.f32.mxu0 %vm12857_vm0, %v18971_v52  ;;  %v14227_v18 = vsel %vm13095_vm8, %v1137_v5, %v1138_v22  ;;  %v14231_v41 = vsel %vm13095_vm8, %v1140_v62, %v1141_v47  ;;  %v2209_v61 = vcombine.low %v2201_v40, %v2208_v54 }
  0xb7   : > { %19071 = vst [vmem:[#allocation123_spill] sm:$0xff] %v14217_v8  ;;  %19072 = vst [vmem:[#allocation124_spill] sm:$0xff] %v14220_v26  ;;  %v1145_v36 = vrot.slane %v14205_v15, 7  ;;  %v1537_v51 = vcombine.low %v14227_v18, %v14231_v41  ;;  %v1544_v43 = vrot.slane %v1536_v4, %v13027_v28  ;;  %v1148_v38 = vrot.slane %v14201_v17, 7 }
  0xb8   : > { %19073 = vst [vmem:[#allocation125_spill] sm:$0xff] %v14227_v18  ;;  %19074 = vst [vmem:[#allocation126_spill] sm:$0xff] %v14231_v41  ;;  %v1151_v34 = vrot.slane %v14217_v8, 7  ;;  %11178 = vmatmul.mubr.msk.f32.gmra.mrb[40].mxu1 %vm1612_vm7, %v2209_v61  ;;  %v1154_v47 = vrot.slane %v14220_v26, 7  ;;  %v2210_v54 = vcombine.low %v14183_v55, %v14205_v15  ;;  %v2211_v61 = vcombine.low %v14201_v17, %v14217_v8  ;;  %v356_v41 = vld [vmem:[%s13048_s27 + $0xd0] sm:$0xff] }
  0xb9   : > { %v14242_v5 = vsel %vm13095_vm8, %v10003_v24, %v1145_v36  ;;  %v1147_v62 = vrot.slane %v1145_v36, 2  ;;  %v1551_v22 = vrot.slane %v1537_v51, %v13027_v28  ;;  %11180 = vmatprep.mubr.msk.f32.mxu1 %vm12857_vm0, %v18971_v52  ;;  %v1150_v40 = vrot.slane %v1148_v38, 2  ;;  %v357_v17 = vld [vmem:[%s13048_s27 + $0xd8] sm:$0x7f] }
  0xba   : > { %19075 = vst [vmem:[#allocation127_spill] sm:$0xff] %v14242_v5  ;;  %v1153_v4 = vrot.slane %v1151_v34, 2  ;;  %v2218_v36 = vrot.slane %v2210_v54, %v13027_v28  ;;  %v801_v18 = vcombine.high %v355_v53, %v355_v53  ;;  %v14260_v15 = vcombine.high %v14220_v26, %v14220_v26 }
  0xbb   : > { %v14255_v24 = vsel %vm13095_vm8, %v1147_v62, %v1148_v38  ;;  %v1552_v51 = vcombine.low %v1544_v43, %v1551_v22  ;;  %v14264_v55 = vsel %vm13095_vm8, %v1150_v40, %v1151_v34  ;;  %v2225_v53 = vrot.slane %v2211_v61, %v13027_v28 }
  0xbc   : > { %19076 = vst [vmem:[#allocation128_spill] sm:$0xff] %v14255_v24  ;;  %19077 = vst [vmem:[#allocation129_spill] sm:$0xff] %v14260_v15  ;;  %v14268_v8 = vsel %vm13095_vm8, %v1153_v4, %v1154_v47  ;;  %v1553_v38 = vcombine.low %v14242_v5, %v14255_v24  ;;  %v14276_v54 = vrot.slane %v801_v18, %v13027_v28  ;;  %v1156_v22 = vrot.slane %v1154_v47, 2 }
  0xbd   : > { %19078 = vst [vmem:[#allocation130_spill] sm:$0xff] %v14264_v55  ;;  %19079 = vst [vmem:[#allocation131_spill] sm:$0xff] %v14268_v8  ;;  %v1554_v62 = vcombine.low %v14264_v55, %v14268_v8  ;;  %v14279_v43 = vrot.slane %v356_v41, %v13027_v28  ;;  %11087 = vmatmul.mubr.msk.f32.gmra.mrb[40].mxu0 %vm1612_vm7, %v1552_v51  ;;  %v1157_v40 = vrot.slane %v14260_v15, 7 }
  0xbe   : > { %19080 = vst [vmem:[#allocation132_spill] sm:$0xff] %v14276_v54  ;;  %v1561_v34 = vrot.slane %v1553_v38, %v13027_v28  ;;  %v2227_v4 = vcombine.low %v14220_v26, %v14260_v15  ;;  %11089 = vmatprep.mubr.msk.f32.mxu0 %vm12857_vm0, %v18971_v52  ;;  %v2226_v61 = vcombine.low %v2218_v36, %v2225_v53  ;;  %v1160_v15 = vrot.slane %v14276_v54, 7 }
  0xbf   : > { %19081 = vst [vmem:[#allocation133_spill] sm:$0xff] %v14279_v43  ;;  %v1568_v18 = vrot.slane %v1554_v62, %v13027_v28  ;;  %v14291_v8 = vcombine.high %v14279_v43, %v14279_v43  ;;  %v870_v51 = vcombine.high %v14276_v54, %v14276_v54  ;;  %v14297_v47 = vsel %vm13095_vm8, %v1156_v22, %v1157_v40 }
  0xc0   : > { %v1159_v38 = vrot.slane %v1157_v40, 2  ;;  %v10004_v26 = vrot.slane %v14279_v43, 9  ;;  %11181 = vmatmul.mubr.msk.f32.gmra.mrb[42].mxu1 %vm1612_vm7, %v2226_v61  ;;  %v2228_v53 = vcombine.low %v14276_v54, %v14279_v43  ;;  %v1162_v40 = vrot.slane %v1160_v15, 2 }
  0xc1   : > { %19082 = vst [vmem:[#allocation134_spill] sm:$0xff] %v14291_v8  ;;  %v1569_v24 = vcombine.low %v1561_v34, %v1568_v18  ;;  %v1163_v36 = vrot.slane %v870_v51, 7  ;;  %v1167_v62 = vrot.slane %v14291_v8, 7  ;;  %11183 = vmatprep.mubr.msk.f32.mxu1 %vm12857_vm0, %v18971_v52  ;;  %v2235_v55 = vrot.slane %v2227_v4, %v13027_v28 }
  0xc2   : > { %v14310_v22 = vsel %vm13095_vm8, %v1159_v38, %v1160_v15  ;;  %v817_v5 = vcombine.high %v356_v41, %v356_v41  ;;  %v2242_v61 = vrot.slane %v2228_v53, %v13027_v28  ;;  %v14322_v51 = vrot.slane %v357_v17, %v13027_v28 }
  0xc3   : > { %19083 = vst [vmem:[#allocation135_spill] sm:$0xff] %v14310_v22  ;;  %11090 = vmatmul.mubr.msk.f32.gmra.mrb[42].mxu0 %vm1612_vm7, %v1569_v24  ;;  %v14316_v34 = vsel %vm13095_vm8, %v10004_v26, %v1167_v62  ;;  %v1570_v18 = vcombine.low %v14297_v47, %v14310_v22  ;;  %v14328_v15 = vsel %vm13095_vm8, %v1162_v40, %v1163_v36  ;;  %v1169_v26 = vrot.slane %v1167_v62, 2 }
  0xc4   : > { %19084 = vst [vmem:[#allocation136_spill] sm:$0xff] %v14322_v51  ;;  %11092 = vmatprep.mubr.msk.f32.mxu0 %vm12857_vm0, %v18971_v52  ;;  %19085 = vst [vmem:[#allocation137_spill] sm:$0xff] %v14328_v15  ;;  %v14331_v41 = vrot.slane %v817_v5, %v13027_v28  ;;  %v834_v24 = vcombine.high %v357_v17, %v357_v17  ;;  %v1571_v4 = vcombine.low %v14328_v15, %v14316_v34 }
  0xc5   : > { %v1578_v38 = vrot.slane %v1570_v18, %v13027_v28  ;;  %v2243_v53 = vcombine.low %v2235_v55, %v2242_v61  ;;  %v14338_v43 = vcombine.high %v14322_v51, %v14322_v51  ;;  %v1176_v5 = vrot.slane %v14322_v51, 7 }
  0xc6   : > { %19086 = vst [vmem:[#allocation138_spill] sm:$0xff] %v14331_v41  ;;  %v14342_v54 = vcombine.high %v14331_v41, %v14331_v41  ;;  %v1170_v36 = vrot.slane %v14331_v41, 7  ;;  %v2244_v17 = vcombine.low %v14291_v8, %v14331_v41  ;;  %v19088_v62 = vcombine.low %v13182_v6, %v13196_v10 }
  0xc7   : > { %v1585_v40 = vrot.slane %v1571_v4, %v13027_v28  ;;  %11184 = vmatmul.mubr.msk.f32.gmra.mrb[44].mxu1 %vm1612_vm7, %v2243_v53  ;;  %v1179_v18 = vrot.slane %v14338_v43, 7  ;;  %v14358_v61 = vrot.slane %v834_v24, %v13027_v28  ;;  %v1178_v10 = vrot.slane %v1176_v5, 2 }
  0xc8   : > { %19087 = vst [vmem:[#allocation139_spill] sm:$0xff] %v14342_v54  ;;  %v14352_v55 = vrot.slane %v19088_v62, %v13027_v28  ;;  %11186 = vmatprep.mubr.msk.f32.mxu1 %vm12857_vm0, %v18971_v52  ;;  %v14364_v41 = vsel %vm13095_vm8, %v1169_v26, %v1170_v36  ;;  %v1172_v8 = vrot.slane %v1170_v36, 2  ;;  %v1173_v6 = vrot.slane %v14342_v54, 7 }
  0xc9   : > { %19089 = vst [vmem:[#allocation140_spill] sm:$0xff] %v14358_v61  ;;  %v1586_v62 = vcombine.low %v1578_v38, %v1585_v40  ;;  %v2245_v4 = vcombine.low %v14342_v54, %v14322_v51  ;;  %v2252_v53 = vrot.slane %v2244_v17, %v13027_v28  ;;  %v871_v24 = vcombine.high %v14358_v61, %v14358_v61 }
  0xca   : > { %v14374_v22 = vsel %vm13095_vm8, %v1172_v8, %v1173_v6  ;;  %v1175_v15 = vrot.slane %v1173_v6, 2  ;;  %v14378_v26 = vsel %vm13095_vm8, %v1178_v10, %v1179_v18  ;;  %v1181_v36 = vrot.slane %v1179_v18, 2 }
  0xcb   : > { %11093 = vmatmul.mubr.msk.f32.gmra.mrb[44].mxu0 %vm1612_vm7, %v1586_v62  ;;  %v1587_v38 = vcombine.low %v14364_v41, %v14374_v22  ;;  %v2259_v17 = vrot.slane %v2245_v4, %v13027_v28  ;;  %v1182_v40 = vrot.slane %v14358_v61, 7  ;;  %v1185_v6 = vrot.slane %v871_v24, 7 }
  0xcc   : > { %11095 = vmatprep.mubr.msk.f32.mxu0 %vm12857_vm0, %v18971_v52  ;;  %v14389_v8 = vsel %vm13095_vm8, %v1175_v15, %v1176_v5  ;;  %v2261_v18 = vcombine.low %v14338_v43, %v14358_v61  ;;  %v2553_v10 = vcombine.low %v13080_v48, %v13102_v59  ;;  %v2554_v54 = vcombine.low %v13134_v45, %v13156_v31 }
  0xcd   : > { %v1588_v62 = vcombine.low %v14389_v8, %v14378_v26  ;;  %v1595_v4 = vrot.slane %v1587_v38, %v13027_v28  ;;  %v2260_v51 = vcombine.low %v2252_v53, %v2259_v17  ;;  %v14402_v15 = vsel %vm13095_vm8, %v1181_v36, %v1182_v40 }
  0xce   : > { %v1184_v5 = vrot.slane %v1182_v40, 2  ;;  %v3282_v24 = vcombine.low %v13221_v25, %v14352_v55  ;;  %v2268_v48 = vrot.slane %v2261_v18, %v13027_v28  ;;  %v3283_v59 = vcombine.low %v13175_v1, %v13217_v21  ;;  %v19091_v18 = vld [vmem:[#allocation13_spill] sm:$0xff] }
  0xcf   : > { %v1602_v61 = vrot.slane %v1588_v62, %v13027_v28  ;;  %11187 = vmatmul.mubr.msk.f32.gmra.mrb[46].mxu1 %vm1612_vm7, %v2260_v51  ;;  %v3284_v31 = vcombine.low %v13230_v32, %v13246_v44  ;;  %v2561_v51 = vrot.slane %v2553_v10, %v13027_v28  ;;  %v2568_v53 = vrot.slane %v2554_v54, %v13027_v28 }
  0xd0   : > { %11189 = vmatprep.mubr.msk.f32.mxu1 %vm12857_vm0, %v18971_v52  ;;  %v14415_v45 = vsel %vm13095_vm8, %v1184_v5, %v1185_v6  ;;  %v2570_v1 = vcombine.low %v13086_v50, %v13138_v46  ;;  %v2571_v21 = vcombine.low %v13151_v49, %v13191_v9  ;;  %v3291_v36 = vrot.slane %v3283_v59, %v13027_v28  ;;  %v19090_v6 = vld [vmem:[#allocation16_spill] sm:$0xff] }
  0xd1   : > { %v1603_v25 = vcombine.low %v1595_v4, %v1602_v61  ;;  %v1604_v55 = vcombine.low %v14402_v15, %v14415_v45  ;;  %v3298_v44 = vrot.slane %v3284_v31, %v13027_v28  ;;  %v3300_v61 = vcombine.low %v13263_v60, %v13279_v3  ;;  %v19096_v31 = vld [vmem:[#allocation14_spill] sm:$0xff] }
  0xd2   : > { %v3301_v50 = vcombine.low %v13290_v14, %v13302_v23  ;;  %v2569_v46 = vcombine.low %v2561_v51, %v2568_v53  ;;  %v2587_v49 = vcombine.low %v13213_v20, %v13199_v11  ;;  %v2588_v9 = vcombine.low %v13242_v42, %v13253_v57 }
  0xd3   : > { %11096 = vmatmul.mubr.msk.f32.gmra.mrb[46].mxu0 %vm1612_vm7, %v1603_v25  ;;  %v1611_v32 = vrot.slane %v1604_v55, %v13027_v28  ;;  %11190 = vmatmul.mubr.msk.f32.gmra.mrb[48].mxu1 %vm1612_vm7, %v2268_v48  ;;  %v2578_v54 = vrot.slane %v2570_v1, %v13027_v28  ;;  %v2585_v60 = vrot.slane %v2571_v21, %v13027_v28  ;;  %v19097_v1 = vld [vmem:[#allocation15_spill] sm:$0xff] }
  0xd4   : > { %11098 = vmatprep.mubr.msk.f32.mxu0 %vm12857_vm0, %v18971_v52  ;;  %11299 = vmatprep.mubr.msk.f32.mxu1 %vm12857_vm0, %v18971_v52  ;;  %v3317_v3 = vcombine.low %v13318_v37, %v13331_v58  ;;  %v3318_v38 = vcombine.low %v13342_v0, %v13352_v13  ;;  %v3299_v14 = vcombine.low %v3291_v36, %v3298_v44  ;;  %v19098_v21 = vld [vmem:[#allocation11_spill] sm:$0xff] }
  0xd5   : > { %v3308_v11 = vrot.slane %v3300_v61, %v13027_v28  ;;  %v3315_v20 = vrot.slane %v3301_v50, %v13027_v28  ;;  %v2595_v42 = vrot.slane %v2587_v49, %v13027_v28  ;;  %v2602_v57 = vrot.slane %v2588_v9, %v13027_v28  ;;  %v19100_v44 = vld [vmem:[#allocation19_spill] sm:$0xff]  ;;  %v19101_v50 = vld [vmem:[#allocation25_spill] sm:$0xff] }
  0xd6   : > { %v2604_v23 = vcombine.low %v13272_v63, %v13256_v35  ;;  %v2605_v37 = vcombine.low %v13293_v16, %v13309_v33  ;;  %v3325_v58 = vrot.slane %v3317_v3, %v13027_v28  ;;  %v3332_v0 = vrot.slane %v3318_v38, %v13027_v28  ;;  %v19092_v63 = vld [vmem:[#allocation9_spill] sm:$0xff]  ;;  %v19093_v16 = vld [vmem:[#allocation8_spill] sm:$0xff]  ;;  %v19104_v49 = vld [vmem:[#allocation27_spill] sm:$0xff] }
  0xd7   : > { %11099 = vmatmul.mubr.msk.f32.gmra.mrb[48].mxu0 %vm1612_vm7, %v1611_v32  ;;  %11300 = vmatmul.mubr.msk.f32.vlgmr.msra.gmra.mrb[50].mxu1 %vm1612_vm7, %v3282_v24  ;;  %v3334_v13 = vcombine.low %v13356_v19, %v13398_v2  ;;  %v2586_v17 = vcombine.low %v2578_v54, %v2585_v60  ;;  %v3316_v40 = vcombine.low %v3308_v11, %v3315_v20  ;;  %v19094_v19 = vld [vmem:[#allocation12_spill] sm:$0xff]  ;;  %v19095_v2 = vld [vmem:[#allocation10_spill] sm:$0xff]  ;;  %v19105_v20 = vld [vmem:[#allocation17_spill] sm:$0xff] }
  0xd8   : > { %11208 = vmatprep.mubr.msk.f32.mxu0 %vm12857_vm0, %v18971_v52  ;;  %11302 = vmatprep.mubr.msk.f32.mxu1 %vm12857_vm0, %v18971_v52  ;;  %v3335_v10 = vcombine.low %v19091_v18, %v19090_v6  ;;  %v2603_v35 = vcombine.low %v2595_v42, %v2602_v57  ;;  %v2621_v33 = vcombine.low %v19093_v16, %v19092_v63  ;;  %v19099_v32 = vld [vmem:[#allocation18_spill] sm:$0xff]  ;;  %v19106_v42 = vld [vmem:[#allocation21_spill] sm:$0xff]  ;;  %v19112_v16 = vld [vmem:[#allocation24_spill] sm:$0xff] }
  0xd9   : > { %v2622_v62 = vcombine.low %v19095_v2, %v19094_v19  ;;  %v2612_v4 = vrot.slane %v2604_v23, %v13027_v28  ;;  %v2619_v5 = vrot.slane %v2605_v37, %v13027_v28  ;;  %v3333_v24 = vcombine.low %v3325_v58, %v3332_v0  ;;  %v19107_v23 = vld [vmem:[#allocation22_spill] sm:$0xff]  ;;  %v19108_v37 = vld [vmem:[#allocation20_spill] sm:$0xff]  ;;  %v19110_v6 = vld [vmem:[#allocation29_spill] sm:$0xff] }
  0xda   : > { %v3342_v48 = vrot.slane %v3334_v13, %v13027_v28  ;;  %v3349_v59 = vrot.slane %v3335_v10, %v13027_v28  ;;  %v3351_v25 = vcombine.low %v19096_v31, %v13472_v12  ;;  %v3352_v55 = vcombine.low %v13485_v27, %v13495_v29  ;;  %v19103_v29 = vld [vmem:[#allocation28_spill] sm:$0xff]  ;;  %v19111_v10 = vld [vmem:[#allocation39_spill] sm:$0xff]  ;;  %v19114_v2 = vld [vmem:[#allocation33_spill] sm:$0xff] }
  0xdb   : > { %11209 = vmatmul.mubr.msk.f32.vlgmr.msra.gmra.mrb[50].mxu0 %vm1612_vm7, %v2569_v46  ;;  %11303 = vmatmul.mubr.msk.f32.gmra.mrb[52].mxu1 %vm1612_vm7, %v3299_v14  ;;  %v2629_v51 = vrot.slane %v2621_v33, %v13027_v28  ;;  %v2636_v53 = vrot.slane %v2622_v62, %v13027_v28  ;;  %v2638_v36 = vcombine.low %v19098_v21, %v19097_v1  ;;  %v19102_v46 = vld [vmem:[#allocation26_spill] sm:$0xff]  ;;  %v19113_v33 = vld [vmem:[#allocation23_spill] sm:$0xff]  ;;  %v19118_v31 = vld [vmem:[#allocation45_spill] sm:$0xff] }
  0xdc   : > { %11211 = vmatprep.mubr.msk.f32.mxu0 %vm12857_vm0, %v18971_v52  ;;  %11305 = vmatprep.mubr.msk.f32.mxu1 %vm12857_vm0, %v18971_v52  ;;  %v2639_v61 = vcombine.low %v19100_v44, %v19099_v32  ;;  %v2620_v12 = vcombine.low %v2612_v4, %v2619_v5  ;;  %v3368_v27 = vcombine.low %v19102_v46, %v19101_v50  ;;  %v19115_v62 = vld [vmem:[#allocation31_spill] sm:$0xff]  ;;  %v19120_v32 = vld [vmem:[#allocation32_spill] sm:$0xff]  ;;  %v19121_v44 = vld [vmem:[#allocation30_spill] sm:$0xff] }
  0xdd   : > { %v3369_v9 = vcombine.low %v19104_v49, %v19103_v29  ;;  %v3350_v54 = vcombine.low %v3342_v48, %v3349_v59  ;;  %v3359_v60 = vrot.slane %v3351_v25, %v13027_v28  ;;  %v3366_v3 = vrot.slane %v3352_v55, %v13027_v28  ;;  %v19116_v48 = vld [vmem:[#allocation41_spill] sm:$0xff]  ;;  %v19117_v59 = vld [vmem:[#allocation36_spill] sm:$0xff]  ;;  %v19123_v50 = vld [vmem:[#allocation34_spill] sm:$0xff] }
  0xde   : > { %v2637_v38 = vcombine.low %v2629_v51, %v2636_v53  ;;  %v2646_v14 = vrot.slane %v2638_v36, %v13027_v28  ;;  %v2653_v11 = vrot.slane %v2639_v61, %v13027_v28  ;;  %v2655_v57 = vcombine.low %v19106_v42, %v19105_v20  ;;  %v19119_v25 = vld [vmem:[#allocation44_spill] sm:$0xff]  ;;  %v19124_v49 = vld [vmem:[#allocation49_spill] sm:$0xff] }
  0xdf   : > { %11212 = vmatmul.mubr.msk.f32.gmra.mrb[52].mxu0 %vm1612_vm7, %v2586_v17  ;;  %11306 = vmatmul.mubr.msk.f32.gmra.mrb[54].mxu1 %vm1612_vm7, %v3316_v40  ;;  %v2656_v58 = vcombine.low %v19108_v37, %v19107_v23  ;;  %v3376_v0 = vrot.slane %v3368_v27, %v13027_v28  ;;  %v3383_v13 = vrot.slane %v3369_v9, %v13027_v28  ;;  %v19109_v40 = vld [vmem:[#allocation35_spill] sm:$0xff]  ;;  %v19128_v37 = vld [vmem:[#allocation38_spill] sm:$0xff] }
  0xe0   : > { %11214 = vmatprep.mubr.msk.f32.mxu0 %vm12857_vm0, %v18971_v52  ;;  %11308 = vmatprep.mubr.msk.f32.mxu1 %vm12857_vm0, %v18971_v52  ;;  %v3367_v17 = vcombine.low %v3359_v60, %v3366_v3  ;;  %v3385_v18 = vcombine.low %v19110_v6, %v19109_v40  ;;  %v2654_v63 = vcombine.low %v2646_v14, %v2653_v11  ;;  %v19125_v9 = vld [vmem:[#allocation47_spill] sm:$0xff]  ;;  %v19127_v14 = vld [vmem:[#allocation50_spill] sm:$0xff] }
  0xe1   : > { %v2672_v19 = vcombine.low %v19113_v33, %v19112_v16  ;;  %v2673_v4 = vcombine.low %v19115_v62, %v19114_v2  ;;  %v2663_v5 = vrot.slane %v2655_v57, %v13027_v28  ;;  %v3403_v55 = vcombine.low %v19119_v25, %v19118_v31  ;;  %v19134_v16 = vld [vmem:[#allocation59_spill] sm:$0xff]  ;;  %v19135_v33 = vld [vmem:[#allocation57_spill] sm:$0xff]  ;;  %v19136_v62 = vld [vmem:[#allocation46_spill] sm:$0xff] }
  0xe2   : > { %v3384_v51 = vcombine.low %v3376_v0, %v3383_v13  ;;  %v3393_v53 = vrot.slane %v3385_v18, %v13027_v28  ;;  %v2689_v61 = vcombine.low %v19121_v44, %v19120_v32  ;;  %v19130_v13 = vld [vmem:[#allocation43_spill] sm:$0xff]  ;;  %v19140_v25 = vld [vmem:[#allocation65_spill] sm:$0xff] }
  0xe3   : > { %11215 = vmatmul.mubr.msk.f32.gmra.mrb[54].mxu0 %vm1612_vm7, %v2603_v35  ;;  %11309 = vmatmul.mubr.msk.f32.gmra.mrb[56].mxu1 %vm1612_vm7, %v3333_v24  ;;  %v3386_v35 = vcombine.low %v19111_v10, %v13610_v7  ;;  %v2670_v24 = vrot.slane %v2656_v58, %v13027_v28  ;;  %v3402_v7 = vcombine.low %v19117_v59, %v19116_v48  ;;  %v19129_v58 = vld [vmem:[#allocation40_spill] sm:$0xff]  ;;  %v19132_v10 = vld [vmem:[#allocation58_spill] sm:$0xff]  ;;  %v19139_v48 = vld [vmem:[#allocation51_spill] sm:$0xff] }
  0xe4   : > { %11217 = vmatprep.mubr.msk.f32.mxu0 %vm12857_vm0, %v18971_v52  ;;  %11311 = vmatprep.mubr.msk.f32.mxu1 %vm12857_vm0, %v18971_v52  ;;  %v2680_v21 = vrot.slane %v2672_v19, %v13027_v28  ;;  %v2687_v36 = vrot.slane %v2673_v4, %v13027_v28  ;;  %v3417_v29 = vrot.slane %v3403_v55, %v13027_v28  ;;  %v19137_v4 = vld [vmem:[#allocation48_spill] sm:$0xff] }
  0xe5   : > { %v3400_v1 = vrot.slane %v3386_v35, %v13027_v28  ;;  %v3410_v27 = vrot.slane %v3402_v7, %v13027_v28  ;;  %v2671_v60 = vcombine.low %v2663_v5, %v2670_v24  ;;  %v2697_v42 = vrot.slane %v2689_v61, %v13027_v28  ;;  %v19133_v35 = vld [vmem:[#allocation53_spill] sm:$0xff]  ;;  %v19138_v24 = vld [vmem:[#allocation55_spill] sm:$0xff]  ;;  %v19141_v55 = vld [vmem:[#allocation60_spill] sm:$0xff] }
  0xe6   : > { %v2688_v20 = vcombine.low %v2680_v21, %v2687_v36  ;;  %v2706_v0 = vcombine.low %v19129_v58, %v19128_v37  ;;  %v3437_v19 = vcombine.low %v19135_v33, %v19134_v16  ;;  %v2723_v5 = vcombine.low %v19137_v4, %v19136_v62  ;;  %v19156_v16 = vld [vmem:[#allocation71_spill] sm:$0xff]  ;;  %v19157_v33 = vld [vmem:[#allocation70_spill] sm:$0xff]  ;;  %v19158_v62 = vld [vmem:[#allocation81_spill] sm:$0xff] }
  0xe7   : > { %11218 = vmatmul.mubr.msk.f32.gmra.mrb[56].mxu0 %vm1612_vm7, %v2620_v12  ;;  %11312 = vmatmul.mubr.msk.f32.gmra.mrb[58].mxu1 %vm1612_vm7, %v3350_v54  ;;  %v19122_v12 = vld [vmem:[#allocation37_spill] sm:$0xff]  ;;  %v3419_v54 = vcombine.low %v19125_v9, %v19124_v49  ;;  %v3401_v3 = vcombine.low %v3393_v53, %v3400_v1  ;;  %v3418_v23 = vcombine.low %v3410_v27, %v3417_v29  ;;  %v19143_v1 = vld [vmem:[#allocation66_spill] sm:$0xff]  ;;  %v19146_v29 = vld [vmem:[#allocation63_spill] sm:$0xff] }
  0xe8   : > { %11220 = vmatprep.mubr.msk.f32.mxu0 %vm12857_vm0, %v18971_v52  ;;  %11314 = vmatprep.mubr.msk.f32.mxu1 %vm12857_vm0, %v18971_v52  ;;  %v2690_v46 = vcombine.low %v19123_v50, %v19122_v12  ;;  %v2724_v59 = vcombine.low %v19139_v48, %v19138_v24  ;;  %v2714_v7 = vrot.slane %v2706_v0, %v13027_v28  ;;  %v19142_v53 = vld [vmem:[#allocation69_spill] sm:$0xff]  ;;  %v19144_v50 = vld [vmem:[#allocation56_spill] sm:$0xff]  ;;  %v19160_v24 = vld [vmem:[#allocation83_spill] sm:$0xff] }
  0xe9   : > { %v3427_v6 = vrot.slane %v3419_v54, %v13027_v28  ;;  %v3454_v21 = vcombine.low %v19143_v1, %v19142_v53  ;;  %v3451_v44 = vrot.slane %v3437_v19, %v13027_v28  ;;  %v2731_v61 = vrot.slane %v2723_v5, %v13027_v28  ;;  %v19147_v49 = vld [vmem:[#allocation61_spill] sm:$0xff]  ;;  %v19161_v48 = vld [vmem:[#allocation82_spill] sm:$0xff]  ;;  %v19166_v1 = vld [vmem:[#allocation88_spill] sm:$0xff] }
  0xea   : > { %v2704_v57 = vrot.slane %v2690_v46, %v13027_v28  ;;  %v2738_v12 = vrot.slane %v2724_v59, %v13027_v28  ;;  %v19145_v46 = vld [vmem:[#allocation54_spill] sm:$0xff]  ;;  %v2741_v9 = vcombine.low %v19147_v49, %v19146_v29  ;;  %v2774_v19 = vcombine.low %v19157_v33, %v19156_v16  ;;  %v19159_v4 = vld [vmem:[#allocation77_spill] sm:$0xff] }
  0xeb   : > { %11221 = vmatmul.mubr.msk.f32.gmra.mrb[58].mxu0 %vm1612_vm7, %v2637_v38  ;;  %11315 = vmatmul.mubr.msk.f32.gmra.mrb[60].mxu1 %vm1612_vm7, %v3367_v17  ;;  %v19126_v38 = vld [vmem:[#allocation52_spill] sm:$0xff]  ;;  %v19131_v17 = vld [vmem:[#allocation42_spill] sm:$0xff]  ;;  %v2740_v27 = vcombine.low %v19145_v46, %v19144_v50  ;;  %v3487_v5 = vcombine.low %v19159_v4, %v19158_v62  ;;  %v3488_v59 = vcombine.low %v19161_v48, %v19160_v24  ;;  %v19170_v46 = vld [vmem:[#allocation93_spill] sm:$0xff] }
  0xec   : > { %11223 = vmatprep.mubr.msk.f32.mxu0 %vm12857_vm0, %v18971_v52  ;;  %11317 = vmatprep.mubr.msk.f32.mxu1 %vm12857_vm0, %v18971_v52  ;;  %v3420_v11 = vcombine.low %v19127_v14, %v19126_v38  ;;  %v2707_v40 = vcombine.low %v19131_v17, %v19130_v13  ;;  %v2705_v2 = vcombine.low %v2697_v42, %v2704_v57  ;;  %v19149_v38 = vld [vmem:[#allocation72_spill] sm:$0xff]  ;;  %v19151_v57 = vld [vmem:[#allocation74_spill] sm:$0xff]  ;;  %v19177_v33 = vld [vmem:[#allocation97_spill] sm:$0xff] }
  0xed   : > { %v19150_v42 = vld [vmem:[#allocation76_spill] sm:$0xff]  ;;  %v2739_v37 = vcombine.low %v2731_v61, %v2738_v12  ;;  %v2748_v58 = vrot.slane %v2740_v27, %v13027_v28  ;;  %v2755_v0 = vrot.slane %v2741_v9, %v13027_v28  ;;  %v19153_v17 = vld [vmem:[#allocation62_spill] sm:$0xff]  ;;  %v3505_v27 = vcombine.low %v19170_v46, %v14001_v30  ;;  %v19171_v9 = vld [vmem:[#allocation87_spill] sm:$0xff] }
  0xee   : > { %v3434_v18 = vrot.slane %v3420_v11, %v13027_v28  ;;  %v2721_v31 = vrot.slane %v2707_v40, %v13027_v28  ;;  %v19152_v13 = vld [vmem:[#allocation64_spill] sm:$0xff]  ;;  %v19168_v61 = vld [vmem:[#allocation90_spill] sm:$0xff]  ;;  %v14653_v49 = vrot.slane %v2774_v19, %v13027_v28  ;;  %v3495_v30 = vrot.slane %v3487_v5, %v13027_v28 }
  0xef   : > { %11224 = vmatmul.mubr.msk.f32.gmra.mrb[60].mxu0 %vm1612_vm7, %v2654_v63  ;;  %11318 = vmatmul.mubr.msk.f32.gmra.mrb[62].mxu1 %vm1612_vm7, %v3384_v51  ;;  %v3436_v63 = vcombine.low %v19133_v35, %v19132_v10  ;;  %v3453_v51 = vcombine.low %v19141_v55, %v19140_v25  ;;  %v2757_v40 = vcombine.low %v19153_v17, %v19152_v13  ;;  %v19155_v10 = vld [vmem:[#allocation68_spill] sm:$0xff]  ;;  %v19178_v19 = vld [vmem:[#allocation98_spill] sm:$0xff] }
  0xf0   : > { %11226 = vmatprep.mubr.msk.f32.mxu0 %vm12857_vm0, %v18971_v52  ;;  %11320 = vmatprep.mubr.msk.f32.mxu1 %vm12857_vm0, %v18971_v52  ;;  %v3435_v36 = vcombine.low %v3427_v6, %v3434_v18  ;;  %v2722_v11 = vcombine.low %v2714_v7, %v2721_v31  ;;  %v19154_v18 = vld [vmem:[#allocation67_spill] sm:$0xff]  ;;  %v19162_v7 = vld [vmem:[#allocation78_spill] sm:$0xff]  ;;  %v19164_v55 = vld [vmem:[#allocation80_spill] sm:$0xff]  ;;  %v3519_v13 = vrot.slane %v3505_v27, %v13027_v28 }
  0xf1   : > { %v3444_v32 = vrot.slane %v3436_v63, %v13027_v28  ;;  %v3461_v54 = vrot.slane %v3453_v51, %v13027_v28  ;;  %v2758_v35 = vcombine.low %v19155_v10, %v19154_v18  ;;  %v19163_v31 = vld [vmem:[#allocation75_spill] sm:$0xff]  ;;  %v19169_v12 = vld [vmem:[#allocation84_spill] sm:$0xff]  ;;  %v19179_v48 = vld [vmem:[#allocation94_spill] sm:$0xff] }
  0xf2   : > { %v2775_v25 = vcombine.low %v19163_v31, %v19162_v7  ;;  %v19165_v51 = vld [vmem:[#allocation79_spill] sm:$0xff]  ;;  %v3504_v50 = vcombine.low %v19169_v12, %v19168_v61  ;;  %v19175_v17 = vld [vmem:[#allocation96_spill] sm:$0xff] }
  0xf3   : > { %11227 = vmatmul.mubr.msk.f32.gmra.mrb[62].mxu0 %vm1612_vm7, %v2671_v60  ;;  %11321 = vmatmul.mubr.msk.f32.gmra.mrb[64].mxu1 %vm1612_vm7, %v3401_v3  ;;  %v3468_v60 = vrot.slane %v3454_v21, %v13027_v28  ;;  %v19148_v3 = vld [vmem:[#allocation73_spill] sm:$0xff]  ;;  %v2791_v53 = vcombine.low %v19165_v51, %v19164_v55  ;;  %v19167_v21 = vld [vmem:[#allocation86_spill] sm:$0xff]  ;;  %v2772_v29 = vrot.slane %v2758_v35, %v13027_v28  ;;  %v19184_v61 = vld [vmem:[#allocation100_spill] sm:$0xff] }
  0xf4   : > { %11229 = vmatprep.mubr.msk.f32.mxu0 %vm12857_vm0, %v18971_v52  ;;  %11323 = vmatprep.mubr.msk.f32.mxu1 %vm12857_vm0, %v18971_v52  ;;  %v3470_v14 = vcombine.low %v19149_v38, %v19148_v3  ;;  %v19173_v3 = vld [vmem:[#allocation92_spill] sm:$0xff]  ;;  %v19174_v38 = vld [vmem:[#allocation89_spill] sm:$0xff] }
  0xf5   : > { %v3469_v6 = vcombine.low %v3461_v54, %v3468_v60  ;;  %v19172_v54 = vld [vmem:[#allocation85_spill] sm:$0xff] }
  0xf6   : > { %v3478_v63 = vrot.slane %v3470_v14, %v13027_v28  ;;  %v2808_v60 = vcombine.low %v19172_v54, %v19171_v9  ;;  %v2809_v14 = vcombine.low %v19174_v38, %v19173_v3  ;;  %v14693_v62 = vld [vmem:[%s13048_s27 + $0xe0] sm:$0xff] }
  0xf7   : > { %11230 = vmatmul.mubr.msk.f32.gmra.mrb[64].mxu0 %vm1612_vm7, %v2688_v20  ;;  %11324 = vmatmul.mubr.msk.f32.gmra.mrb[66].mxu1 %vm1612_vm7, %v3418_v23  ;;  %v3452_v20 = vcombine.low %v3444_v32, %v3451_v44  ;;  %v3471_v23 = vcombine.low %v19151_v57, %v19150_v42  ;;  %v2756_v32 = vcombine.low %v2748_v58, %v2755_v0  ;;  %v19181_v51 = vld [vmem:[#allocation101_spill] sm:$0xff] }
  0xf8   : > { %11232 = vmatprep.mubr.msk.f32.mxu0 %vm12857_vm0, %v18971_v52  ;;  %11326 = vmatprep.mubr.msk.f32.mxu1 %vm12857_vm0, %v18971_v52  ;;  %v2765_v44 = vrot.slane %v2757_v40, %v13027_v28  ;;  %v3502_v42 = vrot.slane %v3488_v59, %v13027_v28  ;;  %v14671_v58 = vrot.slane %v2791_v53, %v13027_v28  ;;  %v19176_v40 = vld [vmem:[#allocation91_spill] sm:$0xff] }
  0xf9   : > { %v3512_v0 = vrot.slane %v3504_v50, %v13027_v28  ;;  %v14681_v18 = vrot.slane %v2808_v60, %v13027_v28  ;;  %v14684_v10 = vrot.slane %v2809_v14, %v13027_v28  ;;  %v19180_v59 = vld [vmem:[#allocation95_spill] sm:$0xff]  ;;  %v3624_v50 = vcombine.low %v14374_v22, %v14389_v8  ;;  %v19187_v14 = vld [vmem:[#allocation102_spill] sm:$0xff] }
  0xfa   : > { %v3503_v16 = vcombine.low %v3495_v30, %v3502_v42  ;;  %v2825_v7 = vcombine.low %v19180_v59, %v19179_v48  ;;  %v19182_v53 = vld [vmem:[#allocation99_spill] sm:$0xff]  ;;  %v14719_v46 = vrot.slane %v14693_v62, %v13027_v28  ;;  %v19188_v30 = vld [vmem:[#allocation108_spill] sm:$0xff]  ;;  %v19189_v42 = vld [vmem:[#allocation105_spill] sm:$0xff]  ;;  %v2511_v48 = vcombine.high %v14693_v62, %v14693_v62 }
  0xfb   : > { %11233 = vmatmul.mubr.msk.f32.gmra.mrb[66].mxu0 %vm1612_vm7, %v2705_v2  ;;  %11327 = vmatmul.mubr.msk.f32.gmra.mrb[68].mxu1 %vm1612_vm7, %v3435_v36  ;;  %v3485_v2 = vrot.slane %v3471_v23, %v13027_v28  ;;  %v2792_v36 = vcombine.low %v19167_v21, %v19166_v1  ;;  %v2789_v23 = vrot.slane %v2775_v25, %v13027_v28  ;;  %v19199_v62 = vld [vmem:[#allocation122_spill] sm:$0xff] }
  0xfc   : > { %11235 = vmatprep.mubr.msk.f32.mxu0 %vm12857_vm0, %v18971_v52  ;;  %11329 = vmatprep.mubr.msk.f32.mxu1 %vm12857_vm0, %v18971_v52  ;;  %v3520_v25 = vcombine.low %v3512_v0, %v3519_v13  ;;  %v2826_v1 = vcombine.low %v19182_v53, %v19181_v51  ;;  %v3623_v21 = vcombine.low %v14316_v34, %v14364_v41  ;;  %v19185_v41 = vld [vmem:[#allocation106_spill] sm:$0xff]  ;;  %v10096_v3 = vrot.slane %v14719_v46, 9  ;;  %v19190_v0 = vld [vmem:[#allocation111_spill] sm:$0xff]  ;;  %v19191_v13 = vld [vmem:[#allocation109_spill] sm:$0xff] }
  0xfd   : > { %v2790_v5 = vcombine.low %v14653_v49, %v2789_v23  ;;  %v14736_v22 = vrot.slane %v2825_v7, %v13027_v28  ;;  %v14739_v8 = vrot.slane %v3624_v50, %v13027_v28  ;;  %v14743_v60 = vcombine.high %v14719_v46, %v14719_v46 }
  0xfe   : > { %v14729_v9 = vrot.slane %v3623_v21, %v13027_v28  ;;  %v14747_v38 = vrot.slane %v2826_v1, %v13027_v28  ;;  %v3640_v23 = vcombine.low %v14378_v26, %v14402_v15  ;;  %v19192_v26 = vld [vmem:[#allocation113_spill] sm:$0xff]  ;;  %v19193_v15 = vld [vmem:[#allocation112_spill] sm:$0xff]  ;;  %v19196_v1 = vld [vmem:[#allocation119_spill] sm:$0xff] }
  0xff   : > { %11236 = vmatmul.mubr.msk.f32.gmra.mrb[68].mxu0 %vm1612_vm7, %v2722_v11  ;;  %11330 = vmatmul.mubr.msk.f32.gmra.mrb[70].mxu1 %vm1612_vm7, %v3452_v20  ;;  %v14659_v11 = vpop.f32.mrb[0].mxu1  ;;  %v3486_v20 = vcombine.low %v3478_v63, %v3485_v2  ;;  %v2773_v63 = vcombine.low %v2765_v44, %v2772_v29  ;;  %v3522_v2 = vcombine.low %v19178_v19, %v19177_v33  ;;  %v19183_v44 = vld [vmem:[#allocation103_spill] sm:$0xff]  ;;  %v19186_v29 = vld [vmem:[#allocation104_spill] sm:$0xff]  ;;  %v19194_v19 = vld [vmem:[#allocation110_spill] sm:$0xff] }
 0x100   : > { %11238 = vmatprep.mubr.msk.f32.mxu0 %vm12857_vm0, %v18971_v52  ;;  %11332 = vmatprep.mubr.msk.f32.mxu1 %vm12857_vm0, %v18971_v52  ;;  %v11119_v57 = vpop.f32.mrb[1].mxu1  ;;  %v3538_v12 = vcombine.low %v19184_v61, %v19183_v44  ;;  %v3539_v49 = vcombine.low %v19186_v29, %v19185_v41  ;;  %v3556_v33 = vcombine.low %v19193_v15, %v19192_v26  ;;  %v19197_v21 = vld [vmem:[#allocation115_spill] sm:$0xff]  ;;  %v19198_v44 = vld [vmem:[#allocation125_spill] sm:$0xff] }
 0x101   : > { %v3536_v34 = vrot.slane %v3522_v2, %v13027_v28  ;;  %v2843_v57 = vcombine.low %v19189_v42, %v19188_v30  ;;  %v19195_v2 = vld [vmem:[#allocation107_spill] sm:$0xff]  ;;  %v3573_v61 = vcombine.low %v19199_v62, %v19198_v44  ;;  %v14808_v29 = vld [vmem:[%s13048_s27 + $0xe8] sm:$0x7f]  ;;  %s324_s27 = scalar_lea.vmem [#allocation2], %s323_s28 }
 0x102   : > { %v14686_v35 = vpop.f32.mrb[0].mxu0  ;;  %v2528_v62 = vcombine.high %v14808_v29, %v14808_v29  ;;  %s9931_s21 = sshll.u32 %s324_s27, 4  ;;  %s18503_s21 = int_to_ptr.vmem [resolvable:$true] %s9931_s21 }
 0x103   : > { %11239 = vmatmul.mubr.msk.f32.gmra.mrb[70].mxu0 %vm1612_vm7, %v2739_v37  ;;  %11333 = vmatmul.mubr.msk.f32.gmra.mrb[72].mxu1 %vm1612_vm7, %v3469_v6  ;;  %v14674_v37 = vrot.slane %v2792_v36, %v13027_v28  ;;  %v3521_v6 = vcombine.low %v19176_v40, %v19175_v17  ;;  %v11028_v4 = vpop.f32.mrb[1].mxu0  ;;  %v3555_v17 = vcombine.low %v19191_v13, %v19190_v0  ;;  %v19203_v0 = vld [vmem:[#allocation126_spill] sm:$0xff]  ;;  %s12792_s25 = scalar_lea.vmem %s18503_s21, 16  ;;  %p12799_p0 = scmp.lt.s32.totalorder %s18503_s21, %s12797_s26 }
 0x104   : > { %11241 = vmatprep.mubr.msk.f32.mxu0 %vm12857_vm0, %v18971_v52  ;;  %11335 = vmatprep.mubr.msk.f32.mxu1 %vm12857_vm0, %v18971_v52  ;;  %v14704_v31 = vpop.f32.mrb[2].mxu1  ;;  %v3639_v40 = vcombine.low %v14729_v9, %v14739_v8  ;;  %v2859_v4 = vcombine.low %v19195_v2, %v19194_v19  ;;  %v14782_v7 = vrot.slane %v2843_v57, %v13027_v28  ;;  %v19204_v13 = vld [vmem:[#allocation130_spill] sm:$0xff]  ;;  %v19207_v19 = vld [vmem:[#allocation116_spill] sm:$0xff]  ;;  %p12793_p11 = scmp.ne.s32.totalorder %s18503_s21, %s12792_s25  ;;  %p12800_p1 = scmp.lt.s32.totalorder %s12798_s29, %s12792_s25 }
 0x105   : > { %v2807_v24 = vcombine.low %v14671_v58, %v14674_v37  ;;  %v3529_v55 = vrot.slane %v3521_v6, %v13027_v28  ;;  %v11122_v36 = vpop.f32.mrb[3].mxu1  ;;  %v3546_v37 = vrot.slane %v3538_v12, %v13027_v28  ;;  %v3237_v6 = vrot.slane %v14743_v60, 7 }
 0x106   : > { %v14721_v27 = vpop.f32.mrb[2].mxu0  ;;  %v3563_v53 = vrot.slane %v3555_v17, %v13027_v28  ;;  %v3572_v36 = vcombine.low %v19197_v21, %v19196_v1  ;;  %v14795_v12 = vadd.f32 %v14659_v11, %v14686_v35  ;;  %v14811_v11 = vrot.slane %v2511_v48, %v13027_v28  ;;  %v19205_v17 = vld [vmem:[#allocation128_spill] sm:$0xff]  ;;  %v19210_v1 = vld [vmem:[#allocation131_spill] sm:$0xff]  ;;  %p12794_p12 = pnand %p12793_p11, %p12949_p5  ;;  %p12801_p2 = por %p12800_p1, %p12799_p0 }
 0x107   : > { %11242 = vmatmul.mubr.msk.f32.gmra.mrb[72].mxu0 %vm1612_vm7, %v2756_v32  ;;  %11336 = vmatmul.mubr.msk.f32.gmra.mrb[74].mxu1 %vm1612_vm7, %v3486_v20  ;;  %v2824_v32 = vcombine.low %v14681_v18, %v14684_v10  ;;  %v11031_v54 = vpop.f32.mrb[3].mxu0  ;;  %v2842_v20 = vcombine.low %v19187_v14, %v14049_v39  ;;  %v3537_v39 = vcombine.low %v3529_v55, %v3536_v34  ;;  %v10132_v18 = vld [vmem:[%s18546_s3 + $0x28] sm:$0xff] }
 0x108   : > { %11244 = vmatprep.mubr.msk.f32.mxu0 %vm12857_vm0, %v18971_v52  ;;  %11338 = vmatprep.mubr.msk.f32.mxu1 %vm12857_vm0, %v18971_v52  ;;  %v14786_v55 = vrot.slane %v3640_v23, %v13027_v28  ;;  %v3570_v34 = vrot.slane %v3556_v33, %v13027_v28  ;;  %v19200_v54 = vld [vmem:[#allocation117_spill] sm:$0xff]  ;;  %v14822_v42 = vrot.slane %v2859_v4, %v13027_v28  ;;  %v19206_v33 = vld [vmem:[#allocation118_spill] sm:$0xff]  ;;  %v19208_v4 = vld [vmem:[#allocation120_spill] sm:$0xff]  ;;  %p12795_p13 = pneg %p12794_p12 }
 0x109   : > { %v2395_v58 = vpop.f32.mrb[4].mxu1  ;;  %v14779_v59 = vrot.slane %v2842_v20, %v13027_v28  ;;  %v3580_v57 = vrot.slane %v3572_v36, %v13027_v28  ;;  %v3587_v23 = vrot.slane %v3573_v61, %v13027_v28  ;;  %v14851_v10 = vcombine.high %v14811_v11, %v14811_v11  ;;  %v19212_v36 = vld [vmem:[#allocation135_spill] sm:$0xff] }
 0x10a   : > { %v2876_v2 = vcombine.low %v19207_v19, %v19206_v33  ;;  %v3606_v21 = vcombine.low %v19210_v1, %v14297_v47  ;;  %v19218_v33 = vld [vmem:[#allocation134_spill] sm:$0xff]  ;;  %v19219_v19 = vld [vmem:[#allocation133_spill] sm:$0xff]  ;;  %p12802_p3 = pnand %p12801_p2, %p12795_p13 }
 0x10b   : > { %11245 = vmatmul.mubr.msk.f32.gmra.mrb[74].mxu0 %vm1612_vm7, %v2773_v63  ;;  %11339 = vmatmul.mubr.msk.f32.gmra.mrb[76].mxu1 %vm1612_vm7, %v3503_v16  ;;  %v11125_v63 = vpop.f32.mrb[5].mxu1  ;;  %v3553_v16 = vrot.slane %v3539_v49, %v13027_v28  ;;  %v2858_v49 = vcombine.low %v14779_v59, %v14782_v7  ;;  %v3243_v47 = vrot.slane %v14851_v10, 7 }
 0x10c   : > { %11247 = vmatprep.mubr.msk.f32.mxu0 %vm12857_vm0, %v18971_v52  ;;  %11341 = vmatprep.mubr.msk.f32.mxu1 %vm12857_vm0, %v18971_v52  ;;  %v3590_v63 = vcombine.low %v19205_v17, %v19204_v13  ;;  %v3239_v13 = vrot.slane %v3237_v6, 2  ;;  %v14903_v17 = vrot.slane %v2528_v62, %v13027_v28 }
 0x10d   : > { %v1739_v51 = vpop.f32.mrb[4].mxu0 }
 0x10e   : > { %v11034_v50 = vpop.f32.mrb[5].mxu0  ;;  %v14857_v26 = vadd.f32 %v2395_v58, %v1739_v51  ;;  %v3604_v58 = vrot.slane %v3590_v63, %v13027_v28  ;;  %v19211_v51 = vld [vmem:[#allocation137_spill] sm:$0xff] }
 0x10f   : > { %11248 = vmatmul.mubr.msk.f32.gmra.mrb[76].mxu0 %vm1612_vm7, %v2790_v5  ;;  %11342 = vmatmul.mubr.msk.f32.gmra.mrb[78].mxu1 %vm1612_vm7, %v3520_v25  ;;  %v3238_v5 = vsel %vm13095_vm8, %v10096_v3, %v3237_v6  ;;  %v19201_v3 = vld [vmem:[#allocation114_spill] sm:$0xff]  ;;  %v3607_v44 = vcombine.low %v19212_v36, %v19211_v51  ;;  %v3240_v50 = vrot.slane %v14811_v11, 7  ;;  %v3234_v51 = vcombine.high %v14903_v17, %v14903_v17 }
 0x110   : > { %11250 = vmatprep.mubr.msk.f32.mxu0 %vm12857_vm0, %v18971_v52  ;;  %11344 = vmatprep.mubr.msk.f32.mxu1 %vm12857_vm0, %v18971_v52  ;;  %v3641_v25 = vcombine.low %v14415_v45, %v3238_v5  ;;  %v3554_v45 = vcombine.low %v3546_v37, %v3553_v16  ;;  %v2400_v35 = vpop.f32.mrb[6].mxu1  ;;  %v2860_v14 = vcombine.low %v19201_v3, %v19200_v54  ;;  %v19202_v37 = vld [vmem:[#allocation127_spill] sm:$0xff]  ;;  %v10131_v16 = vld [vmem:[%s18546_s3 + $0x20] sm:$0xff] }
 0x111   : > { %v11128_v30 = vpop.f32.mrb[7].mxu1  ;;  %v19209_v5 = vld [vmem:[#allocation121_spill] sm:$0xff]  ;;  %v12266_v7 = vpack.c.bf16 %v10132_v18, %v10131_v16  ;;  %v19213_v3 = vld [vmem:[#allocation124_spill] sm:$0xff]  ;;  %v3242_v63 = vrot.slane %v3240_v50, 2  ;;  %v3245_v16 = vrot.slane %v3243_v47, 2 }
 0x112   : > { %v14801_v41 = vrot.slane %v3641_v25, %v13027_v28  ;;  %v2874_v15 = vrot.slane %v2860_v14, %v13027_v28  ;;  %v2877_v48 = vcombine.low %v19209_v5, %v19208_v4  ;;  %v3588_v25 = vcombine.low %v3580_v57, %v3587_v23  ;;  %v19214_v14 = vld [vmem:[#allocation123_spill] sm:$0xff]  ;;  %v19215_v57 = vld [vmem:[#allocation132_spill] sm:$0xff]  ;;  %v19216_v23 = vld [vmem:[#allocation129_spill] sm:$0xff] }
 0x113   : > { %11251 = vmatmul.mubr.msk.f32.gmra.mrb[78].mxu0 %vm1612_vm7, %v2807_v24  ;;  %11345 = vmatmul.mubr.msk.f32.gmra.mrb[80].mxu1 %vm1612_vm7, %v3537_v39  ;;  %v2841_v24 = vcombine.low %v14736_v22, %v14747_v38  ;;  %v3589_v22 = vcombine.low %v19203_v0, %v19202_v37  ;;  %v3571_v38 = vcombine.low %v3563_v53, %v3570_v34 }
 0x114   : > { %11253 = vmatprep.mubr.msk.f32.mxu0 %vm12857_vm0, %v18971_v52  ;;  %11347 = vmatprep.mubr.msk.f32.mxu1 %vm12857_vm0, %v18971_v52  ;;  %v3656_v20 = vcombine.low %v14786_v55, %v14801_v41  ;;  %v14837_v39 = vrot.slane %v14808_v29, %v13027_v28  ;;  %v1744_v59 = vpop.f32.mrb[6].mxu0  ;;  %v2884_v29 = vrot.slane %v2876_v2, %v13027_v28 }
 0x115   : > { %v3597_v53 = vrot.slane %v3589_v22, %v13027_v28  ;;  %12699 = vmatpush3.bf16.msra.mxu1 %v12266_v7  ;;  %12267 = vmatpush3.bf16.msra.mxu0 %v12266_v7  ;;  %v2893_v30 = vcombine.low %v19214_v14, %v19213_v3  ;;  %v2894_v37 = vcombine.low %v19216_v23, %v19215_v57  ;;  %v19217_v22 = vmov 0.0|0.0   ;;  %v19223_v3 = vld [vmem:[#allocation140_spill] sm:$0xff] }
 0x116   : > { %v14883_v61 = vcombine.high %v14837_v39, %v14837_v39  ;;  %v3614_v0 = vrot.slane %v3606_v21, %v13027_v28  ;;  %12268 = vmatprep.subr.bf16.mxu0 %v19217_v22  ;;  %12698 = vmatprep.subr.bf16.mxu1 %v19217_v22  ;;  %v2910_v2 = vcombine.low %v19219_v19, %v19218_v33 }
 0x117   : > { %11254 = vmatmul.mubr.msk.f32.gmra.mrb[80].mxu0 %vm1612_vm7, %v2824_v32  ;;  %11348 = vmatmul.mubr.msk.f32.gmra.mrb[82].mxu1 %vm1612_vm7, %v3554_v45  ;;  %v14855_v32 = vadd.f32 %v14704_v31, %v14721_v27  ;;  %v14867_v31 = vadd.f32 %v2400_v35, %v1744_v59  ;;  %v11037_v27 = vpop.f32.mrb[7].mxu0  ;;  %v3246_v45 = vrot.slane %v14837_v39, 7  ;;  %v2405_v34 = vpop.f32.mrb[8].mxu1  ;;  %v2875_v35 = vcombine.low %v14822_v42, %v2874_v15 }
 0x118   : > { %11256 = vmatprep.mubr.msk.f32.mxu0 %vm12857_vm0, %v18971_v52  ;;  %11350 = vmatprep.mubr.msk.f32.mxu1 %vm12857_vm0, %v18971_v52  ;;  %v11131_v54 = vpop.f32.mrb[9].mxu1  ;;  %v3605_v42 = vcombine.low %v3597_v53, %v3604_v58  ;;  %v3249_v18 = vrot.slane %v14883_v61, 7  ;;  %v2901_v59 = vrot.slane %v2893_v30, %v13027_v28  ;;  %v2908_v7 = vrot.slane %v2894_v37, %v13027_v28  ;;  %v19221_v53 = vld [vmem:[#allocation138_spill] sm:$0xff] }
 0x119   : > { %v3241_v58 = vsel %vm13095_vm8, %v3239_v13, %v3240_v50  ;;  %v3244_v36 = vsel %vm13095_vm8, %v3242_v63, %v3243_v47  ;;  %v3252_v50 = vrot.slane %v14903_v17, 7  ;;  %v2928_v14 = vcombine.low %v19223_v3, %v14719_v46 }
 0x11a   : > { %v3657_v57 = vcombine.low %v3241_v58, %v3244_v36  ;;  %v2961_v55 = vcombine.low %v14883_v61, %v14903_v17 }
 0x11b   : > { %11257 = vmatmul.mubr.msk.f32.gmra.mrb[82].mxu0 %vm1612_vm7, %v2841_v24  ;;  %11351 = vmatmul.mubr.msk.f32.gmra.mrb[84].mxu1 %vm1612_vm7, %v3571_v38  ;;  %v2891_v24 = vrot.slane %v2877_v48, %v13027_v28  ;;  %v3621_v38 = vrot.slane %v3607_v44, %v13027_v28  ;;  %v1749_v15 = vpop.f32.mrb[8].mxu0  ;;  %v3247_v44 = vsel %vm13095_vm8, %v3245_v16, %v3246_v45  ;;  %v3254_v37 = vrot.slane %v3252_v50, 2 }
 0x11c   : > { %11259 = vmatprep.mubr.msk.f32.mxu0 %vm12857_vm0, %v18971_v52  ;;  %11353 = vmatprep.mubr.msk.f32.mxu1 %vm12857_vm0, %v18971_v52  ;;  %v14912_v4 = vadd.f32 %v2405_v34, %v1749_v15  ;;  %v11040_v6 = vpop.f32.mrb[9].mxu0  ;;  %v2918_v34 = vrot.slane %v2910_v2, %v13027_v28  ;;  %v2942_v63 = vrot.slane %v2928_v14, %v13027_v28 }
 0x11d   : > { %v2410_v5 = vpop.f32.mrb[10].mxu1  ;;  %v2892_v48 = vcombine.low %v2884_v29, %v2891_v24  ;;  %v3622_v27 = vcombine.low %v3614_v0, %v3621_v38  ;;  %v19222_v24 = vld [vmem:[#allocation136_spill] sm:$0xff]  ;;  %v3255_v0 = vrot.slane %v3234_v51, 7  ;;  %v2944_v16 = vcombine.low %v14743_v60, %v14811_v11 }
 0x11e   : > { %v11134_v21 = vpop.f32.mrb[11].mxu1  ;;  %v2927_v54 = vcombine.low %v19222_v24, %v14338_v43  ;;  %v3251_v43 = vrot.slane %v3249_v18, 2 }
 0x11f   : > { %11260 = vmatmul.mubr.msk.f32.gmra.mrb[84].mxu0 %vm1612_vm7, %v2858_v49  ;;  %11354 = vmatmul.mubr.msk.f32.gmra.mrb[86].mxu1 %vm1612_vm7, %v3588_v25  ;;  %v3248_v49 = vrot.slane %v3246_v45, 2  ;;  %v19220_v25 = vld [vmem:[#allocation139_spill] sm:$0xff]  ;;  %v2909_v45 = vcombine.low %v2901_v59, %v2908_v7  ;;  %v3256_v9 = vsel %vm13095_vm8, %v3254_v37, %v3255_v0  ;;  %v2952_v11 = vrot.slane %v2944_v16, %v13027_v28 }
 0x120   : > { %11262 = vmatprep.mubr.msk.f32.mxu0 %vm12857_vm0, %v18971_v52  ;;  %11356 = vmatprep.mubr.msk.f32.mxu1 %vm12857_vm0, %v18971_v52  ;;  %v2911_v1 = vcombine.low %v19221_v53, %v19220_v25  ;;  %v2935_v13 = vrot.slane %v2927_v54, %v13027_v28  ;;  %v3253_v60 = vsel %vm13095_vm8, %v3251_v43, %v3252_v50  ;;  %v10133_v0 = vld [vmem:[%s18546_s3 + $0x30] sm:$0xff] }
 0x121   : > { %v3250_v62 = vsel %vm13095_vm8, %v3248_v49, %v3249_v18  ;;  %v2945_v49 = vcombine.low %v14851_v10, %v14837_v39  ;;  %v3665_v18 = vrot.slane %v3657_v57, %v13027_v28  ;;  %v3674_v2 = vcombine.low %v3253_v60, %v3256_v9 }
 0x122   : > { %v2925_v29 = vrot.slane %v2911_v1, %v13027_v28  ;;  %v3658_v23 = vcombine.low %v3247_v44, %v3250_v62 }
 0x123   : > { %11263 = vmatmul.mubr.msk.f32.gmra.mrb[86].mxu0 %vm1612_vm7, %v2875_v35  ;;  %11357 = vmatmul.mubr.msk.f32.gmra.mrb[88].mxu1 %vm1612_vm7, %v3605_v42  ;;  %v1754_v35 = vpop.f32.mrb[10].mxu0  ;;  %v2959_v33 = vrot.slane %v2945_v49, %v13027_v28  ;;  %v3681_v41 = vrot.slane %v3674_v2, %v13027_v28 }
 0x124   : > { %11265 = vmatprep.mubr.msk.f32.mxu0 %vm12857_vm0, %v18971_v52  ;;  %11359 = vmatprep.mubr.msk.f32.mxu1 %vm12857_vm0, %v18971_v52  ;;  %v14941_v47 = vadd.f32 %v2410_v5, %v1754_v35  ;;  %v11043_v30 = vpop.f32.mrb[11].mxu0  ;;  %v2415_v46 = vpop.f32.mrb[12].mxu1  ;;  %v2926_v38 = vcombine.low %v2918_v34, %v2925_v29  ;;  %v3672_v15 = vrot.slane %v3658_v23, %v13027_v28 }
 0x125   : > { %v11137_v42 = vpop.f32.mrb[13].mxu1  ;;  %v2960_v5 = vcombine.low %v2952_v11, %v2959_v33 }
 0x126   : > { %v3673_v19 = vcombine.low %v3665_v18, %v3672_v15 }
 0x127   : > { %11266 = vmatmul.mubr.msk.f32.gmra.mrb[88].mxu0 %vm1612_vm7, %v2892_v48  ;;  %11360 = vmatmul.mubr.msk.f32.gmra.mrb[90].mxu1 %vm1612_vm7, %v3622_v27  ;;  %v2968_v48 = vrot.slane %v2961_v55, %v13027_v28 }
 0x128   : > { %11268 = vmatprep.mubr.msk.f32.mxu0 %vm12857_vm0, %v18971_v52  ;;  %11362 = vmatprep.mubr.msk.f32.mxu1 %vm12857_vm0, %v18971_v52 }
 0x129   : > { %v1759_v8 = vpop.f32.mrb[12].mxu0 }
 0x12a   : > { %v14971_v39 = vadd.f32 %v2415_v46, %v1759_v8  ;;  %v11046_v10 = vpop.f32.mrb[13].mxu0  ;;  %v10134_v46 = vld [vmem:[%s18546_s3 + $0x38] sm:$0xff] }
 0x12b   : > { %11269 = vmatmul.mubr.msk.f32.gmra.mrb[90].mxu0 %vm1612_vm7, %v2909_v45  ;;  %11363 = vmatmul.mubr.msk.f32.gmra.mrb[92].mxu1 %vm1612_vm7, %v3639_v40  ;;  %v2943_v40 = vcombine.low %v2935_v13, %v2942_v63  ;;  %v12269_v42 = vpack.c.bf16 %v10134_v46, %v10133_v0 }
 0x12c   : > { %11271 = vmatprep.mubr.msk.f32.mxu0 %vm12857_vm0, %v18971_v52  ;;  %11365 = vmatprep.mubr.msk.f32.mxu1 %vm12857_vm0, %v18971_v52 }
 0x12d   : > { %12270 = vmatpush3.bf16.msra.mxu0 %v12269_v42  ;;  %12700 = vmatpush3.bf16.msra.mxu1 %v12269_v42 }
 0x12e   : > { %12277 = vmatprep.subr.bf16.mxu0 %v19217_v22  ;;  %12271 = vmatprep.subr.bf16.mxu1 %v19217_v22 }
 0x12f   : > { %11272 = vmatmul.mubr.msk.f32.gmra.mrb[92].mxu0 %vm1612_vm7, %v2926_v38  ;;  %11366 = vmatmul.mubr.msk.f32.gmra.mrb[94].mxu1 %vm1612_vm7, %v3656_v20  ;;  %v2420_v6 = vpop.f32.mrb[14].mxu1 }
 0x130   : > { %11274 = vmatprep.mubr.msk.f32.mxu0 %vm12857_vm0, %v18971_v52  ;;  %11368 = vmatprep.mubr.msk.f32.mxu1 %vm12857_vm0, %v18971_v52  ;;  %v11140_v20 = vpop.f32.mrb[15].mxu1 }
 0x133   : > { %11275 = vmatmul.mubr.msk.f32.gmra.mrb[94].mxu0 %vm1612_vm7, %v2943_v40  ;;  %11369 = vmatmul.mubr.msk.f32.gmra.mrb[96].mxu1 %vm1612_vm7, %v3673_v19  ;;  %v1764_v59 = vpop.f32.mrb[14].mxu0 }
 0x134   : > { %11277 = vmatprep.mubr.msk.f32.mxu0 %vm12857_vm0, %v18971_v52  ;;  %11371 = vmatprep.mubr.msk.f32.mxu1 %vm12857_vm0, %v18971_v52  ;;  %v14997_v61 = vadd.f32 %v2420_v6, %v1764_v59  ;;  %v11049_v17 = vpop.f32.mrb[15].mxu0 }
 0x135   : > { %v2425_v7 = vpop.f32.mrb[16].mxu1 }
 0x136   : > { %v11143_v25 = vpop.f32.mrb[17].mxu1 }
 0x137   : > { %11278 = vmatmul.mubr.msk.f32.gmra.mrb[96].mxu0 %vm1612_vm7, %v2960_v5  ;;  %11372 = vmatmul.mubr.msk.f32.gmra.mrb[98].mxu1 %vm1612_vm7, %v3681_v41  ;;  %v1769_v53 = vpop.f32.mrb[16].mxu0 }
 0x138   : > { %11280 = vmatprep.mubr.msk.f32.mxu0 %vm12857_vm0, %v18971_v52  ;;  %11391 = vmatprep.mubr.msk.f32.mxu1 %vm12857_vm0, %v18971_v52  ;;  %v15002_v1 = vadd.f32 %v2425_v7, %v1769_v53  ;;  %v11052_v21 = vpop.f32.mrb[17].mxu0 }
 0x13b   : > { %11281 = vmatmul.mubr.msk.f32.gmra.mrb[98].mxu0 %vm1612_vm7, %v2968_v48 }
 0x13c   : > { %11382 = vmatprep.mubr.msk.f32.mxu0 %vm12857_vm0, %v18971_v52  ;;  %v2430_v27 = vpop.f32.mrb[18].mxu1 }
 0x13d   : > { %v11146_v58 = vpop.f32.mrb[19].mxu1 }
 0x141   : > { %v1774_v51 = vpop.f32.mrb[18].mxu0 }
 0x142   : > { %v15006_v36 = vadd.f32 %v2430_v27, %v1774_v51  ;;  %v11055_v44 = vpop.f32.mrb[19].mxu0 }
 0x143   : > { %v2435_v62 = vpop.f32.mrb[20].mxu1 }
 0x144   : > { %v11149_v50 = vpop.f32.mrb[21].mxu1 }
 0x147   : > { %v1779_v34 = vpop.f32.mrb[20].mxu0 }
 0x148   : > { %v15008_v35 = vadd.f32 %v2435_v62, %v1779_v34  ;;  %v11058_v29 = vpop.f32.mrb[21].mxu0 }
 0x14a   : > { %v2440_v24 = vpop.f32.mrb[22].mxu1 }
 0x14b   : > { %v11152_v54 = vpop.f32.mrb[23].mxu1 }
 0x14d   : > { %v1784_v3 = vpop.f32.mrb[22].mxu0 }
 0x14e   : > { %v15010_v14 = vadd.f32 %v2440_v24, %v1784_v3  ;;  %v11061_v30 = vpop.f32.mrb[23].mxu0 }
 0x150   : > { %v2445_v45 = vpop.f32.mrb[24].mxu1 }
 0x151   : > { %v11155_v57 = vpop.f32.mrb[25].mxu1 }
 0x154   : > { %v1789_v23 = vpop.f32.mrb[24].mxu0 }
 0x155   : > { %v15012_v43 = vadd.f32 %v2445_v45, %v1789_v23  ;;  %v11064_v37 = vpop.f32.mrb[25].mxu0 }
 0x159   : > { %v2450_v38 = vpop.f32.mrb[26].mxu1 }
 0x15a   : > { %v11158_v13 = vpop.f32.mrb[27].mxu1 }
 0x15d   : > { %v1794_v63 = vpop.f32.mrb[26].mxu0 }
 0x15e   : > { %v15022_v16 = vadd.f32 %v2450_v38, %v1794_v63  ;;  %v11067_v49 = vpop.f32.mrb[27].mxu0 }
 0x15f   : > { %v2455_v18 = vpop.f32.mrb[28].mxu1 }
 0x160   : > { %v11161_v15 = vpop.f32.mrb[29].mxu1 }
 0x163   : > { %v1799_v60 = vpop.f32.mrb[28].mxu0 }
 0x164   : > { %v15024_v9 = vadd.f32 %v2455_v18, %v1799_v60  ;;  %v11070_v8 = vpop.f32.mrb[29].mxu0 }
 0x166   : > { %v2460_v40 = vpop.f32.mrb[30].mxu1 }
 0x167   : > { %v11164_v11 = vpop.f32.mrb[31].mxu1 }
 0x16a   : > { %v1804_v10 = vpop.f32.mrb[30].mxu0 }
 0x16b   : > { %v15026_v33 = vadd.f32 %v2460_v40, %v1804_v10  ;;  %v11073_v19 = vpop.f32.mrb[31].mxu0 }
 0x16f   : > { %v2465_v2 = vpop.f32.mrb[32].mxu1 }
 0x170   : > { %v11167_v6 = vpop.f32.mrb[33].mxu1 }
 0x174   : > { %v1809_v5 = vpop.f32.mrb[32].mxu0 }
 0x175   : > { %v15028_v55 = vadd.f32 %v2465_v2, %v1809_v5  ;;  %v11076_v41 = vpop.f32.mrb[33].mxu0  ;;  %v2470_v20 = vpop.f32.mrb[34].mxu1 }
 0x176   : > { %v11170_v48 = vpop.f32.mrb[35].mxu1 }
 0x179   : > { %v1814_v59 = vpop.f32.mrb[34].mxu0 }
 0x17a   : > { %v15030_v17 = vadd.f32 %v2470_v20, %v1814_v59  ;;  %v11079_v7 = vpop.f32.mrb[35].mxu0 }
 0x17d   : > { %v2475_v25 = vpop.f32.mrb[36].mxu1 }
 0x17e   : > { %v11173_v53 = vpop.f32.mrb[37].mxu1 }
 0x182   : > { %v1819_v21 = vpop.f32.mrb[36].mxu0 }
 0x183   : > { %v15032_v27 = vadd.f32 %v2475_v25, %v1819_v21  ;;  %v11082_v58 = vpop.f32.mrb[37].mxu0  ;;  %v2480_v51 = vpop.f32.mrb[38].mxu1  ;;  %v15050_v25 = vld [vmem:[%s18545_s2] ss:$0 sm:$0xff] }
 0x184   : > { %v11176_v44 = vpop.f32.mrb[39].mxu1 }
 0x188   : > { %v1824_v62 = vpop.f32.mrb[38].mxu0 }
 0x189   : > { %v15034_v50 = vadd.f32 %v2480_v51, %v1824_v62  ;;  %v11085_v34 = vpop.f32.mrb[39].mxu0 }
 0x18b   : > { %19224 = vst [vmem:[#allocation16_spill] sm:$0xff] %v15034_v50  ;;  %v2485_v29 = vpop.f32.mrb[40].mxu1 }
 0x18c   : > { %v11179_v24 = vpop.f32.mrb[41].mxu1 }
 0x190   : > { %v1829_v54 = vpop.f32.mrb[40].mxu0 }
 0x191   : > { %v15036_v3 = vadd.f32 %v2485_v29, %v1829_v54  ;;  %v11088_v30 = vpop.f32.mrb[41].mxu0  ;;  %v19230_v54 = vld [vmem:[#allocation5_spill] sm:$0xff] }
 0x192   : > { %v15058_v30 = vsub.s32 0, %v19230_v54 }
 0x193   : > { %19225 = vst [vmem:[#allocation13_spill] sm:$0xff] %v15036_v3  ;;  %v2490_v45 = vpop.f32.mrb[42].mxu1 }
 0x194   : > { %v11182_v57 = vpop.f32.mrb[43].mxu1  ;;  %19231 = vst [vmem:[#allocation14_spill] sm:$0xff] %v15058_v30 }
 0x196   : > { %v1834_v23 = vpop.f32.mrb[42].mxu0 }
 0x197   : > { %v15038_v37 = vadd.f32 %v2490_v45, %v1834_v23  ;;  %v11091_v0 = vpop.f32.mrb[43].mxu0 }
 0x199   : > { %19226 = vst [vmem:[#allocation9_spill] sm:$0xff] %v15038_v37 }
 0x19a   : > { %v2495_v46 = vpop.f32.mrb[44].mxu1 }
 0x19b   : > { %v11185_v42 = vpop.f32.mrb[45].mxu1 }
 0x19e   : > { %v1839_v38 = vpop.f32.mrb[44].mxu0 }
 0x19f   : > { %v15040_v13 = vadd.f32 %v2495_v46, %v1839_v38  ;;  %v11094_v63 = vpop.f32.mrb[45].mxu0 }
 0x1a1   : > { %19227 = vst [vmem:[#allocation8_spill] sm:$0xff] %v15040_v13 }
 0x1a2   : > { %v2500_v49 = vpop.f32.mrb[46].mxu1 }
 0x1a3   : > { %v11188_v18 = vpop.f32.mrb[47].mxu1 }
 0x1a6   : > { %v1844_v15 = vpop.f32.mrb[46].mxu0  ;;  %v2505_v60 = vpop.f32.mrb[48].mxu1 }
 0x1a7   : > { %v15042_v8 = vadd.f32 %v2500_v49, %v1844_v15  ;;  %v11097_v40 = vpop.f32.mrb[47].mxu0  ;;  %v11191_v11 = vpop.f32.mrb[49].mxu1 }
 0x1a9   : > { %19228 = vst [vmem:[#allocation12_spill] sm:$0xff] %v15042_v8 }
 0x1aa   : > { %v1849_v10 = vpop.f32.mrb[48].mxu0  ;;  %v3798_v19 = vpop.f32.mrb[50].mxu1 }
 0x1ab   : > { %v15044_v2 = vadd.f32 %v2505_v60, %v1849_v10  ;;  %v11100_v6 = vpop.f32.mrb[49].mxu0  ;;  %v11301_v5 = vpop.f32.mrb[51].mxu1 }
 0x1ad   : > { %19229 = vst [vmem:[#allocation10_spill] sm:$0xff] %v15044_v2 }
 0x1ae   : > { %v3085_v41 = vpop.f32.mrb[50].mxu0  ;;  %v3803_v20 = vpop.f32.mrb[52].mxu1 }
 0x1af   : > { %v3209_v48 = vadd.f32 %v3085_v41, %v14795_v12  ;;  %v11210_v59 = vpop.f32.mrb[51].mxu0  ;;  %v11304_v7 = vpop.f32.mrb[53].mxu1  ;;  %v15055_v12 = vsub.s32 1, %v19230_v54 }
 0x1b1   : > { %v3922_v53 = vadd.f32 %v3798_v19, %v3209_v48 }
 0x1b2   : > { %v3090_v21 = vpop.f32.mrb[52].mxu0  ;;  %v3808_v58 = vpop.f32.mrb[54].mxu1 }
 0x1b3   : > { %v3954_v51 = vadd.f32 %v15050_v25, %v3922_v53  ;;  %v3210_v44 = vadd.f32 %v3090_v21, %v14855_v32  ;;  %v11213_v62 = vpop.f32.mrb[53].mxu0  ;;  %v11307_v34 = vpop.f32.mrb[55].mxu1 }
 0x1b5   : > { %v3979_v29 = vmax.f32 %v3954_v51, 0.0  ;;  %v3923_v24 = vadd.f32 %v3803_v20, %v3210_v44 }
 0x1b6   : > { %v3095_v45 = vpop.f32.mrb[54].mxu0  ;;  %v15060_v57 = vpop.f32.mrb[56].mxu1 }
 0x1b7   : > { %v4029_v23 = vcombine.high %v3979_v29, %v3979_v29  ;;  %v4036_v0 = vrot.slane %v3979_v29, %v13027_v28  ;;  %v3955_v46 = vadd.f32 %v15050_v25, %v3923_v24  ;;  %v3211_v32 = vadd.f32 %v3095_v45, %v14857_v26  ;;  %v11216_v42 = vpop.f32.mrb[55].mxu0  ;;  %v11310_v38 = vpop.f32.mrb[57].mxu1 }
 0x1b9   : > { %v4043_v63 = vrot.slane %v4029_v23, %v13027_v28  ;;  %v4044_v49 = vcombine.high %v4036_v0, %v4036_v0  ;;  %v4457_v18 = vrot.slane %v4036_v0, %v15055_v12  ;;  %v4737_v15 = vrot.slane %v4036_v0, %v15058_v30 }
 0x1ba   : > { %v3980_v60 = vmax.f32 %v3955_v46, 0.0  ;;  %v3924_v40 = vadd.f32 %v3808_v58, %v3211_v32  ;;  %v3100_v11 = vpop.f32.mrb[56].mxu0  ;;  %v3818_v10 = vpop.f32.mrb[58].mxu1 }
 0x1bb   : > { %v4045_v19 = vcombine.high %v4043_v63, %v4043_v63  ;;  %v4461_v6 = vrot.slane %v4044_v49, %v15055_v12  ;;  %v4465_v26 = vrot.slane %v4043_v63, %v15055_v12  ;;  %v4741_v5 = vrot.slane %v4044_v49, %v15058_v30  ;;  %v11219_v41 = vpop.f32.mrb[57].mxu0  ;;  %v11313_v20 = vpop.f32.mrb[59].mxu1 }
 0x1bc   : > { %v4745_v48 = vrot.slane %v4043_v63, %v15058_v30  ;;  %v4046_v59 = vcombine.high %v3980_v60, %v3980_v60  ;;  %v4053_v7 = vrot.slane %v3980_v60, %v13027_v28  ;;  %v3956_v53 = vadd.f32 %v15050_v25, %v3924_v40 }
 0x1bd   : > { %v4469_v21 = vrot.slane %v4045_v19, %v15055_v12  ;;  %v4599_v58 = vsel %vm4598_vm9, %v4461_v6, %v4457_v18  ;;  %v4749_v51 = vrot.slane %v4045_v19, %v15058_v30  ;;  %v4878_v44 = vsel %vm4598_vm9, %v4741_v5, %v4737_v15 }
 0x1be   : > { %v4600_v62 = vsel %vm873_vm2, %v4465_v26, %v4599_v58  ;;  %v4879_v34 = vsel %vm873_vm2, %v4745_v48, %v4878_v44  ;;  %v5038_v29 = vsel %vm4598_vm9, %v4745_v48, %v4741_v5  ;;  %v5203_v24 = vsel %vm4598_vm9, %v4465_v26, %v4461_v6  ;;  %v3105_v54 = vpop.f32.mrb[58].mxu0  ;;  %v3823_v45 = vpop.f32.mrb[60].mxu1 }
 0x1bf   : > { %v15083_v23 = vrot.slane %v4046_v59, %v13027_v28  ;;  %v15085_v0 = vcombine.high %v4053_v7, %v4053_v7  ;;  %v4473_v46 = vrot.slane %v4053_v7, %v15055_v12  ;;  %v4602_v32 = vsel %vm4601_vm10, %v4469_v21, %v4600_v62  ;;  %v11222_v42 = vpop.f32.mrb[59].mxu0  ;;  %v11316_v38 = vpop.f32.mrb[61].mxu1 }
 0x1c0   : > { %v4753_v63 = vrot.slane %v4053_v7, %v15058_v30  ;;  %v4880_v49 = vsel %vm4601_vm10, %v4749_v51, %v4879_v34  ;;  %v5039_v18 = vsel %vm873_vm2, %v4749_v51, %v5038_v29  ;;  %v5204_v15 = vsel %vm873_vm2, %v4469_v21, %v5203_v24 }
 0x1c1   : > { %19232 = vst [vmem:[#allocation15_spill] sm:$0xff] %v15083_v23  ;;  %v4062_v60 = vcombine.high %v15083_v23, %v15083_v23  ;;  %v15096_v40 = vsel %vm875_vm4, %v4473_v46, %v4602_v32  ;;  %v4757_v19 = vrot.slane %v15085_v0, %v15058_v30  ;;  %v5017_v26 = vrot.slane %v15083_v23, %v15058_v30 }
 0x1c2   : > { %v4881_v6 = vsel %vm875_vm4, %v4753_v63, %v4880_v49  ;;  %v5040_v5 = vsel %vm4601_vm10, %v4753_v63, %v5039_v18  ;;  %v3110_v41 = vpop.f32.mrb[60].mxu0  ;;  %v15104_v20 = vpop.f32.mrb[62].mxu1  ;;  %v15107_v48 = vsel %vm4601_vm10, %v4473_v46, %v5204_v15  ;;  %v3981_v7 = vmax.f32 %v3956_v53, 0.0 }
 0x1c3   : > { %19233 = vst [vmem:[#allocation11_spill] sm:$0xff] %v15107_v48  ;;  %v5347_v59 = vrot.slane %v4062_v60, %v15058_v30  ;;  %v11225_v21 = vpop.f32.mrb[61].mxu0  ;;  %v11319_v58 = vpop.f32.mrb[63].mxu1  ;;  %v5632_v51 = vrot.slane %v4062_v60, %v15055_v12  ;;  %v3212_v44 = vadd.f32 %v3100_v11, %v14867_v31  ;;  %v3213_v62 = vadd.f32 %v3105_v54, %v14912_v4 }
 0x1c4   : > { %v3214_v34 = vadd.f32 %v3110_v41, %v14941_v47  ;;  %v4063_v29 = vcombine.high %v3981_v7, %v3981_v7  ;;  %v4070_v24 = vrot.slane %v3981_v7, %v13027_v28  ;;  %v5041_v32 = vsel %vm875_vm4, %v4757_v19, %v5040_v5 }
 0x1c5   : > { %v15117_v46 = vsel %vm4604_vm11, %v4757_v19, %v4881_v6  ;;  %v3925_v53 = vadd.f32 %v15060_v57, %v3212_v44  ;;  %v3926_v42 = vadd.f32 %v3818_v10, %v3213_v62  ;;  %v15123_v31 = vsel %vm4604_vm11, %v5017_v26, %v5041_v32 }
 0x1c6   : > { %19234 = vst [vmem:[#allocation18_spill] sm:$0xff] %v15117_v46  ;;  %v3927_v38 = vadd.f32 %v3823_v45, %v3214_v34  ;;  %v3115_v63 = vpop.f32.mrb[62].mxu0  ;;  %v15120_v49 = vpop.f32.mrb[64].mxu1  ;;  %v4077_v4 = vrot.slane %v4063_v29, %v13027_v28  ;;  %v4078_v47 = vcombine.high %v4070_v24, %v4070_v24  ;;  %v5351_v11 = vrot.slane %v4070_v24, %v15058_v30 }
 0x1c7   : > { %v5636_v54 = vrot.slane %v4070_v24, %v15055_v12  ;;  %v11228_v18 = vpop.f32.mrb[63].mxu0  ;;  %v11322_v15 = vpop.f32.mrb[65].mxu1  ;;  %v3957_v60 = vadd.f32 %v15050_v25, %v3925_v53  ;;  %v3958_v57 = vadd.f32 %v15050_v25, %v3926_v42  ;;  %v15132_v45 = vadd.f32 %v3115_v63, %v14971_v39  ;;  %v15161_v63 = vld [vmem:[%s18546_s3 + $0x40] sm:$0xff] }
 0x1c8   : > { %v3959_v10 = vadd.f32 %v15050_v25, %v3927_v38  ;;  %v4079_v19 = vcombine.high %v4077_v4, %v4077_v4  ;;  %v5355_v6 = vrot.slane %v4078_v47, %v15058_v30  ;;  %v5359_v26 = vrot.slane %v4077_v4, %v15058_v30 }
 0x1c9   : > { %v5488_v5 = vsel %vm4598_vm9, %v5351_v11, %v5347_v59  ;;  %v5640_v41 = vrot.slane %v4078_v47, %v15055_v12  ;;  %v5644_v7 = vrot.slane %v4077_v4, %v15055_v12  ;;  %v5773_v21 = vsel %vm4598_vm9, %v5636_v54, %v5632_v51  ;;  %v15166_v4 = vld [vmem:[%s18546_s3 + $0x48] sm:$0xff] }
 0x1ca   : > { %v3982_v58 = vmax.f32 %v3957_v60, 0.0  ;;  %v15140_v44 = vpop.f32.mrb[64].mxu0  ;;  %v15142_v62 = vpop.f32.mrb[66].mxu1  ;;  %v15145_v39 = vrot.slane %v4079_v19, %v15058_v30  ;;  %v5489_v34 = vsel %vm873_vm2, %v5355_v6, %v5488_v5  ;;  %v15149_v29 = vrot.slane %v4079_v19, %v15055_v12  ;;  %v15181_v60 = vld [vmem:[%s18546_s3 + $0x58] sm:$0xff]  ;;  %v15186_v19 = vld [vmem:[%s18546_s3] sm:$0xff] }
 0x1cb   : > { %v5938_v59 = vsel %vm4598_vm9, %v5355_v6, %v5351_v11  ;;  %v11231_v24 = vpop.f32.mrb[65].mxu0  ;;  %v11325_v32 = vpop.f32.mrb[67].mxu1  ;;  %v15153_v53 = vsel %vm4601_vm10, %v5359_v26, %v5489_v34  ;;  %v5774_v51 = vsel %vm873_vm2, %v5640_v41, %v5773_v21  ;;  %v6103_v38 = vsel %vm4598_vm9, %v5640_v41, %v5636_v54  ;;  %v15176_v54 = vld [vmem:[%s18546_s3 + $0x50] sm:$0xff]  ;;  %19239 = vst [vmem:[#allocation27_spill] sm:$0xff] %v15186_v19  ;;  %v15199_v21 = vld [vmem:[%s18546_s3 + $0x8] sm:$0xff] }
 0x1cc   : > { %19235 = vst [vmem:[#allocation19_spill] sm:$0xff] %v15145_v39  ;;  %19236 = vst [vmem:[#allocation25_spill] sm:$0xff] %v15149_v29  ;;  %v5939_v42 = vsel %vm873_vm2, %v5359_v26, %v5938_v59  ;;  %v15169_v47 = vsel %vm4601_vm10, %v5644_v7, %v5774_v51  ;;  %v6104_v11 = vsel %vm873_vm2, %v5644_v7, %v6103_v38  ;;  %v3983_v5 = vmax.f32 %v3958_v57, 0.0  ;;  %v15209_v34 = vld [vmem:[%s18546_s3 + $0x88] sm:$0xff]  ;;  %v15221_v38 = vld [vmem:[%s18546_s3 + $0x10] sm:$0xff] }
 0x1cd   : > { %19237 = vst [vmem:[#allocation26_spill] sm:$0xff] %v15153_v53  ;;  %19238 = vst [vmem:[#allocation28_spill] sm:$0xff] %v15169_v47  ;;  %v4080_v18 = vcombine.high %v3982_v58, %v3982_v58  ;;  %v4087_v15 = vrot.slane %v3982_v58, %v13027_v28  ;;  %v5940_v6 = vsel %vm4601_vm10, %v15145_v39, %v5939_v42  ;;  %v15204_v58 = vld [vmem:[%s18546_s3 + $0x80] sm:$0xff]  ;;  %v3984_v32 = vmax.f32 %v3959_v10, 0.0 }
 0x1ce   : > { %v6105_v26 = vsel %vm4601_vm10, %v15149_v29, %v6104_v11  ;;  %v15192_v41 = vpop.f32.mrb[66].mxu0  ;;  %v15194_v7 = vpop.f32.mrb[68].mxu1  ;;  %19240 = vst [vmem:[#allocation17_spill] sm:$0xff] %v15199_v21  ;;  %19241 = vst [vmem:[#allocation21_spill] sm:$0xff] %v15204_v58  ;;  %v15226_v11 = vld [vmem:[%s18546_s3 + $0x18] sm:$0xff]  ;;  %v4097_v56 = vcombine.high %v3983_v5, %v3983_v5  ;;  %v4104_v10 = vrot.slane %v3983_v5, %v13027_v28  ;;  %v15246_v47 = vld [vmem:[%s18546_s3 + $0x60] sm:$0xff] }
 0x1cf   : > { %19242 = vst [vmem:[#allocation22_spill] sm:$0xff] %v15209_v34  ;;  %v4094_v57 = vrot.slane %v4080_v18, %v13027_v28  ;;  %v15213_v59 = vrot.slane %v4087_v15, %v15058_v30  ;;  %v15216_v24 = vrot.slane %v4087_v15, %v15055_v12  ;;  %v11234_v51 = vpop.f32.mrb[67].mxu0  ;;  %v11328_v42 = vpop.f32.mrb[69].mxu1  ;;  %19245 = vst [vmem:[#allocation29_spill] sm:$0xff] %v15221_v38  ;;  %v15231_v18 = vld [vmem:[%s18546_s3 + $0x90] sm:$0xff]  ;;  %v15241_v29 = vld [vmem:[%s18546_s3 + $0x98] sm:$0xff] }
 0x1d0   : > { %19246 = vst [vmem:[#allocation39_spill] sm:$0xff] %v15226_v11  ;;  %19247 = vst [vmem:[#allocation24_spill] sm:$0xff] %v15231_v18  ;;  %v15251_v5 = vld [vmem:[%s18546_s3 + $0x68] sm:$0xff]  ;;  %v15255_v51 = vrot.slane %v15085_v0, %v15055_v12  ;;  %v15261_v39 = vcombine.high %v4087_v15, %v4087_v15  ;;  %v4111_v0 = vrot.slane %v4097_v56, %v13027_v28 }
 0x1d1   : > { %19243 = vst [vmem:[#allocation20_spill] sm:$0xff] %v15213_v59  ;;  %19244 = vst [vmem:[#allocation35_spill] sm:$0xff] %v15216_v24  ;;  %v4096_v42 = vcombine.high %v4094_v57, %v4094_v57  ;;  %v15265_v53 = vsel %vm875_vm4, %v15213_v59, %v5940_v6  ;;  %v15269_v46 = vsel %vm875_vm4, %v15216_v24, %v6105_v26 }
 0x1d2   : > { %19248 = vst [vmem:[#allocation23_spill] sm:$0xff] %v15241_v29  ;;  %19249 = vst [vmem:[#allocation33_spill] sm:$0xff] %v15246_v47  ;;  %v3130_v8 = vpop.f32.mrb[68].mxu0  ;;  %v15272_v13 = vpop.f32.mrb[70].mxu1  ;;  %v4114_v37 = vcombine.high %v3984_v32, %v3984_v32  ;;  %v15289_v24 = vrot.slane %v4104_v10, %v15058_v30  ;;  %v4121_v15 = vrot.slane %v3984_v32, %v13027_v28 }
 0x1d3   : > { %19250 = vst [vmem:[#allocation31_spill] sm:$0xff] %v15251_v5  ;;  %19251 = vst [vmem:[#allocation41_spill] sm:$0xff] %v15255_v51  ;;  %v11237_v48 = vpop.f32.mrb[69].mxu0  ;;  %v11331_v19 = vpop.f32.mrb[71].mxu1  ;;  %v15283_v56 = vrot.slane %v4096_v42, %v15055_v12  ;;  %v4605_v6 = vsel %vm4604_vm11, %v15255_v51, %v15096_v40  ;;  %v4481_v2 = vrot.slane %v4094_v57, %v15055_v12 }
 0x1d4   : > { %19252 = vst [vmem:[#allocation36_spill] sm:$0xff] %v15261_v39  ;;  %19253 = vst [vmem:[#allocation45_spill] sm:$0xff] %v15265_v53  ;;  %v4112_v48 = vcombine.high %v4104_v10, %v4104_v10  ;;  %v4113_v19 = vcombine.high %v4111_v0, %v4111_v0  ;;  %v15297_v26 = vrot.slane %v4094_v57, %v15058_v30 }
 0x1d5   : > { %19254 = vst [vmem:[#allocation44_spill] sm:$0xff] %v15269_v46  ;;  %19255 = vst [vmem:[#allocation32_spill] sm:$0xff] %v15283_v56  ;;  %v15286_v46 = vrot.slane %v4096_v42, %v15058_v30  ;;  %v15302_v23 = vrot.slane %v4104_v10, %v15055_v12  ;;  %v15307_v5 = vrot.slane %v4111_v0, %v15055_v12 }
 0x1d6   : > { %19256 = vst [vmem:[#allocation30_spill] sm:$0xff] %v15297_v26  ;;  %v3135_v53 = vpop.f32.mrb[70].mxu0  ;;  %v3853_v47 = vpop.f32.mrb[72].mxu1  ;;  %v15310_v40 = vrot.slane %v4111_v0, %v15058_v30  ;;  %v15313_v57 = vrot.slane %v4114_v37, %v13027_v28  ;;  %v6433_v42 = vsel %vm4598_vm9, %v15283_v56, %v4481_v2  ;;  %v15321_v32 = vrot.slane %v4112_v48, %v15055_v12 }
 0x1d7   : > { %19257 = vst [vmem:[#allocation37_spill] sm:$0xff] %v15302_v23  ;;  %19258 = vst [vmem:[#allocation34_spill] sm:$0xff] %v15307_v5  ;;  %v11240_v51 = vpop.f32.mrb[71].mxu0  ;;  %v11334_v59 = vpop.f32.mrb[73].mxu1  ;;  %v6268_v10 = vsel %vm4598_vm9, %v15286_v46, %v15297_v26  ;;  %v15324_v39 = vrot.slane %v4112_v48, %v15058_v30  ;;  %v15327_v0 = vrot.slane %v4113_v19, %v15055_v12 }
 0x1d8   : > { %19259 = vst [vmem:[#allocation49_spill] sm:$0xff] %v15321_v32  ;;  %v15330_v37 = vrot.slane %v4113_v19, %v15058_v30  ;;  %v6578_v59 = vsel %vm4598_vm9, %v15289_v24, %v15286_v46  ;;  %v4129_v51 = vcombine.high %v4121_v15, %v4121_v15  ;;  %v6723_v26 = vsel %vm4598_vm9, %v15302_v23, %v15283_v56 }
 0x1d9   : > { %19260 = vst [vmem:[#allocation47_spill] sm:$0xff] %v15327_v0  ;;  %v3928_v38 = vadd.f32 %v15104_v20, %v15132_v45  ;;  %v3216_v48 = vadd.f32 %v15140_v44, %v14997_v61  ;;  %v4606_v11 = vsel %vm877_vm5, %v4481_v2, %v4605_v6  ;;  %v15347_v3 = vsel %vm873_vm2, %v15289_v24, %v6268_v10 }
 0x1da   : > { %v3140_v21 = vpop.f32.mrb[72].mxu0  ;;  %v15343_v19 = vpop.f32.mrb[74].mxu1  ;;  %19261 = vst [vmem:[#allocation52_spill] sm:$0xff] %v15347_v3  ;;  %v15351_v18 = vsel %vm873_vm2, %v15302_v23, %v6433_v42  ;;  %v4130_v29 = vcombine.high %v15313_v57, %v15313_v57  ;;  %v4608_v20 = vsel %vm4607_vm12, %v15283_v56, %v4606_v11  ;;  %v15359_v2 = vsel %vm873_vm2, %v15324_v39, %v6578_v59 }
 0x1db   : > { %19262 = vst [vmem:[#allocation50_spill] sm:$0xff] %v15351_v18  ;;  %v11243_v61 = vpop.f32.mrb[73].mxu0  ;;  %v11337_v45 = vpop.f32.mrb[75].mxu1  ;;  %19263 = vst [vmem:[#allocation38_spill] sm:$0xff] %v15359_v2  ;;  %v3960_v44 = vadd.f32 %v15050_v25, %v3928_v38  ;;  %v3929_v6 = vadd.f32 %v15120_v49, %v3216_v48  ;;  %11383 = vmatmul.mubr.msk.f32.vlgmr.msra.gmra.mrb[100].mxu0 %vm4633_vm13, %v4608_v20  ;;  %v3217_v42 = vadd.f32 %v15192_v41, %v15002_v1 }
 0x1dc   : > { %v15368_v10 = vsel %vm873_vm2, %v15321_v32, %v6723_v26  ;;  %v15371_v11 = vrot.slane %v4121_v15, %v15058_v30  ;;  %v15374_v61 = vrot.slane %v4129_v51, %v15058_v30  ;;  %v15378_v38 = vrot.slane %v15313_v57, %v15058_v30  ;;  %11385 = vmatprep.mubr.msk.f32.mxu0 %vm12857_vm0, %v18971_v52 }
 0x1dd   : > { %19264 = vst [vmem:[#allocation40_spill] sm:$0xff] %v15368_v10  ;;  %v3985_v49 = vmax.f32 %v3960_v44, 0.0  ;;  %v3961_v1 = vadd.f32 %v15050_v25, %v3929_v6  ;;  %v3930_v41 = vadd.f32 %v15142_v62, %v3217_v42  ;;  %v3218_v26 = vadd.f32 %v3130_v8, %v15006_v36 }
 0x1de   : > { %19265 = vst [vmem:[#allocation43_spill] sm:$0xff] %v15371_v11  ;;  %19266 = vst [vmem:[#allocation42_spill] sm:$0xff] %v15374_v61  ;;  %v3145_v59 = vpop.f32.mrb[74].mxu0  ;;  %v15385_v48 = vpop.f32.mrb[76].mxu1  ;;  %v19268_v20 = vpack.c.bf16 %v15166_v4, %v15161_v63  ;;  %v15391_v45 = vrot.slane %v4130_v29, %v15058_v30  ;;  %v3219_v10 = vadd.f32 %v3135_v53, %v15008_v35 }
 0x1df   : > { %19267 = vst [vmem:[#allocation58_spill] sm:$0xff] %v15378_v38  ;;  %v3220_v44 = vadd.f32 %v3140_v21, %v15010_v14  ;;  %v15396_v6 = vadd.f32 %v3145_v59, %v15012_v43  ;;  %v11246_v62 = vpop.f32.mrb[75].mxu0  ;;  %v11340_v42 = vpop.f32.mrb[77].mxu1  ;;  %v4131_v36 = vcombine.high %v3985_v49, %v3985_v49  ;;  %v4138_v8 = vrot.slane %v3985_v49, %v13027_v28 }
 0x1e0   : > { %12279 = vmatpush3.bf16.msra.mxu0 %v19268_v20  ;;  %19269 = vst [vmem:[#allocation53_spill] sm:$0xff] %v15391_v45  ;;  %v3986_v18 = vmax.f32 %v3961_v1, 0.0  ;;  %v3962_v63 = vadd.f32 %v15050_v25, %v3930_v41  ;;  %v15402_v4 = vrot.slane %v4121_v15, %v15055_v12  ;;  %v3931_v35 = vadd.f32 %v15194_v7, %v3218_v26 }
 0x1e1   : > { %12280 = vmatprep.subr.bf16.mxu0 %v19217_v22  ;;  %v3932_v14 = vadd.f32 %v15272_v13, %v3219_v10  ;;  %v3933_v53 = vadd.f32 %v3853_v47, %v3220_v44  ;;  %v6888_v43 = vsel %vm4598_vm9, %v15378_v38, %v15374_v61  ;;  %v4145_v21 = vrot.slane %v4131_v36, %v13027_v28 }
 0x1e2   : > { %19270 = vst [vmem:[#allocation59_spill] sm:$0xff] %v15402_v4  ;;  %v4146_v59 = vcombine.high %v4138_v8, %v4138_v8  ;;  %v4609_v49 = vsel %vm4598_vm9, %v15321_v32, %v15302_v23  ;;  %v15413_v1 = vpop.f32.mrb[76].mxu0  ;;  %v15415_v15 = vpop.f32.mrb[78].mxu1  ;;  %v19271_v7 = vpack.c.bf16 %v15181_v60, %v15176_v54  ;;  %v15421_v13 = vrot.slane %v4129_v51, %v15055_v12 }
 0x1e3   : > { %v15425_v47 = vrot.slane %v15313_v57, %v15055_v12  ;;  %v15428_v10 = vrot.slane %v4138_v8, %v15058_v30  ;;  %v4148_v41 = vcombine.high %v3986_v18, %v3986_v18  ;;  %v11249_v26 = vpop.f32.mrb[77].mxu0  ;;  %v11343_v20 = vpop.f32.mrb[79].mxu1  ;;  %v7198_v54 = vsel %vm4598_vm9, %v15391_v45, %v15378_v38 }
 0x1e4   : > { %12282 = vmatpush3.bf16.msra.mxu0 %v19271_v7  ;;  %19272 = vst [vmem:[#allocation57_spill] sm:$0xff] %v15421_v13  ;;  %v4147_v60 = vcombine.high %v4145_v21, %v4145_v21  ;;  %v4155_v51 = vrot.slane %v3986_v18, %v13027_v28  ;;  %v3987_v44 = vmax.f32 %v3962_v63, 0.0  ;;  %v15436_v62 = vrot.slane %v4130_v29, %v15055_v12 }
 0x1e5   : > { %19273 = vst [vmem:[#allocation46_spill] sm:$0xff] %v15425_v47  ;;  %19274 = vst [vmem:[#allocation48_spill] sm:$0xff] %v15428_v10  ;;  %12289 = vmatprep.subr.bf16.mxu0 %v19217_v22  ;;  %v15440_v57 = vsel %vm873_vm2, %v15391_v45, %v6888_v43  ;;  %v3963_v42 = vadd.f32 %v15050_v25, %v3931_v35  ;;  %v15445_v36 = vsel %vm873_vm2, %v15307_v5, %v4609_v49 }
 0x1e6   : > { %19275 = vst [vmem:[#allocation55_spill] sm:$0xff] %v15436_v62  ;;  %19276 = vst [vmem:[#allocation51_spill] sm:$0xff] %v15440_v57  ;;  %v15448_v7 = vrot.slane %v4146_v59, %v15058_v30  ;;  %v15451_v26 = vrot.slane %v4145_v21, %v15058_v30  ;;  %v15454_v18 = vrot.slane %v4138_v8, %v15055_v12  ;;  %v15457_v63 = vpop.f32.mrb[78].mxu0  ;;  %v15459_v43 = vpop.f32.mrb[80].mxu1 }
 0x1e7   : > { %v4162_v29 = vrot.slane %v4148_v41, %v13027_v28  ;;  %v15462_v35 = vrot.slane %v4146_v59, %v15055_v12  ;;  %v15465_v49 = vrot.slane %v4145_v21, %v15055_v12  ;;  %v15468_v20 = vrot.slane %v4147_v60, %v15058_v30  ;;  %v11252_v8 = vpop.f32.mrb[79].mxu0  ;;  %v11346_v2 = vpop.f32.mrb[81].mxu1 }
 0x1e8   : > { %19277 = vst [vmem:[#allocation65_spill] sm:$0xff] %v15448_v7  ;;  %19278 = vst [vmem:[#allocation60_spill] sm:$0xff] %v15451_v26  ;;  %v15472_v57 = vsel %vm873_vm2, %v15428_v10, %v7198_v54  ;;  %v15475_v41 = vrot.slane %v4147_v60, %v15055_v12  ;;  %v4163_v47 = vcombine.high %v4155_v51, %v4155_v51  ;;  %v3988_v21 = vmax.f32 %v3963_v42, 0.0 }
 0x1e9   : > { %19279 = vst [vmem:[#allocation69_spill] sm:$0xff] %v15454_v18  ;;  %19280 = vst [vmem:[#allocation66_spill] sm:$0xff] %v15462_v35  ;;  %v4165_v18 = vcombine.high %v3987_v44, %v3987_v44  ;;  %v4172_v59 = vrot.slane %v3987_v44, %v13027_v28  ;;  %v15479_v35 = vrot.slane %v4155_v51, %v15055_v12 }
 0x1ea   : > { %19281 = vst [vmem:[#allocation56_spill] sm:$0xff] %v15465_v49  ;;  %19282 = vst [vmem:[#allocation54_spill] sm:$0xff] %v15468_v20  ;;  %v3964_v49 = vadd.f32 %v15050_v25, %v3932_v14  ;;  %v3965_v62 = vadd.f32 %v15050_v25, %v3933_v53  ;;  %v4164_v13 = vcombine.high %v4162_v29, %v4162_v29  ;;  %v15487_v8 = vpop.f32.mrb[80].mxu0 }
 0x1eb   : > { %19283 = vst [vmem:[#allocation63_spill] sm:$0xff] %v15472_v57  ;;  %19284 = vst [vmem:[#allocation61_spill] sm:$0xff] %v15475_v41  ;;  %v15484_v54 = vrot.slane %v4162_v29, %v15055_v12  ;;  %v4179_v2 = vrot.slane %v4165_v18, %v13027_v28  ;;  %v4180_v60 = vcombine.high %v4172_v59, %v4172_v59  ;;  %v15489_v57 = vpop.f32.mrb[82].mxu1  ;;  %v11255_v41 = vpop.f32.mrb[81].mxu0 }
 0x1ec   : > { %19285 = vst [vmem:[#allocation73_spill] sm:$0xff] %v15479_v35  ;;  %v15492_v44 = vrot.slane %v4155_v51, %v15058_v30  ;;  %v15495_v42 = vrot.slane %v4162_v29, %v15058_v30  ;;  %v4182_v14 = vcombine.high %v3988_v21, %v3988_v21  ;;  %v4189_v53 = vrot.slane %v3988_v21, %v13027_v28  ;;  %v11349_v3 = vpop.f32.mrb[83].mxu1 }
 0x1ed   : > { %19286 = vst [vmem:[#allocation72_spill] sm:$0xff] %v15484_v54  ;;  %v15499_v20 = vrot.slane %v4163_v47, %v15055_v12  ;;  %v15502_v18 = vrot.slane %v4163_v47, %v15058_v30  ;;  %v3989_v4 = vmax.f32 %v3964_v49, 0.0  ;;  %v3990_v23 = vmax.f32 %v3965_v62, 0.0 }
 0x1ee   : > { %19287 = vst [vmem:[#allocation76_spill] sm:$0xff] %v15492_v44  ;;  %v4181_v56 = vcombine.high %v4179_v2, %v4179_v2  ;;  %v15505_v51 = vrot.slane %v4180_v60, %v15058_v30  ;;  %v15508_v29 = vrot.slane %v4179_v2, %v15058_v30  ;;  %v15511_v5 = vrot.slane %v4182_v14, %v13027_v28  ;;  %v15522_v49 = vpop.f32.mrb[82].mxu0  ;;  %v15524_v21 = vpop.f32.mrb[84].mxu1 }
 0x1ef   : > { %19288 = vst [vmem:[#allocation74_spill] sm:$0xff] %v15499_v20  ;;  %19289 = vst [vmem:[#allocation64_spill] sm:$0xff] %v15502_v18  ;;  %v15514_v3 = vrot.slane %v4164_v13, %v15058_v30  ;;  %v15517_v41 = vrot.slane %v4180_v60, %v15055_v12  ;;  %v15520_v47 = vrot.slane %v4179_v2, %v15055_v12  ;;  %v11258_v44 = vpop.f32.mrb[83].mxu0  ;;  %v11352_v2 = vpop.f32.mrb[85].mxu1 }
 0x1f0   : > { %19290 = vst [vmem:[#allocation62_spill] sm:$0xff] %v15505_v51  ;;  %19291 = vst [vmem:[#allocation67_spill] sm:$0xff] %v15508_v29  ;;  %v4197_v62 = vcombine.high %v4189_v53, %v4189_v53  ;;  %v15527_v32 = vrot.slane %v4172_v59, %v15055_v12  ;;  %v15530_v14 = vrot.slane %v4172_v59, %v15058_v30 }
 0x1f1   : > { %19292 = vst [vmem:[#allocation68_spill] sm:$0xff] %v15511_v5  ;;  %19293 = vst [vmem:[#allocation71_spill] sm:$0xff] %v15517_v41  ;;  %v4198_v26 = vcombine.high %v15511_v5, %v15511_v5  ;;  %v15535_v60 = vrot.slane %v4189_v53, %v15058_v30  ;;  %v4199_v7 = vcombine.high %v3989_v4, %v3989_v4 }
 0x1f2   : > { %19294 = vst [vmem:[#allocation70_spill] sm:$0xff] %v15520_v47  ;;  %19295 = vst [vmem:[#allocation81_spill] sm:$0xff] %v15527_v32  ;;  %v4206_v10 = vrot.slane %v3989_v4, %v13027_v28  ;;  %v4216_v45 = vcombine.high %v3990_v23, %v3990_v23  ;;  %v4223_v38 = vrot.slane %v3990_v23, %v13027_v28 }
 0x1f3   : > { %19296 = vst [vmem:[#allocation77_spill] sm:$0xff] %v15530_v14  ;;  %19297 = vst [vmem:[#allocation83_spill] sm:$0xff] %v15535_v60  ;;  %v15542_v61 = vsel %vm4598_vm9, %v15508_v29, %v15505_v51  ;;  %v15545_v59 = vrot.slane %v4181_v56, %v15058_v30  ;;  %v15548_v5 = vrot.slane %v4181_v56, %v15055_v12  ;;  %v15562_v60 = vpop.f32.mrb[84].mxu0 }
 0x1f4   : > { %v15551_v44 = vrot.slane %v4189_v53, %v15055_v12  ;;  %v15556_v4 = vsel %vm4598_vm9, %v15520_v47, %v15517_v41  ;;  %v15559_v23 = vrot.slane %v4197_v62, %v15058_v30  ;;  %v4213_v2 = vrot.slane %v4199_v7, %v13027_v28 }
 0x1f5   : > { %19298 = vst [vmem:[#allocation82_spill] sm:$0xff] %v15545_v59  ;;  %19299 = vst [vmem:[#allocation78_spill] sm:$0xff] %v15548_v5  ;;  %v4214_v29 = vcombine.high %v4206_v10, %v4206_v10  ;;  %v15564_v59 = vpop.f32.mrb[86].mxu1  ;;  %v15567_v56 = vrot.slane %v4198_v26, %v15058_v30  ;;  %v15570_v53 = vrot.slane %v4197_v62, %v15055_v12  ;;  %v11261_v5 = vpop.f32.mrb[85].mxu0 }
 0x1f6   : > { %19300 = vst [vmem:[#allocation75_spill] sm:$0xff] %v15551_v44  ;;  %19301 = vst [vmem:[#allocation80_spill] sm:$0xff] %v15556_v4  ;;  %v4230_v44 = vrot.slane %v4216_v45, %v13027_v28  ;;  %v4231_v47 = vcombine.high %v4223_v38, %v4223_v38  ;;  %v11355_v4 = vpop.f32.mrb[87].mxu1  ;;  %v15577_v7 = vrot.slane %v4206_v10, %v15058_v30 }
 0x1f7   : > { %19302 = vst [vmem:[#allocation79_spill] sm:$0xff] %v15559_v23  ;;  %19303 = vst [vmem:[#allocation88_spill] sm:$0xff] %v15567_v56  ;;  %v15574_v23 = vrot.slane %v4198_v26, %v15055_v12  ;;  %v15580_v51 = vrot.slane %v4164_v13, %v15055_v12  ;;  %v4611_v56 = vsel %vm4601_vm10, %v15327_v0, %v15445_v36 }
 0x1f8   : > { %19304 = vst [vmem:[#allocation86_spill] sm:$0xff] %v15570_v53  ;;  %19306 = vst [vmem:[#allocation84_spill] sm:$0xff] %v15577_v7  ;;  %v4215_v62 = vcombine.high %v4213_v2, %v4213_v2  ;;  %v15586_v53 = vrot.slane %v4206_v10, %v15055_v12  ;;  %v15589_v5 = vrot.slane %v4223_v38, %v15055_v12  ;;  %v15606_v10 = vpop.f32.mrb[86].mxu0 }
 0x1f9   : > { %19305 = vst [vmem:[#allocation90_spill] sm:$0xff] %v15574_v23  ;;  %19307 = vst [vmem:[#allocation93_spill] sm:$0xff] %v15580_v51  ;;  %v15592_v45 = vrot.slane %v4223_v38, %v15058_v30  ;;  %v15595_v26 = vrot.slane %v4213_v2, %v15055_v12  ;;  %v15598_v13 = vrot.slane %v4213_v2, %v15058_v30  ;;  %v15608_v23 = vpop.f32.mrb[88].mxu1 }
 0x1fa   : > { %19308 = vst [vmem:[#allocation87_spill] sm:$0xff] %v15586_v53  ;;  %19309 = vst [vmem:[#allocation85_spill] sm:$0xff] %v15589_v5  ;;  %v15601_v4 = vrot.slane %v4214_v29, %v15058_v30  ;;  %v15604_v36 = vrot.slane %v4214_v29, %v15055_v12  ;;  %v4232_v0 = vcombine.high %v4230_v44, %v4230_v44  ;;  %v11358_v22 = vpop.f32.mrb[89].mxu1 }
 0x1fb   : > { %19310 = vst [vmem:[#allocation92_spill] sm:$0xff] %v15592_v45  ;;  %19311 = vst [vmem:[#allocation89_spill] sm:$0xff] %v15595_v26  ;;  %v15611_v38 = vrot.slane %v4231_v47, %v15055_v12  ;;  %v15614_v50 = vrot.slane %v4230_v44, %v15055_v12  ;;  %v4612_v2 = vsel %vm875_vm4, %v15479_v35, %v4611_v56 }
 0x1fc   : > { %19312 = vst [vmem:[#allocation96_spill] sm:$0xff] %v15598_v13  ;;  %19313 = vst [vmem:[#allocation91_spill] sm:$0xff] %v15601_v4  ;;  %v11264_v13 = vpop.f32.mrb[87].mxu0  ;;  %v4613_v29 = vsel %vm4604_vm11, %v15499_v20, %v4612_v2  ;;  %v3934_v14 = vadd.f32 %v15343_v19, %v15396_v6  ;;  %v3223_v58 = vadd.f32 %v15457_v63, %v15024_v9  ;;  %v15643_v63 = vpop.f32.mrb[90].mxu1 }
 0x1fd   : > { %19314 = vst [vmem:[#allocation97_spill] sm:$0xff] %v15604_v36  ;;  %19315 = vst [vmem:[#allocation98_spill] sm:$0xff] %v15608_v23  ;;  %v3222_v23 = vadd.f32 %v15413_v1, %v15022_v16  ;;  %v15627_v34 = vrot.slane %v4215_v62, %v15055_v12  ;;  %v15630_v45 = vrot.slane %v4215_v62, %v15058_v30  ;;  %v15641_v1 = vpop.f32.mrb[88].mxu0 }
 0x1fe   : > { %19316 = vst [vmem:[#allocation94_spill] sm:$0xff] %v15611_v38  ;;  %19317 = vst [vmem:[#allocation95_spill] sm:$0xff] %v15614_v50  ;;  %v4614_v22 = vsel %vm877_vm5, %v15484_v54, %v4613_v29  ;;  %v3224_v56 = vadd.f32 %v15487_v8, %v15026_v33  ;;  %v3966_v16 = vadd.f32 %v15050_v25, %v3934_v14 }
 0x1ff   : > { %19318 = vst [vmem:[#allocation101_spill] sm:$0xff] %v15627_v34  ;;  %v4615_v19 = vsel %vm4607_vm12, %v15580_v51, %v4614_v22  ;;  %v3935_v6 = vadd.f32 %v15385_v48, %v3222_v23  ;;  %v3936_v9 = vadd.f32 %v15415_v15, %v3223_v58  ;;  %v15648_v62 = vsel %vm4598_vm9, %v15601_v4, %v15577_v7  ;;  %v11267_v58 = vpop.f32.mrb[89].mxu0  ;;  %v11361_v15 = vpop.f32.mrb[91].mxu1 }
 0x200   : > { %19319 = vst [vmem:[#allocation99_spill] sm:$0xff] %v15648_v62  ;;  %v15651_v33 = vrot.slane %v4231_v47, %v15058_v30  ;;  %11386 = vmatmul.mubr.msk.f32.gmra.mrb[102].mxu0 %vm4633_vm13, %v4615_v19  ;;  %v3937_v8 = vadd.f32 %v15459_v43, %v3224_v56  ;;  %v3225_v48 = vadd.f32 %v15522_v49, %v15028_v55  ;;  %v3991_v14 = vmax.f32 %v3966_v16, 0.0  ;;  %v15674_v16 = vpop.f32.mrb[90].mxu0 }
 0x201   : > { %v3967_v23 = vadd.f32 %v15050_v25, %v3935_v6  ;;  %v3968_v13 = vadd.f32 %v15050_v25, %v3936_v9  ;;  %11388 = vmatprep.mubr.msk.f32.mxu0 %vm12857_vm0, %v18971_v52  ;;  %v4616_v47 = vsel %vm4598_vm9, %v15517_v41, %v15527_v32  ;;  %v15665_v2 = vrot.slane %v4232_v0, %v15058_v30  ;;  %v15676_v6 = vpop.f32.mrb[92].mxu1 }
 0x202   : > { %v3969_v43 = vadd.f32 %v15050_v25, %v3937_v8  ;;  %v4617_v55 = vsel %vm873_vm2, %v15595_v26, %v4616_v47  ;;  %v3938_v49 = vadd.f32 %v15489_v57, %v3225_v48  ;;  %v4233_v29 = vcombine.high %v3991_v14, %v3991_v14  ;;  %v11270_v48 = vpop.f32.mrb[91].mxu0  ;;  %v11364_v15 = vpop.f32.mrb[93].mxu1 }
 0x203   : > { %v15672_v22 = vrot.slane %v3991_v14, %v13027_v28  ;;  %v3992_v56 = vmax.f32 %v3967_v23, 0.0  ;;  %v3993_v19 = vmax.f32 %v3968_v13, 0.0  ;;  %v15679_v9 = vrot.slane %v4230_v44, %v15058_v30  ;;  %v15710_v15 = vpop.f32.mrb[92].mxu0 }
 0x204   : > { %v3994_v58 = vmax.f32 %v3969_v43, 0.0  ;;  %v5043_v8 = vsel %vm877_vm5, %v15286_v46, %v15123_v31  ;;  %v15686_v57 = vadd.f32 %v15562_v60, %v15030_v17  ;;  %v4247_v14 = vrot.slane %v4233_v29, %v13027_v28  ;;  %v11273_v41 = vpop.f32.mrb[93].mxu0 }
 0x205   : > { %19320 = vst [vmem:[#allocation103_spill] sm:$0xff] %v15672_v22  ;;  %19321 = vst [vmem:[#allocation100_spill] sm:$0xff] %v15679_v9  ;;  %v4248_v23 = vcombine.high %v15672_v22, %v15672_v22  ;;  %v4257_v13 = vrot.slane %v3992_v56, %v13027_v28  ;;  %v4618_v44 = vsel %vm4601_vm10, %v15627_v34, %v4617_v55 }
 0x206   : > { %v15697_v31 = vsel %vm4598_vm9, %v15604_v36, %v15586_v53  ;;  %v4250_v47 = vcombine.high %v3992_v56, %v3992_v56  ;;  %v4267_v17 = vcombine.high %v3993_v19, %v3993_v19  ;;  %v4274_v60 = vrot.slane %v3993_v19, %v13027_v28  ;;  %v15712_v36 = vpop.f32.mrb[94].mxu1 }
 0x207   : > { %19322 = vst [vmem:[#allocation106_spill] sm:$0xff] %v15697_v31  ;;  %v4249_v43 = vcombine.high %v4247_v14, %v4247_v14  ;;  %v6282_v29 = vsel %vm4598_vm9, %v15665_v2, %v15679_v9  ;;  %v15704_v48 = vrot.slane %v4232_v0, %v15055_v12  ;;  %v15708_v55 = vsel %vm4607_vm12, %v15289_v24, %v5043_v8  ;;  %v11367_v35 = vpop.f32.mrb[95].mxu1 }
 0x208   : > { %v4284_v56 = vcombine.high %v3994_v58, %v3994_v58  ;;  %v4291_v4 = vrot.slane %v3994_v58, %v13027_v28  ;;  %v4619_v19 = vsel %vm875_vm4, %v15589_v5, %v4618_v44  ;;  %v3970_v26 = vadd.f32 %v15050_v25, %v3938_v49 }
 0x209   : > { %19323 = vst [vmem:[#allocation104_spill] sm:$0xff] %v15704_v48  ;;  %v15719_v0 = vrot.slane %v4248_v23, %v15058_v30  ;;  %v15722_v8 = vrot.slane %v4247_v14, %v15058_v30  ;;  %v4265_v31 = vcombine.high %v4257_v13, %v4257_v13  ;;  %v4281_v53 = vrot.slane %v4267_v17, %v13027_v28  ;;  %v15741_v17 = vpop.f32.mrb[94].mxu0 }
 0x20a   : > { %v15726_v62 = vrot.slane %v4248_v23, %v15055_v12  ;;  %v15729_v58 = vrot.slane %v4247_v14, %v15055_v12  ;;  %v15732_v44 = vrot.slane %v4250_v47, %v13027_v28  ;;  %v4282_v41 = vcombine.high %v4274_v60, %v4274_v60  ;;  %v15743_v23 = vpop.f32.mrb[96].mxu1  ;;  %v11276_v5 = vpop.f32.mrb[95].mxu0 }
 0x20b   : > { %19324 = vst [vmem:[#allocation102_spill] sm:$0xff] %v15719_v0  ;;  %19325 = vst [vmem:[#allocation108_spill] sm:$0xff] %v15722_v8  ;;  %v15735_v35 = vrot.slane %v4249_v43, %v15058_v30  ;;  %v15738_v49 = vrot.slane %v4257_v13, %v15058_v30  ;;  %v4283_v32 = vcombine.high %v4281_v53, %v4281_v53  ;;  %v11370_v54 = vpop.f32.mrb[97].mxu1 }
 0x20c   : > { %19326 = vst [vmem:[#allocation105_spill] sm:$0xff] %v15726_v62  ;;  %19327 = vst [vmem:[#allocation111_spill] sm:$0xff] %v15729_v58  ;;  %v4833_v51 = vrot.slane %v4274_v60, %v15058_v30  ;;  %v15746_v14 = vrot.slane %v4282_v41, %v15055_v12  ;;  %v15749_v47 = vrot.slane %v4282_v41, %v15058_v30 }
 0x20d   : > { %19328 = vst [vmem:[#allocation109_spill] sm:$0xff] %v15735_v35  ;;  %19329 = vst [vmem:[#allocation113_spill] sm:$0xff] %v15738_v49  ;;  %v4298_v58 = vrot.slane %v4284_v56, %v13027_v28  ;;  %v4299_v62 = vcombine.high %v4291_v4, %v4291_v4  ;;  %v15753_v34 = vrot.slane %v4249_v43, %v15055_v12 }
 0x20e   : > { %19330 = vst [vmem:[#allocation112_spill] sm:$0xff] %v15746_v14  ;;  %19331 = vst [vmem:[#allocation110_spill] sm:$0xff] %v15749_v47  ;;  %v15756_v20 = vrot.slane %v4265_v31, %v15058_v30  ;;  %v15759_v49 = vrot.slane %v4257_v13, %v15055_v12  ;;  %v15762_v35 = vrot.slane %v4274_v60, %v15055_v12 }
 0x20f   : > { %19332 = vst [vmem:[#allocation107_spill] sm:$0xff] %v15753_v34  ;;  %v15765_v41 = vrot.slane %v4265_v31, %v15055_v12  ;;  %v15768_v56 = vrot.slane %v4281_v53, %v15055_v12  ;;  %v15771_v54 = vrot.slane %v4283_v32, %v15055_v12  ;;  %v15774_v5 = vrot.slane %v4281_v53, %v15058_v30 }
 0x210   : > { %19333 = vst [vmem:[#allocation119_spill] sm:$0xff] %v15756_v20  ;;  %19334 = vst [vmem:[#allocation115_spill] sm:$0xff] %v15759_v49  ;;  %v4623_v13 = vsel %vm4598_vm9, %v15746_v14, %v15762_v35  ;;  %v15780_v43 = vrot.slane %v4283_v32, %v15058_v30  ;;  %v15783_v60 = vsel %vm873_vm2, %v4833_v51, %v6282_v29  ;;  %v15790_v49 = vpop.f32.mrb[98].mxu1  ;;  %v3995_v20 = vmax.f32 %v3970_v26, 0.0 }
 0x211   : > { %19335 = vst [vmem:[#allocation125_spill] sm:$0xff] %v15762_v35  ;;  %19336 = vst [vmem:[#allocation122_spill] sm:$0xff] %v15765_v41  ;;  %v15786_v31 = vrot.slane %v4291_v4, %v15055_v12  ;;  %v15788_v41 = vpop.f32.mrb[96].mxu0  ;;  %v15794_v53 = vsel %vm4598_vm9, %v15749_v47, %v4833_v51  ;;  %v4300_v34 = vcombine.high %v4298_v58, %v4298_v58 }
 0x212   : > { %19337 = vst [vmem:[#allocation117_spill] sm:$0xff] %v15768_v56  ;;  %19338 = vst [vmem:[#allocation114_spill] sm:$0xff] %v15771_v54  ;;  %v15797_v35 = vrot.slane %v4299_v62, %v15055_v12  ;;  %v4620_v32 = vsel %vm4604_vm11, %v15611_v38, %v4619_v19  ;;  %v11279_v29 = vpop.f32.mrb[97].mxu0  ;;  %v3939_v8 = vadd.f32 %v15524_v21, %v15686_v57 }
 0x213   : > { %19339 = vst [vmem:[#allocation127_spill] sm:$0xff] %v15783_v60  ;;  %19340 = vst [vmem:[#allocation126_spill] sm:$0xff] %v15786_v31  ;;  %v11373_v60 = vpop.f32.mrb[99].mxu1  ;;  %v4621_v14 = vsel %vm877_vm5, %v15614_v50, %v4620_v32  ;;  %v5045_v51 = vsel %vm4598_vm9, %v15310_v40, %v15324_v39  ;;  %v3227_v19 = vadd.f32 %v15606_v10, %v15032_v27  ;;  %v15823_v32 = vpop.f32.mrb[98].mxu0  ;;  %v19358_v50 = vmov 0.0|0.0  }
 0x214   : > { %19341 = vst [vmem:[#allocation130_spill] sm:$0xff] %v15794_v53  ;;  %19342 = vst [vmem:[#allocation128_spill] sm:$0xff] %v15797_v35  ;;  %v4622_v53 = vsel %vm4607_vm12, %v15704_v48, %v4621_v14  ;;  %v5046_v0 = vsel %vm873_vm2, %v15330_v37, %v5045_v51  ;;  %v15816_v60 = vrot.slane %v15672_v22, %v15058_v30 }
 0x215   : > { %11389 = vmatmul.mubr.msk.f32.gmra.mrb[104].mxu0 %vm4633_vm13, %v4622_v53  ;;  %v4301_v21 = vcombine.high %v3995_v20, %v3995_v20  ;;  %v4308_v26 = vrot.slane %v3995_v20, %v13027_v28  ;;  %v3971_v57 = vadd.f32 %v15050_v25, %v3939_v8  ;;  %v5047_v14 = vsel %vm4601_vm10, %v15371_v11, %v5046_v0  ;;  %v11282_v8 = vpop.f32.mrb[99].mxu0 }
 0x216   : > { %v15827_v29 = vsel %vm873_vm2, %v15768_v56, %v4623_v13  ;;  %v15830_v27 = vrot.slane %v4291_v4, %v15058_v30  ;;  %11428 = vmatprep.mubr.msk.f32.mxu0 %vm12857_vm0, %v18971_v52  ;;  %v5048_v20 = vsel %vm875_vm4, %v15502_v18, %v5047_v14  ;;  %v3940_v10 = vadd.f32 %v15564_v59, %v3227_v19 }
 0x217   : > { %v15838_v0 = vrot.slane %v4299_v62, %v15058_v30  ;;  %v15841_v53 = vrot.slane %v4298_v58, %v15058_v30  ;;  %v4315_v13 = vrot.slane %v4301_v21, %v13027_v28  ;;  %v5053_v4 = vsel %vm873_vm2, %v15630_v45, %v15542_v61 }
 0x218   : > { %19343 = vst [vmem:[#allocation118_spill] sm:$0xff] %v15830_v27  ;;  %v4316_v51 = vcombine.high %v4308_v26, %v4308_v26  ;;  %v3996_v11 = vmax.f32 %v3971_v57, 0.0  ;;  %v5049_v14 = vsel %vm4604_vm11, %v15495_v42, %v5048_v20  ;;  %v3972_v59 = vadd.f32 %v15050_v25, %v3940_v10  ;;  %v19350_v57 = vld [vmem:[#allocation92_spill] sm:$0xff] }
 0x219   : > { %19344 = vst [vmem:[#allocation116_spill] sm:$0xff] %v15838_v0  ;;  %19345 = vst [vmem:[#allocation120_spill] sm:$0xff] %v15841_v53  ;;  %v15851_v19 = vrot.slane %v4298_v58, %v15055_v12  ;;  %v15854_v62 = vrot.slane %v4300_v34, %v15058_v30  ;;  %v15857_v8 = vrot.slane %v4300_v34, %v15055_v12  ;;  %11429 = vmatmul.mubr.msk.f32.vlgmr.msra.gmra.mrb[106].mxu0 %vm4633_vm13, %v15708_v55 }
 0x21a   : > { %v15864_v61 = vsel %vm4598_vm9, %v15816_v60, %v15665_v2  ;;  %v4318_v21 = vcombine.high %v3996_v11, %v3996_v11  ;;  %v4325_v25 = vrot.slane %v3996_v11, %v13027_v28  ;;  %11431 = vmatprep.mubr.msk.f32.mxu0 %vm12857_vm0, %v18971_v52  ;;  %v5050_v58 = vsel %vm877_vm5, %v15514_v3, %v5049_v14 }
 0x21b   : > { %19346 = vst [vmem:[#allocation121_spill] sm:$0xff] %v15851_v19  ;;  %19347 = vst [vmem:[#allocation131_spill] sm:$0xff] %v15854_v62  ;;  %v5054_v34 = vsel %vm4601_vm10, %v19350_v57, %v5053_v4  ;;  %v4317_v20 = vcombine.high %v4315_v13, %v4315_v13  ;;  %v15874_v55 = vrot.slane %v4308_v26, %v15058_v30  ;;  %v19354_v19 = vld [vmem:[#allocation21_spill] sm:$0xff] }
 0x21c   : > { %19348 = vst [vmem:[#allocation137_spill] sm:$0xff] %v15857_v8  ;;  %19349 = vst [vmem:[#allocation135_spill] sm:$0xff] %v15864_v61  ;;  %v15877_v10 = vrot.slane %v4308_v26, %v15055_v12  ;;  %v3997_v61 = vmax.f32 %v3972_v59, 0.0  ;;  %v19353_v8 = vld [vmem:[#allocation22_spill] sm:$0xff]  ;;  %v15883_v56 = vrot.slane %v4316_v51, %v15058_v30  ;;  %v15886_v14 = vrot.slane %v4318_v21, %v13027_v28  ;;  %v19357_v4 = vld [vmem:[#allocation77_spill] sm:$0xff] }
 0x21d   : > { %19351 = vst [vmem:[#allocation124_spill] sm:$0xff] %v15874_v55  ;;  %v19355_v11 = vpack.c.bf16 %v19353_v8, %v19354_v19  ;;  %v4333_v48 = vcombine.high %v4325_v25, %v4325_v25  ;;  %v5051_v22 = vsel %vm4607_vm12, %v19357_v4, %v5050_v58  ;;  %v5055_v19 = vsel %vm875_vm4, %v15651_v33, %v5054_v34  ;;  %v19359_v8 = vld [vmem:[#allocation16_spill] sm:$0xff] }
 0x21e   : > { %19352 = vst [vmem:[#allocation123_spill] sm:$0xff] %v15877_v10  ;;  %19356 = vst [vmem:[#allocation132_spill] sm:$0xff] %v15883_v56  ;;  %11432 = vmatmul.mubr.msk.f32.gmra.mrb[108].mxu0 %vm4633_vm13, %v5051_v22  ;;  %v4335_v26 = vcombine.high %v3997_v61, %v3997_v61  ;;  %v4342_v59 = vrot.slane %v3997_v61, %v13027_v28  ;;  %v15898_v21 = vrot.slane %v4315_v13, %v15058_v30 }
 0x21f   : > { %12291 = vmatpush3.bf16.msra.mxu0 %v19355_v11  ;;  %v3228_v11 = vadd.f32 %v15641_v1, %v19359_v8  ;;  %v15901_v10 = vrot.slane %v4316_v51, %v15055_v12  ;;  %v15904_v58 = vrot.slane %v4315_v13, %v15055_v12  ;;  %v4334_v22 = vcombine.high %v15886_v14, %v15886_v14  ;;  %v19367_v13 = vld [vmem:[#allocation23_spill] sm:$0xff]  ;;  %v19368_v8 = vld [vmem:[#allocation24_spill] sm:$0xff] }
 0x220   : > { %12292 = vmatprep.subr.bf16.mxu0 %v19358_v50  ;;  %19360 = vst [vmem:[#allocation129_spill] sm:$0xff] %v15898_v21  ;;  %11434 = vmatprep.mubr.msk.f32.mxu0 %vm12857_vm0, %v18971_v52  ;;  %v15911_v61 = vrot.slane %v4317_v20, %v15058_v30  ;;  %v15914_v1 = vrot.slane %v4317_v20, %v15055_v12 }
 0x221   : > { %19361 = vst [vmem:[#allocation134_spill] sm:$0xff] %v15901_v10  ;;  %19362 = vst [vmem:[#allocation133_spill] sm:$0xff] %v15904_v58  ;;  %v15917_v34 = vrot.slane %v4325_v25, %v15058_v30  ;;  %v15920_v51 = vrot.slane %v4325_v25, %v15055_v12  ;;  %v19369_v58 = vpack.c.bf16 %v19367_v13, %v19368_v8 }
 0x222   : > { %19363 = vst [vmem:[#allocation139_spill] sm:$0xff] %v15911_v61  ;;  %19364 = vst [vmem:[#allocation138_spill] sm:$0xff] %v15914_v1  ;;  %v4577_v10 = vrot.slane %v15886_v14, %v15055_v12  ;;  %v15928_v38 = vrot.slane %v4333_v48, %v15058_v30  ;;  %v5056_v20 = vsel %vm4604_vm11, %v15679_v9, %v5055_v19  ;;  %v19371_v1 = vld [vmem:[#allocation98_spill] sm:$0xff] }
 0x223   : > { %19365 = vst [vmem:[#allocation136_spill] sm:$0xff] %v15917_v34  ;;  %19366 = vst [vmem:[#allocation140_spill] sm:$0xff] %v15920_v51  ;;  %12294 = vmatpush3.bf16.msra.mxu0 %v19369_v58  ;;  %v3941_v61 = vadd.f32 %v19371_v1, %v3228_v11  ;;  %v15935_v25 = vrot.slane %v4333_v48, %v15055_v12  ;;  %v4349_v51 = vrot.slane %v4335_v26, %v13027_v28  ;;  %v15952_v48 = vld [vmem:[%s18545_s2] ss:$0 sm:$0xff]  ;;  %v19377_v34 = vld [vmem:[#allocation9_spill] sm:$0xff] }
 0x224   : > { %19370 = vst [vmem:[#allocation5_spill] sm:$0xff] %v15928_v38  ;;  %12301 = vmatprep.subr.bf16.mxu0 %v19358_v50  ;;  %v4350_v13 = vcombine.high %v4342_v59, %v4342_v59  ;;  %v15939_v58 = vrot.slane %v4342_v59, %v15055_v12  ;;  %v15942_v8 = vrot.slane %v4334_v22, %v15055_v12 }
 0x225   : > { %19372 = vst [vmem:[#allocation92_spill] sm:$0xff] %v15935_v25  ;;  %v15945_v38 = vrot.slane %v4342_v59, %v15058_v30  ;;  %v5057_v19 = vsel %vm877_vm5, %v15665_v2, %v5056_v20  ;;  %v3973_v26 = vadd.f32 %v15952_v48, %v3941_v61  ;;  %v15956_v11 = vrot.slane %v4334_v22, %v15058_v30  ;;  %v19376_v25 = vld [vmem:[#allocation13_spill] sm:$0xff]  ;;  %v19378_v61 = vld [vmem:[#allocation8_spill] sm:$0xff] }
 0x226   : > { %19373 = vst [vmem:[#allocation22_spill] sm:$0xff] %v15939_v58  ;;  %19374 = vst [vmem:[#allocation21_spill] sm:$0xff] %v15942_v8  ;;  %v5058_v1 = vsel %vm4607_vm12, %v15816_v60, %v5057_v19  ;;  %v3229_v59 = vadd.f32 %v15674_v16, %v19376_v25  ;;  %v3230_v21 = vadd.f32 %v15710_v15, %v19377_v34 }
 0x227   : > { %19375 = vst [vmem:[#allocation16_spill] sm:$0xff] %v15945_v38  ;;  %11435 = vmatmul.mubr.msk.f32.gmra.mrb[110].mxu0 %vm4633_vm13, %v5058_v1  ;;  %v3998_v20 = vmax.f32 %v3973_v26, 0.0  ;;  %v4625_v56 = vsel %vm4601_vm10, %v15771_v54, %v15827_v29  ;;  %v5059_v22 = vsel %vm4598_vm9, %v15774_v5, %v15749_v47  ;;  %v3231_v60 = vadd.f32 %v15741_v17, %v19378_v61 }
 0x228   : > { %v3942_v19 = vadd.f32 %v15643_v63, %v3229_v59  ;;  %v3943_v16 = vadd.f32 %v15676_v6, %v3230_v21  ;;  %v4626_v15 = vsel %vm875_vm4, %v15786_v31, %v4625_v56  ;;  %11437 = vmatprep.mubr.msk.f32.mxu0 %vm12857_vm0, %v18971_v52  ;;  %v5060_v29 = vsel %vm873_vm2, %v15780_v43, %v5059_v22 }
 0x229   : > { %v4351_v34 = vcombine.high %v4349_v51, %v4349_v51  ;;  %v4352_v25 = vcombine.high %v3998_v20, %v3998_v20  ;;  %v4627_v26 = vsel %vm4604_vm11, %v15797_v35, %v4626_v15  ;;  %v5061_v17 = vsel %vm4601_vm10, %v15830_v27, %v5060_v29 }
 0x22a   : > { %v3974_v63 = vadd.f32 %v15952_v48, %v3942_v19  ;;  %v3975_v6 = vadd.f32 %v15952_v48, %v3943_v16  ;;  %v4628_v56 = vsel %vm877_vm5, %v4577_v10, %v4627_v26  ;;  %v5062_v21 = vsel %vm875_vm4, %v15838_v0, %v5061_v17  ;;  %v19382_v17 = vld [vmem:[#allocation17_spill] sm:$0xff] }
 0x22b   : > { %v15991_v1 = vrot.slane %v4350_v13, %v15055_v12  ;;  %v15994_v59 = vrot.slane %v4352_v25, %v13027_v28  ;;  %v4629_v22 = vsel %vm4607_vm12, %v15942_v8, %v4628_v56  ;;  %v5063_v61 = vsel %vm4604_vm11, %v15841_v53, %v5062_v21  ;;  %v19383_v56 = vld [vmem:[#allocation27_spill] sm:$0xff] }
 0x22c   : > { %v3999_v19 = vmax.f32 %v3974_v63, 0.0  ;;  %v4000_v15 = vmax.f32 %v3975_v6, 0.0  ;;  %11392 = vmatmul.mubr.msk.f32.vlgmr.msra.gmra.mrb[100].mxu1 %vm4633_vm13, %v4629_v22  ;;  %v5064_v16 = vsel %vm877_vm5, %v15956_v11, %v5063_v61  ;;  %v3944_v29 = vadd.f32 %v15712_v36, %v3231_v60 }
 0x22d   : > { %19379 = vst [vmem:[#allocation23_spill] sm:$0xff] %v15991_v1  ;;  %19380 = vst [vmem:[#allocation24_spill] sm:$0xff] %v15994_v59  ;;  %v16005_v26 = vrot.slane %v3998_v20, %v13027_v28  ;;  %v4368_v25 = vcombine.high %v15994_v59, %v15994_v59  ;;  %v19384_v47 = vpack.c.bf16 %v19382_v17, %v19383_v56  ;;  %11394 = vmatprep.mubr.msk.f32.mxu1 %vm12857_vm0, %v18971_v52 }
 0x22e   : > { %v5065_v63 = vsel %vm4607_vm12, %v15945_v38, %v5064_v16  ;;  %v16017_v6 = vrot.slane %v4349_v51, %v15055_v12  ;;  %v4369_v36 = vcombine.high %v3999_v19, %v3999_v19  ;;  %v4376_v20 = vrot.slane %v3999_v19, %v13027_v28 }
 0x22f   : > { %19381 = vst [vmem:[#allocation98_spill] sm:$0xff] %v16005_v26  ;;  %12273 = vmatpush3.bf16.msra.mxu1 %v19384_v47  ;;  %11438 = vmatmul.mubr.msk.f32.gmra.mrb[112].mxu0 %vm4633_vm13, %v5065_v63  ;;  %v16022_v60 = vrot.slane %v4351_v34, %v15055_v12  ;;  %v4386_v21 = vcombine.high %v4000_v15, %v4000_v15  ;;  %v19396_v63 = vld [vmem:[#allocation29_spill] sm:$0xff] }
 0x230   : > { %19385 = vst [vmem:[#allocation13_spill] sm:$0xff] %v16017_v6  ;;  %v16025_v47 = vrot.slane %v4000_v15, %v13027_v28  ;;  %12274 = vmatprep.subr.bf16.mxu1 %v19358_v50  ;;  %v3976_v22 = vadd.f32 %v15952_v48, %v3944_v29  ;;  %v4630_v61 = vsel %vm4598_vm9, %v15991_v1, %v15939_v58 }
 0x231   : > { %19386 = vst [vmem:[#allocation9_spill] sm:$0xff] %v16022_v60  ;;  %v16034_v19 = vsel %vm4598_vm9, %v15942_v8, %v4577_v10  ;;  %v16037_v16 = vrot.slane %v4350_v13, %v15058_v30  ;;  %v16040_v17 = vrot.slane %v4349_v51, %v15058_v30  ;;  %v16043_v15 = vrot.slane %v4351_v34, %v15058_v30  ;;  %v19395_v51 = vld [vmem:[#allocation39_spill] sm:$0xff] }
 0x232   : > { %19387 = vst [vmem:[#allocation8_spill] sm:$0xff] %v16025_v47  ;;  %19388 = vst [vmem:[#allocation17_spill] sm:$0xff] %v16034_v19  ;;  %11440 = vmatprep.mubr.msk.f32.mxu0 %vm12857_vm0, %v18971_v52  ;;  %v16049_v29 = vcombine.high %v16005_v26, %v16005_v26  ;;  %v16052_v56 = vrot.slane %v4368_v25, %v15058_v30  ;;  %v16055_v10 = vrot.slane %v4368_v25, %v15055_v12 }
 0x233   : > { %19389 = vst [vmem:[#allocation27_spill] sm:$0xff] %v16037_v16  ;;  %19390 = vst [vmem:[#allocation141_spill] sm:$0xff] %v16040_v17  ;;  %v16058_v13 = vrot.slane %v4369_v36, %v13027_v28  ;;  %v19397_v34 = vpack.c.bf16 %v19395_v51, %v19396_v63  ;;  %v4384_v19 = vcombine.high %v4376_v20, %v4376_v20  ;;  %v4001_v58 = vmax.f32 %v3976_v22, 0.0  ;;  %v19403_v22 = vld [vmem:[#allocation18_spill] sm:$0xff] }
 0x234   : > { %19391 = vst [vmem:[#allocation142_spill] sm:$0xff] %v16043_v15  ;;  %19392 = vst [vmem:[#allocation143_spill] sm:$0xff] %v16049_v29  ;;  %v16064_v53 = vrot.slane %v4376_v20, %v15058_v30  ;;  %v4631_v8 = vsel %vm873_vm2, %v16017_v6, %v4630_v61  ;;  %v16070_v25 = vrot.slane %v4376_v20, %v15055_v12 }
 0x235   : > { %19393 = vst [vmem:[#allocation144_spill] sm:$0xff] %v16052_v56  ;;  %19394 = vst [vmem:[#allocation145_spill] sm:$0xff] %v16055_v10  ;;  %12276 = vmatpush3.bf16.msra.mxu1 %v19397_v34  ;;  %v4400_v36 = vrot.slane %v4386_v21, %v13027_v28  ;;  %v16075_v10 = vcombine.high %v16025_v47, %v16025_v47  ;;  %v4632_v51 = vsel %vm4601_vm10, %v16022_v60, %v4631_v8  ;;  %v19402_v34 = vld [vmem:[#allocation12_spill] sm:$0xff]  ;;  %v19406_v60 = vld [vmem:[#allocation19_spill] sm:$0xff] }
 0x236   : > { %19398 = vst [vmem:[#allocation39_spill] sm:$0xff] %v16064_v53  ;;  %12283 = vmatprep.subr.bf16.mxu1 %v19358_v50  ;;  %19399 = vst [vmem:[#allocation29_spill] sm:$0xff] %v16070_v25  ;;  %v4403_v63 = vcombine.high %v4001_v58, %v4001_v58  ;;  %11395 = vmatmul.mubr.msk.f32.gmra.mrb[102].mxu1 %vm4633_vm13, %v4632_v51  ;;  %v16084_v61 = vrot.slane %v16005_v26, %v15058_v30  ;;  %v19404_v25 = vld [vmem:[#allocation30_spill] sm:$0xff] }
 0x237   : > { %19400 = vst [vmem:[#allocation146_spill] sm:$0xff] %v16075_v10  ;;  %v5066_v20 = vsel %vm4598_vm9, %v16040_v17, %v16037_v16  ;;  %v3232_v8 = vadd.f32 %v15788_v41, %v19402_v34  ;;  %11405 = vmatprep.mubr.msk.f32.mxu1 %vm12857_vm0, %v18971_v52  ;;  %v4883_v51 = vsel %vm877_vm5, %v19404_v25, %v19403_v22  ;;  %v19405_v10 = vld [vmem:[#allocation26_spill] sm:$0xff] }
 0x238   : > { %19401 = vst [vmem:[#allocation147_spill] sm:$0xff] %v16084_v61  ;;  %v5067_v21 = vsel %vm873_vm2, %v16043_v15, %v5066_v20  ;;  %v5491_v6 = vsel %vm875_vm4, %v19406_v60, %v19405_v10  ;;  %v16102_v1 = vrot.slane %v4384_v19, %v15058_v30  ;;  %v16105_v35 = vrot.slane %v4384_v19, %v15055_v12  ;;  %v19409_v60 = vld [vmem:[#allocation20_spill] sm:$0xff]  ;;  %v19411_v19 = vld [vmem:[#allocation42_spill] sm:$0xff] }
 0x239   : > { %v4410_v20 = vrot.slane %v4001_v58, %v13027_v28  ;;  %v5068_v34 = vsel %vm4601_vm10, %v16084_v61, %v5067_v21  ;;  %v3945_v25 = vadd.f32 %v15743_v23, %v3232_v8  ;;  %v4884_v22 = vsel %vm4607_vm12, %v15286_v46, %v4883_v51  ;;  %v19412_v41 = vld [vmem:[#allocation10_spill] sm:$0xff]  ;;  %v19413_v8 = vld [vmem:[#allocation31_spill] sm:$0xff]  ;;  %v19414_v46 = vld [vmem:[#allocation33_spill] sm:$0xff] }
 0x23a   : > { %19407 = vst [vmem:[#allocation12_spill] sm:$0xff] %v16102_v1  ;;  %19408 = vst [vmem:[#allocation18_spill] sm:$0xff] %v16105_v35  ;;  %v5492_v10 = vsel %vm4604_vm11, %v19409_v60, %v5491_v6  ;;  %v16118_v26 = vrot.slane %v4403_v63, %v13027_v28  ;;  %11441 = vmatmul.mubr.msk.f32.gmra.mrb[114].mxu0 %vm4633_vm13, %v5068_v34  ;;  %11406 = vmatmul.mubr.msk.f32.vlgmr.msra.gmra.mrb[104].mxu1 %vm4633_vm13, %v4884_v22  ;;  %v19416_v6 = vld [vmem:[#allocation58_spill] sm:$0xff]  ;;  %v19419_v60 = vld [vmem:[#allocation53_spill] sm:$0xff] }
 0x23b   : > { %v5493_v58 = vsel %vm877_vm5, %v19411_v19, %v5492_v10  ;;  %v3233_v21 = vadd.f32 %v15823_v32, %v19412_v41  ;;  %v3977_v23 = vadd.f32 %v15952_v48, %v3945_v25  ;;  %v19415_v51 = vpack.c.bf16 %v19413_v8, %v19414_v46  ;;  %11474 = vmatprep.mubr.msk.f32.mxu0 %vm12857_vm0, %v18971_v52  ;;  %v19417_v25 = vld [vmem:[#allocation68_spill] sm:$0xff]  ;;  %v19421_v8 = vld [vmem:[#allocation65_spill] sm:$0xff] }
 0x23c   : > { %19410 = vst [vmem:[#allocation30_spill] sm:$0xff] %v16118_v26  ;;  %v5494_v63 = vsel %vm4607_vm12, %v19416_v6, %v5493_v58  ;;  %v4885_v34 = vsel %vm4598_vm9, %v15324_v39, %v15289_v24  ;;  %11408 = vmatprep.mubr.msk.f32.mxu1 %vm12857_vm0, %v18971_v52  ;;  %v16144_v22 = vrot.slane %v19417_v25, %v15058_v30  ;;  %v19420_v10 = vld [vmem:[#allocation48_spill] sm:$0xff] }
 0x23d   : > { %12285 = vmatpush3.bf16.msra.mxu1 %v19415_v51  ;;  %v3946_v32 = vadd.f32 %v15790_v49, %v3233_v21  ;;  %v4886_v41 = vsel %vm873_vm2, %v15310_v40, %v4885_v34  ;;  %v5495_v19 = vsel %vm4598_vm9, %v19420_v10, %v19419_v60  ;;  %v4002_v58 = vmax.f32 %v3977_v23, 0.0  ;;  %v19422_v49 = vld [vmem:[#allocation62_spill] sm:$0xff]  ;;  %v19423_v34 = vld [vmem:[#allocation76_spill] sm:$0xff] }
 0x23e   : > { %19418 = vst [vmem:[#allocation26_spill] sm:$0xff] %v16144_v22  ;;  %v4887_v24 = vsel %vm4601_vm10, %v15330_v37, %v4886_v41  ;;  %v5496_v46 = vsel %vm873_vm2, %v19421_v8, %v5495_v19  ;;  %v4892_v21 = vsel %vm4598_vm9, %v19422_v49, %v19357_v4  ;;  %12286 = vmatprep.subr.bf16.mxu1 %v19358_v50  ;;  %v19424_v23 = vld [vmem:[#allocation60_spill] sm:$0xff]  ;;  %v19431_v4 = vld [vmem:[#allocation79_spill] sm:$0xff] }
 0x23f   : > { %11475 = vmatmul.mubr.msk.f32.vlgmr.msra.gmra.mrb[116].mxu0 %vm4633_vm13, %v5494_v63  ;;  %v3978_v51 = vadd.f32 %v15952_v48, %v3946_v32  ;;  %v4888_v61 = vsel %vm875_vm4, %v19423_v34, %v4887_v24  ;;  %v5497_v47 = vsel %vm4601_vm10, %v19424_v23, %v5496_v46  ;;  %v19425_v41 = vld [vmem:[#allocation96_spill] sm:$0xff]  ;;  %v4420_v19 = vcombine.high %v4002_v58, %v4002_v58  ;;  %v19427_v48 = vld [vmem:[#allocation82_spill] sm:$0xff]  ;;  %v19428_v46 = vld [vmem:[#allocation83_spill] sm:$0xff] }
 0x240   : > { %v4893_v35 = vsel %vm873_vm2, %v19425_v41, %v4892_v21  ;;  %v16166_v25 = vrot.slane %v4002_v58, %v13027_v28  ;;  %v4889_v49 = vsel %vm4604_vm11, %v15502_v18, %v4888_v61  ;;  %11477 = vmatprep.mubr.msk.f32.mxu0 %vm12857_vm0, %v18971_v52  ;;  %v5498_v63 = vsel %vm875_vm4, %v19427_v48, %v5497_v47 }
 0x241   : > { %v4003_v32 = vmax.f32 %v3978_v51, 0.0  ;;  %v4890_v24 = vsel %vm877_vm5, %v15495_v42, %v4889_v49  ;;  %v5499_v21 = vsel %vm4604_vm11, %v19428_v46, %v5498_v63  ;;  %v4894_v58 = vsel %vm4601_vm10, %v15630_v45, %v4893_v35 }
 0x242   : > { %19426 = vst [vmem:[#allocation19_spill] sm:$0xff] %v16166_v25  ;;  %v16180_v41 = vcombine.high %v4400_v36, %v4400_v36  ;;  %v16183_v61 = vrot.slane %v4400_v36, %v15058_v30  ;;  %v4891_v18 = vsel %vm4607_vm12, %v15514_v3, %v4890_v24  ;;  %v5500_v47 = vsel %vm877_vm5, %v19431_v4, %v5499_v21  ;;  %v10156_v24 = vld [vmem:[%s18546_s3 + $0x70] sm:$0xff]  ;;  %v10157_v21 = vld [vmem:[%s18546_s3 + $0x78] sm:$0xff] }
 0x243   : > { %v16190_v51 = vrot.slane %v4400_v36, %v15055_v12  ;;  %v16192_v49 = vcombine.high %v4410_v20, %v4410_v20  ;;  %11409 = vmatmul.mubr.msk.f32.gmra.mrb[106].mxu1 %vm4633_vm13, %v4891_v18  ;;  %v5501_v35 = vsel %vm4607_vm12, %v16144_v22, %v5500_v47  ;;  %v4895_v63 = vsel %vm875_vm4, %v19350_v57, %v4894_v58 }
 0x244   : > { %19429 = vst [vmem:[#allocation20_spill] sm:$0xff] %v16180_v41  ;;  %19430 = vst [vmem:[#allocation42_spill] sm:$0xff] %v16183_v61  ;;  %v16207_v36 = vcombine.high %v16118_v26, %v16118_v26  ;;  %v16210_v18 = vrot.slane %v4410_v20, %v15058_v30  ;;  %v16213_v47 = vrot.slane %v4410_v20, %v15055_v12  ;;  %11478 = vmatmul.mubr.msk.f32.gmra.mrb[118].mxu0 %vm4633_vm13, %v5501_v35  ;;  %v19441_v35 = vld [vmem:[#allocation88_spill] sm:$0xff] }
 0x245   : > { %19432 = vst [vmem:[#allocation10_spill] sm:$0xff] %v16190_v51  ;;  %19433 = vst [vmem:[#allocation31_spill] sm:$0xff] %v16192_v49  ;;  %v16216_v58 = vrot.slane %v4420_v19, %v13027_v28  ;;  %v16221_v51 = vcombine.high %v16166_v25, %v16166_v25  ;;  %v16224_v48 = vrot.slane %v4003_v32, %v13027_v28  ;;  %11411 = vmatprep.mubr.msk.f32.mxu1 %vm12857_vm0, %v18971_v52  ;;  %v19451_v49 = vld [vmem:[#allocation129_spill] sm:$0xff] }
 0x246   : > { %19434 = vst [vmem:[#allocation33_spill] sm:$0xff] %v16207_v36  ;;  %19435 = vst [vmem:[#allocation58_spill] sm:$0xff] %v16210_v18  ;;  %v4896_v36 = vsel %vm4604_vm11, %v15651_v33, %v4895_v63  ;;  %11480 = vmatprep.mubr.msk.f32.mxu0 %vm12857_vm0, %v18971_v52  ;;  %v16236_v19 = vrot.slane %v15732_v44, %v15058_v30  ;;  %v5502_v32 = vsel %vm4598_vm9, %v15577_v7, %v19441_v35 }
 0x247   : > { %19436 = vst [vmem:[#allocation53_spill] sm:$0xff] %v16213_v47  ;;  %19437 = vst [vmem:[#allocation76_spill] sm:$0xff] %v16216_v58  ;;  %v4897_v20 = vsel %vm877_vm5, %v15679_v9, %v4896_v36  ;;  %v12287_v28 = vpack.c.bf16 %v10157_v21, %v10156_v24  ;;  %v16247_v25 = vrot.slane %v15886_v14, %v15058_v30  ;;  %v19443_v36 = vld [vmem:[#allocation130_spill] sm:$0xff]  ;;  %v19445_v24 = vld [vmem:[#allocation108_spill] sm:$0xff] }
 0x248   : > { %19438 = vst [vmem:[#allocation148_spill] sm:$0xff] %v16221_v51  ;;  %19439 = vst [vmem:[#allocation149_spill] sm:$0xff] %v16224_v48  ;;  %v4898_v47 = vsel %vm4607_vm12, %v15665_v2, %v4897_v20  ;;  %v19442_v48 = vld [vmem:[#allocation102_spill] sm:$0xff]  ;;  %v4900_v26 = vsel %vm873_vm2, %v15774_v5, %v19443_v36  ;;  %v16254_v9 = vcombine.high %v16216_v58, %v16216_v58  ;;  %v10181_v20 = vld [vmem:[%s18546_s3 + $0xc0] sm:$0xff] }
 0x249   : > { %19440 = vst [vmem:[#allocation150_spill] sm:$0xff] %v16236_v19  ;;  %v5503_v63 = vsel %vm873_vm2, %v19442_v48, %v5502_v32  ;;  %11412 = vmatmul.mubr.msk.f32.gmra.mrb[108].mxu1 %vm4633_vm13, %v4898_v47  ;;  %v4901_v21 = vsel %vm4601_vm10, %v15780_v43, %v4900_v26  ;;  %v16263_v14 = vrot.slane %v16049_v29, %v15058_v30  ;;  %v10182_v32 = vld [vmem:[%s18546_s3 + $0xc8] sm:$0xff]  ;;  %v19462_v29 = vld [vmem:[#allocation15_spill] sm:$0xff] }
 0x24a   : > { %19444 = vst [vmem:[#allocation130_spill] sm:$0xff] %v16254_v9  ;;  %v5504_v2 = vsel %vm4601_vm10, %v19445_v24, %v5503_v63  ;;  %v19446_v36 = vld [vmem:[#allocation109_spill] sm:$0xff]  ;;  %12288 = vmatpush3.bf16.msra.mxu1 %v12287_v28  ;;  %11414 = vmatprep.mubr.msk.f32.mxu1 %vm12857_vm0, %v18971_v52  ;;  %v4902_v26 = vsel %vm875_vm4, %v15830_v27, %v4901_v21  ;;  %v19449_v28 = vld [vmem:[#allocation132_spill] sm:$0xff]  ;;  %v19450_v21 = vld [vmem:[#allocation119_spill] sm:$0xff] }
 0x24b   : > { %v5505_v47 = vsel %vm875_vm4, %v19446_v36, %v5504_v2  ;;  %v5509_v63 = vsel %vm4598_vm9, %v15874_v55, %v15854_v62  ;;  %v19447_v9 = vld [vmem:[#allocation113_spill] sm:$0xff]  ;;  %v4903_v7 = vsel %vm4604_vm11, %v15838_v0, %v4902_v26  ;;  %v16286_v2 = vrot.slane %v15994_v59, %v15058_v30  ;;  %12295 = vmatprep.subr.bf16.mxu1 %v19358_v50  ;;  %v19452_v59 = vld [vmem:[#allocation139_spill] sm:$0xff] }
 0x24c   : > { %v5506_v48 = vsel %vm4604_vm11, %v19447_v9, %v5505_v47  ;;  %v5510_v18 = vsel %vm873_vm2, %v19449_v28, %v5509_v63  ;;  %v4904_v62 = vsel %vm877_vm5, %v16247_v25, %v4903_v7  ;;  %v12302_v41 = vpack.c.bf16 %v10182_v32, %v10181_v20  ;;  %v10183_v7 = vld [vmem:[%s18546_s3 + $0xd0] sm:$0xff]  ;;  %v19464_v27 = vld [vmem:[#allocation49_spill] sm:$0xff] }
 0x24d   : > { %19448 = vst [vmem:[#allocation151_spill] sm:$0xff] %v16286_v2  ;;  %v5507_v61 = vsel %vm877_vm5, %v19450_v21, %v5506_v48  ;;  %v5511_v47 = vsel %vm4601_vm10, %v19451_v49, %v5510_v18  ;;  %v4905_v0 = vsel %vm4607_vm12, %v15956_v11, %v4904_v62  ;;  %v4906_v48 = vsel %vm4598_vm9, %v16037_v16, %v15945_v38  ;;  %v10184_v18 = vld [vmem:[%s18546_s3 + $0xd8] sm:$0xff]  ;;  %v19459_v16 = vld [vmem:[#allocation45_spill] sm:$0xff] }
 0x24e   : > { %v5508_v26 = vsel %vm4607_vm12, %v16236_v19, %v5507_v61  ;;  %v5512_v63 = vsel %vm875_vm4, %v19452_v59, %v5511_v47  ;;  %11415 = vmatmul.mubr.msk.f32.gmra.mrb[110].mxu1 %vm4633_vm13, %v4905_v0  ;;  %v19453_v62 = vld [vmem:[#allocation136_spill] sm:$0xff]  ;;  %v4907_v20 = vsel %vm873_vm2, %v16040_v17, %v4906_v48  ;;  %v16320_v32 = vrot.slane %v16058_v13, %v15058_v30  ;;  %v19458_v17 = vld [vmem:[#allocation41_spill] sm:$0xff] }
 0x24f   : > { %11481 = vmatmul.mubr.msk.f32.gmra.mrb[120].mxu0 %vm4633_vm13, %v5508_v26  ;;  %v5513_v61 = vsel %vm4604_vm11, %v19453_v62, %v5512_v63  ;;  %v16324_v47 = vrot.slane %v16221_v51, %v15058_v30  ;;  %v5516_v26 = vsel %vm4598_vm9, %v16064_v53, %v16052_v56  ;;  %v16335_v63 = vrot.slane %v16216_v58, %v15058_v30 }
 0x250   : > { %19454 = vst [vmem:[#allocation152_spill] sm:$0xff] %v16320_v32  ;;  %11483 = vmatprep.mubr.msk.f32.mxu0 %vm12857_vm0, %v18971_v52  ;;  %v5514_v0 = vsel %vm877_vm5, %v16263_v14, %v5513_v61  ;;  %12303 = vmatpush3.bf16.msra.mxu0 %v12302_v41  ;;  %v5517_v48 = vsel %vm873_vm2, %v16102_v1, %v5516_v26  ;;  %v10172_v41 = vld [vmem:[%s18546_s3 + $0xa0] sm:$0xff]  ;;  %v10173_v61 = vld [vmem:[%s18546_s3 + $0xa8] sm:$0xff] }
 0x251   : > { %19455 = vst [vmem:[#allocation153_spill] sm:$0xff] %v16324_v47  ;;  %19456 = vst [vmem:[#allocation154_spill] sm:$0xff] %v16335_v63  ;;  %11417 = vmatprep.mubr.msk.f32.mxu1 %vm12857_vm0, %v18971_v52  ;;  %12304 = vmatprep.subr.bf16.mxu0 %v19358_v50  ;;  %v12305_v51 = vpack.c.bf16 %v10184_v18, %v10183_v7  ;;  %v5515_v58 = vsel %vm4607_vm12, %v16286_v2, %v5514_v0  ;;  %v19457_v47 = vld [vmem:[#allocation11_spill] sm:$0xff]  ;;  %v19460_v7 = vld [vmem:[#allocation36_spill] sm:$0xff] }
 0x252   : > { %v4908_v63 = vsel %vm4601_vm10, %v16043_v15, %v4907_v20  ;;  %v5206_v26 = vsel %vm875_vm4, %v19458_v17, %v19457_v47  ;;  %v19461_v18 = vrot.slane %v19460_v7, %v15058_v30  ;;  %v5518_v0 = vsel %vm4601_vm10, %v16320_v32, %v5517_v48  ;;  %v19465_v17 = vld [vmem:[#allocation34_spill] sm:$0xff] }
 0x253   : > { %11484 = vmatmul.mubr.msk.f32.gmra.mrb[122].mxu0 %vm4633_vm13, %v5515_v58  ;;  %11418 = vmatmul.mubr.msk.f32.gmra.mrb[112].mxu1 %vm4633_vm13, %v4908_v63  ;;  %v19463_v20 = vrot.slane %v19462_v29, %v15055_v12  ;;  %v5210_v47 = vsel %vm4598_vm9, %v19465_v17, %v19464_v27  ;;  %v12296_v63 = vpack.c.bf16 %v10173_v61, %v10172_v41  ;;  %v19468_v29 = vld [vmem:[#allocation37_spill] sm:$0xff]  ;;  %v19469_v17 = vld [vmem:[#allocation59_spill] sm:$0xff] }
 0x254   : > { %v5942_v38 = vsel %vm4604_vm11, %v19461_v18, %v19459_v16  ;;  %11486 = vmatprep.mubr.msk.f32.mxu0 %vm12857_vm0, %v18971_v52  ;;  %12306 = vmatpush3.bf16.msra.mxu0 %v12305_v51  ;;  %v19466_v16 = vld [vmem:[#allocation32_spill] sm:$0xff]  ;;  %v19467_v18 = vld [vmem:[#allocation47_spill] sm:$0xff]  ;;  %v19470_v51 = vld [vmem:[#allocation74_spill] sm:$0xff] }
 0x255   : > { %v5207_v15 = vsel %vm4604_vm11, %v19463_v20, %v5206_v26  ;;  %v5211_v48 = vsel %vm873_vm2, %v19467_v18, %v5210_v47  ;;  %11451 = vmatprep.mubr.msk.f32.mxu1 %vm12857_vm0, %v18971_v52  ;;  %v5943_v20 = vsel %vm877_vm5, %v19416_v6, %v5942_v38  ;;  %v19471_v47 = vld [vmem:[#allocation80_spill] sm:$0xff]  ;;  %v16397_v38 = vcombine.high %v15732_v44, %v15732_v44  ;;  %v19540_v18 = vld [vmem:[#allocation27_spill] sm:$0xff] }
 0x256   : > { %v5208_v58 = vsel %vm877_vm5, %v19466_v16, %v5207_v15  ;;  %v5212_v27 = vsel %vm4601_vm10, %v19469_v17, %v5211_v48  ;;  %v5945_v15 = vsel %vm4598_vm9, %v19421_v8, %v19420_v10  ;;  %v19472_v16 = vld [vmem:[#allocation101_spill] sm:$0xff]  ;;  %12313 = vmatprep.subr.bf16.mxu0 %v19358_v50  ;;  %v19473_v6 = vld [vmem:[#allocation72_spill] sm:$0xff]  ;;  %v19474_v48 = vld [vmem:[#allocation54_spill] sm:$0xff] }
 0x257   : > { %v5209_v26 = vsel %vm4607_vm12, %v19468_v29, %v5208_v58  ;;  %v5213_v41 = vsel %vm875_vm4, %v19470_v51, %v5212_v27  ;;  %v5946_v61 = vsel %vm873_vm2, %v19424_v23, %v5945_v15  ;;  %v5218_v58 = vsel %vm873_vm2, %v19472_v16, %v19471_v47  ;;  %11487 = vmatmul.mubr.msk.f32.gmra.mrb[124].mxu0 %vm4633_vm13, %v5518_v0  ;;  %v19475_v15 = vld [vmem:[#allocation85_spill] sm:$0xff] }
 0x258   : > { %11452 = vmatmul.mubr.msk.f32.vlgmr.msra.gmra.mrb[114].mxu1 %vm4633_vm13, %v5209_v26  ;;  %v5214_v27 = vsel %vm4604_vm11, %v19473_v6, %v5213_v41  ;;  %v5947_v29 = vsel %vm4601_vm10, %v19474_v48, %v5946_v61  ;;  %v5219_v17 = vsel %vm4601_vm10, %v19475_v15, %v5218_v58  ;;  %11520 = vmatprep.mubr.msk.f32.mxu0 %vm12857_vm0, %v18971_v52  ;;  %v19476_v47 = vld [vmem:[#allocation93_spill] sm:$0xff]  ;;  %v19477_v26 = vld [vmem:[#allocation94_spill] sm:$0xff]  ;;  %v19478_v58 = vld [vmem:[#allocation95_spill] sm:$0xff] }
 0x259   : > { %12297 = vmatpush3.bf16.msra.mxu1 %v12296_v63  ;;  %v5215_v16 = vsel %vm877_vm5, %v19476_v47, %v5214_v27  ;;  %v5948_v0 = vsel %vm875_vm4, %v19428_v46, %v5947_v29  ;;  %v5220_v51 = vsel %vm875_vm4, %v19477_v26, %v5219_v17  ;;  %v16419_v41 = vsel %vm4598_vm9, %v15956_v11, %v16247_v25  ;;  %v10174_v17 = vld [vmem:[%s18546_s3 + $0xb0] sm:$0xff]  ;;  %v10175_v25 = vld [vmem:[%s18546_s3 + $0xb8] sm:$0xff]  ;;  %v19479_v29 = vld [vmem:[#allocation81_spill] sm:$0xff] }
 0x25a   : > { %v5944_v63 = vsel %vm4607_vm12, %v19419_v60, %v5943_v20  ;;  %11454 = vmatprep.mubr.msk.f32.mxu1 %vm12857_vm0, %v18971_v52  ;;  %v5949_v61 = vsel %vm4604_vm11, %v19431_v4, %v5948_v0  ;;  %v5221_v27 = vsel %vm4604_vm11, %v19478_v58, %v5220_v51  ;;  %v5216_v60 = vsel %vm4607_vm12, %v19479_v29, %v5215_v16  ;;  %v19480_v48 = vld [vmem:[#allocation103_spill] sm:$0xff]  ;;  %v10199_v15 = vld [vmem:[%s18546_s3 + $0x100] sm:$0xff]  ;;  %v10200_v16 = vld [vmem:[%s18546_s3 + $0x108] sm:$0xff] }
 0x25b   : > { %v5950_v20 = vsel %vm877_vm5, %v16144_v22, %v5949_v61  ;;  %v16441_v0 = vrot.slane %v19480_v48, %v15055_v12  ;;  %12298 = vmatprep.subr.bf16.mxu1 %v19358_v50  ;;  %v19482_v51 = vld [vmem:[#allocation99_spill] sm:$0xff]  ;;  %11521 = vmatmul.mubr.msk.f32.vlgmr.msra.gmra.mrb[126].mxu0 %vm4633_vm13, %v5944_v63  ;;  %v19483_v48 = vld [vmem:[#allocation104_spill] sm:$0xff]  ;;  %v16459_v46 = vrot.slane %v16397_v38, %v15058_v30  ;;  %v19486_v58 = vld [vmem:[#allocation117_spill] sm:$0xff] }
 0x25c   : > { %v5953_v26 = vsel %vm873_vm2, %v19445_v24, %v19482_v51  ;;  %11455 = vmatmul.mubr.msk.f32.gmra.mrb[116].mxu1 %vm4633_vm13, %v5216_v60  ;;  %v5222_v61 = vsel %vm877_vm5, %v19483_v48, %v5221_v27  ;;  %11523 = vmatprep.mubr.msk.f32.mxu0 %vm12857_vm0, %v18971_v52  ;;  %v5951_v24 = vsel %vm4607_vm12, %v19441_v35, %v5950_v20  ;;  %v19485_v48 = vld [vmem:[#allocation112_spill] sm:$0xff]  ;;  %v19543_v4 = vld [vmem:[#allocation141_spill] sm:$0xff] }
 0x25d   : > { %19481 = vst [vmem:[#allocation11_spill] sm:$0xff] %v16441_v0  ;;  %19484 = vst [vmem:[#allocation41_spill] sm:$0xff] %v16459_v46  ;;  %v5954_v51 = vsel %vm4601_vm10, %v19446_v36, %v5953_v26  ;;  %11457 = vmatprep.mubr.msk.f32.mxu1 %vm12857_vm0, %v18971_v52  ;;  %v12299_v27 = vpack.c.bf16 %v10175_v25, %v10174_v17  ;;  %v5224_v26 = vsel %vm4598_vm9, %v19486_v58, %v19485_v48  ;;  %v19529_v58 = vld [vmem:[#allocation143_spill] sm:$0xff]  ;;  %v19544_v47 = vld [vmem:[#allocation145_spill] sm:$0xff] }
 0x25e   : > { %v5955_v63 = vsel %vm875_vm4, %v19447_v9, %v5954_v51  ;;  %v5959_v36 = vsel %vm4598_vm9, %v19449_v28, %v15874_v55  ;;  %v12314_v23 = vpack.c.bf16 %v10200_v16, %v10199_v15  ;;  %v5223_v20 = vsel %vm4607_vm12, %v16441_v0, %v5222_v61  ;;  %v19487_v61 = vld [vmem:[#allocation98_spill] sm:$0xff]  ;;  %v19494_v0 = vld [vmem:[#allocation9_spill] sm:$0xff] }
 0x25f   : > { %v5956_v60 = vsel %vm4604_vm11, %v19450_v21, %v5955_v63  ;;  %12300 = vmatpush3.bf16.msra.mxu1 %v12299_v27  ;;  %v5225_v17 = vsel %vm873_vm2, %v15771_v54, %v5224_v26  ;;  %v5960_v25 = vsel %vm873_vm2, %v19451_v49, %v5959_v36  ;;  %11524 = vmatmul.mubr.msk.f32.gmra.mrb[128].mxu0 %vm4633_vm13, %v5951_v24  ;;  %v19489_v36 = vld [vmem:[#allocation128_spill] sm:$0xff]  ;;  %v19490_v27 = vld [vmem:[#allocation23_spill] sm:$0xff]  ;;  %v19519_v28 = vld [vmem:[#allocation110_spill] sm:$0xff] }
 0x260   : > { %v5957_v35 = vsel %vm877_vm5, %v16236_v19, %v5956_v60  ;;  %11458 = vmatmul.mubr.msk.f32.gmra.mrb[118].mxu1 %vm4633_vm13, %v5223_v20  ;;  %v5226_v15 = vsel %vm4601_vm10, %v15786_v31, %v5225_v17  ;;  %v5961_v16 = vsel %vm4601_vm10, %v19452_v59, %v5960_v25  ;;  %v16495_v51 = vrot.slane %v19487_v61, %v15055_v12  ;;  %v19491_v60 = vld [vmem:[#allocation13_spill] sm:$0xff]  ;;  %v19517_v49 = vld [vmem:[#allocation87_spill] sm:$0xff]  ;;  %v19527_v55 = vld [vmem:[#allocation122_spill] sm:$0xff] }
 0x261   : > { %11526 = vmatprep.mubr.msk.f32.mxu0 %vm12857_vm0, %v18971_v52  ;;  %11460 = vmatprep.mubr.msk.f32.mxu1 %vm12857_vm0, %v18971_v52  ;;  %v5227_v24 = vsel %vm875_vm4, %v19489_v36, %v5226_v15  ;;  %v5962_v63 = vsel %vm875_vm4, %v19453_v62, %v5961_v16  ;;  %v5231_v26 = vsel %vm4598_vm9, %v19491_v60, %v19490_v27  ;;  %v19492_v20 = vld [vmem:[#allocation121_spill] sm:$0xff]  ;;  %v10201_v16 = vld [vmem:[%s18546_s3 + $0x110] sm:$0xff]  ;;  %v10202_v62 = vld [vmem:[%s18546_s3 + $0x118] sm:$0xff] }
 0x262   : > { %19488 = vst [vmem:[#allocation45_spill] sm:$0xff] %v16495_v51  ;;  %v5228_v17 = vsel %vm4604_vm11, %v19492_v20, %v5227_v24  ;;  %v19493_v25 = vld [vmem:[#allocation5_spill] sm:$0xff]  ;;  %12315 = vmatpush3.bf16.msra.mxu0 %v12314_v23  ;;  %v5232_v59 = vsel %vm873_vm2, %v19494_v0, %v5231_v26  ;;  %v16516_v15 = vcombine.high %v16058_v13, %v16058_v13  ;;  %v19516_v60 = vld [vmem:[#allocation90_spill] sm:$0xff]  ;;  %v19518_v27 = vld [vmem:[#allocation127_spill] sm:$0xff] }
 0x263   : > { %v5963_v61 = vsel %vm4604_vm11, %v19493_v25, %v5962_v63  ;;  %v5958_v24 = vsel %vm4607_vm12, %v16459_v46, %v5957_v35  ;;  %v19495_v63 = vld [vmem:[#allocation21_spill] sm:$0xff]  ;;  %v5966_v25 = vsel %vm4598_vm9, %v16102_v1, %v16064_v53  ;;  %12316 = vmatprep.subr.bf16.mxu0 %v19358_v50  ;;  %v16537_v20 = vsel %vm4598_vm9, %v16286_v2, %v16263_v14  ;;  %v19497_v35 = vld [vmem:[#allocation22_spill] sm:$0xff] }
 0x264   : > { %v5229_v23 = vsel %vm877_vm5, %v19495_v63, %v5228_v17  ;;  %v5964_v26 = vsel %vm877_vm5, %v16286_v2, %v5963_v61  ;;  %19496 = vst [vmem:[#allocation36_spill] sm:$0xff] %v16537_v20  ;;  %11527 = vmatmul.mubr.msk.f32.gmra.mrb[130].mxu0 %vm4633_vm13, %v5958_v24  ;;  %v5233_v17 = vsel %vm4601_vm10, %v16495_v51, %v5232_v59  ;;  %v10190_v63 = vld [vmem:[%s18546_s3 + $0xe0] sm:$0xff]  ;;  %v10191_v14 = vld [vmem:[%s18546_s3 + $0xe8] sm:$0xff] }
 0x265   : > { %v5230_v46 = vsel %vm4607_vm12, %v19497_v35, %v5229_v23  ;;  %v16546_v61 = vrot.slane %v16516_v15, %v15058_v30  ;;  %11529 = vmatprep.mubr.msk.f32.mxu0 %vm12857_vm0, %v18971_v52  ;;  %v5967_v59 = vsel %vm873_vm2, %v16320_v32, %v5966_v25  ;;  %v12317_v24 = vpack.c.bf16 %v10202_v62, %v10201_v16  ;;  %v19499_v23 = vld [vmem:[#allocation28_spill] sm:$0xff]  ;;  %v19500_v51 = vld [vmem:[#allocation25_spill] sm:$0xff]  ;;  %v19528_v54 = vld [vmem:[#allocation118_spill] sm:$0xff] }
 0x266   : > { %11461 = vmatmul.mubr.msk.f32.gmra.mrb[120].mxu1 %vm4633_vm13, %v5230_v46  ;;  %v5776_v2 = vsel %vm875_vm4, %v19500_v51, %v19499_v23  ;;  %v5965_v1 = vsel %vm4607_vm12, %v16052_v56, %v5964_v26  ;;  %12307 = vmatprep.subr.bf16.mxu1 %v19358_v50  ;;  %v19501_v46 = vld [vmem:[#allocation35_spill] sm:$0xff]  ;;  %v19502_v20 = vld [vmem:[#allocation52_spill] sm:$0xff]  ;;  %v19503_v62 = vld [vmem:[#allocation57_spill] sm:$0xff]  ;;  %v12308_v51 = vpack.c.bf16 %v10191_v14, %v10190_v63 }
 0x267   : > { %19498 = vst [vmem:[#allocation15_spill] sm:$0xff] %v16546_v61  ;;  %11463 = vmatprep.mubr.msk.f32.mxu1 %vm12857_vm0, %v18971_v52  ;;  %v5777_v53 = vsel %vm4604_vm11, %v19501_v46, %v5776_v2  ;;  %v6270_v25 = vsel %vm4601_vm10, %v15324_v39, %v19502_v20  ;;  %12318 = vmatpush3.bf16.msra.mxu0 %v12317_v24  ;;  %v19504_v23 = vld [vmem:[#allocation55_spill] sm:$0xff]  ;;  %v19505_v32 = vld [vmem:[#allocation69_spill] sm:$0xff]  ;;  %v19506_v20 = vld [vmem:[#allocation66_spill] sm:$0xff] }
 0x268   : > { %v5778_v16 = vsel %vm877_vm5, %v19503_v62, %v5777_v53  ;;  %v6271_v26 = vsel %vm875_vm4, %v15310_v40, %v6270_v25  ;;  %v5780_v56 = vsel %vm4598_vm9, %v19505_v32, %v19504_v23  ;;  %11530 = vmatmul.mubr.msk.f32.gmra.mrb[132].mxu0 %vm4633_vm13, %v5965_v1  ;;  %v5968_v2 = vsel %vm4601_vm10, %v16546_v61, %v5967_v59  ;;  %v19507_v63 = vld [vmem:[#allocation56_spill] sm:$0xff]  ;;  %v19508_v59 = vld [vmem:[#allocation77_spill] sm:$0xff]  ;;  %v19512_v61 = vld [vmem:[#allocation78_spill] sm:$0xff] }
 0x269   : > { %v6272_v39 = vsel %vm4604_vm11, %v15330_v37, %v6271_v26  ;;  %v5781_v24 = vsel %vm873_vm2, %v19506_v20, %v5780_v56  ;;  %v6275_v53 = vsel %vm4598_vm9, %v15514_v3, %v15495_v42  ;;  %11532 = vmatprep.mubr.msk.f32.mxu0 %vm12857_vm0, %v18971_v52  ;;  %v19509_v56 = vld [vmem:[#allocation46_spill] sm:$0xff]  ;;  %12325 = vmatprep.subr.bf16.mxu0 %v19358_v50  ;;  %v19531_v9 = vld [vmem:[#allocation137_spill] sm:$0xff] }
 0x26a   : > { %11464 = vmatmul.mubr.msk.f32.gmra.mrb[122].mxu1 %vm4633_vm13, %v5233_v17  ;;  %v6273_v1 = vsel %vm877_vm5, %v19423_v34, %v6272_v39  ;;  %v5782_v14 = vsel %vm4601_vm10, %v19507_v63, %v5781_v24  ;;  %v6276_v46 = vsel %vm873_vm2, %v19508_v59, %v6275_v53  ;;  %v5779_v25 = vsel %vm4607_vm12, %v19509_v56, %v5778_v16  ;;  %v19510_v17 = vld [vmem:[#allocation68_spill] sm:$0xff]  ;;  %v19513_v34 = vld [vmem:[#allocation62_spill] sm:$0xff]  ;;  %v19514_v24 = vld [vmem:[#allocation75_spill] sm:$0xff] }
 0x26b   : > { %11497 = vmatprep.mubr.msk.f32.mxu1 %vm12857_vm0, %v18971_v52  ;;  %v16604_v26 = vrot.slane %v19510_v17, %v15055_v12  ;;  %v5783_v62 = vsel %vm875_vm4, %v19512_v61, %v5782_v14  ;;  %v6277_v39 = vsel %vm4601_vm10, %v19513_v34, %v6276_v46  ;;  %v19515_v53 = vld [vmem:[#allocation96_spill] sm:$0xff]  ;;  %v5787_v16 = vsel %vm4598_vm9, %v19517_v49, %v19516_v60  ;;  %v19520_v14 = vld [vmem:[#allocation86_spill] sm:$0xff]  ;;  %v19521_v61 = vld [vmem:[#allocation105_spill] sm:$0xff] }
 0x26c   : > { %v5784_v0 = vsel %vm4604_vm11, %v19514_v24, %v5783_v62  ;;  %v6278_v36 = vsel %vm875_vm4, %v19515_v53, %v6277_v39  ;;  %v6284_v17 = vsel %vm4601_vm10, %v19519_v28, %v19518_v27  ;;  %11533 = vmatmul.mubr.msk.f32.gmra.mrb[134].mxu0 %vm4633_vm13, %v5968_v2  ;;  %v5788_v39 = vsel %vm873_vm2, %v19521_v61, %v5787_v16  ;;  %v10192_v27 = vld [vmem:[%s18546_s3 + $0xf0] sm:$0xff]  ;;  %v10193_v2 = vld [vmem:[%s18546_s3 + $0xf8] sm:$0xff] }
 0x26d   : > { %19511 = vst [vmem:[#allocation32_spill] sm:$0xff] %v16604_v26  ;;  %v5785_v46 = vsel %vm877_vm5, %v19520_v14, %v5784_v0  ;;  %v6279_v62 = vsel %vm4604_vm11, %v15630_v45, %v6278_v36  ;;  %v6285_v53 = vsel %vm875_vm4, %v15774_v5, %v6284_v17  ;;  %11566 = vmatprep.mubr.msk.f32.mxu0 %vm12857_vm0, %v18971_v52  ;;  %v19523_v16 = vld [vmem:[#allocation111_spill] sm:$0xff]  ;;  %v19524_v61 = vld [vmem:[#allocation64_spill] sm:$0xff]  ;;  %v19537_v21 = vld [vmem:[#allocation146_spill] sm:$0xff] }
 0x26e   : > { %11498 = vmatmul.mubr.msk.f32.vlgmr.msra.gmra.mrb[124].mxu1 %vm4633_vm13, %v5779_v25  ;;  %v6280_v0 = vsel %vm877_vm5, %v19350_v57, %v6279_v62  ;;  %v16643_v36 = vrot.slane %v15732_v44, %v15055_v12  ;;  %v5789_v17 = vsel %vm4601_vm10, %v19523_v16, %v5788_v39  ;;  %v6274_v49 = vsel %vm4607_vm12, %v19524_v61, %v6273_v1  ;;  %v19525_v25 = vld [vmem:[#allocation107_spill] sm:$0xff] }
 0x26f   : > { %12309 = vmatpush3.bf16.msra.mxu1 %v12308_v51  ;;  %11500 = vmatprep.mubr.msk.f32.mxu1 %vm12857_vm0, %v18971_v52  ;;  %v5790_v31 = vsel %vm875_vm4, %v19525_v25, %v5789_v17  ;;  %v6286_v62 = vsel %vm4604_vm11, %v15780_v43, %v6285_v53  ;;  %v5786_v44 = vsel %vm4607_vm12, %v16604_v26, %v5785_v46  ;;  %v19526_v39 = vld [vmem:[#allocation115_spill] sm:$0xff] }
 0x270   : > { %19522 = vst [vmem:[#allocation37_spill] sm:$0xff] %v16643_v36  ;;  %v6281_v35 = vsel %vm4607_vm12, %v15651_v33, %v6280_v0  ;;  %v5791_v51 = vsel %vm4604_vm11, %v19526_v39, %v5790_v31  ;;  %12310 = vmatprep.subr.bf16.mxu1 %v19358_v50  ;;  %v12311_v1 = vpack.c.bf16 %v10193_v2, %v10192_v27  ;;  %v19532_v0 = vld [vmem:[#allocation123_spill] sm:$0xff]  ;;  %v10217_v31 = vld [vmem:[%s18546_s3 + $0x140] sm:$0xff] }
 0x271   : > { %11567 = vmatmul.mubr.msk.f32.vlgmr.msra.gmra.mrb[136].mxu0 %vm4633_vm13, %v6274_v49  ;;  %v5792_v17 = vsel %vm877_vm5, %v19527_v55, %v5791_v51  ;;  %v6287_v53 = vsel %vm877_vm5, %v19528_v54, %v6286_v62  ;;  %v16669_v46 = vrot.slane %v19529_v58, %v15055_v12  ;;  %v5794_v19 = vsel %vm4598_vm9, %v19532_v0, %v19531_v9  ;;  %v10218_v49 = vld [vmem:[%s18546_s3 + $0x148] sm:$0xff]  ;;  %v19533_v27 = vld [vmem:[#allocation24_spill] sm:$0xff] }
 0x272   : > { %11501 = vmatmul.mubr.msk.f32.gmra.mrb[126].mxu1 %vm4633_vm13, %v5786_v44  ;;  %11569 = vmatprep.mubr.msk.f32.mxu0 %vm12857_vm0, %v18971_v52  ;;  %v5793_v58 = vsel %vm4607_vm12, %v16643_v36, %v5792_v17  ;;  %v16687_v2 = vrot.slane %v19533_v27, %v15055_v12  ;;  %v19535_v62 = vld [vmem:[#allocation134_spill] sm:$0xff]  ;;  %v19536_v9 = vld [vmem:[#allocation133_spill] sm:$0xff]  ;;  %v16697_v48 = vrot.slane %v19537_v21, %v15058_v30  ;;  %v19538_v17 = vld [vmem:[#allocation16_spill] sm:$0xff] }
 0x273   : > { %19530 = vst [vmem:[#allocation80_spill] sm:$0xff] %v16669_v46  ;;  %v5795_v51 = vsel %vm873_vm2, %v19535_v62, %v5794_v19  ;;  %11503 = vmatprep.mubr.msk.f32.mxu1 %vm12857_vm0, %v18971_v52  ;;  %12312 = vmatpush3.bf16.msra.mxu1 %v12311_v1  ;;  %v6290_v29 = vsel %vm873_vm2, %v19538_v17, %v16419_v41  ;;  %v19539_v27 = vld [vmem:[#allocation138_spill] sm:$0xff] }
 0x274   : > { %19534 = vst [vmem:[#allocation103_spill] sm:$0xff] %v16687_v2  ;;  %v5796_v44 = vsel %vm4601_vm10, %v19536_v9, %v5795_v51  ;;  %v6291_v19 = vsel %vm4601_vm10, %v19540_v18, %v6290_v29  ;;  %v12326_v22 = vpack.c.bf16 %v10218_v49, %v10217_v31  ;;  %v16708_v1 = vrot.slane %v16058_v13, %v15055_v12  ;;  %v19542_v51 = vld [vmem:[#allocation140_spill] sm:$0xff]  ;;  %v10219_v13 = vld [vmem:[%s18546_s3 + $0x150] sm:$0xff] }
 0x275   : > { %v5797_v8 = vsel %vm875_vm4, %v19539_v27, %v5796_v44  ;;  %12319 = vmatprep.subr.bf16.mxu1 %v19358_v50  ;;  %11570 = vmatmul.mubr.msk.f32.gmra.mrb[138].mxu0 %vm4633_vm13, %v6281_v35  ;;  %v6292_v41 = vsel %vm875_vm4, %v19543_v4, %v6291_v19  ;;  %v19545_v44 = vld [vmem:[#allocation29_spill] sm:$0xff]  ;;  %v19546_v29 = vld [vmem:[#allocation20_spill] sm:$0xff]  ;;  %v19548_v49 = vld [vmem:[#allocation142_spill] sm:$0xff] }
 0x276   : > { %19541 = vst [vmem:[#allocation99_spill] sm:$0xff] %v16708_v1  ;;  %v5798_v21 = vsel %vm4604_vm11, %v19542_v51, %v5797_v8  ;;  %v5801_v6 = vsel %vm4598_vm9, %v19545_v44, %v19544_v47  ;;  %v16721_v31 = vrot.slane %v19546_v29, %v15058_v30  ;;  %v10220_v35 = vld [vmem:[%s18546_s3 + $0x158] sm:$0xff]  ;;  %11504 = vmatmul.mubr.msk.f32.gmra.mrb[128].mxu1 %vm4633_vm13, %v5793_v58  ;;  %v19549_v29 = vld [vmem:[#allocation18_spill] sm:$0xff] }
 0x277   : > { %11572 = vmatprep.mubr.msk.f32.mxu0 %vm12857_vm0, %v18971_v52  ;;  %v5799_v8 = vsel %vm877_vm5, %v16669_v46, %v5798_v21  ;;  %v6293_v19 = vsel %vm4604_vm11, %v19548_v49, %v6292_v41  ;;  %v5802_v10 = vsel %vm873_vm2, %v19549_v29, %v5801_v6  ;;  %v19550_v47 = vld [vmem:[#allocation116_spill] sm:$0xff]  ;;  %11506 = vmatprep.mubr.msk.f32.mxu1 %vm12857_vm0, %v18971_v52  ;;  %v19553_v6 = vld [vmem:[#allocation31_spill] sm:$0xff] }
 0x278   : > { %19547 = vst [vmem:[#allocation98_spill] sm:$0xff] %v16721_v31  ;;  %v6288_v44 = vsel %vm4607_vm12, %v19550_v47, %v6287_v53  ;;  %v5800_v58 = vsel %vm4607_vm12, %v16687_v2, %v5799_v8  ;;  %v19551_v4 = vld [vmem:[#allocation8_spill] sm:$0xff]  ;;  %12327 = vmatpush3.bf16.msra.mxu0 %v12326_v22  ;;  %v16752_v46 = vrot.slane %v19553_v6, %v15058_v30  ;;  %v19554_v53 = vld [vmem:[#allocation42_spill] sm:$0xff] }
 0x279   : > { %v19552_v51 = vrot.slane %v19551_v4, %v15058_v30  ;;  %v6296_v49 = vsel %vm4598_vm9, %v16721_v31, %v19554_v53  ;;  %12328 = vmatprep.subr.bf16.mxu0 %v19358_v50  ;;  %v12329_v8 = vpack.c.bf16 %v10220_v35, %v10219_v13  ;;  %v10208_v4 = vld [vmem:[%s18546_s3 + $0x120] sm:$0xff]  ;;  %v10209_v22 = vld [vmem:[%s18546_s3 + $0x128] sm:$0xff]  ;;  %11573 = vmatmul.mubr.msk.f32.gmra.mrb[140].mxu0 %vm4633_vm13, %v6288_v44 }
 0x27a   : > { %v19556_v6 = vld [vmem:[#allocation44_spill] sm:$0xff]  ;;  %v19557_v13 = vrot.slane %v19460_v7, %v15055_v12  ;;  %v19558_v53 = vld [vmem:[#allocation38_spill] sm:$0xff]  ;;  %11507 = vmatmul.mubr.msk.f32.gmra.mrb[130].mxu1 %vm4633_vm13, %v5800_v58  ;;  %11575 = vmatprep.mubr.msk.f32.mxu0 %vm12857_vm0, %v18971_v52  ;;  %v6110_v58 = vsel %vm4598_vm9, %v19506_v20, %v19505_v32  ;;  %v19616_v20 = vld [vmem:[#allocation17_spill] sm:$0xff] }
 0x27b   : > { %v6294_v21 = vsel %vm877_vm5, %v19552_v51, %v6293_v19  ;;  %v5803_v51 = vsel %vm4601_vm10, %v16708_v1, %v5802_v10  ;;  %v19555_v19 = vld [vmem:[#allocation58_spill] sm:$0xff]  ;;  %v6580_v31 = vsel %vm4601_vm10, %v15310_v40, %v19558_v53  ;;  %11509 = vmatprep.mubr.msk.f32.mxu1 %vm12857_vm0, %v18971_v52 }
 0x27c   : > { %v6295_v41 = vsel %vm4607_vm12, %v16697_v48, %v6294_v21  ;;  %v6297_v21 = vsel %vm873_vm2, %v19555_v19, %v6296_v49  ;;  %v6107_v35 = vsel %vm4604_vm11, %v19557_v13, %v19556_v6  ;;  %v6581_v7 = vsel %vm875_vm4, %v15330_v37, %v6580_v31  ;;  %12330 = vmatpush3.bf16.msra.mxu0 %v12329_v8  ;;  %v19559_v6 = vld [vmem:[#allocation43_spill] sm:$0xff]  ;;  %v19560_v8 = vld [vmem:[#allocation61_spill] sm:$0xff] }
 0x27d   : > { %v6298_v10 = vsel %vm4601_vm10, %v16752_v46, %v6297_v21  ;;  %v6108_v44 = vsel %vm877_vm5, %v19509_v56, %v6107_v35  ;;  %v12320_v49 = vpack.c.bf16 %v10209_v22, %v10208_v4  ;;  %v6582_v53 = vsel %vm4604_vm11, %v19559_v6, %v6581_v7  ;;  %12337 = vmatprep.subr.bf16.mxu0 %v19358_v50  ;;  %v19561_v35 = vld [vmem:[#allocation106_spill] sm:$0xff] }
 0x27e   : > { %v6109_v40 = vsel %vm4607_vm12, %v19504_v23, %v6108_v44  ;;  %v6111_v21 = vsel %vm873_vm2, %v19507_v63, %v6110_v58  ;;  %v6585_v37 = vsel %vm4598_vm9, %v19508_v59, %v15514_v3  ;;  %v6094_v31 = vrot.slane %v16397_v38, %v15055_v12  ;;  %11576 = vmatmul.mubr.msk.f32.gmra.mrb[142].mxu0 %vm4633_vm13, %v6295_v41  ;;  %v19562_v59 = vld [vmem:[#allocation67_spill] sm:$0xff] }
 0x27f   : > { %v6583_v4 = vsel %vm877_vm5, %v19524_v61, %v6582_v53  ;;  %v6112_v22 = vsel %vm4601_vm10, %v19560_v8, %v6111_v21  ;;  %v6586_v13 = vsel %vm873_vm2, %v19513_v34, %v6585_v37  ;;  %v6118_v3 = vsel %vm873_vm2, %v19523_v16, %v19561_v35  ;;  %11510 = vmatmul.mubr.msk.f32.gmra.mrb[132].mxu1 %vm4633_vm13, %v5803_v51  ;;  %v19564_v21 = vld [vmem:[#allocation135_spill] sm:$0xff] }
 0x280   : > { %11578 = vmatprep.mubr.msk.f32.mxu0 %vm12857_vm0, %v18971_v52  ;;  %v6113_v38 = vsel %vm875_vm4, %v19514_v24, %v6112_v22  ;;  %v6587_v61 = vsel %vm4601_vm10, %v19562_v59, %v6586_v13  ;;  %v6119_v41 = vsel %vm4601_vm10, %v19525_v25, %v6118_v3  ;;  %11543 = vmatprep.mubr.msk.f32.mxu1 %vm12857_vm0, %v18971_v52  ;;  %v10210_v37 = vld [vmem:[%s18546_s3 + $0x130] sm:$0xff]  ;;  %v10211_v22 = vld [vmem:[%s18546_s3 + $0x138] sm:$0xff]  ;;  %v10235_v3 = vld [vmem:[%s18546_s3 + $0x180] sm:$0xff] }
 0x281   : > { %v6114_v34 = vsel %vm4604_vm11, %v19520_v14, %v6113_v38  ;;  %v6588_v51 = vsel %vm875_vm4, %v15630_v45, %v6587_v61  ;;  %v6120_v44 = vsel %vm875_vm4, %v19526_v39, %v6119_v41  ;;  %v16832_v7 = vsel %vm4598_vm9, %v6094_v31, %v16643_v36  ;;  %v19628_v14 = vld [vmem:[#allocation9_spill] sm:$0xff] }
 0x282   : > { %19563 = vst [vmem:[#allocation28_spill] sm:$0xff] %v16832_v7  ;;  %v6115_v58 = vsel %vm877_vm5, %v16604_v26, %v6114_v34  ;;  %v6589_v6 = vsel %vm4604_vm11, %v19350_v57, %v6588_v51  ;;  %v6121_v53 = vsel %vm4604_vm11, %v19527_v55, %v6120_v44  ;;  %v6593_v45 = vsel %vm873_vm2, %v19519_v28, %v19564_v21  ;;  %v19568_v44 = vld [vmem:[#allocation141_spill] sm:$0xff] }
 0x283   : > { %11579 = vmatmul.mubr.msk.f32.gmra.mrb[144].mxu0 %vm4633_vm13, %v6298_v10  ;;  %v6584_v57 = vsel %vm4607_vm12, %v15495_v42, %v6583_v4  ;;  %v6590_v13 = vsel %vm877_vm5, %v15651_v33, %v6589_v6  ;;  %v6122_v35 = vsel %vm877_vm5, %v16643_v36, %v6121_v53  ;;  %v6594_v28 = vsel %vm4601_vm10, %v15774_v5, %v6593_v45  ;;  %v10236_v10 = vld [vmem:[%s18546_s3 + $0x188] sm:$0xff]  ;;  %v19565_v33 = vld [vmem:[#allocation100_spill] sm:$0xff] }
 0x284   : > { %11544 = vmatmul.mubr.msk.f32.vlgmr.msra.gmra.mrb[134].mxu1 %vm4633_vm13, %v6109_v40  ;;  %11612 = vmatprep.mubr.msk.f32.mxu0 %vm12857_vm0, %v18971_v52  ;;  %v6116_v42 = vsel %vm4607_vm12, %v19516_v60, %v6115_v58  ;;  %v6591_v4 = vsel %vm4607_vm12, %v19565_v33, %v6590_v13  ;;  %v6595_v5 = vsel %vm875_vm4, %v15780_v43, %v6594_v28  ;;  %v19569_v58 = vld [vmem:[#allocation29_spill] sm:$0xff]  ;;  %v19571_v53 = vld [vmem:[#allocation142_spill] sm:$0xff]  ;;  %v19573_v28 = vld [vmem:[#allocation147_spill] sm:$0xff] }
 0x285   : > { %12321 = vmatpush3.bf16.msra.mxu1 %v12320_v49  ;;  %11546 = vmatprep.mubr.msk.f32.mxu1 %vm12857_vm0, %v18971_v52  ;;  %v6596_v38 = vsel %vm4604_vm11, %v19528_v54, %v6595_v5  ;;  %v12323_v40 = vpack.c.bf16 %v10211_v22, %v10210_v37  ;;  %v6124_v59 = vsel %vm4598_vm9, %v19535_v62, %v19532_v0  ;;  %v10237_v37 = vld [vmem:[%s18546_s3 + $0x190] sm:$0xff]  ;;  %v10238_v22 = vld [vmem:[%s18546_s3 + $0x198] sm:$0xff] }
 0x286   : > { %v6123_v61 = vsel %vm4607_vm12, %v6094_v31, %v6122_v35  ;;  %12322 = vmatprep.subr.bf16.mxu1 %v19358_v50  ;;  %v6125_v41 = vsel %vm873_vm2, %v19536_v9, %v6124_v59  ;;  %v6599_v43 = vsel %vm4598_vm9, %v19538_v17, %v15956_v11  ;;  %v12338_v49 = vpack.c.bf16 %v10236_v10, %v10235_v3  ;;  %v19567_v11 = vld [vmem:[#allocation140_spill] sm:$0xff]  ;;  %v19574_v10 = vld [vmem:[#allocation30_spill] sm:$0xff]  ;;  %v19576_v59 = vld [vmem:[#allocation145_spill] sm:$0xff] }
 0x287   : > { %11613 = vmatmul.mubr.msk.f32.vlgmr.msra.gmra.mrb[146].mxu0 %vm4633_vm13, %v6584_v57  ;;  %v6597_v54 = vsel %vm877_vm5, %v19550_v47, %v6596_v38  ;;  %v6126_v34 = vsel %vm4601_vm10, %v19539_v27, %v6125_v41  ;;  %v6600_v31 = vsel %vm873_vm2, %v19540_v18, %v6599_v43  ;;  %v16896_v51 = vrot.slane %v16516_v15, %v15055_v12  ;;  %v19570_v18 = vld [vmem:[#allocation92_spill] sm:$0xff]  ;;  %v19575_v38 = vld [vmem:[#allocation98_spill] sm:$0xff]  ;;  %v19612_v9 = vld [vmem:[#allocation117_spill] sm:$0xff] }
 0x288   : > { %11547 = vmatmul.mubr.msk.f32.gmra.mrb[136].mxu1 %vm4633_vm13, %v6116_v42  ;;  %11615 = vmatprep.mubr.msk.f32.mxu0 %vm12857_vm0, %v18971_v52  ;;  %v6127_v17 = vsel %vm875_vm4, %v19567_v11, %v6126_v34  ;;  %v6601_v47 = vsel %vm4601_vm10, %v19568_v44, %v6600_v31  ;;  %v6131_v6 = vsel %vm4598_vm9, %v19549_v29, %v19569_v58  ;;  %v19572_v57 = vld [vmem:[#allocation120_spill] sm:$0xff]  ;;  %v19577_v43 = vld [vmem:[#allocation42_spill] sm:$0xff] }
 0x289   : > { %19566 = vst [vmem:[#allocation25_spill] sm:$0xff] %v16896_v51  ;;  %11549 = vmatprep.mubr.msk.f32.mxu1 %vm12857_vm0, %v18971_v52  ;;  %12324 = vmatpush3.bf16.msra.mxu1 %v12323_v40  ;;  %v6128_v15 = vsel %vm4604_vm11, %v19570_v18, %v6127_v17  ;;  %v6602_v21 = vsel %vm875_vm4, %v19571_v53, %v6601_v47  ;;  %v19580_v31 = vld [vmem:[#allocation34_spill] sm:$0xff]  ;;  %v19581_v47 = vld [vmem:[#allocation51_spill] sm:$0xff]  ;;  %v19583_v53 = vld [vmem:[#allocation72_spill] sm:$0xff] }
 0x28a   : > { %v6132_v45 = vsel %vm873_vm2, %v16708_v1, %v6131_v6  ;;  %v6598_v13 = vsel %vm4607_vm12, %v19572_v57, %v6597_v54  ;;  %v6129_v35 = vsel %vm877_vm5, %v16687_v2, %v6128_v15  ;;  %v6603_v3 = vsel %vm4604_vm11, %v19573_v28, %v6602_v21  ;;  %12339 = vmatpush3.bf16.msra.mxu0 %v12338_v49  ;;  %v19579_v54 = vld [vmem:[#allocation49_spill] sm:$0xff]  ;;  %v19582_v6 = vld [vmem:[#allocation48_spill] sm:$0xff]  ;;  %v19610_v11 = vld [vmem:[#allocation94_spill] sm:$0xff] }
 0x28b   : > { %v6577_v42 = vrot.slane %v19574_v10, %v15058_v30  ;;  %11616 = vmatmul.mubr.msk.f32.gmra.mrb[148].mxu0 %vm4633_vm13, %v6591_v4  ;;  %v6604_v33 = vsel %vm877_vm5, %v16697_v48, %v6603_v3  ;;  %v6133_v5 = vsel %vm4601_vm10, %v16896_v51, %v6132_v45  ;;  %v6606_v40 = vsel %vm4598_vm9, %v19555_v19, %v19575_v38  ;;  %v10227_v44 = vld [vmem:[%s18546_s3 + $0x168] sm:$0xff]  ;;  %v19600_v51 = vld [vmem:[#allocation95_spill] sm:$0xff]  ;;  %v19615_v0 = vld [vmem:[#allocation124_spill] sm:$0xff] }
 0x28c   : > { %12340 = vmatprep.subr.bf16.mxu0 %v19358_v50  ;;  %11550 = vmatmul.mubr.msk.f32.gmra.mrb[138].mxu1 %vm4633_vm13, %v6123_v61  ;;  %v6130_v4 = vsel %vm4607_vm12, %v19576_v59, %v6129_v35  ;;  %v6607_v48 = vsel %vm873_vm2, %v16752_v46, %v6606_v40  ;;  %v12341_v41 = vpack.c.bf16 %v10238_v22, %v10237_v37  ;;  %v19578_v61 = vld [vmem:[#allocation50_spill] sm:$0xff]  ;;  %v10226_v46 = vld [vmem:[%s18546_s3 + $0x160] sm:$0xff]  ;;  %v19585_v37 = vld [vmem:[#allocation79_spill] sm:$0xff] }
 0x28d   : > { %11618 = vmatprep.mubr.msk.f32.mxu0 %vm12857_vm0, %v18971_v52  ;;  %11552 = vmatprep.mubr.msk.f32.mxu1 %vm12857_vm0, %v18971_v52  ;;  %v6605_v19 = vsel %vm4607_vm12, %v19577_v43, %v6604_v33  ;;  %v6608_v49 = vsel %vm4601_vm10, %v6577_v42, %v6607_v48  ;;  %v6435_v34 = vsel %vm4601_vm10, %v19579_v54, %v19578_v61  ;;  %v19584_v21 = vld [vmem:[#allocation93_spill] sm:$0xff]  ;;  %v19586_v22 = vld [vmem:[#allocation26_spill] sm:$0xff]  ;;  %v19587_v35 = vld [vmem:[#allocation47_spill] sm:$0xff] }
 0x28e   : > { %12331 = vmatprep.subr.bf16.mxu1 %v19358_v50  ;;  %12342 = vmatpush3.bf16.msra.mxu0 %v12341_v41  ;;  %v6436_v17 = vsel %vm875_vm4, %v19580_v31, %v6435_v34  ;;  %v6890_v15 = vsel %vm4601_vm10, %v19582_v6, %v19581_v47  ;;  %v6440_v45 = vsel %vm4598_vm9, %v19584_v21, %v19583_v53  ;;  %v19588_v3 = vld [vmem:[#allocation65_spill] sm:$0xff]  ;;  %v19590_v40 = vld [vmem:[#allocation88_spill] sm:$0xff]  ;;  %v19593_v54 = vld [vmem:[#allocation71_spill] sm:$0xff] }
 0x28f   : > { %v6895_v57 = vsel %vm4598_vm9, %v19586_v22, %v19585_v37  ;;  %11619 = vmatmul.mubr.msk.f32.gmra.mrb[150].mxu0 %vm4633_vm13, %v6598_v13  ;;  %v6437_v28 = vsel %vm4604_vm11, %v19587_v35, %v6436_v17  ;;  %v6891_v42 = vsel %vm875_vm4, %v19588_v3, %v6890_v15  ;;  %v19589_v33 = vld [vmem:[#allocation81_spill] sm:$0xff]  ;;  %v19592_v43 = vld [vmem:[#allocation60_spill] sm:$0xff]  ;;  %v12332_v17 = vpack.c.bf16 %v10227_v44, %v10226_v46  ;;  %v19594_v47 = vld [vmem:[#allocation82_spill] sm:$0xff] }
 0x290   : > { %v6441_v38 = vsel %vm873_vm2, %v19589_v33, %v6440_v45  ;;  %v6896_v48 = vsel %vm873_vm2, %v19590_v40, %v6895_v57  ;;  %11553 = vmatmul.mubr.msk.f32.gmra.mrb[140].mxu1 %vm4633_vm13, %v6130_v4  ;;  %11621 = vmatprep.mubr.msk.f32.mxu0 %vm12857_vm0, %v18971_v52  ;;  %v19591_v41 = vld [vmem:[#allocation73_spill] sm:$0xff]  ;;  %v6892_v61 = vsel %vm4604_vm11, %v19592_v43, %v6891_v42  ;;  %v19596_v45 = vld [vmem:[#allocation84_spill] sm:$0xff]  ;;  %v19617_v29 = vld [vmem:[#allocation22_spill] sm:$0xff] }
 0x291   : > { %v6438_v13 = vsel %vm877_vm5, %v19591_v41, %v6437_v28  ;;  %v6442_v34 = vsel %vm4601_vm10, %v19593_v54, %v6441_v38  ;;  %11555 = vmatprep.mubr.msk.f32.mxu1 %vm12857_vm0, %v18971_v52  ;;  %v6893_v6 = vsel %vm877_vm5, %v19594_v47, %v6892_v61  ;;  %v19595_v4 = vld [vmem:[#allocation89_spill] sm:$0xff]  ;;  %v6897_v57 = vsel %vm4601_vm10, %v19596_v45, %v6896_v48  ;;  %v19597_v28 = vld [vmem:[#allocation74_spill] sm:$0xff]  ;;  %v19601_v46 = vld [vmem:[#allocation104_spill] sm:$0xff] }
 0x292   : > { %v6443_v15 = vsel %vm875_vm4, %v19595_v4, %v6442_v34  ;;  %v6439_v41 = vsel %vm4607_vm12, %v19597_v28, %v6438_v13  ;;  %v19598_v42 = vld [vmem:[#allocation101_spill] sm:$0xff]  ;;  %v19599_v38 = vld [vmem:[#allocation102_spill] sm:$0xff]  ;;  %v6447_v44 = vsel %vm4598_vm9, %v19601_v46, %v19600_v51  ;;  %12349 = vmatprep.subr.bf16.mxu0 %v19358_v50  ;;  %v19602_v61 = vld [vmem:[#allocation83_spill] sm:$0xff] }
 0x293   : > { %v6444_v8 = vsel %vm4604_vm11, %v19598_v42, %v6443_v15  ;;  %v6898_v39 = vsel %vm875_vm4, %v19599_v38, %v6897_v57  ;;  %11622 = vmatmul.mubr.msk.f32.gmra.mrb[152].mxu0 %vm4633_vm13, %v6605_v19  ;;  %v6894_v48 = vsel %vm4607_vm12, %v19602_v61, %v6893_v6  ;;  %v19603_v34 = vld [vmem:[#allocation85_spill] sm:$0xff]  ;;  %v19604_v47 = vld [vmem:[#allocation108_spill] sm:$0xff]  ;;  %v10228_v38 = vld [vmem:[%s18546_s3 + $0x170] sm:$0xff] }
 0x294   : > { %v6445_v13 = vsel %vm877_vm5, %v19603_v34, %v6444_v8  ;;  %v6899_v4 = vsel %vm4604_vm11, %v19604_v47, %v6898_v39  ;;  %v19605_v15 = vld [vmem:[#allocation125_spill] sm:$0xff]  ;;  %v10229_v19 = vld [vmem:[%s18546_s3 + $0x178] sm:$0xff]  ;;  %11556 = vmatmul.mubr.msk.f32.gmra.mrb[142].mxu1 %vm4633_vm13, %v6133_v5  ;;  %11624 = vmatprep.mubr.msk.f32.mxu0 %vm12857_vm0, %v18971_v52 }
 0x295   : > { %v6448_v57 = vsel %vm873_vm2, %v19605_v15, %v6447_v44  ;;  %v19606_v8 = vld [vmem:[#allocation109_spill] sm:$0xff]  ;;  %v19607_v39 = vld [vmem:[#allocation112_spill] sm:$0xff]  ;;  %v19608_v44 = vld [vmem:[#allocation119_spill] sm:$0xff]  ;;  %11589 = vmatprep.mubr.msk.f32.mxu1 %vm12857_vm0, %v18971_v52  ;;  %v6446_v24 = vsel %vm4607_vm12, %v19610_v11, %v6445_v13  ;;  %v12335_v1 = vpack.c.bf16 %v10229_v19, %v10228_v38  ;;  %v6455_v13 = vsel %vm873_vm2, %v19617_v29, %v19616_v20 }
 0x296   : > { %v6900_v6 = vsel %vm877_vm5, %v19606_v8, %v6899_v4  ;;  %v6449_v18 = vsel %vm4601_vm10, %v19607_v39, %v6448_v57  ;;  %v19609_v15 = vld [vmem:[#allocation150_spill] sm:$0xff]  ;;  %v19611_v5 = vld [vmem:[#allocation113_spill] sm:$0xff]  ;;  %v19613_v4 = vld [vmem:[#allocation131_spill] sm:$0xff] }
 0x297   : > { %v6902_v25 = vsel %vm4598_vm9, %v19609_v15, %v19608_v44  ;;  %v6901_v27 = vsel %vm4607_vm12, %v19611_v5, %v6900_v6  ;;  %v6450_v16 = vsel %vm875_vm4, %v19612_v9, %v6449_v18  ;;  %v19614_v57 = vld [vmem:[#allocation114_spill] sm:$0xff]  ;;  %11625 = vmatmul.mubr.msk.f32.gmra.mrb[154].mxu0 %vm4633_vm13, %v6608_v49  ;;  %v19619_v18 = vld [vmem:[#allocation132_spill] sm:$0xff]  ;;  %v19624_v49 = vld [vmem:[#allocation13_spill] sm:$0xff] }
 0x298   : > { %v6903_v62 = vsel %vm873_vm2, %v19613_v4, %v6902_v25  ;;  %v6451_v7 = vsel %vm4604_vm11, %v19614_v57, %v6450_v16  ;;  %v19618_v6 = vld [vmem:[#allocation126_spill] sm:$0xff]  ;;  %v19622_v16 = vld [vmem:[#allocation23_spill] sm:$0xff]  ;;  %v10253_v38 = vld [vmem:[%s18546_s3 + $0x1c0] sm:$0xff]  ;;  %11590 = vmatmul.mubr.msk.f32.vlgmr.msra.gmra.mrb[144].mxu1 %vm4633_vm13, %v6439_v41  ;;  %11658 = vmatprep.mubr.msk.f32.mxu0 %vm12857_vm0, %v18971_v52 }
 0x299   : > { %v6904_v63 = vsel %vm4601_vm10, %v19615_v0, %v6903_v62  ;;  %v6452_v58 = vsel %vm877_vm5, %v19618_v6, %v6451_v7  ;;  %v19620_v25 = vld [vmem:[#allocation146_spill] sm:$0xff]  ;;  %v6456_v62 = vsel %vm4601_vm10, %v19622_v16, %v6455_v13  ;;  %v19625_v13 = vld [vmem:[#allocation33_spill] sm:$0xff]  ;;  %12333 = vmatpush3.bf16.msra.mxu1 %v12332_v17  ;;  %11592 = vmatprep.mubr.msk.f32.mxu1 %vm12857_vm0, %v18971_v52  ;;  %v19626_v59 = vld [vmem:[#allocation128_spill] sm:$0xff] }
 0x29a   : > { %v6905_v60 = vsel %vm875_vm4, %v19619_v18, %v6904_v63  ;;  %v17057_v4 = vrot.slane %v19620_v25, %v15055_v12  ;;  %v10254_v20 = vld [vmem:[%s18546_s3 + $0x1c8] sm:$0xff]  ;;  %v6457_v19 = vsel %vm875_vm4, %v19624_v49, %v6456_v62  ;;  %v6867_v25 = vrot.slane %v19625_v13, %v15058_v30  ;;  %v19627_v41 = vld [vmem:[#allocation139_spill] sm:$0xff]  ;;  %12334 = vmatprep.subr.bf16.mxu1 %v19358_v50  ;;  %v19632_v44 = vld [vmem:[#allocation36_spill] sm:$0xff] }
 0x29b   : > { %v19623_v63 = vld [vmem:[#allocation129_spill] sm:$0xff]  ;;  %v6453_v32 = vsel %vm4607_vm12, %v19626_v59, %v6452_v58  ;;  %v6458_v36 = vsel %vm4604_vm11, %v19628_v14, %v6457_v19  ;;  %v19631_v17 = vld [vmem:[#allocation19_spill] sm:$0xff]  ;;  %v19633_v2 = vld [vmem:[#allocation144_spill] sm:$0xff]  ;;  %v12350_v23 = vpack.c.bf16 %v10254_v20, %v10253_v38  ;;  %11659 = vmatmul.mubr.msk.f32.vlgmr.msra.gmra.mrb[156].mxu0 %vm4633_vm13, %v6894_v48 }
 0x29c   : > { %19621 = vst [vmem:[#allocation35_spill] sm:$0xff] %v17057_v4  ;;  %v6906_v7 = vsel %vm4604_vm11, %v19623_v63, %v6905_v60  ;;  %v19629_v60 = vld [vmem:[#allocation8_spill] sm:$0xff]  ;;  %v17091_v55 = vrot.slane %v19631_v17, %v15058_v30  ;;  %v6910_v58 = vsel %vm873_vm2, %v19633_v2, %v19632_v44  ;;  %v19634_v19 = vld [vmem:[#allocation39_spill] sm:$0xff]  ;;  %11593 = vmatmul.mubr.msk.f32.gmra.mrb[146].mxu1 %vm4633_vm13, %v6446_v24  ;;  %v19641_v59 = vld [vmem:[#allocation10_spill] sm:$0xff] }
 0x29d   : > { %v6907_v26 = vsel %vm877_vm5, %v19627_v41, %v6906_v7  ;;  %v19630_v62 = vrot.slane %v19629_v60, %v15055_v12  ;;  %v6911_v14 = vsel %vm4601_vm10, %v19634_v19, %v6910_v58  ;;  %v19635_v60 = vld [vmem:[#allocation20_spill] sm:$0xff]  ;;  %v10255_v44 = vld [vmem:[%s18546_s3 + $0x1d0] sm:$0xff]  ;;  %11661 = vmatprep.mubr.msk.f32.mxu0 %vm12857_vm0, %v18971_v52  ;;  %11595 = vmatprep.mubr.msk.f32.mxu1 %vm12857_vm0, %v18971_v52 }
 0x29e   : > { %v10256_v48 = vld [vmem:[%s18546_s3 + $0x1d8] sm:$0xff]  ;;  %12336 = vmatpush3.bf16.msra.mxu1 %v12335_v1  ;;  %12351 = vmatpush3.bf16.msra.mxu0 %v12350_v23 }
 0x29f   : > { %v6459_v13 = vsel %vm877_vm5, %v19630_v62, %v6458_v36  ;;  %v17103_v36 = vrot.slane %v19635_v60, %v15055_v12  ;;  %v19636_v62 = vld [vmem:[#allocation31_spill] sm:$0xff]  ;;  %v19637_v38 = vld [vmem:[#allocation12_spill] sm:$0xff]  ;;  %v19639_v60 = vld [vmem:[#allocation149_spill] sm:$0xff]  ;;  %v12353_v37 = vpack.c.bf16 %v10256_v48, %v10255_v44  ;;  %11662 = vmatmul.mubr.msk.f32.gmra.mrb[158].mxu0 %vm4633_vm13, %v6901_v27  ;;  %12352 = vmatprep.subr.bf16.mxu0 %v19358_v50 }
 0x2a0   : > { %v6460_v7 = vsel %vm4607_vm12, %v17057_v4, %v6459_v13  ;;  %v17107_v17 = vrot.slane %v19636_v62, %v15055_v12  ;;  %v6912_v20 = vsel %vm875_vm4, %v19637_v38, %v6911_v14  ;;  %v19638_v13 = vld [vmem:[#allocation130_spill] sm:$0xff]  ;;  %v17126_v62 = vrot.slane %v19639_v60, %v15058_v30  ;;  %v19640_v4 = vld [vmem:[#allocation152_spill] sm:$0xff]  ;;  %v19642_v14 = vld [vmem:[#allocation153_spill] sm:$0xff]  ;;  %11596 = vmatmul.mubr.msk.f32.gmra.mrb[148].mxu1 %vm4633_vm13, %v6453_v32 }
 0x2a1   : > { %v17122_v58 = vrot.slane %v19638_v13, %v15058_v30  ;;  %v6913_v24 = vsel %vm4604_vm11, %v19640_v4, %v6912_v20  ;;  %v6461_v5 = vsel %vm4598_vm9, %v17103_v36, %v19641_v59  ;;  %v19643_v38 = vld [vmem:[#allocation154_spill] sm:$0xff]  ;;  %v19644_v30 = vld [vmem:[#allocation53_spill] sm:$0xff]  ;;  %11664 = vmatprep.mubr.msk.f32.mxu0 %vm12857_vm0, %v18971_v52  ;;  %v19645_v23 = vld [vmem:[#allocation40_spill] sm:$0xff]  ;;  %11598 = vmatprep.mubr.msk.f32.mxu1 %vm12857_vm0, %v18971_v52 }
 0x2a2   : > { %v6916_v13 = vsel %vm4598_vm9, %v19643_v38, %v19642_v14  ;;  %v6914_v51 = vsel %vm877_vm5, %v6867_v25, %v6913_v24  ;;  %v6462_v41 = vsel %vm873_vm2, %v19644_v30, %v6461_v5  ;;  %v6725_v27 = vsel %vm4601_vm10, %v19580_v31, %v19645_v23  ;;  %v19646_v5 = vld [vmem:[#allocation136_spill] sm:$0xff]  ;;  %12343 = vmatprep.subr.bf16.mxu1 %v19358_v50  ;;  %v19648_v48 = vld [vmem:[#allocation70_spill] sm:$0xff]  ;;  %v19653_v23 = vld [vmem:[#allocation57_spill] sm:$0xff] }
 0x2a3   : > { %v6917_v1 = vsel %vm873_vm2, %v17122_v58, %v6916_v13  ;;  %v6915_v20 = vsel %vm4607_vm12, %v17091_v55, %v6914_v51  ;;  %v6463_v59 = vsel %vm4601_vm10, %v17107_v17, %v6462_v41  ;;  %v6908_v51 = vsel %vm4607_vm12, %v19646_v5, %v6907_v26  ;;  %12354 = vmatpush3.bf16.msra.mxu0 %v12353_v37  ;;  %v19647_v41 = vld [vmem:[#allocation63_spill] sm:$0xff]  ;;  %v10245_v24 = vld [vmem:[%s18546_s3 + $0x1a8] sm:$0xff] }
 0x2a4   : > { %v6918_v14 = vsel %vm4601_vm10, %v17126_v62, %v6917_v1  ;;  %v6730_v25 = vsel %vm4598_vm9, %v19589_v33, %v19584_v21  ;;  %v6726_v32 = vsel %vm875_vm4, %v19587_v35, %v6725_v27  ;;  %v7200_v31 = vsel %vm4601_vm10, %v19588_v3, %v19647_v41  ;;  %11665 = vmatmul.mubr.msk.f32.gmra.mrb[160].mxu0 %vm4633_vm13, %v6908_v51  ;;  %v19649_v35 = vld [vmem:[#allocation11_spill] sm:$0xff]  ;;  %v19650_v3 = vld [vmem:[#allocation41_spill] sm:$0xff] }
 0x2a5   : > { %v6731_v26 = vsel %vm873_vm2, %v19593_v54, %v6730_v25  ;;  %v7205_v44 = vsel %vm4598_vm9, %v19590_v40, %v19586_v22  ;;  %v6737_v33 = vsel %vm4598_vm9, %v19649_v35, %v19601_v46  ;;  %v7212_v54 = vsel %vm4598_vm9, %v19650_v3, %v19609_v15  ;;  %11599 = vmatmul.mubr.msk.f32.gmra.mrb[150].mxu1 %vm4633_vm13, %v6460_v7  ;;  %v19651_v40 = vld [vmem:[#allocation59_spill] sm:$0xff]  ;;  %v19661_v3 = vld [vmem:[#allocation113_spill] sm:$0xff] }
 0x2a6   : > { %v6732_v21 = vsel %vm4601_vm10, %v19648_v48, %v6731_v26  ;;  %v7206_v37 = vsel %vm873_vm2, %v19596_v45, %v7205_v44  ;;  %11667 = vmatprep.mubr.msk.f32.mxu0 %vm12857_vm0, %v18971_v52  ;;  %11601 = vmatprep.mubr.msk.f32.mxu1 %vm12857_vm0, %v18971_v52  ;;  %v6727_v45 = vsel %vm4604_vm11, %v19651_v40, %v6726_v32  ;;  %v19652_v1 = vld [vmem:[#allocation91_spill] sm:$0xff]  ;;  %v19655_v26 = vld [vmem:[#allocation21_spill] sm:$0xff] }
 0x2a7   : > { %v6733_v22 = vsel %vm875_vm4, %v19598_v42, %v6732_v21  ;;  %v7201_v46 = vsel %vm875_vm4, %v19592_v43, %v7200_v31  ;;  %v6738_v15 = vsel %vm873_vm2, %v19607_v39, %v6737_v33  ;;  %v7213_v7 = vsel %vm873_vm2, %v19615_v0, %v7212_v54  ;;  %v10244_v42 = vld [vmem:[%s18546_s3 + $0x1a0] sm:$0xff]  ;;  %v19656_v44 = vld [vmem:[#allocation151_spill] sm:$0xff] }
 0x2a8   : > { %v6728_v13 = vsel %vm877_vm5, %v19597_v28, %v6727_v45  ;;  %v7207_v43 = vsel %vm4601_vm10, %v19652_v1, %v7206_v37  ;;  %v6739_v39 = vsel %vm4601_vm10, %v19612_v9, %v6738_v15  ;;  %v7053_v0 = vsel %vm4598_vm9, %v19509_v56, %v19653_v23  ;;  %11668 = vmatmul.mubr.msk.f32.gmra.mrb[162].mxu0 %vm4633_vm13, %v6915_v20  ;;  %v19654_v9 = vld [vmem:[#allocation54_spill] sm:$0xff] }
 0x2a9   : > { %v6734_v28 = vsel %vm4604_vm11, %v19603_v34, %v6733_v22  ;;  %v7208_v27 = vsel %vm875_vm4, %v19604_v47, %v7207_v43  ;;  %v17223_v51 = vcombine.high %v19639_v60, %v19639_v60  ;;  %11602 = vmatmul.mubr.msk.f32.gmra.mrb[152].mxu1 %vm4633_vm13, %v6463_v59  ;;  %11670 = vmatprep.mubr.msk.f32.mxu0 %vm12857_vm0, %v18971_v52  ;;  %v19662_v22 = vld [vmem:[#allocation12_spill] sm:$0xff] }
 0x2aa   : > { %v7202_v25 = vsel %vm4604_vm11, %v19654_v9, %v7201_v46  ;;  %v7214_v20 = vsel %vm4601_vm10, %v19619_v18, %v7213_v7  ;;  %11635 = vmatprep.mubr.msk.f32.mxu1 %vm12857_vm0, %v18971_v52  ;;  %v6729_v34 = vsel %vm4607_vm12, %v19583_v53, %v6728_v13  ;;  %v12344_v47 = vpack.c.bf16 %v10245_v24, %v10244_v42  ;;  %v10246_v18 = vld [vmem:[%s18546_s3 + $0x1b0] sm:$0xff]  ;;  %v10247_v53 = vld [vmem:[%s18546_s3 + $0x1b8] sm:$0xff]  ;;  %v19664_v46 = vld [vmem:[#allocation9_spill] sm:$0xff] }
 0x2ab   : > { %v7203_v32 = vsel %vm877_vm5, %v19602_v61, %v7202_v25  ;;  %v6740_v59 = vsel %vm875_vm4, %v19614_v57, %v6739_v39  ;;  %v6735_v41 = vsel %vm877_vm5, %v19610_v11, %v6734_v28  ;;  %v7209_v31 = vsel %vm4604_vm11, %v19606_v8, %v7208_v27  ;;  %v19665_v13 = vld [vmem:[#allocation55_spill] sm:$0xff]  ;;  %v19666_v24 = vld [vmem:[#allocation148_spill] sm:$0xff]  ;;  %v19670_v9 = vld [vmem:[#allocation122_spill] sm:$0xff] }
 0x2ac   : > { %v6744_v61 = vsel %vm4598_vm9, %v19617_v29, %v19655_v26  ;;  %v7219_v57 = vsel %vm4598_vm9, %v19633_v2, %v19656_v44  ;;  %11671 = vmatmul.mubr.msk.f32.gmra.mrb[164].mxu0 %vm4633_vm13, %v6918_v14  ;;  %v7215_v11 = vsel %vm875_vm4, %v19623_v63, %v7214_v20  ;;  %v6722_v48 = vrot.slane %v19574_v10, %v15055_v12  ;;  %v19667_v43 = vld [vmem:[#allocation80_spill] sm:$0xff]  ;;  %v19668_v39 = vld [vmem:[#allocation103_spill] sm:$0xff]  ;;  %v19671_v25 = vld [vmem:[#allocation37_spill] sm:$0xff] }
 0x2ad   : > { %v6745_v8 = vsel %vm873_vm2, %v19622_v16, %v6744_v61  ;;  %v6751_v21 = vsel %vm4598_vm9, %v19644_v30, %v17103_v36  ;;  %11636 = vmatmul.mubr.msk.f32.vlgmr.msra.gmra.mrb[154].mxu1 %vm4633_vm13, %v6729_v34  ;;  %11704 = vmatprep.mubr.msk.f32.mxu0 %vm12857_vm0, %v18971_v52  ;;  %v6741_v2 = vsel %vm4604_vm11, %v19618_v6, %v6740_v59  ;;  %v19657_v36 = vld [vmem:[#allocation79_spill] sm:$0xff]  ;;  %v19674_v59 = vld [vmem:[#allocation86_spill] sm:$0xff]  ;;  %v19678_v61 = vld [vmem:[#allocation5_spill] sm:$0xff] }
 0x2ae   : > { %v7220_v29 = vsel %vm873_vm2, %v19634_v19, %v7219_v57  ;;  %v6752_v16 = vsel %vm873_vm2, %v17107_v17, %v6751_v21  ;;  %12345 = vmatpush3.bf16.msra.mxu1 %v12344_v47  ;;  %11638 = vmatprep.mubr.msk.f32.mxu1 %vm12857_vm0, %v18971_v52  ;;  %v12347_v10 = vpack.c.bf16 %v10247_v53, %v10246_v18  ;;  %v19658_v19 = vld [vmem:[#allocation139_spill] sm:$0xff]  ;;  %v19659_v17 = vld [vmem:[#allocation14_spill] sm:$0xff]  ;;  %v19673_v47 = vld [vmem:[#allocation45_spill] sm:$0xff] }
 0x2af   : > { %v6746_v30 = vsel %vm4601_vm10, %v19624_v49, %v6745_v8  ;;  %v17280_v63 = vsel %vm4601_vm10, %v6722_v48, %v6752_v16  ;;  %v7204_v6 = vsel %vm4607_vm12, %v19657_v36, %v7203_v32  ;;  %12346 = vmatprep.subr.bf16.mxu1 %v19358_v50  ;;  %v7216_v14 = vsel %vm4604_vm11, %v19658_v19, %v7215_v11  ;;  %v19660_v49 = vld [vmem:[#allocation95_spill] sm:$0xff]  ;;  %v19676_v18 = vld [vmem:[#allocation137_spill] sm:$0xff]  ;;  %v19677_v53 = vld [vmem:[#allocation76_spill] sm:$0xff] }
 0x2b0   : > { %v7197_v37 = vrot.slane %v17223_v51, %v19659_v17  ;;  %v7226_v35 = vsel %vm4598_vm9, %v17122_v58, %v19643_v38  ;;  %11705 = vmatmul.mubr.msk.f32.vlgmr.msra.gmra.mrb[166].mxu0 %vm4633_vm13, %v7204_v6  ;;  %v6736_v33 = vsel %vm4607_vm12, %v19660_v49, %v6735_v41  ;;  %v7210_v54 = vsel %vm877_vm5, %v19661_v3, %v7209_v31  ;;  %v19663_v38 = vld [vmem:[#allocation128_spill] sm:$0xff]  ;;  %v19669_v28 = vld [vmem:[#allocation119_spill] sm:$0xff]  ;;  %v19681_v21 = vld [vmem:[#allocation69_spill] sm:$0xff] }
 0x2b1   : > { %v7221_v40 = vsel %vm4601_vm10, %v19662_v22, %v7220_v29  ;;  %v7227_v45 = vsel %vm873_vm2, %v17126_v62, %v7226_v35  ;;  %11639 = vmatmul.mubr.msk.f32.gmra.mrb[156].mxu1 %vm4633_vm13, %v6736_v33  ;;  %11707 = vmatprep.mubr.msk.f32.mxu0 %vm12857_vm0, %v18971_v52  ;;  %v6742_v58 = vsel %vm877_vm5, %v19663_v38, %v6741_v2  ;;  %v19675_v41 = vld [vmem:[#allocation32_spill] sm:$0xff]  ;;  %v19679_v57 = vld [vmem:[#allocation35_spill] sm:$0xff]  ;;  %v19682_v29 = vld [vmem:[#allocation33_spill] sm:$0xff] }
 0x2b2   : > { %v6747_v15 = vsel %vm875_vm4, %v19664_v46, %v6746_v30  ;;  %v17309_v7 = vsel %vm4601_vm10, %v7197_v37, %v7227_v45  ;;  %v7054_v42 = vsel %vm873_vm2, %v19665_v13, %v7053_v0  ;;  %v17315_v62 = vrot.slane %v19666_v24, %v15055_v12  ;;  %11641 = vmatprep.mubr.msk.f32.mxu1 %vm12857_vm0, %v18971_v52  ;;  %v19680_v8 = vld [vmem:[#allocation15_spill] sm:$0xff]  ;;  %v19684_v36 = vld [vmem:[#allocation90_spill] sm:$0xff]  ;;  %v19686_v17 = vld [vmem:[#allocation29_spill] sm:$0xff] }
 0x2b3   : > { %v7217_v1 = vsel %vm877_vm5, %v19646_v5, %v7216_v14  ;;  %12348 = vmatpush3.bf16.msra.mxu1 %v12347_v10  ;;  %v7074_v23 = vsel %vm4598_vm9, %v19668_v39, %v19667_v43  ;;  %v7211_v27 = vsel %vm4607_vm12, %v19669_v28, %v7210_v54  ;;  %v7222_v0 = vsel %vm875_vm4, %v19640_v4, %v7221_v40  ;;  %v19672_v5 = vld [vmem:[#allocation121_spill] sm:$0xff]  ;;  %v19685_v19 = vld [vmem:[#allocation19_spill] sm:$0xff]  ;;  %v19687_v35 = vld [vmem:[#allocation130_spill] sm:$0xff] }
 0x2b4   : > { %12355 = vmatprep.subr.bf16.mxu1 %v19358_v50  ;;  %v7067_v20 = vsel %vm4598_vm9, %v19671_v25, %v19670_v9  ;;  %11708 = vmatmul.mubr.msk.f32.gmra.mrb[168].mxu0 %vm4633_vm13, %v7211_v27  ;;  %v6743_v34 = vsel %vm4607_vm12, %v19672_v5, %v6742_v58  ;;  %v6748_v32 = vsel %vm4604_vm11, %v19673_v47, %v6747_v15  ;;  %v19683_v10 = vld [vmem:[#allocation145_spill] sm:$0xff]  ;;  %v19688_v33 = vld [vmem:[#allocation10_spill] sm:$0xff]  ;;  %v19691_v46 = vld [vmem:[#allocation99_spill] sm:$0xff] }
 0x2b5   : > { %v7060_v31 = vsel %vm4598_vm9, %v19675_v41, %v19674_v59  ;;  %v7068_v4 = vsel %vm873_vm2, %v19676_v18, %v7067_v20  ;;  %v7044_v26 = vrot.slane %v19677_v53, %v15055_v12  ;;  %11642 = vmatmul.mubr.msk.f32.gmra.mrb[158].mxu1 %vm4633_vm13, %v6743_v34  ;;  %11710 = vmatprep.mubr.msk.f32.mxu0 %vm12857_vm0, %v18971_v52  ;;  %v19689_v22 = vld [vmem:[#allocation18_spill] sm:$0xff]  ;;  %v19692_v24 = vld [vmem:[#allocation87_spill] sm:$0xff]  ;;  %v19693_v28 = vld [vmem:[#allocation153_spill] sm:$0xff] }
 0x2b6   : > { %v7218_v44 = vsel %vm4607_vm12, %v19678_v61, %v7217_v1  ;;  %v6749_v11 = vsel %vm877_vm5, %v19679_v57, %v6748_v32  ;;  %11644 = vmatprep.mubr.msk.f32.mxu1 %vm12857_vm0, %v18971_v52  ;;  %v7223_v48 = vsel %vm4604_vm11, %v19680_v8, %v7222_v0  ;;  %v7055_v2 = vsel %vm4601_vm10, %v19681_v21, %v7054_v42  ;;  %v19690_v38 = vld [vmem:[#allocation66_spill] sm:$0xff]  ;;  %v19694_v0 = vld [vmem:[#allocation105_spill] sm:$0xff]  ;;  %v10265_v5 = vld [vmem:[%s18546_s3 + $0x1f8] sm:$0xff] }
 0x2b7   : > { %v7032_v16 = vrot.slane %v19682_v29, %v15055_v12  ;;  %v7075_v30 = vsel %vm873_vm2, %v19683_v10, %v7074_v23  ;;  %v7061_v6 = vsel %vm873_vm2, %v19684_v36, %v7060_v31  ;;  %v7036_v14 = vrot.slane %v19685_v19, %v15055_v12  ;;  %v10263_v42 = vld [vmem:[%s18546_s3 + $0x1e8] sm:$0xff]  ;;  %v10264_v20 = vld [vmem:[%s18546_s3 + $0x1f0] sm:$0xff]  ;;  %v19695_v32 = vld [vmem:[#allocation56_spill] sm:$0xff] }
 0x2b8   : > { %v7076_v37 = vsel %vm4601_vm10, %v19686_v17, %v7075_v30  ;;  %v7048_v49 = vrot.slane %v19687_v35, %v15055_v12  ;;  %11711 = vmatmul.mubr.msk.f32.gmra.mrb[170].mxu0 %vm4633_vm13, %v7218_v44  ;;  %v6750_v3 = vsel %vm4607_vm12, %v19688_v33, %v6749_v11  ;;  %v7224_v54 = vsel %vm877_vm5, %v17091_v55, %v7223_v48  ;;  %v19696_v18 = vld [vmem:[#allocation123_spill] sm:$0xff]  ;;  %v19697_v61 = vld [vmem:[#allocation28_spill] sm:$0xff]  ;;  %v19698_v11 = vld [vmem:[#allocation78_spill] sm:$0xff] }
 0x2b9   : > { %v7077_v40 = vsel %vm875_vm4, %v19689_v22, %v7076_v37  ;;  %v7052_v45 = vrot.slane %v19639_v60, %v15055_v12  ;;  %11645 = vmatmul.mubr.msk.f32.gmra.mrb[160].mxu1 %vm4633_vm13, %v6750_v3  ;;  %11713 = vmatprep.mubr.msk.f32.mxu0 %vm12857_vm0, %v18971_v52  ;;  %v7056_v58 = vsel %vm875_vm4, %v19690_v38, %v7055_v2  ;;  %v10262_v60 = vld [vmem:[%s18546_s3 + $0x1e0] sm:$0xff]  ;;  %v19699_v2 = vld [vmem:[#allocation134_spill] sm:$0xff]  ;;  %v19700_v29 = vld [vmem:[#allocation111_spill] sm:$0xff] }
 0x2ba   : > { %v7078_v15 = vsel %vm4604_vm11, %v19691_v46, %v7077_v40  ;;  %v7081_v55 = vsel %vm4598_vm9, %v7044_v26, %v17315_v62  ;;  %11647 = vmatprep.mubr.msk.f32.mxu1 %vm12857_vm0, %v18971_v52  ;;  %v7062_v1 = vsel %vm4601_vm10, %v19692_v24, %v7061_v6  ;;  %v7225_v27 = vsel %vm4607_vm12, %v19693_v28, %v7224_v54  ;;  %v19702_v19 = vld [vmem:[#allocation138_spill] sm:$0xff]  ;;  %v19703_v3 = vld [vmem:[#allocation75_spill] sm:$0xff]  ;;  %v19704_v40 = vld [vmem:[#allocation140_spill] sm:$0xff] }
 0x2bb   : > { %v7079_v43 = vsel %vm877_vm5, %v7032_v16, %v7078_v15  ;;  %v7082_v23 = vsel %vm873_vm2, %v7048_v49, %v7081_v55  ;;  %v7063_v25 = vsel %vm875_vm4, %v19694_v0, %v7062_v1  ;;  %v7057_v31 = vsel %vm4604_vm11, %v19695_v32, %v7056_v58  ;;  %v4710_v1 = vpop.f32.mrb[100].mxu0 }
 0x2bc   : > { %v7080_v34 = vsel %vm4607_vm12, %v7036_v14, %v7079_v43  ;;  %v7083_v47 = vsel %vm4601_vm10, %v7052_v45, %v7082_v23  ;;  %11714 = vmatmul.mubr.msk.f32.gmra.mrb[172].mxu0 %vm4633_vm13, %v7225_v27  ;;  %v7069_v53 = vsel %vm4601_vm10, %v19696_v18, %v7068_v4  ;;  %v7358_v44 = vsel %vm873_vm2, %v19696_v18, %v19697_v61  ;;  %v19708_v23 = vld [vmem:[#allocation115_spill] sm:$0xff]  ;;  %v11384_v27 = vpop.f32.mrb[101].mxu0 }
 0x2bd   : > { %v7364_v57 = vsel %vm4598_vm9, %v19683_v10, %v19668_v39  ;;  %11648 = vmatmul.mubr.msk.f32.gmra.mrb[162].mxu1 %vm4633_vm13, %v17280_v63  ;;  %11716 = vmatprep.mubr.msk.f32.mxu0 %vm12857_vm0, %v18971_v52  ;;  %v7058_v8 = vsel %vm877_vm5, %v19698_v11, %v7057_v31  ;;  %v12356_v48 = vpack.c.bf16 %v10263_v42, %v10262_v60  ;;  %v19701_v10 = vld [vmem:[#allocation133_spill] sm:$0xff] }
 0x2be   : > { %v7359_v4 = vsel %vm4601_vm10, %v19699_v2, %v7358_v44  ;;  %11681 = vmatprep.mubr.msk.f32.mxu1 %vm12857_vm0, %v18971_v52  ;;  %v7064_v16 = vsel %vm4604_vm11, %v19700_v29, %v7063_v25  ;;  %v12359_v39 = vpack.c.bf16 %v10265_v5, %v10264_v20  ;;  %v7365_v30 = vsel %vm873_vm2, %v19686_v17, %v7364_v57  ;;  %v19710_v5 = vld [vmem:[#allocation61_spill] sm:$0xff] }
 0x2bf   : > { %v7360_v63 = vsel %vm875_vm4, %v19701_v10, %v7359_v4  ;;  %v7070_v6 = vsel %vm875_vm4, %v19699_v2, %v7069_v53  ;;  %v7366_v35 = vsel %vm4601_vm10, %v19689_v22, %v7365_v30  ;;  %v7342_v33 = vrot.slane %v17223_v51, %v15055_v12  ;;  %v19705_v22 = vld [vmem:[#allocation107_spill] sm:$0xff]  ;;  %v19706_v12 = vld [vmem:[#allocation92_spill] sm:$0xff] }
 0x2c0   : > { %v7361_v37 = vsel %vm4604_vm11, %v19702_v19, %v7360_v63  ;;  %11717 = vmatmul.mubr.msk.f32.gmra.mrb[174].mxu0 %vm4633_vm13, %v17309_v7  ;;  %v7059_v54 = vsel %vm4607_vm12, %v19703_v3, %v7058_v8  ;;  %v7367_v58 = vsel %vm875_vm4, %v19691_v46, %v7366_v35  ;;  %v7371_v15 = vsel %vm4598_vm9, %v7048_v49, %v7044_v26  ;;  %v19707_v7 = vld [vmem:[#allocation25_spill] sm:$0xff] }
 0x2c1   : > { %v7362_v17 = vsel %vm877_vm5, %v19704_v40, %v7361_v37  ;;  %11682 = vmatmul.mubr.msk.f32.vlgmr.msra.gmra.mrb[164].mxu1 %vm4633_vm13, %v7059_v54  ;;  %v7065_v55 = vsel %vm877_vm5, %v19705_v22, %v7064_v16  ;;  %v7368_v60 = vsel %vm4604_vm11, %v19707_v7, %v7367_v58  ;;  %v7372_v42 = vsel %vm873_vm2, %v7052_v45, %v7371_v15 }
 0x2c2   : > { %v7363_v51 = vsel %vm4607_vm12, %v19706_v12, %v7362_v17  ;;  %12357 = vmatpush3.bf16.msra.mxu1 %v12356_v48  ;;  %11684 = vmatprep.mubr.msk.f32.mxu1 %vm12857_vm0, %v18971_v52  ;;  %v7071_v26 = vsel %vm4604_vm11, %v19701_v10, %v7070_v6  ;;  %v7369_v49 = vsel %vm877_vm5, %v7036_v14, %v7368_v60 }
 0x2c3   : > { %v7373_v46 = vsel %vm4601_vm10, %v7342_v33, %v7372_v42  ;;  %12358 = vmatprep.subr.bf16.mxu1 %v19358_v50  ;;  %v7370_v43 = vsel %vm4607_vm12, %v17315_v62, %v7369_v49  ;;  %v7343_v45 = vsel %vm4598_vm9, %v19665_v13, %v19509_v56  ;;  %v7066_v28 = vsel %vm4607_vm12, %v19708_v23, %v7065_v55 }
 0x2c4   : > { %v7072_v14 = vsel %vm877_vm5, %v19702_v19, %v7071_v26  ;;  %v7344_v62 = vsel %vm873_vm2, %v19681_v21, %v7343_v45  ;;  %v7350_v13 = vsel %vm4598_vm9, %v19684_v36, %v19675_v41  ;;  %v19709_v41 = vld [vmem:[#allocation97_spill] sm:$0xff] }
 0x2c5   : > { %11685 = vmatmul.mubr.msk.f32.gmra.mrb[166].mxu1 %vm4633_vm13, %v7066_v28  ;;  %v7073_v56 = vsel %vm4607_vm12, %v19704_v40, %v7072_v14  ;;  %v7345_v0 = vsel %vm4601_vm10, %v19690_v38, %v7344_v62  ;;  %v7351_v21 = vsel %vm873_vm2, %v19692_v24, %v7350_v13 }
 0x2c6   : > { %11687 = vmatprep.mubr.msk.f32.mxu1 %vm12857_vm0, %v18971_v52  ;;  %12360 = vmatpush3.bf16.msra.mxu1 %v12359_v39  ;;  %v7346_v25 = vsel %vm875_vm4, %v19695_v32, %v7345_v0  ;;  %v7352_v36 = vsel %vm4601_vm10, %v19709_v41, %v7351_v21 }
 0x2c7   : > { %12505 = vmatprep.subr.bf16.mxu1 %v19358_v50  ;;  %v7353_v20 = vsel %vm875_vm4, %v19700_v29, %v7352_v36  ;;  %v7347_v38 = vsel %vm4604_vm11, %v19710_v5, %v7346_v25 }
 0x2c8   : > { %v7348_v24 = vsel %vm877_vm5, %v19703_v3, %v7347_v38 }
 0x2c9   : > { %11688 = vmatmul.mubr.msk.f32.gmra.mrb[168].mxu1 %vm4633_vm13, %v7073_v56  ;;  %v7349_v32 = vsel %vm4607_vm12, %v19674_v59, %v7348_v24 }
 0x2ca   : > { %11690 = vmatprep.mubr.msk.f32.mxu1 %vm12857_vm0, %v18971_v52 }
 0x2cd   : > { %11691 = vmatmul.mubr.msk.f32.gmra.mrb[170].mxu1 %vm4633_vm13, %v7080_v34  ;;  %v7354_v34 = vsel %vm4604_vm11, %v19705_v22, %v7353_v20 }
 0x2ce   : > { %11693 = vmatprep.mubr.msk.f32.mxu1 %vm12857_vm0, %v18971_v52  ;;  %v7355_v31 = vsel %vm877_vm5, %v19708_v23, %v7354_v34 }
 0x2d1   : > { %11694 = vmatmul.mubr.msk.f32.gmra.mrb[172].mxu1 %vm4633_vm13, %v7083_v47  ;;  %v7356_v47 = vsel %vm4607_vm12, %v19670_v9, %v7355_v31 }
 0x2d2   : > { %11727 = vmatprep.mubr.msk.f32.mxu1 %vm12857_vm0, %v18971_v52 }
 0x2d3   : > { %v4715_v59 = vpop.f32.mrb[102].mxu0 }
 0x2d4   : > { %v11387_v18 = vpop.f32.mrb[103].mxu0 }
 0x2d5   : > { %11728 = vmatmul.mubr.msk.f32.vlgmr.msra.gmra.mrb[174].mxu1 %vm4633_vm13, %v7349_v32 }
 0x2d6   : > { %11730 = vmatprep.mubr.msk.f32.mxu1 %vm12857_vm0, %v18971_v52 }
 0x2d9   : > { %11731 = vmatmul.mubr.msk.f32.gmra.mrb[176].mxu1 %vm4633_vm13, %v7356_v47 }
 0x2da   : > { %11733 = vmatprep.mubr.msk.f32.mxu1 %vm12857_vm0, %v18971_v52 }
 0x2dd   : > { %11734 = vmatmul.mubr.msk.f32.gmra.mrb[178].mxu1 %vm4633_vm13, %v7363_v51 }
 0x2de   : > { %11736 = vmatprep.mubr.msk.f32.mxu1 %vm12857_vm0, %v18971_v52 }
 0x2e1   : > { %11737 = vmatmul.mubr.msk.f32.gmra.mrb[180].mxu1 %vm4633_vm13, %v7370_v43 }
 0x2e2   : > { %11739 = vmatprep.mubr.msk.f32.mxu1 %vm12857_vm0, %v18971_v52 }
 0x2e5   : > { %11740 = vmatmul.mubr.msk.f32.gmra.mrb[182].mxu1 %vm4633_vm13, %v7373_v46 }
 0x2e6   : > { %11929 = vmatprep.mubr.msk.f32.mxu1 %vm12857_vm0, %v18971_v52 }
 0x2e8   : > { %v4720_v9 = vpop.f32.mrb[104].mxu0 }
 0x2e9   : > { %v11390_v53 = vpop.f32.mrb[105].mxu0 }
 0x2ec   : > { %v5145_v61 = vpop.f32.mrb[106].mxu0 }
 0x2ed   : > { %v11430_v44 = vpop.f32.mrb[107].mxu0 }
 0x2f1   : > { %v5150_v57 = vpop.f32.mrb[108].mxu0 }
 0x2f2   : > { %v11433_v11 = vpop.f32.mrb[109].mxu0 }
 0x2fa   : > { %v5155_v8 = vpop.f32.mrb[110].mxu0 }
 0x2fb   : > { %v11436_v48 = vpop.f32.mrb[111].mxu0 }
 0x2ff   : > { %v4725_v2 = vpop.f32.mrb[100].mxu1 }
 0x300   : > { %v11393_v4 = vpop.f32.mrb[101].mxu1 }
 0x302   : > { %v5160_v29 = vpop.f32.mrb[112].mxu0 }
 0x303   : > { %v11439_v16 = vpop.f32.mrb[113].mxu0 }
 0x309   : > { %v4730_v39 = vpop.f32.mrb[102].mxu1 }
 0x30a   : > { %v11396_v10 = vpop.f32.mrb[103].mxu1 }
 0x30d   : > { %v5165_v63 = vpop.f32.mrb[114].mxu0  ;;  %v4985_v30 = vpop.f32.mrb[104].mxu1 }
 0x30e   : > { %v11442_v6 = vpop.f32.mrb[115].mxu0  ;;  %v4986_v19 = vadd.f32 %v4985_v30, %v4710_v1  ;;  %v11407_v37 = vpop.f32.mrb[105].mxu1  ;;  %v10276_v30 = vld [vmem:[%s18548_s5 + $0x40] sm:$0xff] }
 0x30f   : > { %v10277_v6 = vld [vmem:[%s18548_s5 + $0x48] sm:$0xff] }
 0x310   : > { %v5169_v35 = vadd.f32 %v5145_v61, %v4986_v19 }
 0x312   : > { %v5595_v33 = vpop.f32.mrb[116].mxu0 }
 0x313   : > { %v11476_v3 = vpop.f32.mrb[117].mxu0 }
 0x316   : > { %v4990_v54 = vpop.f32.mrb[106].mxu1 }
 0x317   : > { %v4991_v40 = vadd.f32 %v4990_v54, %v4715_v59  ;;  %v11410_v17 = vpop.f32.mrb[107].mxu1  ;;  %v5600_v58 = vpop.f32.mrb[118].mxu0  ;;  %v10278_v54 = vld [vmem:[%s18548_s5 + $0x50] sm:$0xff] }
 0x318   : > { %v11479_v15 = vpop.f32.mrb[119].mxu0 }
 0x319   : > { %v5170_v22 = vadd.f32 %v5150_v57, %v4991_v40  ;;  %v10279_v40 = vld [vmem:[%s18548_s5 + $0x58] sm:$0xff] }
 0x31a   : > { %v12365_v15 = vpack.c.bf16 %v10279_v40, %v10278_v54 }
 0x31c   : > { %v4995_v55 = vpop.f32.mrb[108].mxu1 }
 0x31d   : > { %v4996_v12 = vadd.f32 %v4995_v55, %v4720_v9  ;;  %v11413_v51 = vpop.f32.mrb[109].mxu1 }
 0x31f   : > { %v5171_v7 = vadd.f32 %v5155_v8, %v4996_v12 }
 0x321   : > { %v5000_v42 = vpop.f32.mrb[110].mxu1 }
 0x322   : > { %v5605_v60 = vpop.f32.mrb[120].mxu0  ;;  %v5001_v49 = vadd.f32 %v5000_v42, %v4725_v2  ;;  %v11416_v46 = vpop.f32.mrb[111].mxu1  ;;  %v10282_v42 = vld [vmem:[%s18548_s5 + $0x70] sm:$0xff] }
 0x323   : > { %v11482_v26 = vpop.f32.mrb[121].mxu0 }
 0x324   : > { %v5172_v1 = vadd.f32 %v5160_v29, %v5001_v49 }
 0x326   : > { %v5610_v43 = vpop.f32.mrb[122].mxu0  ;;  %v5005_v45 = vpop.f32.mrb[112].mxu1 }
 0x327   : > { %v11485_v23 = vpop.f32.mrb[123].mxu0  ;;  %v5006_v28 = vadd.f32 %v5005_v45, %v4730_v39  ;;  %v11419_v27 = vpop.f32.mrb[113].mxu1 }
 0x328   : > { %v7578_v27 = vld [vmem:[%s18548_s5 + $0x8] sm:$0xff] }
 0x329   : > { %v5173_v14 = vadd.f32 %v5165_v63, %v5006_v28  ;;  %v7577_v28 = vld [vmem:[%s18548_s5] sm:$0xff] }
 0x32a   : > { %v5615_v62 = vpop.f32.mrb[124].mxu0 }
 0x32b   : > { %v5310_v56 = vpop.f32.mrb[114].mxu1  ;;  %v11488_v13 = vpop.f32.mrb[125].mxu0 }
 0x32c   : > { %v5334_v0 = vadd.f32 %v5310_v56, %v5169_v35  ;;  %v11453_v21 = vpop.f32.mrb[115].mxu1  ;;  %v12361_v35 = vpack.c.bf16 %v10277_v6, %v10276_v30 }
 0x32e   : > { %v5619_v25 = vadd.f32 %v5595_v33, %v5334_v0  ;;  %v6045_v41 = vpop.f32.mrb[126].mxu0  ;;  %12362 = vmatprep.subr.bf16.mxu0 %v12361_v35 }
 0x32f   : > { %v5315_v36 = vpop.f32.mrb[116].mxu1  ;;  %v11522_v20 = vpop.f32.mrb[127].mxu0  ;;  %12364 = vmatpush3.bf16.msra.mxu0 %v12361_v35 }
 0x330   : > { %v5335_v5 = vadd.f32 %v5315_v36, %v5170_v22  ;;  %v11456_v38 = vpop.f32.mrb[117].mxu1  ;;  %12366 = vmatprep.subr.bf16.mxu0 %v12365_v15 }
 0x332   : > { %v5620_v24 = vadd.f32 %v5600_v58, %v5335_v5  ;;  %v6050_v34 = vpop.f32.mrb[128].mxu0 }
 0x333   : > { %v5320_v32 = vpop.f32.mrb[118].mxu1  ;;  %v11525_v31 = vpop.f32.mrb[129].mxu0  ;;  %12368 = vmatpush3.bf16.msra.mxu0 %v12365_v15 }
 0x334   : > { %v5336_v47 = vadd.f32 %v5320_v32, %v5171_v7  ;;  %v11459_v59 = vpop.f32.mrb[119].mxu1  ;;  %v10280_v7 = vld [vmem:[%s18548_s5 + $0x60] sm:$0xff] }
 0x336   : > { %v5621_v18 = vadd.f32 %v5605_v60, %v5336_v47  ;;  %v10281_v60 = vld [vmem:[%s18548_s5 + $0x68] sm:$0xff] }
 0x337   : > { %v6055_v9 = vpop.f32.mrb[130].mxu0  ;;  %v12369_v46 = vpack.c.bf16 %v10281_v60, %v10280_v7 }
 0x338   : > { %v11528_v53 = vpop.f32.mrb[131].mxu0 }
 0x339   : > { %v5325_v61 = vpop.f32.mrb[120].mxu1  ;;  %12370 = vmatprep.subr.bf16.mxu0 %v12369_v46 }
 0x33a   : > { %v5337_v44 = vadd.f32 %v5325_v61, %v5172_v1  ;;  %v11462_v57 = vpop.f32.mrb[121].mxu1  ;;  %v10283_v1 = vld [vmem:[%s18548_s5 + $0x78] sm:$0xff]  ;;  %12372 = vmatpush3.bf16.msra.mxu0 %v12369_v46 }
 0x33b   : > { %v6060_v11 = vpop.f32.mrb[132].mxu0  ;;  %v12373_v23 = vpack.c.bf16 %v10283_v1, %v10282_v42 }
 0x33c   : > { %v5622_v8 = vadd.f32 %v5610_v43, %v5337_v44  ;;  %v11531_v48 = vpop.f32.mrb[133].mxu0 }
 0x33d   : > { %v5330_v2 = vpop.f32.mrb[122].mxu1  ;;  %12374 = vmatprep.subr.bf16.mxu0 %v12373_v23 }
 0x33e   : > { %v5338_v4 = vadd.f32 %v5330_v2, %v5173_v14  ;;  %v11465_v29 = vpop.f32.mrb[123].mxu1  ;;  %12376 = vmatpush3.bf16.msra.mxu0 %v12373_v23 }
 0x33f   : > { %v6065_v16 = vpop.f32.mrb[134].mxu0 }
 0x340   : > { %v5623_v39 = vadd.f32 %v5615_v62, %v5338_v4  ;;  %v11534_v10 = vpop.f32.mrb[135].mxu0 }
 0x341   : > { %v5880_v63 = vpop.f32.mrb[124].mxu1 }
 0x342   : > { %v5904_v19 = vadd.f32 %v5880_v63, %v5619_v25  ;;  %v11499_v37 = vpop.f32.mrb[125].mxu1  ;;  %v17566_v25 = vpack.c.bf16 %v7578_v27, %v7577_v28 }
 0x344   : > { %v6375_v33 = vpop.f32.mrb[136].mxu0  ;;  %v6069_v3 = vadd.f32 %v6045_v41, %v5904_v19  ;;  %12378 = vmatprep.subr.bf16.mxu0 %v17566_v25 }
 0x345   : > { %v11568_v17 = vpop.f32.mrb[137].mxu0  ;;  %v5885_v58 = vpop.f32.mrb[126].mxu1 }
 0x346   : > { %v5905_v22 = vadd.f32 %v5885_v58, %v5620_v24  ;;  %v11502_v55 = vpop.f32.mrb[127].mxu1 }
 0x348   : > { %v6380_v12 = vpop.f32.mrb[138].mxu0  ;;  %v6070_v51 = vadd.f32 %v6050_v34, %v5905_v22 }
 0x349   : > { %v11571_v26 = vpop.f32.mrb[139].mxu0  ;;  %v5890_v49 = vpop.f32.mrb[128].mxu1 }
 0x34a   : > { %v5906_v43 = vadd.f32 %v5890_v49, %v5621_v18  ;;  %v11505_v45 = vpop.f32.mrb[129].mxu1 }
 0x34c   : > { %v6385_v14 = vpop.f32.mrb[140].mxu0  ;;  %v6071_v62 = vadd.f32 %v6055_v9, %v5906_v43 }
 0x34d   : > { %v11574_v56 = vpop.f32.mrb[141].mxu0  ;;  %v5895_v13 = vpop.f32.mrb[130].mxu1 }
 0x34e   : > { %v5907_v0 = vadd.f32 %v5895_v13, %v5622_v8  ;;  %v11508_v21 = vpop.f32.mrb[131].mxu1 }
 0x350   : > { %v6072_v36 = vadd.f32 %v6060_v11, %v5907_v0 }
 0x351   : > { %v6390_v41 = vpop.f32.mrb[142].mxu0 }
 0x352   : > { %v11577_v20 = vpop.f32.mrb[143].mxu0  ;;  %v5900_v5 = vpop.f32.mrb[132].mxu1 }
 0x353   : > { %v5908_v38 = vadd.f32 %v5900_v5, %v5623_v39  ;;  %v11511_v24 = vpop.f32.mrb[133].mxu1 }
 0x355   : > { %v6073_v32 = vadd.f32 %v6065_v16, %v5908_v38 }
 0x356   : > { %v6395_v34 = vpop.f32.mrb[144].mxu0 }
 0x357   : > { %v11580_v31 = vpop.f32.mrb[145].mxu0  ;;  %v6210_v47 = vpop.f32.mrb[134].mxu1 }
 0x358   : > { %v6234_v59 = vadd.f32 %v6210_v47, %v6069_v3  ;;  %v11545_v18 = vpop.f32.mrb[135].mxu1 }
 0x35a   : > { %v6685_v9 = vpop.f32.mrb[146].mxu0  ;;  %v6399_v53 = vadd.f32 %v6375_v33, %v6234_v59 }
 0x35b   : > { %v11614_v61 = vpop.f32.mrb[147].mxu0  ;;  %v6215_v44 = vpop.f32.mrb[136].mxu1 }
 0x35c   : > { %v6235_v57 = vadd.f32 %v6215_v44, %v6070_v51  ;;  %v11548_v8 = vpop.f32.mrb[137].mxu1 }
 0x35e   : > { %v6690_v11 = vpop.f32.mrb[148].mxu0  ;;  %v6400_v48 = vadd.f32 %v6380_v12, %v6235_v57 }
 0x35f   : > { %v11617_v2 = vpop.f32.mrb[149].mxu0  ;;  %v6220_v4 = vpop.f32.mrb[138].mxu1 }
 0x360   : > { %v6236_v29 = vadd.f32 %v6220_v4, %v6071_v62  ;;  %v11551_v39 = vpop.f32.mrb[139].mxu1 }
 0x362   : > { %v6695_v10 = vpop.f32.mrb[150].mxu0  ;;  %v6401_v63 = vadd.f32 %v6385_v14, %v6236_v29 }
 0x363   : > { %v11620_v30 = vpop.f32.mrb[151].mxu0  ;;  %v6225_v16 = vpop.f32.mrb[140].mxu1 }
 0x364   : > { %v6237_v6 = vadd.f32 %v6225_v16, %v6072_v36  ;;  %v11554_v19 = vpop.f32.mrb[141].mxu1 }
 0x366   : > { %v6700_v37 = vpop.f32.mrb[152].mxu0  ;;  %v6402_v35 = vadd.f32 %v6390_v41, %v6237_v6 }
 0x367   : > { %v11623_v3 = vpop.f32.mrb[153].mxu0  ;;  %v6230_v33 = vpop.f32.mrb[142].mxu1 }
 0x368   : > { %v6238_v54 = vadd.f32 %v6230_v33, %v6073_v32  ;;  %v11557_v40 = vpop.f32.mrb[143].mxu1 }
 0x36a   : > { %v6705_v17 = vpop.f32.mrb[154].mxu0  ;;  %v6403_v58 = vadd.f32 %v6395_v34, %v6238_v54 }
 0x36b   : > { %v11626_v15 = vpop.f32.mrb[155].mxu0  ;;  %v6540_v22 = vpop.f32.mrb[144].mxu1 }
 0x36c   : > { %v6564_v55 = vadd.f32 %v6540_v22, %v6399_v53  ;;  %v11591_v12 = vpop.f32.mrb[145].mxu1 }
 0x36e   : > { %v6995_v51 = vpop.f32.mrb[156].mxu0  ;;  %v6709_v7 = vadd.f32 %v6685_v9, %v6564_v55 }
 0x36f   : > { %v11660_v60 = vpop.f32.mrb[157].mxu0  ;;  %v6545_v42 = vpop.f32.mrb[146].mxu1 }
 0x370   : > { %v6565_v26 = vadd.f32 %v6545_v42, %v6400_v48  ;;  %v11594_v49 = vpop.f32.mrb[147].mxu1 }
 0x372   : > { %v7000_v46 = vpop.f32.mrb[158].mxu0  ;;  %v6710_v1 = vadd.f32 %v6690_v11, %v6565_v26 }
 0x373   : > { %v11663_v43 = vpop.f32.mrb[159].mxu0  ;;  %v6550_v45 = vpop.f32.mrb[148].mxu1 }
 0x374   : > { %v6566_v23 = vadd.f32 %v6550_v45, %v6401_v63  ;;  %v11597_v28 = vpop.f32.mrb[149].mxu1 }
 0x376   : > { %v6711_v14 = vadd.f32 %v6695_v10, %v6566_v23 }
 0x377   : > { %v7005_v27 = vpop.f32.mrb[160].mxu0 }
 0x378   : > { %v11666_v62 = vpop.f32.mrb[161].mxu0  ;;  %v6555_v56 = vpop.f32.mrb[150].mxu1 }
 0x379   : > { %v6567_v13 = vadd.f32 %v6555_v56, %v6402_v35  ;;  %v11600_v0 = vpop.f32.mrb[151].mxu1 }
 0x37a   : > { %v17572_v0 = vld [vmem:[%s18547_s4] ss:$0 sm:$0xff] }
 0x37b   : > { %v7010_v21 = vpop.f32.mrb[162].mxu0  ;;  %v6712_v41 = vadd.f32 %v6700_v37, %v6567_v13 }
 0x37c   : > { %v11669_v36 = vpop.f32.mrb[163].mxu0  ;;  %v6560_v20 = vpop.f32.mrb[152].mxu1 }
 0x37d   : > { %v6568_v5 = vadd.f32 %v6560_v20, %v6403_v58  ;;  %v11603_v38 = vpop.f32.mrb[153].mxu1 }
 0x37f   : > { %v7015_v24 = vpop.f32.mrb[164].mxu0  ;;  %v6713_v34 = vadd.f32 %v6705_v17, %v6568_v5 }
 0x380   : > { %v11672_v32 = vpop.f32.mrb[165].mxu0  ;;  %v6830_v31 = vpop.f32.mrb[154].mxu1 }
 0x381   : > { %v6854_v47 = vadd.f32 %v6830_v31, %v6709_v7  ;;  %v11637_v59 = vpop.f32.mrb[155].mxu1  ;;  %v19711_v31 = vld [vmem:[#allocation6_spill] sm:$0xff] }
 0x383   : > { %v7305_v18 = vpop.f32.mrb[166].mxu0  ;;  %v7019_v9 = vadd.f32 %v6995_v51, %v6854_v47 }
 0x384   : > { %v11706_v53 = vpop.f32.mrb[167].mxu0  ;;  %v6835_v61 = vpop.f32.mrb[156].mxu1 }
 0x385   : > { %v6855_v44 = vadd.f32 %v6835_v61, %v6710_v1  ;;  %v11640_v57 = vpop.f32.mrb[157].mxu1  ;;  %v7582_v53 = vld [vmem:[%s18548_s5 + $0x28] sm:$0xff] }
 0x387   : > { %v7310_v8 = vpop.f32.mrb[168].mxu0  ;;  %v7020_v11 = vadd.f32 %v7000_v46, %v6855_v44 }
 0x388   : > { %v11709_v48 = vpop.f32.mrb[169].mxu0  ;;  %v6840_v2 = vpop.f32.mrb[158].mxu1 }
 0x389   : > { %v6856_v4 = vadd.f32 %v6840_v2, %v6711_v14  ;;  %v11643_v29 = vpop.f32.mrb[159].mxu1 }
 0x38b   : > { %v7315_v39 = vpop.f32.mrb[170].mxu0  ;;  %v7021_v10 = vadd.f32 %v7005_v27, %v6856_v4 }
 0x38c   : > { %v11712_v63 = vpop.f32.mrb[171].mxu0  ;;  %v6845_v30 = vpop.f32.mrb[160].mxu1 }
 0x38d   : > { %v6857_v16 = vadd.f32 %v6845_v30, %v6712_v41  ;;  %v11646_v6 = vpop.f32.mrb[161].mxu1 }
 0x38f   : > { %v7320_v19 = vpop.f32.mrb[172].mxu0  ;;  %v7022_v37 = vadd.f32 %v7010_v21, %v6857_v16 }
 0x390   : > { %v11715_v35 = vpop.f32.mrb[173].mxu0  ;;  %v6850_v3 = vpop.f32.mrb[162].mxu1 }
 0x391   : > { %v6858_v33 = vadd.f32 %v6850_v3, %v6713_v34  ;;  %v11649_v54 = vpop.f32.mrb[163].mxu1  ;;  %v7579_v34 = vld [vmem:[%s18548_s5 + $0x10] sm:$0xff] }
 0x393   : > { %v7325_v40 = vpop.f32.mrb[174].mxu0  ;;  %v7023_v17 = vadd.f32 %v7015_v24, %v6858_v33 }
 0x394   : > { %v11718_v58 = vpop.f32.mrb[175].mxu0  ;;  %v7160_v15 = vpop.f32.mrb[164].mxu1 }
 0x395   : > { %v7184_v22 = vadd.f32 %v7160_v15, %v7019_v9  ;;  %v11683_v55 = vpop.f32.mrb[165].mxu1  ;;  %v7581_v9 = vld [vmem:[%s18548_s5 + $0x20] sm:$0xff] }
 0x396   : > { %v17596_v29 = vpack.c.bf16 %v7582_v53, %v7581_v9 }
 0x397   : > { %v7329_v12 = vadd.f32 %v7305_v18, %v7184_v22  ;;  %v7580_v18 = vld [vmem:[%s18548_s5 + $0x18] sm:$0xff] }
 0x398   : > { %v7165_v51 = vpop.f32.mrb[166].mxu1  ;;  %v17594_v4 = vpack.c.bf16 %v7580_v18, %v7579_v34 }
 0x399   : > { %v7185_v7 = vadd.f32 %v7165_v51, %v7020_v11  ;;  %v11686_v60 = vpop.f32.mrb[167].mxu1 }
 0x39b   : > { %v7330_v42 = vadd.f32 %v7310_v8, %v7185_v7 }
 0x39c   : > { %v7170_v26 = vpop.f32.mrb[168].mxu1 }
 0x39d   : > { %v7186_v49 = vadd.f32 %v7170_v26, %v7021_v10  ;;  %v11689_v46 = vpop.f32.mrb[169].mxu1 }
 0x39f   : > { %v7331_v1 = vadd.f32 %v7315_v39, %v7186_v49 }
 0x3a0   : > { %v7175_v43 = vpop.f32.mrb[170].mxu1 }
 0x3a1   : > { %v7187_v45 = vadd.f32 %v7175_v43, %v7022_v37  ;;  %v11692_v23 = vpop.f32.mrb[171].mxu1 }
 0x3a3   : > { %v7332_v28 = vadd.f32 %v7320_v19, %v7187_v45 }
 0x3a4   : > { %v7180_v27 = vpop.f32.mrb[172].mxu1 }
 0x3a5   : > { %v7188_v14 = vadd.f32 %v7180_v27, %v7023_v17  ;;  %v11695_v62 = vpop.f32.mrb[173].mxu1 }
 0x3a7   : > { %v7333_v56 = vadd.f32 %v7325_v40, %v7188_v14 }
 0x3a8   : > { %v7450_v13 = vpop.f32.mrb[174].mxu1 }
 0x3a9   : > { %v7474_v21 = vadd.f32 %v7450_v13, %v7329_v12  ;;  %v11729_v41 = vpop.f32.mrb[175].mxu1 }
 0x3ab   : > { %v7486_v36 = vadd.f32 %v17572_v0, %v7474_v21 }
 0x3ac   : > { %v7455_v20 = vpop.f32.mrb[176].mxu1 }
 0x3ad   : > { %v7491_v5 = vmax.f32 %v7486_v36, 0.0  ;;  %v7475_v38 = vadd.f32 %v7455_v20, %v7330_v42  ;;  %v11732_v24 = vpop.f32.mrb[177].mxu1 }
 0x3af   : > { %v7501_v32 = vcombine.high %v7491_v5, %v7491_v5  ;;  %v7508_v47 = vrot.slane %v7491_v5, %v19711_v31  ;;  %v7487_v59 = vadd.f32 %v17572_v0, %v7475_v38 }
 0x3b0   : > { %v7460_v61 = vpop.f32.mrb[178].mxu1 }
 0x3b1   : > { %v17590_v44 = vrot.slane %v7501_v32, %v19711_v31  ;;  %v17592_v57 = vcombine.high %v7508_v47, %v7508_v47  ;;  %v7492_v8 = vmax.f32 %v7487_v59, 0.0  ;;  %v11735_v11 = vpop.f32.mrb[179].mxu1  ;;  %v10272_v48 = vrot.slane %v7508_v47, 9 }
 0x3b2   : > { %v7476_v2 = vadd.f32 %v7460_v61, %v7331_v1 }
 0x3b3   : > { %v17600_v39 = vcombine.high %v17590_v44, %v17590_v44  ;;  %v7587_v10 = vrot.slane %v17592_v57, 7  ;;  %v7590_v63 = vrot.slane %v17590_v44, 7  ;;  %v7735_v30 = vcombine.low %v7508_v47, %v17592_v57 }
 0x3b4   : > { %v7518_v16 = vcombine.high %v7492_v8, %v7492_v8  ;;  %v17606_v6 = vrot.slane %v7492_v8, %v19711_v31  ;;  %v7488_v19 = vadd.f32 %v17572_v0, %v7476_v2  ;;  %v7465_v37 = vpop.f32.mrb[180].mxu1  ;;  %v7857_v35 = vcombine.low %v17592_v57, %v17590_v44 }
 0x3b5   : > { %v7589_v3 = vrot.slane %v7587_v10, 2  ;;  %v10273_v33 = vrot.slane %v17600_v39, 9  ;;  %v7477_v54 = vadd.f32 %v7465_v37, %v7332_v28  ;;  %v11738_v40 = vpop.f32.mrb[181].mxu1  ;;  %v17614_v58 = vsel %vm13095_vm8, %v10272_v48, %v7587_v10 }
 0x3b6   : > { %v7532_v15 = vrot.slane %v7518_v16, %v19711_v31  ;;  %v17619_v22 = vcombine.high %v17606_v6, %v17606_v6  ;;  %v7594_v55 = vrot.slane %v17606_v6, 7  ;;  %v7493_v12 = vmax.f32 %v7488_v19, 0.0 }
 0x3b7   : > { %v7489_v51 = vadd.f32 %v17572_v0, %v7477_v54  ;;  %v7591_v7 = vsel %vm13095_vm8, %v7589_v3, %v7590_v63  ;;  %v7736_v60 = vcombine.low %v17600_v39, %v17606_v6  ;;  %v17628_v42 = vrot.slane %v7735_v30, %v19711_v31 }
 0x3b8   : > { %v7534_v26 = vcombine.high %v7532_v15, %v7532_v15  ;;  %v7596_v49 = vrot.slane %v7594_v55, 2  ;;  %v7597_v46 = vrot.slane %v17619_v22, 7  ;;  %v10274_v1 = vrot.slane %v7532_v15, 9  ;;  %v7470_v43 = vpop.f32.mrb[182].mxu1 }
 0x3b9   : > { %v7535_v45 = vcombine.high %v7493_v12, %v7493_v12  ;;  %v7542_v23 = vrot.slane %v7493_v12, %v19711_v31  ;;  %v7494_v28 = vmax.f32 %v7489_v51, 0.0  ;;  %v7478_v27 = vadd.f32 %v7470_v43, %v7333_v56  ;;  %v11741_v14 = vpop.f32.mrb[183].mxu1 }
 0x3ba   : > { %v7601_v62 = vrot.slane %v7534_v26, 7  ;;  %v7752_v13 = vcombine.low %v7532_v15, %v7534_v26  ;;  %v7595_v21 = vsel %vm13095_vm8, %v10273_v33, %v7594_v55  ;;  %v7598_v41 = vsel %vm13095_vm8, %v7596_v49, %v7597_v46 }
 0x3bb   : > { %v7549_v36 = vrot.slane %v7535_v45, %v19711_v31  ;;  %v7550_v20 = vcombine.high %v7542_v23, %v7542_v23  ;;  %v7604_v5 = vrot.slane %v7542_v23, 7  ;;  %v7874_v38 = vcombine.low %v7534_v26, %v7542_v23 }
 0x3bc   : > { %v7603_v24 = vrot.slane %v7601_v62, 2  ;;  %v17638_v34 = vrot.slane %v7752_v13, %v19711_v31  ;;  %v7602_v56 = vsel %vm13095_vm8, %v10274_v1, %v7601_v62  ;;  %v7552_v32 = vcombine.high %v7494_v28, %v7494_v28 }
 0x3bd   : > { %v7551_v47 = vcombine.high %v7549_v36, %v7549_v36  ;;  %v10275_v59 = vrot.slane %v7550_v20, 9  ;;  %v7608_v18 = vrot.slane %v7549_v36, 7  ;;  %v7753_v9 = vcombine.low %v7550_v20, %v7549_v36 }
 0x3be   : > { %v7605_v53 = vsel %vm13095_vm8, %v7603_v24, %v7604_v5  ;;  %v17645_v61 = vrot.slane %v7874_v38, %v19711_v31  ;;  %v7559_v8 = vrot.slane %v7494_v28, %v19711_v31  ;;  %v7566_v11 = vrot.slane %v7552_v32, %v19711_v31 }
 0x3bf   : > { %v7609_v48 = vsel %vm13095_vm8, %v10275_v59, %v7608_v18  ;;  %v7610_v2 = vrot.slane %v7608_v18, 2  ;;  %v7611_v39 = vrot.slane %v7551_v47, 7  ;;  %v7639_v10 = vcombine.low %v7602_v56, %v7605_v53 }
 0x3c0   : > { %v17652_v63 = vrot.slane %v7753_v9, %v19711_v31  ;;  %v7875_v30 = vcombine.low %v7549_v36, %v7551_v47  ;;  %v7567_v16 = vcombine.high %v7559_v8, %v7559_v8  ;;  %v7568_v19 = vcombine.high %v7566_v11, %v7566_v11 }
 0x3c1   : > { %v7612_v37 = vsel %vm13095_vm8, %v7610_v2, %v7611_v39  ;;  %v17657_v3 = vrot.slane %v7639_v10, %v19711_v31  ;;  %v10308_v33 = vrot.slane %v7559_v8, 9  ;;  %v8077_v54 = vrot.slane %v7566_v11, 7  ;;  %v10362_v2 = vld [vmem:[%s18550_s7 + $0x48] sm:$0xff]  ;;  %v7583_v39 = vld [vmem:[%s18548_s5 + $0x30] sm:$0xff]  ;;  %v7584_v10 = vld [vmem:[%s18548_s5 + $0x38] sm:$0xff] }
 0x3c2   : > { %v7640_v40 = vcombine.low %v7609_v48, %v7612_v37  ;;  %v7982_v15 = vcombine.low %v7559_v8, %v7567_v16  ;;  %v8074_v55 = vrot.slane %v7567_v16, 7  ;;  %v8189_v12 = vcombine.low %v7567_v16, %v7566_v11 }
 0x3c3   : > { %v10339_v51 = vrot.slane %v7568_v19, 9  ;;  %v7490_v26 = vadd.f32 %v17572_v0, %v7478_v27  ;;  %v7622_v49 = vcombine.low %v17614_v58, %v7591_v7  ;;  %v7623_v46 = vcombine.low %v7595_v21, %v7598_v41 }
 0x3c4   : > { %v17662_v1 = vrot.slane %v7640_v40, %v19711_v31  ;;  %v17665_v43 = vrot.slane %v7982_v15, %v19711_v31  ;;  %v8075_v45 = vsel %vm13095_vm8, %v10308_v33, %v8074_v55  ;;  %v8076_v23 = vrot.slane %v8074_v55, 2  ;;  %v10363_v33 = vld [vmem:[%s18550_s7 + $0x50] sm:$0xff] }
 0x3c5   : > { %v17670_v28 = vrot.slane %v8189_v12, %v19711_v31  ;;  %v7495_v14 = vmax.f32 %v7490_v26, 0.0  ;;  %v7630_v62 = vrot.slane %v7622_v49, %v19711_v31  ;;  %v17674_v0 = vrot.slane %v7623_v46, %v19711_v31  ;;  %v10288_v12 = vld [vmem:[%s18548_s5 + $0x80] sm:$0xff]  ;;  %v10366_v46 = vld [vmem:[%s18550_s7 + $0x68] sm:$0xff] }
 0x3c6   : > { %v8078_v58 = vsel %vm13095_vm8, %v8076_v23, %v8077_v54  ;;  %v17680_v7 = vcombine.low %v17657_v3, %v17662_v1  ;;  %v17683_v27 = vrot.slane %v7736_v60, %v19711_v31  ;;  %v17687_v13 = vcombine.low %v17638_v34, %v17652_v63  ;;  %v10364_v54 = vld [vmem:[%s18550_s7 + $0x58] sm:$0xff]  ;;  %v10290_v23 = vld [vmem:[%s18548_s5 + $0x90] sm:$0xff] }
 0x3c7   : > { %v8089_v21 = vcombine.low %v8075_v45, %v8078_v58  ;;  %v7575_v41 = vrot.slane %v7495_v14, %v19711_v31  ;;  %v7638_v36 = vcombine.low %v7630_v62, %v17674_v0  ;;  %v7858_v20 = vcombine.low %v17606_v6, %v17619_v22  ;;  %v10291_v14 = vld [vmem:[%s18548_s5 + $0x98] sm:$0xff] }
 0x3c8   : > { %v7751_v5 = vcombine.low %v17628_v42, %v17683_v27  ;;  %v17699_v60 = vrot.slane %v7857_v35, %v19711_v31  ;;  %v17702_v38 = vrot.slane %v7875_v30, %v19711_v31  ;;  %v7981_v24 = vcombine.low %v17683_v27, %v17638_v34  ;;  %v10310_v34 = vld [vmem:[%s18548_s5 + $0x108] sm:$0xff] }
 0x3c9   : > { %v7576_v56 = vcombine.high %v7575_v41, %v7575_v41  ;;  %v8288_v32 = vcombine.low %v7568_v19, %v7575_v41  ;;  %v8378_v47 = vrot.slane %v7575_v41, 7  ;;  %11758 = vmatprep.mubr.msk.f32.mxu0 %vm1612_vm7, %v7638_v36  ;;  %v17708_v6 = vrot.slane %v7858_v20, %v19711_v31  ;;  %v10294_v36 = vld [vmem:[%s18548_s5 + $0xb0] sm:$0xff]  ;;  %v10295_v20 = vld [vmem:[%s18548_s5 + $0xb8] sm:$0xff] }
 0x3ca   : > { %11759 = vmatmul.mubr.msk.f32.vlgmr.msra.gmra.mrb[176].mxu0 %vm1612_vm7, %v17680_v7  ;;  %v17714_v44 = vcombine.low %v17645_v61, %v17702_v38  ;;  %v7990_v57 = vcombine.low %v17652_v63, %v17665_v43  ;;  %v8088_v35 = vcombine.low %v17674_v0, %v17657_v3  ;;  %v17721_v22 = vrot.slane %v8089_v21, %v19711_v31  ;;  %v10293_v21 = vld [vmem:[%s18548_s5 + $0xa8] sm:$0xff] }
 0x3cb   : > { %v8380_v42 = vrot.slane %v8378_v47, 2  ;;  %v8381_v59 = vrot.slane %v7576_v56, 7  ;;  %v8489_v18 = vcombine.low %v7575_v41, %v7576_v56  ;;  %12380 = vmatpush3.bf16.msra.mxu0 %v17566_v25  ;;  %11777 = vmatprep.mubr.msk.f32.mxu0 %vm1612_vm7, %v7751_v5  ;;  %v7873_v9 = vcombine.low %v17699_v60, %v17708_v6  ;;  %v10361_v25 = vld [vmem:[%s18550_s7 + $0x40] sm:$0xff]  ;;  %v10299_v56 = vld [vmem:[%s18548_s5 + $0xc8] sm:$0xff] }
 0x3cc   : > { %12382 = vmatprep.subr.bf16.mxu0 %v17594_v4  ;;  %v8097_v53 = vcombine.low %v17662_v1, %v17721_v22  ;;  %v8188_v8 = vcombine.low %v17708_v6, %v17645_v61  ;;  %v8197_v11 = vcombine.low %v17702_v38, %v17670_v28  ;;  %v17735_v48 = vrot.slane %v8288_v32, %v19711_v31  ;;  %v10298_v60 = vld [vmem:[%s18548_s5 + $0xc0] sm:$0xff]  ;;  %v10320_v3 = vld [vmem:[%s18548_s5 + $0x148] sm:$0xff] }
 0x3cd   : > { %v8379_v30 = vsel %vm13095_vm8, %v10339_v51, %v8378_v47  ;;  %v8382_v16 = vsel %vm13095_vm8, %v8380_v42, %v8381_v59  ;;  %v17763_v40 = vrot.slane %v8489_v18, %v19711_v31  ;;  %v12506_v15 = vpack.c.bf16 %v10362_v2, %v10361_v25  ;;  %v10289_v51 = vld [vmem:[%s18548_s5 + $0x88] sm:$0xff]  ;;  %v10300_v47 = vld [vmem:[%s18548_s5 + $0xd0] sm:$0xff]  ;;  %v10301_v42 = vld [vmem:[%s18548_s5 + $0xd8] sm:$0xff] }
 0x3ce   : > { %v8296_v19 = vcombine.low %v17665_v43, %v17735_v48  ;;  %v8392_v37 = vcombine.low %v8379_v30, %v8382_v16  ;;  %v12389_v17 = vpack.c.bf16 %v7584_v10, %v7583_v39  ;;  %v12509_v26 = vpack.c.bf16 %v10364_v54, %v10363_v33  ;;  %v10302_v18 = vld [vmem:[%s18548_s5 + $0xe0] sm:$0xff]  ;;  %v10304_v2 = vld [vmem:[%s18548_s5 + $0xf0] sm:$0xff]  ;;  %v10305_v39 = vld [vmem:[%s18548_s5 + $0xf8] sm:$0xff] }
 0x3cf   : > { %12384 = vmatpush3.bf16.msra.mxu0 %v17594_v4  ;;  %v8497_v4 = vcombine.low %v17670_v28, %v17763_v40  ;;  %12507 = vmatpush3.bf16.msra.mxu1 %v12506_v15  ;;  %v12393_v45 = vpack.c.bf16 %v10289_v51, %v10288_v12  ;;  %v12397_v58 = vpack.c.bf16 %v10291_v14, %v10290_v23  ;;  %v10309_v30 = vld [vmem:[%s18548_s5 + $0x100] sm:$0xff]  ;;  %v10312_v16 = vld [vmem:[%s18548_s5 + $0x118] sm:$0xff]  ;;  %v10314_v54 = vld [vmem:[%s18548_s5 + $0x128] sm:$0xff] }
 0x3d0   : > { %12386 = vmatprep.subr.bf16.mxu0 %v17596_v29  ;;  %v17767_v55 = vrot.slane %v8392_v37, %v19711_v31  ;;  %12508 = vmatprep.subr.bf16.mxu1 %v19358_v50  ;;  %v10365_v31 = vld [vmem:[%s18550_s7 + $0x60] sm:$0xff]  ;;  %v12405_v5 = vpack.c.bf16 %v10295_v20, %v10294_v36  ;;  %v12409_v32 = vpack.c.bf16 %v10299_v56, %v10298_v60  ;;  %v10316_v12 = vld [vmem:[%s18548_s5 + $0x138] sm:$0xff]  ;;  %v10325_v23 = vld [vmem:[%s18548_s5 + $0x170] sm:$0xff] }
 0x3d1   : > { %v12512_v62 = vpack.c.bf16 %v10366_v46, %v10365_v31  ;;  %v12413_v59 = vpack.c.bf16 %v10301_v42, %v10300_v47  ;;  %v12421_v10 = vpack.c.bf16 %v10305_v39, %v10304_v2  ;;  %v12425_v27 = vpack.c.bf16 %v10310_v34, %v10309_v30  ;;  %v10313_v33 = vld [vmem:[%s18548_s5 + $0x120] sm:$0xff]  ;;  %v10322_v51 = vld [vmem:[%s18548_s5 + $0x158] sm:$0xff]  ;;  %v10324_v46 = vld [vmem:[%s18548_s5 + $0x168] sm:$0xff] }
 0x3d2   : > { %v8400_v49 = vcombine.low %v17721_v22, %v17767_v55  ;;  %v12433_v15 = vpack.c.bf16 %v10314_v54, %v10313_v33  ;;  %v10323_v31 = vld [vmem:[%s18548_s5 + $0x160] sm:$0xff]  ;;  %v10326_v14 = vld [vmem:[%s18548_s5 + $0x178] sm:$0xff]  ;;  %v10330_v61 = vld [vmem:[%s18548_s5 + $0x188] sm:$0xff] }
 0x3d3   : > { %12388 = vmatpush3.bf16.msra.mxu0 %v17596_v29  ;;  %12510 = vmatpush3.bf16.msra.mxu1 %v12509_v26  ;;  %v10292_v29 = vld [vmem:[%s18548_s5 + $0xa0] sm:$0xff]  ;;  %v12453_v1 = vpack.c.bf16 %v10326_v14, %v10325_v23  ;;  %v10335_v36 = vld [vmem:[%s18548_s5 + $0x1b0] sm:$0xff]  ;;  %v10336_v20 = vld [vmem:[%s18548_s5 + $0x1b8] sm:$0xff] }
 0x3d4   : > { %12390 = vmatprep.subr.bf16.mxu0 %v12389_v17  ;;  %12511 = vmatprep.subr.bf16.mxu1 %v19358_v50  ;;  %v12401_v41 = vpack.c.bf16 %v10293_v21, %v10292_v29  ;;  %v10333_v29 = vld [vmem:[%s18548_s5 + $0x1a0] sm:$0xff]  ;;  %v10334_v21 = vld [vmem:[%s18548_s5 + $0x1a8] sm:$0xff]  ;;  %v10342_v60 = vld [vmem:[%s18548_s5 + $0x1d0] sm:$0xff] }
 0x3d5   : > { %v10340_v38 = vld [vmem:[%s18548_s5 + $0x1c0] sm:$0xff]  ;;  %v10343_v56 = vld [vmem:[%s18548_s5 + $0x1d8] sm:$0xff]  ;;  %v10345_v42 = vld [vmem:[%s18548_s5 + $0x1e8] sm:$0xff] }
 0x3d6   : > { %v10344_v47 = vld [vmem:[%s18548_s5 + $0x1e0] sm:$0xff]  ;;  %v10353_v2 = vld [vmem:[%s18548_s5 + $0x218] sm:$0xff]  ;;  %v10355_v30 = vld [vmem:[%s18548_s5 + $0x228] sm:$0xff] }
 0x3d7   : > { %12392 = vmatpush3.bf16.msra.mxu0 %v12389_v17  ;;  %12513 = vmatpush3.bf16.msra.mxu1 %v12512_v62  ;;  %v10315_v17 = vld [vmem:[%s18548_s5 + $0x130] sm:$0xff]  ;;  %v10332_v62 = vld [vmem:[%s18548_s5 + $0x198] sm:$0xff]  ;;  %v10350_v43 = vld [vmem:[%s18548_s5 + $0x200] sm:$0xff] }
 0x3d8   : > { %12394 = vmatprep.subr.bf16.mxu0 %v12393_v45  ;;  %12514 = vmatprep.subr.bf16.mxu1 %v19358_v50  ;;  %v12437_v63 = vpack.c.bf16 %v10316_v12, %v10315_v17  ;;  %v10434_v22 = vld [vmem:[%s18550_s7 + $0x240] sm:$0xff]  ;;  %v10367_v28 = vld [vmem:[%s18550_s7 + $0x70] sm:$0xff]  ;;  %v10368_v40 = vld [vmem:[%s18550_s7 + $0x78] sm:$0xff] }
 0x3d9   : > { %v10438_v54 = vld [vmem:[%s18550_s7 + $0x260] sm:$0xff]  ;;  %v12515_v12 = vpack.c.bf16 %v10368_v40, %v10367_v28  ;;  %v8589_v23 = vld [vmem:[%s18550_s7 + $0x8] sm:$0xff] }
 0x3da   : > { %11778 = vmatmul.mubr.msk.f32.vlgmr.msra.gmra.mrb[176].mxu0 %vm1612_vm7, %v17687_v13 }
 0x3db   : > { %12396 = vmatpush3.bf16.msra.mxu0 %v12393_v45  ;;  %11796 = vmatprep.mubr.msk.f32.mxu0 %vm1612_vm7, %v7873_v9  ;;  %v10303_v9 = vld [vmem:[%s18548_s5 + $0xe8] sm:$0xff]  ;;  %v12449_v45 = vpack.c.bf16 %v10324_v46, %v10323_v31 }
 0x3dc   : > { %12398 = vmatprep.subr.bf16.mxu0 %v12397_v58  ;;  %v12417_v25 = vpack.c.bf16 %v10303_v9, %v10302_v18  ;;  %v10346_v18 = vld [vmem:[%s18548_s5 + $0x1f0] sm:$0xff]  ;;  %v10347_v9 = vld [vmem:[%s18548_s5 + $0x1f8] sm:$0xff]  ;;  %12516 = vmatpush3.bf16.msra.mxu1 %v12515_v12  ;;  %v10453_v31 = vld [vmem:[%s18550_s7 + $0x2c8] sm:$0xff] }
 0x3dd   : > { %12517 = vmatprep.subr.bf16.mxu1 %v19358_v50  ;;  %v10489_v12 = vld [vmem:[%s18550_s7 + $0x3c8] sm:$0xff] }
 0x3df   : > { %12400 = vmatpush3.bf16.msra.mxu0 %v12397_v58 }
 0x3e0   : > { %12402 = vmatprep.subr.bf16.mxu0 %v12401_v41 }
 0x3e3   : > { %12404 = vmatpush3.bf16.msra.mxu0 %v12401_v41  ;;  %v12465_v41 = vpack.c.bf16 %v10334_v21, %v10333_v29  ;;  %v8590_v29 = vld [vmem:[%s18550_s7 + $0x10] sm:$0xff]  ;;  %v8591_v21 = vld [vmem:[%s18550_s7 + $0x18] sm:$0xff] }
 0x3e4   : > { %12406 = vmatprep.subr.bf16.mxu0 %v12405_v5 }
 0x3e7   : > { %12408 = vmatpush3.bf16.msra.mxu0 %v12405_v5  ;;  %v12469_v5 = vpack.c.bf16 %v10336_v20, %v10335_v36  ;;  %v12521_v36 = vpack.c.bf16 %v8591_v21, %v8590_v29  ;;  %v10456_v20 = vld [vmem:[%s18550_s7 + $0x2e0] sm:$0xff]  ;;  %v10494_v21 = vld [vmem:[%s18550_s7 + $0x3f0] sm:$0xff] }
 0x3e8   : > { %12410 = vmatprep.subr.bf16.mxu0 %v12409_v32 }
 0x3ea   : > { %11797 = vmatmul.mubr.msk.f32.vlgmr.msra.gmra.mrb[176].mxu0 %vm1612_vm7, %v17714_v44 }
 0x3eb   : > { %12412 = vmatpush3.bf16.msra.mxu0 %v12409_v32  ;;  %11815 = vmatprep.mubr.msk.f32.mxu0 %vm1612_vm7, %v7981_v24  ;;  %v10311_v24 = vld [vmem:[%s18548_s5 + $0x110] sm:$0xff]  ;;  %v12477_v32 = vpack.c.bf16 %v10343_v56, %v10342_v60 }
 0x3ec   : > { %12414 = vmatprep.subr.bf16.mxu0 %v12413_v59  ;;  %v12429_v37 = vpack.c.bf16 %v10312_v16, %v10311_v24  ;;  %v10357_v24 = vld [vmem:[%s18548_s5 + $0x238] sm:$0xff]  ;;  %v10458_v56 = vld [vmem:[%s18550_s7 + $0x2f0] sm:$0xff] }
 0x3ef   : > { %12416 = vmatpush3.bf16.msra.mxu0 %v12413_v59  ;;  %v12481_v59 = vpack.c.bf16 %v10345_v42, %v10344_v47  ;;  %v8594_v47 = vld [vmem:[%s18550_s7 + $0x30] sm:$0xff]  ;;  %v8595_v42 = vld [vmem:[%s18550_s7 + $0x38] sm:$0xff] }
 0x3f0   : > { %12418 = vmatprep.subr.bf16.mxu0 %v12417_v25 }
 0x3f3   : > { %12420 = vmatpush3.bf16.msra.mxu0 %v12417_v25  ;;  %v12485_v25 = vpack.c.bf16 %v10347_v9, %v10346_v18  ;;  %v12527_v18 = vpack.c.bf16 %v8595_v42, %v8594_v47  ;;  %v10470_v9 = vld [vmem:[%s18550_s7 + $0x340] sm:$0xff]  ;;  %v10391_v47 = vld [vmem:[%s18550_s7 + $0x110] sm:$0xff]  ;;  %v10392_v42 = vld [vmem:[%s18550_s7 + $0x118] sm:$0xff] }
 0x3f4   : > { %12422 = vmatprep.subr.bf16.mxu0 %v12421_v10 }
 0x3f7   : > { %12424 = vmatpush3.bf16.msra.mxu0 %v12421_v10  ;;  %v10354_v10 = vld [vmem:[%s18548_s5 + $0x220] sm:$0xff] }
 0x3f8   : > { %12426 = vmatprep.subr.bf16.mxu0 %v12425_v27  ;;  %v12497_v34 = vpack.c.bf16 %v10355_v30, %v10354_v10  ;;  %v10473_v10 = vld [vmem:[%s18550_s7 + $0x358] sm:$0xff]  ;;  %v10373_v30 = vld [vmem:[%s18550_s7 + $0x90] sm:$0xff] }
 0x3fa   : > { %11816 = vmatmul.mubr.msk.f32.vlgmr.msra.gmra.mrb[176].mxu0 %vm1612_vm7, %v7990_v57  ;;  %v10319_v57 = vld [vmem:[%s18548_s5 + $0x140] sm:$0xff] }
 0x3fb   : > { %12428 = vmatpush3.bf16.msra.mxu0 %v12425_v27  ;;  %11834 = vmatprep.mubr.msk.f32.mxu0 %vm1612_vm7, %v8088_v35  ;;  %v12441_v0 = vpack.c.bf16 %v10320_v3, %v10319_v57  ;;  %v10321_v35 = vld [vmem:[%s18548_s5 + $0x150] sm:$0xff]  ;;  %v10360_v3 = vld [vmem:[%s18549_s6] ss:$0 sm:$0xff] }
 0x3fc   : > { %12430 = vmatprep.subr.bf16.mxu0 %v12429_v37  ;;  %v12445_v26 = vpack.c.bf16 %v10322_v51, %v10321_v35  ;;  %v10356_v27 = vld [vmem:[%s18548_s5 + $0x230] sm:$0xff] }
 0x3fd   : > { %v12501_v16 = vpack.c.bf16 %v10357_v24, %v10356_v27 }
 0x3ff   : > { %12432 = vmatpush3.bf16.msra.mxu0 %v12429_v37  ;;  %v10437_v37 = vld [vmem:[%s18550_s7 + $0x258] sm:$0xff] }
 0x400   : > { %12434 = vmatprep.subr.bf16.mxu0 %v12433_v15 }
 0x403   : > { %12436 = vmatpush3.bf16.msra.mxu0 %v12433_v15  ;;  %v10439_v15 = vld [vmem:[%s18550_s7 + $0x268] sm:$0xff] }
 0x404   : > { %12438 = vmatprep.subr.bf16.mxu0 %v12437_v63  ;;  %v12620_v17 = vpack.c.bf16 %v10439_v15, %v10438_v54  ;;  %v10477_v54 = vld [vmem:[%s18550_s7 + $0x378] sm:$0xff]  ;;  %v10377_v15 = vld [vmem:[%s18550_s7 + $0xb0] sm:$0xff] }
 0x407   : > { %12440 = vmatpush3.bf16.msra.mxu0 %v12437_v63  ;;  %v10441_v63 = vld [vmem:[%s18550_s7 + $0x278] sm:$0xff] }
 0x408   : > { %12442 = vmatprep.subr.bf16.mxu0 %v12441_v0 }
 0x40a   : > { %11835 = vmatmul.mubr.msk.f32.vlgmr.msra.gmra.mrb[176].mxu0 %vm1612_vm7, %v8097_v53  ;;  %v10329_v53 = vld [vmem:[%s18548_s5 + $0x180] sm:$0xff] }
 0x40b   : > { %12444 = vmatpush3.bf16.msra.mxu0 %v12441_v0  ;;  %11853 = vmatprep.mubr.msk.f32.mxu0 %vm1612_vm7, %v8188_v8  ;;  %v12457_v6 = vpack.c.bf16 %v10330_v61, %v10329_v53  ;;  %v10331_v8 = vld [vmem:[%s18548_s5 + $0x190] sm:$0xff] }
 0x40c   : > { %12446 = vmatprep.subr.bf16.mxu0 %v12445_v26  ;;  %v12461_v58 = vpack.c.bf16 %v10332_v62, %v10331_v8  ;;  %v10454_v8 = vld [vmem:[%s18550_s7 + $0x2d0] sm:$0xff]  ;;  %v10455_v62 = vld [vmem:[%s18550_s7 + $0x2d8] sm:$0xff] }
 0x40f   : > { %12448 = vmatpush3.bf16.msra.mxu0 %v12445_v26  ;;  %v10452_v26 = vld [vmem:[%s18550_s7 + $0x2c0] sm:$0xff] }
 0x410   : > { %12450 = vmatprep.subr.bf16.mxu0 %v12449_v45  ;;  %v12638_v53 = vpack.c.bf16 %v10453_v31, %v10452_v26  ;;  %v10491_v26 = vld [vmem:[%s18550_s7 + $0x3d8] sm:$0xff] }
 0x413   : > { %12452 = vmatpush3.bf16.msra.mxu0 %v12449_v45  ;;  %v8588_v45 = vld [vmem:[%s18550_s7] sm:$0xff] }
 0x414   : > { %12454 = vmatprep.subr.bf16.mxu0 %v12453_v1 }
 0x417   : > { %12456 = vmatpush3.bf16.msra.mxu0 %v12453_v1 }
 0x418   : > { %12458 = vmatprep.subr.bf16.mxu0 %v12457_v6 }
 0x41a   : > { %11854 = vmatmul.mubr.msk.f32.vlgmr.msra.gmra.mrb[176].mxu0 %vm1612_vm7, %v8197_v11 }
 0x41b   : > { %12460 = vmatpush3.bf16.msra.mxu0 %v12457_v6  ;;  %11872 = vmatprep.mubr.msk.f32.mxu0 %vm1612_vm7, %v17687_v13  ;;  %v10341_v13 = vld [vmem:[%s18548_s5 + $0x1c8] sm:$0xff]  ;;  %v12518_v6 = vpack.c.bf16 %v8589_v23, %v8588_v45  ;;  %v10383_v45 = vld [vmem:[%s18550_s7 + $0xd8] sm:$0xff] }
 0x41c   : > { %12462 = vmatprep.subr.bf16.mxu0 %v12461_v58  ;;  %v12473_v11 = vpack.c.bf16 %v10341_v13, %v10340_v38  ;;  %v8592_v38 = vld [vmem:[%s18550_s7 + $0x20] sm:$0xff]  ;;  %v8593_v13 = vld [vmem:[%s18550_s7 + $0x28] sm:$0xff] }
 0x41d   : > { %v12524_v60 = vpack.c.bf16 %v8593_v13, %v8592_v38  ;;  %v10389_v13 = vld [vmem:[%s18550_s7 + $0x100] sm:$0xff] }
 0x41f   : > { %12464 = vmatpush3.bf16.msra.mxu0 %v12461_v58 }
 0x420   : > { %12466 = vmatprep.subr.bf16.mxu0 %v12465_v41 }
 0x423   : > { %12468 = vmatpush3.bf16.msra.mxu0 %v12465_v41  ;;  %v12641_v41 = vpack.c.bf16 %v10455_v62, %v10454_v8  ;;  %v10384_v8 = vld [vmem:[%s18550_s7 + $0xe0] sm:$0xff]  ;;  %v10385_v62 = vld [vmem:[%s18550_s7 + $0xe8] sm:$0xff] }
 0x424   : > { %12470 = vmatprep.subr.bf16.mxu0 %v12469_v5  ;;  %v12548_v29 = vpack.c.bf16 %v10385_v62, %v10384_v8  ;;  %v10422_v8 = vld [vmem:[%s18550_s7 + $0x1f0] sm:$0xff]  ;;  %v10423_v62 = vld [vmem:[%s18550_s7 + $0x1f8] sm:$0xff] }
 0x427   : > { %12472 = vmatpush3.bf16.msra.mxu0 %v12469_v5  ;;  %v10457_v5 = vld [vmem:[%s18550_s7 + $0x2e8] sm:$0xff] }
 0x428   : > { %12474 = vmatprep.subr.bf16.mxu0 %v12473_v11 }
 0x42a   : > { %11873 = vmatmul.mubr.msk.f32.vlgmr.msra.gmra.mrb[176].mxu0 %vm1612_vm7, %v8296_v19  ;;  %v10352_v19 = vld [vmem:[%s18548_s5 + $0x210] sm:$0xff] }
 0x42b   : > { %12476 = vmatpush3.bf16.msra.mxu0 %v12473_v11  ;;  %11891 = vmatprep.mubr.msk.f32.mxu0 %vm1612_vm7, %v17680_v7  ;;  %v10351_v7 = vld [vmem:[%s18548_s5 + $0x208] sm:$0xff]  ;;  %v12493_v39 = vpack.c.bf16 %v10353_v2, %v10352_v19  ;;  %v12644_v11 = vpack.c.bf16 %v10457_v5, %v10456_v20  ;;  %v10387_v20 = vld [vmem:[%s18550_s7 + $0xf8] sm:$0xff] }
 0x42c   : > { %12478 = vmatprep.subr.bf16.mxu0 %v12477_v32  ;;  %v12489_v48 = vpack.c.bf16 %v10351_v7, %v10350_v43  ;;  %v10371_v43 = vld [vmem:[%s18550_s7 + $0x80] sm:$0xff]  ;;  %v10372_v7 = vld [vmem:[%s18550_s7 + $0x88] sm:$0xff] }
 0x42d   : > { %v12530_v2 = vpack.c.bf16 %v10372_v7, %v10371_v43  ;;  %v10395_v43 = vld [vmem:[%s18550_s7 + $0x130] sm:$0xff]  ;;  %v10396_v7 = vld [vmem:[%s18550_s7 + $0x138] sm:$0xff] }
 0x42f   : > { %12480 = vmatpush3.bf16.msra.mxu0 %v12477_v32  ;;  %v10459_v32 = vld [vmem:[%s18550_s7 + $0x2f8] sm:$0xff] }
 0x430   : > { %12482 = vmatprep.subr.bf16.mxu0 %v12481_v59 }
 0x433   : > { %12484 = vmatpush3.bf16.msra.mxu0 %v12481_v59  ;;  %v12647_v59 = vpack.c.bf16 %v10459_v32, %v10458_v56 }
 0x434   : > { %12486 = vmatprep.subr.bf16.mxu0 %v12485_v25 }
 0x437   : > { %12488 = vmatpush3.bf16.msra.mxu0 %v12485_v25  ;;  %v10471_v25 = vld [vmem:[%s18550_s7 + $0x348] sm:$0xff] }
 0x438   : > { %12490 = vmatprep.subr.bf16.mxu0 %v12489_v48 }
 0x43a   : > { %11892 = vmatmul.mubr.msk.f32.vlgmr.msra.gmra.mrb[176].mxu0 %vm1612_vm7, %v8400_v49  ;;  %v10436_v49 = vld [vmem:[%s18550_s7 + $0x250] sm:$0xff] }
 0x43b   : > { %12492 = vmatpush3.bf16.msra.mxu0 %v12489_v48  ;;  %11910 = vmatprep.mubr.msk.f32.mxu0 %vm1612_vm7, %v17714_v44  ;;  %v10435_v44 = vld [vmem:[%s18550_s7 + $0x248] sm:$0xff]  ;;  %v12617_v33 = vpack.c.bf16 %v10437_v37, %v10436_v49  ;;  %v12662_v48 = vpack.c.bf16 %v10471_v25, %v10470_v9 }
 0x43c   : > { %12494 = vmatprep.subr.bf16.mxu0 %v12493_v39  ;;  %v12614_v55 = vpack.c.bf16 %v10435_v44, %v10434_v22  ;;  %v10475_v22 = vld [vmem:[%s18550_s7 + $0x368] sm:$0xff]  ;;  %v10375_v44 = vld [vmem:[%s18550_s7 + $0xa0] sm:$0xff] }
 0x43d   : > { %v10394_v9 = vld [vmem:[%s18550_s7 + $0x128] sm:$0xff] }
 0x43f   : > { %12496 = vmatpush3.bf16.msra.mxu0 %v12493_v39  ;;  %v10472_v39 = vld [vmem:[%s18550_s7 + $0x350] sm:$0xff] }
 0x440   : > { %12498 = vmatprep.subr.bf16.mxu0 %v12497_v34  ;;  %v12665_v27 = vpack.c.bf16 %v10473_v10, %v10472_v39 }
 0x443   : > { %12500 = vmatpush3.bf16.msra.mxu0 %v12497_v34  ;;  %v10374_v34 = vld [vmem:[%s18550_s7 + $0x98] sm:$0xff] }
 0x444   : > { %12502 = vmatprep.subr.bf16.mxu0 %v12501_v16  ;;  %v12533_v24 = vpack.c.bf16 %v10374_v34, %v10373_v30  ;;  %v10400_v30 = vld [vmem:[%s18550_s7 + $0x150] sm:$0xff]  ;;  %v10401_v34 = vld [vmem:[%s18550_s7 + $0x158] sm:$0xff] }
 0x447   : > { %12504 = vmatpush3.bf16.msra.mxu0 %v12501_v16  ;;  %v10474_v16 = vld [vmem:[%s18550_s7 + $0x360] sm:$0xff] }
 0x448   : > { %12613 = vmatprep.subr.bf16.mxu0 %v19358_v50  ;;  %v12668_v49 = vpack.c.bf16 %v10475_v22, %v10474_v16  ;;  %v10403_v16 = vld [vmem:[%s18550_s7 + $0x168] sm:$0xff] }
 0x44a   : > { %11911 = vmatmul.mubr.msk.f32.vlgmr.msra.gmra.mrb[176].mxu0 %vm1612_vm7, %v8497_v4  ;;  %v10440_v4 = vld [vmem:[%s18550_s7 + $0x270] sm:$0xff] }
 0x44b   : > { %12615 = vmatpush3.bf16.msra.mxu0 %v12614_v55  ;;  %12100 = vmatprep.mubr.msk.f32.mxu0 %vm12857_vm0, %v18971_v52  ;;  %v12623_v57 = vpack.c.bf16 %v10441_v63, %v10440_v4  ;;  %v10376_v55 = vld [vmem:[%s18550_s7 + $0xa8] sm:$0xff]  ;;  %v10488_v4 = vld [vmem:[%s18550_s7 + $0x3c0] sm:$0xff] }
 0x44c   : > { %12616 = vmatprep.subr.bf16.mxu0 %v19358_v50  ;;  %v12536_v37 = vpack.c.bf16 %v10376_v55, %v10375_v44  ;;  %v10380_v63 = vld [vmem:[%s18550_s7 + $0xc0] sm:$0xff]  ;;  %v10404_v44 = vld [vmem:[%s18550_s7 + $0x170] sm:$0xff]  ;;  %v10405_v55 = vld [vmem:[%s18550_s7 + $0x178] sm:$0xff] }
 0x44f   : > { %12618 = vmatpush3.bf16.msra.mxu0 %v12617_v33  ;;  %v10476_v33 = vld [vmem:[%s18550_s7 + $0x370] sm:$0xff] }
 0x450   : > { %12619 = vmatprep.subr.bf16.mxu0 %v19358_v50  ;;  %v12671_v28 = vpack.c.bf16 %v10477_v54, %v10476_v33  ;;  %v10408_v33 = vld [vmem:[%s18550_s7 + $0x188] sm:$0xff] }
 0x453   : > { %12621 = vmatpush3.bf16.msra.mxu0 %v12620_v17  ;;  %v10378_v17 = vld [vmem:[%s18550_s7 + $0xb8] sm:$0xff] }
 0x454   : > { %12622 = vmatprep.subr.bf16.mxu0 %v19358_v50  ;;  %v12539_v40 = vpack.c.bf16 %v10378_v17, %v10377_v15  ;;  %v10409_v17 = vld [vmem:[%s18550_s7 + $0x190] sm:$0xff] }
 0x457   : > { %12624 = vmatpush3.bf16.msra.mxu0 %v12623_v57  ;;  %v10381_v57 = vld [vmem:[%s18550_s7 + $0xc8] sm:$0xff] }
 0x458   : > { %12637 = vmatprep.subr.bf16.mxu0 %v19358_v50 }
 0x51d   : > { %v11912_v0 = vpop.f32.mrb[176].mxu0 }
 0x51e   : > { %v8585_v35 = vadd.f32 %v11912_v0, %v10360_v3  ;;  %v8566_v51 = vpop.f32.mrb[177].mxu0 }
 0x51f   : > { %v8584_v46 = vadd.f32 %v10360_v3, %v8566_v51  ;;  %v12686_v3 = vpack.c.bf16 %v10489_v12, %v10488_v4  ;;  %v10490_v51 = vld [vmem:[%s18550_s7 + $0x3d0] sm:$0xff]  ;;  %v10411_v4 = vld [vmem:[%s18550_s7 + $0x1a0] sm:$0xff]  ;;  %v10412_v12 = vld [vmem:[%s18550_s7 + $0x1a8] sm:$0xff] }
 0x520   : > { %v18051_v14 = vmax.f32 %v8585_v35, 0.0  ;;  %v12542_v35 = vpack.c.bf16 %v10381_v57, %v10380_v63  ;;  %v12689_v23 = vpack.c.bf16 %v10491_v26, %v10490_v51  ;;  %v12584_v63 = vpack.c.bf16 %v10412_v12, %v10411_v4  ;;  %v10413_v57 = vld [vmem:[%s18550_s7 + $0x1b0] sm:$0xff]  ;;  %v10417_v51 = vld [vmem:[%s18550_s7 + $0x1c8] sm:$0xff]  ;;  %v10482_v12 = vld [vmem:[%s18550_s7 + $0x398] sm:$0xff] }
 0x521   : > { %v18053_v1 = vmax.f32 %v8584_v46, 0.0  ;;  %v10382_v46 = vld [vmem:[%s18550_s7 + $0xd0] sm:$0xff] }
 0x522   : > { %v9341_v61 = vrot.slane %v18051_v14, 1  ;;  %v9507_v19 = vrot.slane %v18051_v14, 3  ;;  %v9673_v0 = vrot.slane %v18051_v14, 5  ;;  %v10481_v4 = vld [vmem:[%s18550_s7 + $0x390] sm:$0xff] }
 0x523   : > { %v8606_v58 = vrot.slane %v18053_v1, 1  ;;  %v8760_v31 = vrot.slane %v18053_v1, 2  ;;  %v8843_v32 = vrot.slane %v18053_v1, 3  ;;  %v8926_v10 = vrot.slane %v18053_v1, 4 }
 0x524   : > { %12101 = vmatmul.mubr.msk.f32.vlgmr.msra.gmra.mrb[178].mxu0 %vm1612_vm7, %v9341_v61  ;;  %v10492_v61 = vld [vmem:[%s18550_s7 + $0x3e0] sm:$0xff]  ;;  %v9009_v15 = vrot.slane %v18053_v1, 5 }
 0x525   : > { %12639 = vmatpush3.bf16.msra.mxu0 %v12638_v53  ;;  %11930 = vmatmul.mubr.msk.f32.vlgmr.msra.gmra.mrb[184].mxu1 %vm1612_vm7, %v8606_v58  ;;  %v12545_v53 = vpack.c.bf16 %v10383_v45, %v10382_v46  ;;  %v10418_v46 = vld [vmem:[%s18550_s7 + $0x1d0] sm:$0xff]  ;;  %v10419_v45 = vld [vmem:[%s18550_s7 + $0x1d8] sm:$0xff] }
 0x526   : > { %12519 = vmatpush3.bf16.msra.mxu1 %v12518_v6  ;;  %12640 = vmatprep.subr.bf16.mxu0 %v19358_v50  ;;  %v10493_v6 = vld [vmem:[%s18550_s7 + $0x3e8] sm:$0xff] }
 0x527   : > { %12520 = vmatprep.subr.bf16.mxu1 %v19358_v50  ;;  %12138 = vmatprep.mubr.msk.f32.mxu0 %vm12857_vm0, %v18971_v52  ;;  %v12692_v58 = vpack.c.bf16 %v10493_v6, %v10492_v61  ;;  %v10421_v61 = vld [vmem:[%s18550_s7 + $0x1e8] sm:$0xff] }
 0x528   : > { %11948 = vmatprep.mubr.msk.f32.mxu1 %vm12857_vm0, %v18971_v52 }
 0x529   : > { %12642 = vmatpush3.bf16.msra.mxu0 %v12641_v41  ;;  %v10495_v41 = vld [vmem:[%s18550_s7 + $0x3f8] sm:$0xff] }
 0x52a   : > { %12522 = vmatpush3.bf16.msra.mxu1 %v12521_v36  ;;  %12643 = vmatprep.subr.bf16.mxu0 %v19358_v50  ;;  %v10386_v36 = vld [vmem:[%s18550_s7 + $0xf0] sm:$0xff]  ;;  %v12695_v5 = vpack.c.bf16 %v10495_v41, %v10494_v21  ;;  %v10426_v21 = vld [vmem:[%s18550_s7 + $0x208] sm:$0xff] }
 0x52b   : > { %12523 = vmatprep.subr.bf16.mxu1 %v19358_v50  ;;  %v12551_v38 = vpack.c.bf16 %v10387_v20, %v10386_v36  ;;  %v9175_v36 = vrot.slane %v18053_v1, 7  ;;  %v10427_v20 = vld [vmem:[%s18550_s7 + $0x210] sm:$0xff] }
 0x52d   : > { %12645 = vmatpush3.bf16.msra.mxu0 %v12644_v11  ;;  %v10390_v11 = vld [vmem:[%s18550_s7 + $0x108] sm:$0xff] }
 0x52e   : > { %12525 = vmatpush3.bf16.msra.mxu1 %v12524_v60  ;;  %12646 = vmatprep.subr.bf16.mxu0 %v19358_v50  ;;  %v9839_v60 = vrot.slane %v18051_v14, 7  ;;  %v12554_v56 = vpack.c.bf16 %v10390_v11, %v10389_v13  ;;  %v10430_v13 = vld [vmem:[%s18550_s7 + $0x228] sm:$0xff] }
 0x52f   : > { %12526 = vmatprep.subr.bf16.mxu1 %v19358_v50 }
 0x531   : > { %12648 = vmatpush3.bf16.msra.mxu0 %v12647_v59  ;;  %v12557_v59 = vpack.c.bf16 %v10392_v42, %v10391_v47  ;;  %v10443_v47 = vld [vmem:[%s18550_s7 + $0x280] sm:$0xff]  ;;  %v10444_v42 = vld [vmem:[%s18550_s7 + $0x288] sm:$0xff] }
 0x532   : > { %12528 = vmatpush3.bf16.msra.mxu1 %v12527_v18  ;;  %12661 = vmatprep.subr.bf16.mxu0 %v19358_v50  ;;  %v10393_v18 = vld [vmem:[%s18550_s7 + $0x120] sm:$0xff] }
 0x533   : > { %12529 = vmatprep.subr.bf16.mxu1 %v19358_v50  ;;  %v12560_v25 = vpack.c.bf16 %v10394_v9, %v10393_v18  ;;  %v10445_v18 = vld [vmem:[%s18550_s7 + $0x290] sm:$0xff]  ;;  %v10446_v9 = vld [vmem:[%s18550_s7 + $0x298] sm:$0xff] }
 0x534   : > { %12139 = vmatmul.mubr.msk.f32.vlgmr.msra.gmra.mrb[180].mxu0 %vm1612_vm7, %v9507_v19  ;;  %v10398_v19 = vld [vmem:[%s18550_s7 + $0x140] sm:$0xff] }
 0x535   : > { %11949 = vmatmul.mubr.msk.f32.vlgmr.msra.gmra.mrb[186].mxu1 %vm1612_vm7, %v18053_v1  ;;  %12663 = vmatpush3.bf16.msra.mxu0 %v12662_v48  ;;  %v12563_v48 = vpack.c.bf16 %v10396_v7, %v10395_v43  ;;  %v10447_v43 = vld [vmem:[%s18550_s7 + $0x2a0] sm:$0xff]  ;;  %v10448_v7 = vld [vmem:[%s18550_s7 + $0x2a8] sm:$0xff] }
 0x536   : > { %12531 = vmatpush3.bf16.msra.mxu1 %v12530_v2  ;;  %12664 = vmatprep.subr.bf16.mxu0 %v19358_v50  ;;  %v10399_v2 = vld [vmem:[%s18550_s7 + $0x148] sm:$0xff] }
 0x537   : > { %12532 = vmatprep.subr.bf16.mxu1 %v19358_v50  ;;  %12176 = vmatprep.mubr.msk.f32.mxu0 %vm12857_vm0, %v18971_v52  ;;  %v12566_v39 = vpack.c.bf16 %v10399_v2, %v10398_v19  ;;  %v10449_v19 = vld [vmem:[%s18550_s7 + $0x2b0] sm:$0xff]  ;;  %v10450_v2 = vld [vmem:[%s18550_s7 + $0x2b8] sm:$0xff] }
 0x538   : > { %11967 = vmatprep.mubr.msk.f32.mxu1 %vm12857_vm0, %v18971_v52 }
 0x539   : > { %12666 = vmatpush3.bf16.msra.mxu0 %v12665_v27  ;;  %v12569_v27 = vpack.c.bf16 %v10401_v34, %v10400_v30  ;;  %v10462_v30 = vld [vmem:[%s18550_s7 + $0x308] sm:$0xff] }
 0x53a   : > { %12534 = vmatpush3.bf16.msra.mxu1 %v12533_v24  ;;  %12667 = vmatprep.subr.bf16.mxu0 %v19358_v50  ;;  %v10402_v24 = vld [vmem:[%s18550_s7 + $0x160] sm:$0xff] }
 0x53b   : > { %12535 = vmatprep.subr.bf16.mxu1 %v19358_v50  ;;  %v12572_v22 = vpack.c.bf16 %v10403_v16, %v10402_v24  ;;  %v10463_v24 = vld [vmem:[%s18550_s7 + $0x310] sm:$0xff]  ;;  %v10464_v16 = vld [vmem:[%s18550_s7 + $0x318] sm:$0xff] }
 0x53d   : > { %12669 = vmatpush3.bf16.msra.mxu0 %v12668_v49  ;;  %v12575_v49 = vpack.c.bf16 %v10405_v55, %v10404_v44  ;;  %v10465_v44 = vld [vmem:[%s18550_s7 + $0x320] sm:$0xff]  ;;  %v10466_v55 = vld [vmem:[%s18550_s7 + $0x328] sm:$0xff] }
 0x53e   : > { %12537 = vmatpush3.bf16.msra.mxu1 %v12536_v37  ;;  %12670 = vmatprep.subr.bf16.mxu0 %v19358_v50  ;;  %v10407_v37 = vld [vmem:[%s18550_s7 + $0x180] sm:$0xff] }
 0x53f   : > { %12538 = vmatprep.subr.bf16.mxu1 %v19358_v50  ;;  %v12578_v54 = vpack.c.bf16 %v10408_v33, %v10407_v37  ;;  %v10467_v37 = vld [vmem:[%s18550_s7 + $0x330] sm:$0xff]  ;;  %v10468_v33 = vld [vmem:[%s18550_s7 + $0x338] sm:$0xff] }
 0x541   : > { %12672 = vmatpush3.bf16.msra.mxu0 %v12671_v28  ;;  %v10410_v28 = vld [vmem:[%s18550_s7 + $0x198] sm:$0xff] }
 0x542   : > { %12540 = vmatpush3.bf16.msra.mxu1 %v12539_v40  ;;  %12685 = vmatprep.subr.bf16.mxu0 %v19358_v50  ;;  %v12581_v40 = vpack.c.bf16 %v10410_v28, %v10409_v17  ;;  %v10480_v17 = vld [vmem:[%s18550_s7 + $0x388] sm:$0xff] }
 0x543   : > { %12541 = vmatprep.subr.bf16.mxu1 %v19358_v50 }
 0x544   : > { %12177 = vmatmul.mubr.msk.f32.vlgmr.msra.gmra.mrb[182].mxu0 %vm1612_vm7, %v9673_v0 }
 0x545   : > { %11968 = vmatmul.mubr.msk.f32.vlgmr.msra.gmra.mrb[188].mxu1 %vm1612_vm7, %v8760_v31  ;;  %12687 = vmatpush3.bf16.msra.mxu0 %v12686_v3  ;;  %v10414_v3 = vld [vmem:[%s18550_s7 + $0x1b8] sm:$0xff]  ;;  %v9092_v31 = vrot.slane %v18053_v1, 6  ;;  %v10429_v1 = vld [vmem:[%s18550_s7 + $0x220] sm:$0xff] }
 0x546   : > { %12543 = vmatpush3.bf16.msra.mxu1 %v12542_v35  ;;  %12688 = vmatprep.subr.bf16.mxu0 %v19358_v50  ;;  %v12587_v0 = vpack.c.bf16 %v10414_v3, %v10413_v57  ;;  %v10416_v35 = vld [vmem:[%s18550_s7 + $0x1c0] sm:$0xff]  ;;  %v12608_v11 = vpack.c.bf16 %v10430_v13, %v10429_v1  ;;  %v10484_v3 = vld [vmem:[%s18550_s7 + $0x3a8] sm:$0xff] }
 0x547   : > { %12544 = vmatprep.subr.bf16.mxu1 %v19358_v50  ;;  %12214 = vmatprep.mubr.msk.f32.mxu0 %vm12857_vm0, %v18971_v52  ;;  %v12590_v26 = vpack.c.bf16 %v10417_v51, %v10416_v35  ;;  %v10483_v57 = vld [vmem:[%s18550_s7 + $0x3a0] sm:$0xff]  ;;  %v10485_v35 = vld [vmem:[%s18550_s7 + $0x3b0] sm:$0xff] }
 0x548   : > { %11986 = vmatprep.mubr.msk.f32.mxu1 %vm12857_vm0, %v18971_v52 }
 0x549   : > { %12690 = vmatpush3.bf16.msra.mxu0 %v12689_v23  ;;  %v12593_v23 = vpack.c.bf16 %v10419_v45, %v10418_v46 }
 0x54a   : > { %12546 = vmatpush3.bf16.msra.mxu1 %v12545_v53  ;;  %12691 = vmatprep.subr.bf16.mxu0 %v19358_v50  ;;  %v10420_v53 = vld [vmem:[%s18550_s7 + $0x1e0] sm:$0xff] }
 0x54b   : > { %12547 = vmatprep.subr.bf16.mxu1 %v19358_v50  ;;  %v12596_v6 = vpack.c.bf16 %v10421_v61, %v10420_v53 }
 0x54d   : > { %12693 = vmatpush3.bf16.msra.mxu0 %v12692_v58  ;;  %v12599_v58 = vpack.c.bf16 %v10423_v62, %v10422_v8 }
 0x54e   : > { %12549 = vmatpush3.bf16.msra.mxu1 %v12548_v29  ;;  %12694 = vmatprep.subr.bf16.mxu0 %v19358_v50  ;;  %v10425_v29 = vld [vmem:[%s18550_s7 + $0x200] sm:$0xff] }
 0x54f   : > { %12550 = vmatprep.subr.bf16.mxu1 %v19358_v50  ;;  %v12602_v41 = vpack.c.bf16 %v10426_v21, %v10425_v29 }
 0x551   : > { %12696 = vmatpush3.bf16.msra.mxu0 %v12695_v5  ;;  %v10428_v5 = vld [vmem:[%s18550_s7 + $0x218] sm:$0xff] }
 0x552   : > { %12552 = vmatpush3.bf16.msra.mxu1 %v12551_v38  ;;  %v12605_v38 = vpack.c.bf16 %v10428_v5, %v10427_v20 }
 0x553   : > { %12553 = vmatprep.subr.bf16.mxu1 %v19358_v50 }
 0x554   : > { %12215 = vmatmul.mubr.msk.f32.vlgmr.msra.gmra.mrb[184].mxu0 %vm1612_vm7, %v9839_v60  ;;  %v10431_v60 = vld [vmem:[%s18550_s7 + $0x230] sm:$0xff] }
 0x555   : > { %11987 = vmatmul.mubr.msk.f32.vlgmr.msra.gmra.mrb[190].mxu1 %vm1612_vm7, %v8843_v32 }
 0x556   : > { %12555 = vmatpush3.bf16.msra.mxu1 %v12554_v56  ;;  %12005 = vmatprep.mubr.msk.f32.mxu1 %vm12857_vm0, %v18971_v52  ;;  %v10432_v56 = vld [vmem:[%s18550_s7 + $0x238] sm:$0xff] }
 0x557   : > { %12556 = vmatprep.subr.bf16.mxu1 %v19358_v50  ;;  %v12611_v32 = vpack.c.bf16 %v10432_v56, %v10431_v60 }
 0x55a   : > { %12558 = vmatpush3.bf16.msra.mxu1 %v12557_v59  ;;  %v12626_v59 = vpack.c.bf16 %v10444_v42, %v10443_v47 }
 0x55b   : > { %12559 = vmatprep.subr.bf16.mxu1 %v19358_v50 }
 0x55e   : > { %12561 = vmatpush3.bf16.msra.mxu1 %v12560_v25  ;;  %v12629_v25 = vpack.c.bf16 %v10446_v9, %v10445_v18 }
 0x55f   : > { %12562 = vmatprep.subr.bf16.mxu1 %v19358_v50 }
 0x562   : > { %12564 = vmatpush3.bf16.msra.mxu1 %v12563_v48  ;;  %v12632_v48 = vpack.c.bf16 %v10448_v7, %v10447_v43 }
 0x563   : > { %12565 = vmatprep.subr.bf16.mxu1 %v19358_v50 }
 0x565   : > { %12006 = vmatmul.mubr.msk.f32.vlgmr.msra.gmra.mrb[192].mxu1 %vm1612_vm7, %v8926_v10  ;;  %v10461_v10 = vld [vmem:[%s18550_s7 + $0x300] sm:$0xff] }
 0x566   : > { %12567 = vmatpush3.bf16.msra.mxu1 %v12566_v39  ;;  %12024 = vmatprep.mubr.msk.f32.mxu1 %vm12857_vm0, %v18971_v52  ;;  %v12635_v39 = vpack.c.bf16 %v10450_v2, %v10449_v19  ;;  %v12650_v34 = vpack.c.bf16 %v10462_v30, %v10461_v10 }
 0x567   : > { %12568 = vmatprep.subr.bf16.mxu1 %v19358_v50 }
 0x56a   : > { %12570 = vmatpush3.bf16.msra.mxu1 %v12569_v27  ;;  %v9424_v27 = vrot.slane %v18051_v14, 2 }
 0x56b   : > { %12571 = vmatprep.subr.bf16.mxu1 %v19358_v50 }
 0x56e   : > { %12573 = vmatpush3.bf16.msra.mxu1 %v12572_v22  ;;  %v12653_v22 = vpack.c.bf16 %v10464_v16, %v10463_v24 }
 0x56f   : > { %12574 = vmatprep.subr.bf16.mxu1 %v19358_v50 }
 0x572   : > { %12576 = vmatpush3.bf16.msra.mxu1 %v12575_v49  ;;  %v12656_v49 = vpack.c.bf16 %v10466_v55, %v10465_v44 }
 0x573   : > { %12577 = vmatprep.subr.bf16.mxu1 %v19358_v50 }
 0x575   : > { %12025 = vmatmul.mubr.msk.f32.vlgmr.msra.gmra.mrb[194].mxu1 %vm1612_vm7, %v9009_v15  ;;  %v10479_v15 = vld [vmem:[%s18550_s7 + $0x380] sm:$0xff] }
 0x576   : > { %12579 = vmatpush3.bf16.msra.mxu1 %v12578_v54  ;;  %12043 = vmatprep.mubr.msk.f32.mxu1 %vm12857_vm0, %v18971_v52  ;;  %v12659_v54 = vpack.c.bf16 %v10468_v33, %v10467_v37  ;;  %v12674_v28 = vpack.c.bf16 %v10480_v17, %v10479_v15 }
 0x577   : > { %12580 = vmatprep.subr.bf16.mxu1 %v19358_v50 }
 0x57a   : > { %12582 = vmatpush3.bf16.msra.mxu1 %v12581_v40  ;;  %v9590_v40 = vrot.slane %v18051_v14, 4 }
 0x57b   : > { %12583 = vmatprep.subr.bf16.mxu1 %v19358_v50 }
 0x57e   : > { %12585 = vmatpush3.bf16.msra.mxu1 %v12584_v63  ;;  %v12677_v63 = vpack.c.bf16 %v10482_v12, %v10481_v4 }
 0x57f   : > { %12586 = vmatprep.subr.bf16.mxu1 %v19358_v50 }
 0x582   : > { %12588 = vmatpush3.bf16.msra.mxu1 %v12587_v0  ;;  %v12680_v0 = vpack.c.bf16 %v10484_v3, %v10483_v57 }
 0x583   : > { %12589 = vmatprep.subr.bf16.mxu1 %v19358_v50 }
 0x585   : > { %12044 = vmatmul.mubr.msk.f32.vlgmr.msra.gmra.mrb[196].mxu1 %vm1612_vm7, %v9092_v31 }
 0x586   : > { %12591 = vmatpush3.bf16.msra.mxu1 %v12590_v26  ;;  %12062 = vmatprep.mubr.msk.f32.mxu1 %vm12857_vm0, %v18971_v52  ;;  %v9756_v26 = vrot.slane %v18051_v14, 6 }
 0x587   : > { %12592 = vmatprep.subr.bf16.mxu1 %v19358_v50 }
 0x58a   : > { %12594 = vmatpush3.bf16.msra.mxu1 %v12593_v23 }
 0x58b   : > { %12595 = vmatprep.subr.bf16.mxu1 %v19358_v50 }
 0x58e   : > { %12597 = vmatpush3.bf16.msra.mxu1 %v12596_v6 }
 0x58f   : > { %12598 = vmatprep.subr.bf16.mxu1 %v19358_v50 }
 0x592   : > { %12600 = vmatpush3.bf16.msra.mxu1 %v12599_v58 }
 0x593   : > { %12601 = vmatprep.subr.bf16.mxu1 %v19358_v50 }
 0x595   : > { %12063 = vmatmul.mubr.msk.f32.vlgmr.msra.gmra.mrb[198].mxu1 %vm1612_vm7, %v9175_v36 }
 0x596   : > { %12603 = vmatpush3.bf16.msra.mxu1 %v12602_v41  ;;  %12081 = vmatprep.mubr.msk.f32.mxu1 %vm12857_vm0, %v18971_v52 }
 0x597   : > { %12604 = vmatprep.subr.bf16.mxu1 %v19358_v50 }
 0x59a   : > { %12606 = vmatpush3.bf16.msra.mxu1 %v12605_v38 }
 0x59b   : > { %12607 = vmatprep.subr.bf16.mxu1 %v19358_v50 }
 0x59e   : > { %12609 = vmatpush3.bf16.msra.mxu1 %v12608_v11 }
 0x59f   : > { %12610 = vmatprep.subr.bf16.mxu1 %v19358_v50 }
 0x5a2   : > { %12612 = vmatpush3.bf16.msra.mxu1 %v12611_v32 }
 0x5a3   : > { %12625 = vmatprep.subr.bf16.mxu1 %v19358_v50 }
 0x5a5   : > { %12082 = vmatmul.mubr.msk.f32.vlgmr.msra.gmra.mrb[200].mxu1 %vm1612_vm7, %v18051_v14 }
 0x5a6   : > { %12627 = vmatpush3.bf16.msra.mxu1 %v12626_v59  ;;  %12119 = vmatprep.mubr.msk.f32.mxu1 %vm12857_vm0, %v18971_v52 }
 0x5a7   : > { %12628 = vmatprep.subr.bf16.mxu1 %v19358_v50 }
 0x5aa   : > { %12630 = vmatpush3.bf16.msra.mxu1 %v12629_v25 }
 0x5ab   : > { %12631 = vmatprep.subr.bf16.mxu1 %v19358_v50 }
 0x5ae   : > { %12633 = vmatpush3.bf16.msra.mxu1 %v12632_v48 }
 0x5af   : > { %12634 = vmatprep.subr.bf16.mxu1 %v19358_v50 }
 0x5b2   : > { %12636 = vmatpush3.bf16.msra.mxu1 %v12635_v39 }
 0x5b3   : > { %12649 = vmatprep.subr.bf16.mxu1 %v19358_v50 }
 0x5b5   : > { %12120 = vmatmul.mubr.msk.f32.vlgmr.msra.gmra.mrb[202].mxu1 %vm1612_vm7, %v9424_v27 }
 0x5b6   : > { %12651 = vmatpush3.bf16.msra.mxu1 %v12650_v34  ;;  %12157 = vmatprep.mubr.msk.f32.mxu1 %vm12857_vm0, %v18971_v52 }
 0x5b7   : > { %12652 = vmatprep.subr.bf16.mxu1 %v19358_v50 }
 0x5ba   : > { %12654 = vmatpush3.bf16.msra.mxu1 %v12653_v22 }
 0x5bb   : > { %12655 = vmatprep.subr.bf16.mxu1 %v19358_v50 }
 0x5be   : > { %12657 = vmatpush3.bf16.msra.mxu1 %v12656_v49  ;;  %v9913_v49 = vld [vmem:[%s18551_s8] sm:$0x1] }
 0x5bf   : > { %12658 = vmatprep.subr.bf16.mxu1 %v19358_v50 }
 0x5c2   : > { %12660 = vmatpush3.bf16.msra.mxu1 %v12659_v54 }
 0x5c3   : > { %12673 = vmatprep.subr.bf16.mxu1 %v19358_v50 }
 0x5c5   : > { %12158 = vmatmul.mubr.msk.f32.vlgmr.msra.gmra.mrb[204].mxu1 %vm1612_vm7, %v9590_v40 }
 0x5c6   : > { %12675 = vmatpush3.bf16.msra.mxu1 %v12674_v28  ;;  %12195 = vmatprep.mubr.msk.f32.mxu1 %vm12857_vm0, %v18971_v52  ;;  %v10486_v52 = vld [vmem:[%s18550_s7 + $0x3b8] sm:$0xff] }
 0x5c7   : > { %12676 = vmatprep.subr.bf16.mxu1 %v19358_v50  ;;  %v12683_v51 = vpack.c.bf16 %v10486_v52, %v10485_v35 }
 0x5ca   : > { %12678 = vmatpush3.bf16.msra.mxu1 %v12677_v63 }
 0x5cb   : > { %12679 = vmatprep.subr.bf16.mxu1 %v19358_v50 }
 0x5ce   : > { %12681 = vmatpush3.bf16.msra.mxu1 %v12680_v0 }
 0x5cf   : > { %12682 = vmatprep.subr.bf16.mxu1 %v19358_v50 }
 0x5d2   : > { %12684 = vmatpush3.bf16.msra.mxu1 %v12683_v51 }
 0x5d5   : > { %12196 = vmatmul.mubr.msk.f32.vlgmr.msra.gmra.mrb[206].mxu1 %vm1612_vm7, %v9756_v26 }
 0x5f7   : > { %v9410_v31 = vpop.f32.mrb[178].mxu0 }
 0x5f8   : > { %v8675_v46 = vpop.f32.mrb[184].mxu1  ;;  %v12102_v45 = vpop.f32.mrb[179].mxu0 }
 0x5f9   : > { %v11931_v23 = vpop.f32.mrb[185].mxu1 }
 0x607   : > { %v9576_v53 = vpop.f32.mrb[180].mxu0 }
 0x608   : > { %v8747_v61 = vpop.f32.mrb[186].mxu1  ;;  %v12140_v6 = vpop.f32.mrb[181].mxu0 }
 0x609   : > { %v8748_v8 = vadd.f32 %v8747_v61, %v8675_v46  ;;  %v11950_v62 = vpop.f32.mrb[187].mxu1 }
 0x617   : > { %v9742_v58 = vpop.f32.mrb[182].mxu0 }
 0x618   : > { %v8829_v29 = vpop.f32.mrb[188].mxu1  ;;  %v12178_v21 = vpop.f32.mrb[183].mxu0 }
 0x619   : > { %v8833_v41 = vadd.f32 %v8829_v29, %v8748_v8  ;;  %v11969_v36 = vpop.f32.mrb[189].mxu1 }
 0x627   : > { %v9908_v50 = vpop.f32.mrb[184].mxu0 }
 0x628   : > { %v8912_v20 = vpop.f32.mrb[190].mxu1  ;;  %v12216_v5 = vpop.f32.mrb[185].mxu0 }
 0x629   : > { %v8916_v14 = vadd.f32 %v8912_v20, %v8833_v41  ;;  %v11988_v38 = vpop.f32.mrb[191].mxu1 }
 0x638   : > { %v8995_v1 = vpop.f32.mrb[192].mxu1 }
 0x639   : > { %v8999_v13 = vadd.f32 %v8995_v1, %v8916_v14  ;;  %v12007_v11 = vpop.f32.mrb[193].mxu1 }
 0x648   : > { %v9078_v60 = vpop.f32.mrb[194].mxu1 }
 0x649   : > { %v9082_v56 = vadd.f32 %v9078_v60, %v8999_v13  ;;  %v12026_v32 = vpop.f32.mrb[195].mxu1 }
 0x658   : > { %v9161_v47 = vpop.f32.mrb[196].mxu1 }
 0x659   : > { %v9165_v42 = vadd.f32 %v9161_v47, %v9082_v56  ;;  %v12045_v59 = vpop.f32.mrb[197].mxu1 }
 0x668   : > { %v9244_v18 = vpop.f32.mrb[198].mxu1 }
 0x669   : > { %v9248_v9 = vadd.f32 %v9244_v18, %v9165_v42  ;;  %v12064_v25 = vpop.f32.mrb[199].mxu1 }
 0x678   : > { %v9327_v43 = vpop.f32.mrb[200].mxu1 }
 0x679   : > { %v9331_v7 = vadd.f32 %v9327_v43, %v9248_v9  ;;  %v12083_v48 = vpop.f32.mrb[201].mxu1 }
 0x67b   : > { %v9414_v19 = vadd.f32 %v9410_v31, %v9331_v7 }
 0x688   : > { %v9493_v2 = vpop.f32.mrb[202].mxu1 }
 0x689   : > { %v9497_v39 = vadd.f32 %v9493_v2, %v9414_v19  ;;  %v12121_v10 = vpop.f32.mrb[203].mxu1 }
 0x68b   : > { %v9580_v30 = vadd.f32 %v9576_v53, %v9497_v39 }
 0x698   : > { %v9659_v34 = vpop.f32.mrb[204].mxu1 }
 0x699   : > { %v9663_v27 = vadd.f32 %v9659_v34, %v9580_v30  ;;  %v12159_v24 = vpop.f32.mrb[205].mxu1 }
 0x69b   : > { %v9746_v16 = vadd.f32 %v9742_v58, %v9663_v27 }
 0x6a8   : > { %v9825_v22 = vpop.f32.mrb[206].mxu1 }
 0x6a9   : > { %v9829_v44 = vadd.f32 %v9825_v22, %v9746_v16  ;;  %v12197_v55 = vpop.f32.mrb[207].mxu1 }
 0x6ab   : > { %v9912_v37 = vadd.f32 %v9908_v50, %v9829_v44 }
 0x6ad   : > { %v9914_v33 = vadd.f32 %v9913_v49, %v9912_v37 }
 0x6af   : > { %v9915_v54 = vmax.f32 %v9914_v33, 0.0 }
 0x6b1   : > { %9917 = vst.msk [vmem:[%s324_s27] sm:$0x1] %vm9916_vm14, %v9915_v54 }
 0x6b2   : > { %12805 = shalt.err (!%p12802_p3)
}
 0x6b3   : > { %s12806_s28 = scalar_lea.hbm %s18501_s16, 16  ;;  %s12810_s27 = scalar_lea.hbm %s18552_s9, 32 }
 0x6b4   : > { %p12807_p4 = scmp.ne.s32.totalorder %s18501_s16, %s12806_s28  ;;  %p12811_p9 = scmp.lt.u32.totalorder %s18501_s16, %s18552_s9 }
 0x6b5   : > { %p12812_p10 = scmp.lt.u32.totalorder %s12810_s27, %s12806_s28  ;;  %p12814_p12 = scmp.lt.u32.totalorder %s12806_s28, %s18501_s16 }
 0x6b6   : > { %p12808_p7 = pnand %p12807_p4, %p12949_p5 }
 0x6b7   : > { %p12813_p11 = por %p12812_p10, %p12811_p9 }
 0x6b8   : > { %p12809_p8 = pneg %p12808_p7 }
 0x6b9   : > { %p12815_p13 = por %p12814_p12, %p12813_p11 }
 0x6bb   : > { %p12816_p0 = pnand %p12815_p13, %p12809_p8 }
 0x6bd   : > { %12819 = shalt.err (!%p12816_p0)
}
 0x6be   : > { %12718 = dma.vmem_to_hbm [thread:$0]  (%p12949_p5), %s18503_s21, 16, %s18501_s16, %s9919_s24  }
 0x6bf PF: > { %p12724_p1 = scmp.ge.s32.totalorder %s12854_s12, 2  ;;  %s9943_s25 = sand.u32 1, %s12842_s30  }
 0x6c0   : > { %s9944_s13 = scalar_lea.sflag [#allocation3], %s9943_s25 }
 0x6c1   : > { %p12721_p2 = pnand %p12724_p1, %p12953_p6 }
 0x6c3   : > { %12837 = dma.done.wait (!%p12721_p2), %s9944_s13, 16  }
 0x6c4   : > { %12839 = vsyncadd (!%p12721_p2), %s9944_s13, 4294967280  ;;  %p19_p3 = scmp.ge.s32.totalorder %s12936_s15, 4   ;;  %s19713_s30 = smov %s12846_s10 }
 0x6c5   : > { %s19714_s10 = smov %s12850_s11  ;;  %s19715_s11 = smov %s12947_s18 }
 0x6c6   : > { %s19716_s12 = smov %s12936_s15  ;;  %21 = sbr.rel (!%p19_p3) target bundleno = 3 (0x3), region = 132 }
 0x6cd   :  { %9948 = vsyncpa [#allocation3], 1 }
 0x6ce   :  { %9950 = vsyncpa [#allocation3 + $0x1], 1 }

</bundles_post_ra>
